<compile_context>
chip_gen: v6e
topology: v6e:2x2x1
jax: 0.10.0
libtpu: 0.0.40
codegen_flags: <defaults>
</compile_context>

<pallas_src>
import functools

import jax
import jax.numpy as jnp
from jax.experimental import pallas as pl
from jax.experimental.pallas import tpu as pltpu

K = 3  # 3x3 convolutions, SAME padding


def _round_up(v, m):
    return ((v + m - 1) // m) * m


def _pick_rows_per_tile(h, w, max_rows=256):
    """Largest divisor r of h with r*w <= max_rows (fallback 1)."""
    best = 1
    for r in range(1, h + 1):
        if h % r == 0 and r * w <= max_rows:
            best = r
    return best


def _pick_batch_tile(n, max_b=4):
    """Largest divisor of n that is <= max_b (images per grid step)."""
    best = 1
    for b in range(1, min(n, max_b) + 1):
        if n % b == 0:
            best = b
    return best


def _residual_block_kernel(x_ref, w1_ref, s1_ref, b1_ref, a_ref,
                           w2_ref, s2_ref, b2_ref, o_ref,
                           xf_ref, mid_ref, *, W, MT, NT, MARGIN, B_TILE):
    """B_TILE images per grid step; spatial dims flattened to M = H*W rows.

    x_ref   : (B_TILE, M, C) f32   input, row-major spatial flatten
    w*_ref  : (3, 3C, C)     bf16  conv weights, row dy; rows blocks = dx taps
    s*/b*   : (1, C)         f32   folded BN scale / shift (conv bias included)
    a_ref   : (1,)           f32   PReLU slope (SMEM scalar)
    o_ref   : (B_TILE, M, C) f32
    xf/mid  : (2*MARGIN + M, 3C) bf16 widened staging buffers (dx taps side by
              side, column-edge masks folded in, zero dy halos).
    """
    M = MT * NT
    C = x_ref.shape[-1]
    C3 = 3 * C

    # ---- hoisted parameter loads (once per grid step) -----------------------
    w1_rows = tuple(w1_ref[dy] for dy in range(K))   # 3 x (3C, C) bf16
    w2_rows = tuple(w2_ref[dy] for dy in range(K))
    s1 = s1_ref[...]
    b1 = b1_ref[...]
    s2 = s2_ref[...]
    b2 = b2_ref[...]
    alpha = a_ref[0]                                   # scalar from SMEM

    # ---- column-edge masks generated in-kernel ------------------------------
    # not_last  zeroes the dx=0 (left)  tap at output column 0
    # not_first zeroes the dx=2 (right) tap at output column W-1
    col = jax.lax.broadcasted_iota(jnp.int32, (M, 1), 0) % W
    not_last = col != (W - 1)      # mask for the "+1 row" (left-tap) store
    not_first = col != 0           # mask for the "-1 row" (right-tap) store
    zero_bf = jnp.zeros((), jnp.bfloat16)

    # ---- zero the dy halos of both widened buffers (once per step) ----------
    # Data rows are fully rewritten per image; the channel blocks of the
    # boundary rows that are never written must stay zero, so one zeroing per
    # step covers every image processed in this step (keeps the grid axis
    # megacore-"parallel", and it is only ~2*(MARGIN+1)*3C bf16 of stores).
    halo = jnp.zeros((MARGIN + 1, C3), xf_ref.dtype)
    xf_ref[pl.ds(0, MARGIN + 1), :] = halo
    xf_ref[pl.ds(MARGIN + M - 1, MARGIN + 1), :] = halo
    mid_ref[pl.ds(0, MARGIN + 1), :] = halo
    mid_ref[pl.ds(MARGIN + M - 1, MARGIN + 1), :] = halo

    def conv3x3(src_ref, w_rows, base):
        """Fused 3x3 SAME conv for one M-tile.

        The three dx taps live side by side (channel blocks) in the widened
        buffer, so each dy row is a single (MT, 3C) @ (3C, C) matmul."""
        acc = jnp.dot(src_ref[pl.ds(base - W, MT), :], w_rows[0],
                      preferred_element_type=jnp.float32)
        acc = acc + jnp.dot(src_ref[pl.ds(base, MT), :], w_rows[1],
                            preferred_element_type=jnp.float32)
        acc = acc + jnp.dot(src_ref[pl.ds(base + W, MT), :], w_rows[2],
                            preferred_element_type=jnp.float32)
        return acc

    def stage_wide(dst_ref, vals_bf, row0, nrows, m_lo):
        """Write vals_bf (nrows, C) into the widened buffer as the 3 dx taps:
        centre at row r, left tap shifted +1 row, right tap shifted -1 row,
        with the column-edge masks folded in (so conv needs no masking)."""
        nl = not_last[m_lo:m_lo + nrows]
        nf = not_first[m_lo:m_lo + nrows]
        dst_ref[pl.ds(row0, nrows), pl.ds(C, C)] = vals_bf
        dst_ref[pl.ds(row0 + 1, nrows), pl.ds(0, C)] = jnp.where(nl, vals_bf, zero_bf)
        dst_ref[pl.ds(row0 - 1, nrows), pl.ds(2 * C, C)] = jnp.where(nf, vals_bf, zero_bf)

    for b in range(B_TILE):                    # images batched per grid step
        # Stage the input once (three full-block bf16 stores, no per-tile loop).
        x_bf = x_ref[b].astype(jnp.bfloat16)   # (M, C)
        stage_wide(xf_ref, x_bf, MARGIN, M, 0)

        # conv1 -> BN1 -> PReLU -> mid (bf16, widened layout feeding conv2).
        for mt in range(NT):
            m0 = mt * MT
            acc = conv3x3(xf_ref, w1_rows, MARGIN + m0)
            y = acc * s1 + b1
            y = jnp.where(y >= 0, y, alpha * y)
            stage_wide(mid_ref, y.astype(jnp.bfloat16), MARGIN + m0, MT, m0)

        # conv2 -> BN2 -> + residual (f32) -> out.
        for mt in range(NT):
            m0 = mt * MT
            acc = conv3x3(mid_ref, w2_rows, MARGIN + m0)
            y2 = acc * s2 + b2
            res = x_ref[b, pl.ds(m0, MT), :].astype(jnp.float32)
            o_ref[b, pl.ds(m0, MT), :] = (y2 + res).astype(o_ref.dtype)


def residual_block_pallas(x_nchw, params):
    """x_nchw: (N, C, H, W) float32 (PyTorch layout). Returns (N, C, H, W)."""
    x = jnp.transpose(x_nchw, (0, 2, 3, 1))      # NHWC, channels on lanes
    N, H, W, C = x.shape
    M = H * W
    x_flat = x.reshape(N, M, C)                  # contiguous collapse (free)

    MARGIN = _round_up(W + 1, 8)                 # halo rows for the dy=+-1 taps
    rpt = _pick_rows_per_tile(H, W, max_rows=256)
    MT, NT = rpt * W, H // rpt                   # MT is a multiple of W
    # TODO(synk): if W > 256 this degenerates to MT = W > max_rows; add column
    #             tiling for very wide images.
    R_TOT = M + 2 * MARGIN
    B_TILE = _pick_batch_tile(N)                 # images per grid step
    # NOTE: at tiny N this can make the grid extent 1; on v7x prefer B_TILE
    # such that N // B_TILE >= 2 so both TensorCores get work.

    # bf16 weights, the 3 dx taps of each dy row stacked on the contraction
    # dim: w[dy] is (3C, C) with row block dx*C:(dx+1)*C == w[dy, dx].
    w1 = params["w1"].reshape(K, K * C, C).astype(jnp.bfloat16)
    w2 = params["w2"].reshape(K, K * C, C).astype(jnp.bfloat16)

    kernel = functools.partial(_residual_block_kernel,
                               W=W, MT=MT, NT=NT, MARGIN=MARGIN, B_TILE=B_TILE)

    fixed2 = lambda n: (0, 0)
    fixed3 = lambda n: (0, 0, 0)
    batched = lambda n: (n, 0, 0)

    out_flat = pl.pallas_call(
        kernel,
        out_shape=jax.ShapeDtypeStruct((N, M, C), x.dtype),
        grid_spec=pltpu.PrefetchScalarGridSpec(
            num_scalar_prefetch=0,
            grid=(N // B_TILE,),
            in_specs=[
                pl.BlockSpec((B_TILE, M, C), batched),          # x (flattened)
                pl.BlockSpec((K, K * C, C), fixed3),            # w1 (bf16)
                pl.BlockSpec((1, C), fixed2),                   # scale1
                pl.BlockSpec((1, C), fixed2),                   # shift1
                pl.BlockSpec(memory_space=pltpu.MemorySpace.SMEM),  # PReLU alpha
                pl.BlockSpec((K, K * C, C), fixed3),            # w2 (bf16)
                pl.BlockSpec((1, C), fixed2),                   # scale2
                pl.BlockSpec((1, C), fixed2),                   # shift2
            ],
            out_specs=pl.BlockSpec((B_TILE, M, C), batched),
            scratch_shapes=[
                pltpu.VMEM((R_TOT, 3 * C), jnp.bfloat16),  # widened input taps
                pltpu.VMEM((R_TOT, 3 * C), jnp.bfloat16),  # widened conv1 taps
            ],
        ),
        compiler_params=pltpu.CompilerParams(
            dimension_semantics=("parallel",),
            vmem_limit_bytes=32 * 1024 * 1024),
    )(x_flat, w1, params["s1"], params["sh1"], params["alpha"],
      w2, params["s2"], params["sh2"])

    out = out_flat.reshape(N, H, W, C)
    return jnp.transpose(out, (0, 3, 1, 2))      # back to NCHW


def make_params(key, n_channels):
    """Deterministic synthetic parameters; BN + conv bias folded to scale/shift."""
    C = n_channels
    ks = jax.random.split(key, 12)
    eps = 1e-5

    def fold(gamma, beta, mean, var, conv_bias):
        s = gamma / jnp.sqrt(var + eps)
        sh = beta + (conv_bias - mean) * s
        return s.reshape(1, C), sh.reshape(1, C)

    w1 = 0.05 * jax.random.normal(ks[0], (K, K, C, C), jnp.float32)
    cb1 = 0.01 * jax.random.normal(ks[1], (C,), jnp.float32)
    g1 = 1.0 + 0.1 * jax.random.normal(ks[2], (C,), jnp.float32)
    b1 = 0.1 * jax.random.normal(ks[3], (C,), jnp.float32)
    m1 = 0.05 * jax.random.normal(ks[4], (C,), jnp.float32)
    v1 = 1.0 + 0.1 * jax.random.uniform(ks[5], (C,), jnp.float32)

    w2 = 0.05 * jax.random.normal(ks[6], (K, K, C, C), jnp.float32)
    cb2 = 0.01 * jax.random.normal(ks[7], (C,), jnp.float32)
    g2 = 1.0 + 0.1 * jax.random.normal(ks[8], (C,), jnp.float32)
    b2 = 0.1 * jax.random.normal(ks[9], (C,), jnp.float32)
    m2 = 0.05 * jax.random.normal(ks[10], (C,), jnp.float32)
    v2 = 1.0 + 0.1 * jax.random.uniform(ks[11], (C,), jnp.float32)

    s1, sh1 = fold(g1, b1, m1, v1, cb1)
    s2, sh2 = fold(g2, b2, m2, v2, cb2)
    alpha = jnp.full((1,), 0.25, jnp.float32)  # nn.PReLU() default slope

    kernel_params = dict(w1=w1, s1=s1, sh1=sh1, alpha=alpha,
                         w2=w2, s2=s2, sh2=sh2)
    raw = dict(w1=w1, cb1=cb1, g1=g1, b1=b1, m1=m1, v1=v1,
               w2=w2, cb2=cb2, g2=g2, b2=b2, m2=m2, v2=v2, alpha=0.25)
    return kernel_params, raw


def residual_block_ref(x_nchw, raw):
    """Pure-JAX reference (eval-mode BN, full f32), for correctness checking."""
    eps = 1e-5
    x = jnp.transpose(x_nchw, (0, 2, 3, 1))

    def conv(a, w, b):
        y = jax.lax.conv_general_dilated(
            a, w, (1, 1), "SAME",
            dimension_numbers=("NHWC", "HWIO", "NHWC"),
            precision=jax.lax.Precision.HIGHEST)
        return y + b

    def bn(y, g, b, m, v):
        return (y - m) / jnp.sqrt(v + eps) * g + b

    y = conv(x, raw["w1"], raw["cb1"])
    y = bn(y, raw["g1"], raw["b1"], raw["m1"], raw["v1"])
    y = jnp.where(y >= 0, y, raw["alpha"] * y)
    y = conv(y, raw["w2"], raw["cb2"])
    y = bn(y, raw["g2"], raw["b2"], raw["m2"], raw["v2"])
    y = y + x
    return jnp.transpose(y, (0, 3, 1, 2))


if __name__ == "__main__":
    N, C, H, W = 2, 64, 16, 16   # n_channels=64 is the module default
    key = jax.random.PRNGKey(0)
    kx, kp = jax.random.split(key)
    x = jax.random.normal(kx, (N, C, H, W), jnp.float32)

    kernel_params, raw_params = make_params(kp, C)

    out = residual_block_pallas(x, kernel_params)
    out = jax.block_until_ready(out)

    ref = jax.block_until_ready(residual_block_ref(x, raw_params))
    assert out.shape == (N, C, H, W)
    max_err = float(jnp.max(jnp.abs(out - ref)))
    assert max_err < 5e-2, f"max abs error {max_err}"

    print("KERNEL_OK")
</pallas_src>

<mosaic_0001>
module attributes {stable_mosaic.version = 11 : i64} {
  func.func @_residual_block_kernel(%arg0: i32, %arg1: memref<2x256x64xf32, #tpu.memory_space<vmem>>, %arg2: memref<3x192x64xbf16, #tpu.memory_space<vmem>>, %arg3: memref<1x64xf32, #tpu.memory_space<vmem>>, %arg4: memref<1x64xf32, #tpu.memory_space<vmem>>, %arg5: memref<1xf32, #tpu.memory_space<smem>>, %arg6: memref<3x192x64xbf16, #tpu.memory_space<vmem>>, %arg7: memref<1x64xf32, #tpu.memory_space<vmem>>, %arg8: memref<1x64xf32, #tpu.memory_space<vmem>>, %arg9: memref<2x256x64xf32, #tpu.memory_space<vmem>>, %arg10: memref<304x192xbf16, #tpu.memory_space<vmem>>, %arg11: memref<304x192xbf16, #tpu.memory_space<vmem>>) attributes {dimension_semantics = [#tpu.dimension_semantics<parallel>], iteration_bounds = array<i64: 1>, scalar_prefetch = 0 : i64, scratch_operands = 2 : i64, tpu.core_type = #tpu.core_type<tc>, window_params = [{transform_indices = @transform_0, window_bounds = array<i64: 2, 256, 64>}, {pipeline_mode = #tpu.pipeline_mode<synchronous>, transform_indices = @transform_1, window_bounds = array<i64: 3, 192, 64>}, {pipeline_mode = #tpu.pipeline_mode<synchronous>, transform_indices = @transform_2, window_bounds = array<i64: 1, 64>}, {pipeline_mode = #tpu.pipeline_mode<synchronous>, transform_indices = @transform_3, window_bounds = array<i64: 1, 64>}, {transform_indices = @transform_4, window_bounds = array<i64: 1>}, {pipeline_mode = #tpu.pipeline_mode<synchronous>, transform_indices = @transform_5, window_bounds = array<i64: 3, 192, 64>}, {pipeline_mode = #tpu.pipeline_mode<synchronous>, transform_indices = @transform_6, window_bounds = array<i64: 1, 64>}, {pipeline_mode = #tpu.pipeline_mode<synchronous>, transform_indices = @transform_7, window_bounds = array<i64: 1, 64>}, {transform_indices = @transform_8, window_bounds = array<i64: 2, 256, 64>}]} {
    %c0 = arith.constant 0 : index
    %c0_0 = arith.constant 0 : index
    %c0_1 = arith.constant 0 : index
    %0 = vector.load %arg2[%c0, %c0_0, %c0_1] : memref<3x192x64xbf16, #tpu.memory_space<vmem>>, vector<1x192x64xbf16>
    %1 = vector.shape_cast %0 : vector<1x192x64xbf16> to vector<192x64xbf16>
    %c1 = arith.constant 1 : index
    %c0_2 = arith.constant 0 : index
    %c0_3 = arith.constant 0 : index
    %2 = vector.load %arg2[%c1, %c0_2, %c0_3] : memref<3x192x64xbf16, #tpu.memory_space<vmem>>, vector<1x192x64xbf16>
    %3 = vector.shape_cast %2 : vector<1x192x64xbf16> to vector<192x64xbf16>
    %c2 = arith.constant 2 : index
    %c0_4 = arith.constant 0 : index
    %c0_5 = arith.constant 0 : index
    %4 = vector.load %arg2[%c2, %c0_4, %c0_5] : memref<3x192x64xbf16, #tpu.memory_space<vmem>>, vector<1x192x64xbf16>
    %5 = vector.shape_cast %4 : vector<1x192x64xbf16> to vector<192x64xbf16>
    %c0_6 = arith.constant 0 : index
    %c0_7 = arith.constant 0 : index
    %c0_8 = arith.constant 0 : index
    %6 = vector.load %arg6[%c0_6, %c0_7, %c0_8] : memref<3x192x64xbf16, #tpu.memory_space<vmem>>, vector<1x192x64xbf16>
    %7 = vector.shape_cast %6 : vector<1x192x64xbf16> to vector<192x64xbf16>
    %c1_9 = arith.constant 1 : index
    %c0_10 = arith.constant 0 : index
    %c0_11 = arith.constant 0 : index
    %8 = vector.load %arg6[%c1_9, %c0_10, %c0_11] : memref<3x192x64xbf16, #tpu.memory_space<vmem>>, vector<1x192x64xbf16>
    %9 = vector.shape_cast %8 : vector<1x192x64xbf16> to vector<192x64xbf16>
    %c2_12 = arith.constant 2 : index
    %c0_13 = arith.constant 0 : index
    %c0_14 = arith.constant 0 : index
    %10 = vector.load %arg6[%c2_12, %c0_13, %c0_14] : memref<3x192x64xbf16, #tpu.memory_space<vmem>>, vector<1x192x64xbf16>
    %11 = vector.shape_cast %10 : vector<1x192x64xbf16> to vector<192x64xbf16>
    %c0_15 = arith.constant 0 : index
    %c0_16 = arith.constant 0 : index
    %12 = vector.load %arg3[%c0_15, %c0_16] : memref<1x64xf32, #tpu.memory_space<vmem>>, vector<1x64xf32>
    %c0_17 = arith.constant 0 : index
    %c0_18 = arith.constant 0 : index
    %13 = vector.load %arg4[%c0_17, %c0_18] : memref<1x64xf32, #tpu.memory_space<vmem>>, vector<1x64xf32>
    %c0_19 = arith.constant 0 : index
    %c0_20 = arith.constant 0 : index
    %14 = vector.load %arg7[%c0_19, %c0_20] : memref<1x64xf32, #tpu.memory_space<vmem>>, vector<1x64xf32>
    %c0_21 = arith.constant 0 : index
    %c0_22 = arith.constant 0 : index
    %15 = vector.load %arg8[%c0_21, %c0_22] : memref<1x64xf32, #tpu.memory_space<vmem>>, vector<1x64xf32>
    %c0_23 = arith.constant 0 : index
    %16 = memref.load %arg5[%c0_23] : memref<1xf32, #tpu.memory_space<smem>>
    %17 = tpu.iota {dimensions = array<i32: 0>} : vector<256x1xi32>
    %c16_i32 = arith.constant 16 : i32
    %c0_i32 = arith.constant 0 : i32
    %18 = arith.cmpi eq, %c16_i32, %c0_i32 : i32
    %c1_i32 = arith.constant 1 : i32
    %19 = arith.select %18, %c1_i32, %c16_i32 : i32
    %20 = vector.broadcast %19 : i32 to vector<256x1xi32>
    %21 = arith.remsi %17, %20 : vector<256x1xi32>
    %c0_i32_24 = arith.constant 0 : i32
    %22 = vector.broadcast %c0_i32_24 : i32 to vector<256x1xi32>
    %23 = arith.cmpi ne, %21, %22 : vector<256x1xi32>
    %c0_i32_25 = arith.constant 0 : i32
    %24 = vector.broadcast %c0_i32_25 : i32 to vector<256x1xi32>
    %25 = arith.cmpi slt, %21, %24 : vector<256x1xi32>
    %c0_i32_26 = arith.constant 0 : i32
    %26 = arith.cmpi slt, %19, %c0_i32_26 : i32
    %27 = vector.broadcast %26 : i1 to vector<256x1xi1>
    %28 = vector.broadcast %27 : vector<256x1xi1> to vector<256x1xi1>
    %29 = arith.xori %25, %28 : vector<256x1xi1>
    %30 = arith.andi %29, %23 : vector<256x1xi1>
    %31 = vector.broadcast %19 : i32 to vector<256x1xi32>
    %32 = arith.addi %21, %31 : vector<256x1xi32>
    %33 = arith.select %30, %32, %21 : vector<256x1xi1>, vector<256x1xi32>
    %c15_i32 = arith.constant 15 : i32
    %34 = vector.broadcast %c15_i32 : i32 to vector<256x1xi32>
    %35 = arith.cmpi ne, %33, %34 : vector<256x1xi32>
    %c0_i32_27 = arith.constant 0 : i32
    %36 = vector.broadcast %c0_i32_27 : i32 to vector<256x1xi32>
    %37 = arith.cmpi ne, %33, %36 : vector<256x1xi32>
    %cst = arith.constant 0.000000e+00 : bf16
    %38 = vector.broadcast %cst : bf16 to vector<25x192xbf16>
    %c0_28 = arith.constant 0 : index
    %c0_29 = arith.constant 0 : index
    %39 = vector.load %arg10[%c0_28, %c0_29] : memref<304x192xbf16, #tpu.memory_space<vmem>>, vector<25x192xbf16>
    tpu.vector_store %arg10[%c0_28, %c0_29], %38 {strides = array<i32>} : memref<304x192xbf16, #tpu.memory_space<vmem>>, vector<25x192xbf16>,
    %c279 = arith.constant 279 : index
    %c0_30 = arith.constant 0 : index
    %40 = vector.load %arg10[%c279, %c0_30] : memref<304x192xbf16, #tpu.memory_space<vmem>>, vector<25x192xbf16>
    tpu.vector_store %arg10[%c279, %c0_30], %38 {strides = array<i32>} : memref<304x192xbf16, #tpu.memory_space<vmem>>, vector<25x192xbf16>,
    %c0_31 = arith.constant 0 : index
    %c0_32 = arith.constant 0 : index
    %41 = vector.load %arg11[%c0_31, %c0_32] : memref<304x192xbf16, #tpu.memory_space<vmem>>, vector<25x192xbf16>
    tpu.vector_store %arg11[%c0_31, %c0_32], %38 {strides = array<i32>} : memref<304x192xbf16, #tpu.memory_space<vmem>>, vector<25x192xbf16>,
    %c279_33 = arith.constant 279 : index
    %c0_34 = arith.constant 0 : index
    %42 = vector.load %arg11[%c279_33, %c0_34] : memref<304x192xbf16, #tpu.memory_space<vmem>>, vector<25x192xbf16>
    tpu.vector_store %arg11[%c279_33, %c0_34], %38 {strides = array<i32>} : memref<304x192xbf16, #tpu.memory_space<vmem>>, vector<25x192xbf16>,
    %c0_35 = arith.constant 0 : index
    %c0_36 = arith.constant 0 : index
    %c0_37 = arith.constant 0 : index
    %43 = vector.load %arg1[%c0_35, %c0_36, %c0_37] : memref<2x256x64xf32, #tpu.memory_space<vmem>>, vector<1x256x64xf32>
    %44 = vector.shape_cast %43 : vector<1x256x64xf32> to vector<256x64xf32>
    %45 = arith.truncf %44 : vector<256x64xf32> to vector<256x64xbf16>
    %c24 = arith.constant 24 : index
    %c64 = arith.constant 64 : index
    %46 = vector.load %arg10[%c24, %c64] : memref<304x192xbf16, #tpu.memory_space<vmem>>, vector<256x64xbf16>
    tpu.vector_store %arg10[%c24, %c64], %45 {strides = array<i32>} : memref<304x192xbf16, #tpu.memory_space<vmem>>, vector<256x64xbf16>,
    %cst_38 = arith.constant 0.000000e+00 : bf16
    %47 = vector.shape_cast %35 : vector<256x1xi1> to vector<256x1xi1>
    %48 = vector.broadcast %47 : vector<256x1xi1> to vector<256x64xi1>
    %49 = vector.broadcast %cst_38 : bf16 to vector<256x64xbf16>
    %50 = arith.select %48, %45, %49 : vector<256x64xi1>, vector<256x64xbf16>
    %c25 = arith.constant 25 : index
    %c0_39 = arith.constant 0 : index
    %51 = vector.load %arg10[%c25, %c0_39] : memref<304x192xbf16, #tpu.memory_space<vmem>>, vector<256x64xbf16>
    tpu.vector_store %arg10[%c25, %c0_39], %50 {strides = array<i32>} : memref<304x192xbf16, #tpu.memory_space<vmem>>, vector<256x64xbf16>,
    %cst_40 = arith.constant 0.000000e+00 : bf16
    %52 = vector.shape_cast %37 : vector<256x1xi1> to vector<256x1xi1>
    %53 = vector.broadcast %52 : vector<256x1xi1> to vector<256x64xi1>
    %54 = vector.broadcast %cst_40 : bf16 to vector<256x64xbf16>
    %55 = arith.select %53, %45, %54 : vector<256x64xi1>, vector<256x64xbf16>
    %c23 = arith.constant 23 : index
    %c128 = arith.constant 128 : index
    %56 = vector.load %arg10[%c23, %c128] : memref<304x192xbf16, #tpu.memory_space<vmem>>, vector<256x64xbf16>
    tpu.vector_store %arg10[%c23, %c128], %55 {strides = array<i32>} : memref<304x192xbf16, #tpu.memory_space<vmem>>, vector<256x64xbf16>,
    %c8 = arith.constant 8 : index
    %c0_41 = arith.constant 0 : index
    %57 = vector.load %arg10[%c8, %c0_41] : memref<304x192xbf16, #tpu.memory_space<vmem>>, vector<256x192xbf16>
    %cst_42 = arith.constant dense<0.000000e+00> : vector<256x64xf32>
    %58 = tpu.matmul %57, %1, %cst_42 {dimension_numbers = #tpu.dot_dimension_numbers<[1], [0], [0], [1], [0, 0, 1, 1], [], []>} : vector<256x192xbf16>, vector<192x64xbf16>, vector<256x64xf32> -> vector<256x64xf32>
    %c24_43 = arith.constant 24 : index
    %c0_44 = arith.constant 0 : index
    %59 = vector.load %arg10[%c24_43, %c0_44] : memref<304x192xbf16, #tpu.memory_space<vmem>>, vector<256x192xbf16>
    %cst_45 = arith.constant dense<0.000000e+00> : vector<256x64xf32>
    %60 = tpu.matmul %59, %3, %cst_45 {dimension_numbers = #tpu.dot_dimension_numbers<[1], [0], [0], [1], [0, 0, 1, 1], [], []>} : vector<256x192xbf16>, vector<192x64xbf16>, vector<256x64xf32> -> vector<256x64xf32>
    %61 = arith.addf %58, %60 : vector<256x64xf32>
    %c40 = arith.constant 40 : index
    %c0_46 = arith.constant 0 : index
    %62 = vector.load %arg10[%c40, %c0_46] : memref<304x192xbf16, #tpu.memory_space<vmem>>, vector<256x192xbf16>
    %cst_47 = arith.constant dense<0.000000e+00> : vector<256x64xf32>
    %63 = tpu.matmul %62, %5, %cst_47 {dimension_numbers = #tpu.dot_dimension_numbers<[1], [0], [0], [1], [0, 0, 1, 1], [], []>} : vector<256x192xbf16>, vector<192x64xbf16>, vector<256x64xf32> -> vector<256x64xf32>
    %64 = arith.addf %61, %63 : vector<256x64xf32>
    %65 = vector.broadcast %12 : vector<1x64xf32> to vector<256x64xf32>
    %66 = arith.mulf %64, %65 : vector<256x64xf32>
    %67 = vector.broadcast %13 : vector<1x64xf32> to vector<256x64xf32>
    %68 = arith.addf %66, %67 : vector<256x64xf32>
    %cst_48 = arith.constant 0.000000e+00 : f32
    %69 = vector.broadcast %cst_48 : f32 to vector<256x64xf32>
    %70 = arith.cmpf oge, %68, %69 : vector<256x64xf32>
    %71 = vector.broadcast %16 : f32 to vector<256x64xf32>
    %72 = arith.mulf %71, %68 : vector<256x64xf32>
    %73 = arith.select %70, %68, %72 : vector<256x64xi1>, vector<256x64xf32>
    %74 = arith.truncf %73 : vector<256x64xf32> to vector<256x64xbf16>
    %c24_49 = arith.constant 24 : index
    %c64_50 = arith.constant 64 : index
    %75 = vector.load %arg11[%c24_49, %c64_50] : memref<304x192xbf16, #tpu.memory_space<vmem>>, vector<256x64xbf16>
    tpu.vector_store %arg11[%c24_49, %c64_50], %74 {strides = array<i32>} : memref<304x192xbf16, #tpu.memory_space<vmem>>, vector<256x64xbf16>,
    %cst_51 = arith.constant 0.000000e+00 : bf16
    %76 = vector.shape_cast %35 : vector<256x1xi1> to vector<256x1xi1>
    %77 = vector.broadcast %76 : vector<256x1xi1> to vector<256x64xi1>
    %78 = vector.broadcast %cst_51 : bf16 to vector<256x64xbf16>
    %79 = arith.select %77, %74, %78 : vector<256x64xi1>, vector<256x64xbf16>
    %c25_52 = arith.constant 25 : index
    %c0_53 = arith.constant 0 : index
    %80 = vector.load %arg11[%c25_52, %c0_53] : memref<304x192xbf16, #tpu.memory_space<vmem>>, vector<256x64xbf16>
    tpu.vector_store %arg11[%c25_52, %c0_53], %79 {strides = array<i32>} : memref<304x192xbf16, #tpu.memory_space<vmem>>, vector<256x64xbf16>,
    %cst_54 = arith.constant 0.000000e+00 : bf16
    %81 = vector.shape_cast %37 : vector<256x1xi1> to vector<256x1xi1>
    %82 = vector.broadcast %81 : vector<256x1xi1> to vector<256x64xi1>
    %83 = vector.broadcast %cst_54 : bf16 to vector<256x64xbf16>
    %84 = arith.select %82, %74, %83 : vector<256x64xi1>, vector<256x64xbf16>
    %c23_55 = arith.constant 23 : index
    %c128_56 = arith.constant 128 : index
    %85 = vector.load %arg11[%c23_55, %c128_56] : memref<304x192xbf16, #tpu.memory_space<vmem>>, vector<256x64xbf16>
    tpu.vector_store %arg11[%c23_55, %c128_56], %84 {strides = array<i32>} : memref<304x192xbf16, #tpu.memory_space<vmem>>, vector<256x64xbf16>,
    %c8_57 = arith.constant 8 : index
    %c0_58 = arith.constant 0 : index
    %86 = vector.load %arg11[%c8_57, %c0_58] : memref<304x192xbf16, #tpu.memory_space<vmem>>, vector<256x192xbf16>
    %cst_59 = arith.constant dense<0.000000e+00> : vector<256x64xf32>
    %87 = tpu.matmul %86, %7, %cst_59 {dimension_numbers = #tpu.dot_dimension_numbers<[1], [0], [0], [1], [0, 0, 1, 1], [], []>} : vector<256x192xbf16>, vector<192x64xbf16>, vector<256x64xf32> -> vector<256x64xf32>
    %c24_60 = arith.constant 24 : index
    %c0_61 = arith.constant 0 : index
    %88 = vector.load %arg11[%c24_60, %c0_61] : memref<304x192xbf16, #tpu.memory_space<vmem>>, vector<256x192xbf16>
    %cst_62 = arith.constant dense<0.000000e+00> : vector<256x64xf32>
    %89 = tpu.matmul %88, %9, %cst_62 {dimension_numbers = #tpu.dot_dimension_numbers<[1], [0], [0], [1], [0, 0, 1, 1], [], []>} : vector<256x192xbf16>, vector<192x64xbf16>, vector<256x64xf32> -> vector<256x64xf32>
    %90 = arith.addf %87, %89 : vector<256x64xf32>
    %c40_63 = arith.constant 40 : index
    %c0_64 = arith.constant 0 : index
    %91 = vector.load %arg11[%c40_63, %c0_64] : memref<304x192xbf16, #tpu.memory_space<vmem>>, vector<256x192xbf16>
    %cst_65 = arith.constant dense<0.000000e+00> : vector<256x64xf32>
    %92 = tpu.matmul %91, %11, %cst_65 {dimension_numbers = #tpu.dot_dimension_numbers<[1], [0], [0], [1], [0, 0, 1, 1], [], []>} : vector<256x192xbf16>, vector<192x64xbf16>, vector<256x64xf32> -> vector<256x64xf32>
    %93 = arith.addf %90, %92 : vector<256x64xf32>
    %94 = vector.broadcast %14 : vector<1x64xf32> to vector<256x64xf32>
    %95 = arith.mulf %93, %94 : vector<256x64xf32>
    %96 = vector.broadcast %15 : vector<1x64xf32> to vector<256x64xf32>
    %97 = arith.addf %95, %96 : vector<256x64xf32>
    %c0_66 = arith.constant 0 : index
    %c0_67 = arith.constant 0 : index
    %c0_68 = arith.constant 0 : index
    %98 = vector.load %arg1[%c0_66, %c0_67, %c0_68] : memref<2x256x64xf32, #tpu.memory_space<vmem>>, vector<1x256x64xf32>
    %99 = vector.shape_cast %98 : vector<1x256x64xf32> to vector<256x64xf32>
    %100 = arith.addf %97, %99 : vector<256x64xf32>
    %c0_69 = arith.constant 0 : index
    %c0_70 = arith.constant 0 : index
    %c0_71 = arith.constant 0 : index
    %101 = vector.load %arg9[%c0_69, %c0_70, %c0_71] : memref<2x256x64xf32, #tpu.memory_space<vmem>>, vector<1x256x64xf32>
    %102 = vector.shape_cast %101 : vector<1x256x64xf32> to vector<256x64xf32>
    %103 = vector.shape_cast %100 : vector<256x64xf32> to vector<1x256x64xf32>
    tpu.vector_store %arg9[%c0_69, %c0_70, %c0_71], %103 {strides = array<i32>} : memref<2x256x64xf32, #tpu.memory_space<vmem>>, vector<1x256x64xf32>,
    %c1_72 = arith.constant 1 : index
    %c0_73 = arith.constant 0 : index
    %c0_74 = arith.constant 0 : index
    %104 = vector.load %arg1[%c1_72, %c0_73, %c0_74] : memref<2x256x64xf32, #tpu.memory_space<vmem>>, vector<1x256x64xf32>
    %105 = vector.shape_cast %104 : vector<1x256x64xf32> to vector<256x64xf32>
    %106 = arith.truncf %105 : vector<256x64xf32> to vector<256x64xbf16>
    %c24_75 = arith.constant 24 : index
    %c64_76 = arith.constant 64 : index
    %107 = vector.load %arg10[%c24_75, %c64_76] : memref<304x192xbf16, #tpu.memory_space<vmem>>, vector<256x64xbf16>
    tpu.vector_store %arg10[%c24_75, %c64_76], %106 {strides = array<i32>} : memref<304x192xbf16, #tpu.memory_space<vmem>>, vector<256x64xbf16>,
    %cst_77 = arith.constant 0.000000e+00 : bf16
    %108 = vector.shape_cast %35 : vector<256x1xi1> to vector<256x1xi1>
    %109 = vector.broadcast %108 : vector<256x1xi1> to vector<256x64xi1>
    %110 = vector.broadcast %cst_77 : bf16 to vector<256x64xbf16>
    %111 = arith.select %109, %106, %110 : vector<256x64xi1>, vector<256x64xbf16>
    %c25_78 = arith.constant 25 : index
    %c0_79 = arith.constant 0 : index
    %112 = vector.load %arg10[%c25_78, %c0_79] : memref<304x192xbf16, #tpu.memory_space<vmem>>, vector<256x64xbf16>
    tpu.vector_store %arg10[%c25_78, %c0_79], %111 {strides = array<i32>} : memref<304x192xbf16, #tpu.memory_space<vmem>>, vector<256x64xbf16>,
    %cst_80 = arith.constant 0.000000e+00 : bf16
    %113 = vector.shape_cast %37 : vector<256x1xi1> to vector<256x1xi1>
    %114 = vector.broadcast %113 : vector<256x1xi1> to vector<256x64xi1>
    %115 = vector.broadcast %cst_80 : bf16 to vector<256x64xbf16>
    %116 = arith.select %114, %106, %115 : vector<256x64xi1>, vector<256x64xbf16>
    %c23_81 = arith.constant 23 : index
    %c128_82 = arith.constant 128 : index
    %117 = vector.load %arg10[%c23_81, %c128_82] : memref<304x192xbf16, #tpu.memory_space<vmem>>, vector<256x64xbf16>
    tpu.vector_store %arg10[%c23_81, %c128_82], %116 {strides = array<i32>} : memref<304x192xbf16, #tpu.memory_space<vmem>>, vector<256x64xbf16>,
    %c8_83 = arith.constant 8 : index
    %c0_84 = arith.constant 0 : index
    %118 = vector.load %arg10[%c8_83, %c0_84] : memref<304x192xbf16, #tpu.memory_space<vmem>>, vector<256x192xbf16>
    %cst_85 = arith.constant dense<0.000000e+00> : vector<256x64xf32>
    %119 = tpu.matmul %118, %1, %cst_85 {dimension_numbers = #tpu.dot_dimension_numbers<[1], [0], [0], [1], [0, 0, 1, 1], [], []>} : vector<256x192xbf16>, vector<192x64xbf16>, vector<256x64xf32> -> vector<256x64xf32>
    %c24_86 = arith.constant 24 : index
    %c0_87 = arith.constant 0 : index
    %120 = vector.load %arg10[%c24_86, %c0_87] : memref<304x192xbf16, #tpu.memory_space<vmem>>, vector<256x192xbf16>
    %cst_88 = arith.constant dense<0.000000e+00> : vector<256x64xf32>
    %121 = tpu.matmul %120, %3, %cst_88 {dimension_numbers = #tpu.dot_dimension_numbers<[1], [0], [0], [1], [0, 0, 1, 1], [], []>} : vector<256x192xbf16>, vector<192x64xbf16>, vector<256x64xf32> -> vector<256x64xf32>
    %122 = arith.addf %119, %121 : vector<256x64xf32>
    %c40_89 = arith.constant 40 : index
    %c0_90 = arith.constant 0 : index
    %123 = vector.load %arg10[%c40_89, %c0_90] : memref<304x192xbf16, #tpu.memory_space<vmem>>, vector<256x192xbf16>
    %cst_91 = arith.constant dense<0.000000e+00> : vector<256x64xf32>
    %124 = tpu.matmul %123, %5, %cst_91 {dimension_numbers = #tpu.dot_dimension_numbers<[1], [0], [0], [1], [0, 0, 1, 1], [], []>} : vector<256x192xbf16>, vector<192x64xbf16>, vector<256x64xf32> -> vector<256x64xf32>
    %125 = arith.addf %122, %124 : vector<256x64xf32>
    %126 = vector.broadcast %12 : vector<1x64xf32> to vector<256x64xf32>
    %127 = arith.mulf %125, %126 : vector<256x64xf32>
    %128 = vector.broadcast %13 : vector<1x64xf32> to vector<256x64xf32>
    %129 = arith.addf %127, %128 : vector<256x64xf32>
    %cst_92 = arith.constant 0.000000e+00 : f32
    %130 = vector.broadcast %cst_92 : f32 to vector<256x64xf32>
    %131 = arith.cmpf oge, %129, %130 : vector<256x64xf32>
    %132 = vector.broadcast %16 : f32 to vector<256x64xf32>
    %133 = arith.mulf %132, %129 : vector<256x64xf32>
    %134 = arith.select %131, %129, %133 : vector<256x64xi1>, vector<256x64xf32>
    %135 = arith.truncf %134 : vector<256x64xf32> to vector<256x64xbf16>
    %c24_93 = arith.constant 24 : index
    %c64_94 = arith.constant 64 : index
    %136 = vector.load %arg11[%c24_93, %c64_94] : memref<304x192xbf16, #tpu.memory_space<vmem>>, vector<256x64xbf16>
    tpu.vector_store %arg11[%c24_93, %c64_94], %135 {strides = array<i32>} : memref<304x192xbf16, #tpu.memory_space<vmem>>, vector<256x64xbf16>,
    %cst_95 = arith.constant 0.000000e+00 : bf16
    %137 = vector.shape_cast %35 : vector<256x1xi1> to vector<256x1xi1>
    %138 = vector.broadcast %137 : vector<256x1xi1> to vector<256x64xi1>
    %139 = vector.broadcast %cst_95 : bf16 to vector<256x64xbf16>
    %140 = arith.select %138, %135, %139 : vector<256x64xi1>, vector<256x64xbf16>
    %c25_96 = arith.constant 25 : index
    %c0_97 = arith.constant 0 : index
    %141 = vector.load %arg11[%c25_96, %c0_97] : memref<304x192xbf16, #tpu.memory_space<vmem>>, vector<256x64xbf16>
    tpu.vector_store %arg11[%c25_96, %c0_97], %140 {strides = array<i32>} : memref<304x192xbf16, #tpu.memory_space<vmem>>, vector<256x64xbf16>,
    %cst_98 = arith.constant 0.000000e+00 : bf16
    %142 = vector.shape_cast %37 : vector<256x1xi1> to vector<256x1xi1>
    %143 = vector.broadcast %142 : vector<256x1xi1> to vector<256x64xi1>
    %144 = vector.broadcast %cst_98 : bf16 to vector<256x64xbf16>
    %145 = arith.select %143, %135, %144 : vector<256x64xi1>, vector<256x64xbf16>
    %c23_99 = arith.constant 23 : index
    %c128_100 = arith.constant 128 : index
    %146 = vector.load %arg11[%c23_99, %c128_100] : memref<304x192xbf16, #tpu.memory_space<vmem>>, vector<256x64xbf16>
    tpu.vector_store %arg11[%c23_99, %c128_100], %145 {strides = array<i32>} : memref<304x192xbf16, #tpu.memory_space<vmem>>, vector<256x64xbf16>,
    %c8_101 = arith.constant 8 : index
    %c0_102 = arith.constant 0 : index
    %147 = vector.load %arg11[%c8_101, %c0_102] : memref<304x192xbf16, #tpu.memory_space<vmem>>, vector<256x192xbf16>
    %cst_103 = arith.constant dense<0.000000e+00> : vector<256x64xf32>
    %148 = tpu.matmul %147, %7, %cst_103 {dimension_numbers = #tpu.dot_dimension_numbers<[1], [0], [0], [1], [0, 0, 1, 1], [], []>} : vector<256x192xbf16>, vector<192x64xbf16>, vector<256x64xf32> -> vector<256x64xf32>
    %c24_104 = arith.constant 24 : index
    %c0_105 = arith.constant 0 : index
    %149 = vector.load %arg11[%c24_104, %c0_105] : memref<304x192xbf16, #tpu.memory_space<vmem>>, vector<256x192xbf16>
    %cst_106 = arith.constant dense<0.000000e+00> : vector<256x64xf32>
    %150 = tpu.matmul %149, %9, %cst_106 {dimension_numbers = #tpu.dot_dimension_numbers<[1], [0], [0], [1], [0, 0, 1, 1], [], []>} : vector<256x192xbf16>, vector<192x64xbf16>, vector<256x64xf32> -> vector<256x64xf32>
    %151 = arith.addf %148, %150 : vector<256x64xf32>
    %c40_107 = arith.constant 40 : index
    %c0_108 = arith.constant 0 : index
    %152 = vector.load %arg11[%c40_107, %c0_108] : memref<304x192xbf16, #tpu.memory_space<vmem>>, vector<256x192xbf16>
    %cst_109 = arith.constant dense<0.000000e+00> : vector<256x64xf32>
    %153 = tpu.matmul %152, %11, %cst_109 {dimension_numbers = #tpu.dot_dimension_numbers<[1], [0], [0], [1], [0, 0, 1, 1], [], []>} : vector<256x192xbf16>, vector<192x64xbf16>, vector<256x64xf32> -> vector<256x64xf32>
    %154 = arith.addf %151, %153 : vector<256x64xf32>
    %155 = vector.broadcast %14 : vector<1x64xf32> to vector<256x64xf32>
    %156 = arith.mulf %154, %155 : vector<256x64xf32>
    %157 = vector.broadcast %15 : vector<1x64xf32> to vector<256x64xf32>
    %158 = arith.addf %156, %157 : vector<256x64xf32>
    %c1_110 = arith.constant 1 : index
    %c0_111 = arith.constant 0 : index
    %c0_112 = arith.constant 0 : index
    %159 = vector.load %arg1[%c1_110, %c0_111, %c0_112] : memref<2x256x64xf32, #tpu.memory_space<vmem>>, vector<1x256x64xf32>
    %160 = vector.shape_cast %159 : vector<1x256x64xf32> to vector<256x64xf32>
    %161 = arith.addf %158, %160 : vector<256x64xf32>
    %c1_113 = arith.constant 1 : index
    %c0_114 = arith.constant 0 : index
    %c0_115 = arith.constant 0 : index
    %162 = vector.load %arg9[%c1_113, %c0_114, %c0_115] : memref<2x256x64xf32, #tpu.memory_space<vmem>>, vector<1x256x64xf32>
    %163 = vector.shape_cast %162 : vector<1x256x64xf32> to vector<256x64xf32>
    %164 = vector.shape_cast %161 : vector<256x64xf32> to vector<1x256x64xf32>
    tpu.vector_store %arg9[%c1_113, %c0_114, %c0_115], %164 {strides = array<i32>} : memref<2x256x64xf32, #tpu.memory_space<vmem>>, vector<1x256x64xf32>,
    return
  }
  func.func @transform_0(%arg0: i32) -> (i32, i32, i32) {
    %c0_i32 = arith.constant 0 : i32
    %c0_i32_0 = arith.constant 0 : i32
    %c0_i32_1 = arith.constant 0 : i32
    return %arg0, %c0_i32, %c0_i32_0 : i32, i32, i32
  }
  func.func @transform_1(%arg0: i32) -> (i32, i32, i32) {
    %c0_i32 = arith.constant 0 : i32
    %c0_i32_0 = arith.constant 0 : i32
    %c0_i32_1 = arith.constant 0 : i32
    %c0_i32_2 = arith.constant 0 : i32
    return %c0_i32, %c0_i32_0, %c0_i32_1 : i32, i32, i32
  }
  func.func @transform_2(%arg0: i32) -> (i32, i32) {
    %c0_i32 = arith.constant 0 : i32
    %c0_i32_0 = arith.constant 0 : i32
    %c0_i32_1 = arith.constant 0 : i32
    return %c0_i32, %c0_i32_0 : i32, i32
  }
  func.func @transform_3(%arg0: i32) -> (i32, i32) {
    %c0_i32 = arith.constant 0 : i32
    %c0_i32_0 = arith.constant 0 : i32
    %c0_i32_1 = arith.constant 0 : i32
    return %c0_i32, %c0_i32_0 : i32, i32
  }
  func.func @transform_4(%arg0: i32) -> i32 {
    %c0_i32 = arith.constant 0 : i32
    %c0_i32_0 = arith.constant 0 : i32
    return %c0_i32 : i32
  }
  func.func @transform_5(%arg0: i32) -> (i32, i32, i32) {
    %c0_i32 = arith.constant 0 : i32
    %c0_i32_0 = arith.constant 0 : i32
    %c0_i32_1 = arith.constant 0 : i32
    %c0_i32_2 = arith.constant 0 : i32
    return %c0_i32, %c0_i32_0, %c0_i32_1 : i32, i32, i32
  }
  func.func @transform_6(%arg0: i32) -> (i32, i32) {
    %c0_i32 = arith.constant 0 : i32
    %c0_i32_0 = arith.constant 0 : i32
    %c0_i32_1 = arith.constant 0 : i32
    return %c0_i32, %c0_i32_0 : i32, i32
  }
  func.func @transform_7(%arg0: i32) -> (i32, i32) {
    %c0_i32 = arith.constant 0 : i32
    %c0_i32_0 = arith.constant 0 : i32
    %c0_i32_1 = arith.constant 0 : i32
    return %c0_i32, %c0_i32_0 : i32, i32
  }
  func.func @transform_8(%arg0: i32) -> (i32, i32, i32) {
    %c0_i32 = arith.constant 0 : i32
    %c0_i32_0 = arith.constant 0 : i32
    %c0_i32_1 = arith.constant 0 : i32
    return %arg0, %c0_i32, %c0_i32_0 : i32, i32, i32
  }
}

</mosaic_0001>

<bundles_post_ra>
// kernel: tpu_custom_call.1
= control target key start
LH: loop header
LB: loop body
LE: loop exit
PB: predicated region body
PF: predicated region fallthrough
CT: control target
= control target key end

     0   :  { %v186_v0 = vlaneseq  ;;  %vm667_vm0 = vcmask 1043456   ;;  %vm668_vm1 = vcmask 523268   ;;  %v18849_v4 = vmov 0   ;;  %s12468_s13 = smov 64   ;;  %s18821_s0 = inlined_call_operand.vmem [shape: f32[2,256,64], index: 0, kind: input, shape index: {}]   ;;  %s18822_s1 = inlined_call_operand.vmem [shape: bf16[3,192,64], index: 1, kind: input, shape index: {}]   ;;  %s18823_s5 = inlined_call_operand.vmem [shape: bf16[3,192,64], index: 5, kind: input, shape index: {}]   ;;  %s18824_s2 = inlined_call_operand.vmem [shape: f32[1,64], index: 2, kind: input, shape index: {}]   ;;  %s18825_s3 = inlined_call_operand.vmem [shape: f32[1,64], index: 3, kind: input, shape index: {}]   ;;  %s18826_s4 = inlined_call_operand.<no memory space> [shape: f32[1], index: 4, kind: input, shape index: {}]   ;;  %s18827_s6 = inlined_call_operand.vmem [shape: f32[1,64], index: 6, kind: input, shape index: {}]   ;;  %s18828_s7 = inlined_call_operand.vmem [shape: f32[1,64], index: 7, kind: input, shape index: {}]   ;;  %s18829_s8 = inlined_call_operand.vmem [shape: f32[2,256,64], index: 8, kind: output, shape index: {}]  }
   0x1   :  { %vm12514_vm2 = vmor %vm668_vm1, %vm667_vm0  ;;  %v708_v2 = vld [vmem:[%s18821_s0] sm:$0xff]  ;;  %v709_v3 = vld [vmem:[%s18821_s0 + $0x8] sm:$0xff]  ;;  %2845 = vmatprep.subr.bf16.mxu1 %v18849_v4  ;;  %2600 = vmatprep.subr.bf16.mxu0 %v18849_v4  ;;  %vm12467_vm3 = vmmov 1   ;;  %vm18831_vm10 = vsmask.f32 7950  ;;  %v19054_v36 = vmov 0 }
   0x2   :  { %v12526_v5 = vshrl.u32 %v186_v0, 7  ;;  %672 = vst.msk [vmem:[#allocation2 + $0x10] sm:$0xff] %vm12514_vm2, %v18849_v4  ;;  %v11971_v6 = vpack.c.bf16 %v708_v2, %v708_v2  ;;  %vm12531_vm4 = vmpackc.low %vm12467_vm3, %vm12467_vm3  ;;  %v12559_v8 = vld [vmem:[%s18821_s0 + $0x10] sm:$0xff]  ;;  %v11972_v9 = vpack.c.bf16 %v709_v3, %v709_v3  ;;  %v12564_v10 = vld [vmem:[%s18821_s0 + $0x18] sm:$0xff]  ;;  %v740_v23 = vpack.c.bf16 %v709_v3, %v708_v2 }
   0x3   :  { %671 = vst.msk [vmem:[#allocation2 + $0x8] sm:$0xff] %vm12514_vm2, %v18849_v4  ;;  %693 = vst.msk [vmem:[#allocation2 + $0x118] sm:$0xff] %vm12514_vm2, %v18849_v4  ;;  %v11973_v11 = vpack.c.bf16 %v12559_v8, %v12559_v8  ;;  %v12576_v16 = vld [vmem:[%s18821_s0 + $0x20] sm:$0xff]  ;;  %v12581_v17 = vsel %vm12531_vm4, 65537, %v18849_v4  ;;  %v11974_v18 = vpack.c.bf16 %v12564_v10, %v12564_v10  ;;  %v12589_v22 = vld [vmem:[%s18821_s0 + $0x28] sm:$0xff]  ;;  %v19057_v43 = vmov 0 }
   0x4   :  { %694 = vst.msk [vmem:[#allocation2 + $0x120] sm:$0xff] %vm12514_vm2, %v18849_v4  ;;  %697 = vst.msk [vmem:[#allocation3 + $0x8] sm:$0xff] %vm12514_vm2, %v18849_v4  ;;  %v188_v12 = vadd.s32 8, %v12526_v5  ;;  %v223_v13 = vand.u32 15, %v12526_v5  ;;  %836 = vrot.lane.b32.xlu0 %v11971_v6, %s12468_s13  ;;  %v189_v14 = vadd.s32 16, %v12526_v5  ;;  %v190_v15 = vadd.s32 24, %v12526_v5 }
   0x5   :  { %698 = vst.msk [vmem:[#allocation3 + $0x10] sm:$0xff] %vm12514_vm2, %v18849_v4  ;;  %705 = vst.msk [vmem:[#allocation3 + $0x118] sm:$0xff] %vm12514_vm2, %v18849_v4  ;;  %840 = vrot.lane.b32.xlu1 %v11973_v11, %s12468_s13  ;;  %v191_v24 = vadd.s32 32, %v12526_v5  ;;  %v192_v25 = vadd.s32 40, %v12526_v5  ;;  %v11975_v26 = vpack.c.bf16 %v12576_v16, %v12576_v16  ;;  %v11976_v31 = vpack.c.bf16 %v12589_v22, %v12589_v22  ;;  %v12612_v32 = vld [vmem:[%s18821_s0 + $0x38] sm:$0xff]  ;;  %v12103_v48 = vld [vmem:[%s18822_s1 + $0x30] sm:$0xff]  }
   0x6   :  { %706 = vst.msk [vmem:[#allocation3 + $0x120] sm:$0xff] %vm12514_vm2, %v18849_v4  ;;  %v230_v19 = vand.u32 15, %v188_v12  ;;  %vm635_vm5 = vcmp.ne.s32.totalorder %v223_v13, 0  ;;  %v237_v20 = vand.u32 15, %v189_v14  ;;  %v244_v21 = vand.u32 15, %v190_v15  ;;  %v12102_v38 = vld [vmem:[%s18822_s1 + $0x38] sm:$0xff]  }
   0x7   :  { %vm1682_vm6 = vmpackc.low %vm635_vm5, %vm635_vm5  ;;  %vm18830_vm12 = vsmask.f32 3328  ;;  %v251_v34 = vand.u32 15, %v191_v24  ;;  %v258_v37 = vand.u32 15, %v192_v25  ;;  %v11978_v42 = vpack.c.bf16 %v12612_v32, %v12612_v32  ;;  %2846 = vmatpush1.bf16.msra.mxu1 %v12102_v38  ;;  %v12104_v49 = vld [vmem:[%s18822_s1 + $0x98] sm:$0xff]   ;;  %v12105_v1 = vld [vmem:[%s18822_s1 + $0x28] sm:$0xff]  }
   0x8   :  { %vm604_vm7 = vcmp.ne.s32.totalorder %v230_v19, 15  ;;  %v1714_v27 = vsel %vm1682_vm6, 65537, %v18849_v4  ;;  %838 = vrot.lane.b32.xlu0 %v11972_v9, %s12468_s13  ;;  %vm12597_vm8 = vcmp.ne.s32.totalorder %v244_v21, 15  ;;  %vm12601_vm9 = vcmp.ne.s32.totalorder %v237_v20, 0  ;;  %2847 = vmatprep.subr.bf16.mxu1 %v18849_v4  ;;  %v12106_v6 = vld [vmem:[%s18822_s1 + $0x90] sm:$0xff]   ;;  %v12107_v14 = vld [vmem:[%s18822_s1 + $0x20] sm:$0xff]  }
   0x9   :  { %vm1030_vm11 = vmpackc.low %vm604_vm7, %vm604_vm7  ;;  %v11007_v30 = vcombine.low %v1714_v27, %v12581_v17  ;;  %842 = vrot.lane.b32.xlu1 %v11974_v18, %s12468_s13  ;;  %vm1907_vm1 = vsmask.f32 7440  ;;  %vm2261_vm2 = vcmask 519171   ;;  %vm12642_vm3 = vcmp.ne.s32.totalorder %v251_v34, 0  ;;  %2601 = vmatpush1.bf16.msra.mxu0 %v12104_v49  ;;  %v2263_v59 = vld [vmem:[#allocation2 + $0x14] sm:$0x8] }
   0xa   :  { %v1062_v33 = vsel %vm1030_vm11, 65537, %v18849_v4  ;;  %vm1032_vm13 = vmpackc.low %vm12597_vm8, %vm12597_vm8  ;;  %v741_v53 = vpack.c.bf16 %v12564_v10, %v12559_v8  ;;  %vm12658_vm4 = vcmp.ne.s32.totalorder %v258_v37, 15  ;;  %v19064_v58 = vmov 0  ;;  %2602 = vmatprep.subr.bf16.mxu0 %v18849_v4  ;;  %v12108_v24 = vld [vmem:[%s18822_s1 + $0x88] sm:$0xff]   ;;  %v12109_v34 = vld [vmem:[%s18822_s1 + $0x18] sm:$0xff]  }
   0xb   :  { %v10959_v35 = vcombine.low %v12581_v17, %v1062_v33  ;;  %vm12619_vm14 = vcmp.ne.s16.totalorder %v11007_v30, 0  ;;  %vm1684_vm15 = vmpackc.low %vm12601_vm9, %vm12601_vm9  ;;  %v1064_v40 = vsel %vm1032_vm13, 65537, %v18849_v4  ;;  %v19067_v60 = vmov 0  ;;  %2848 = vmatpush1.bf16.msra.mxu1 %v12103_v48  ;;  %v12747_v33 = vld [vmem:[%s18821_s0 + $0x30] sm:$0xff]  ;;  %v12112_v57 = vld [vmem:[%s18822_s1 + $0x78] sm:$0xff]  }
   0xc   :  { %v19055_v36 = vsel %vm12619_vm14, 4294967295, %v19054_v36  ;;  %v1810_v39 = vsel %vm12619_vm14, %v740_v23, 0  ;;  %v1716_v41 = vsel %vm1684_vm15, 65537, %v18849_v4  ;;  %844 = vrot.lane.b32.xlu0 %v11975_v26, %s12468_s13  ;;  %v10960_v52 = vcombine.low %v12581_v17, %v1064_v40  ;;  %vm12663_vm5 = vmand %vm2261_vm2, %vm18831_vm10  ;;  %2849 = vmatprep.subr.bf16.mxu1 %v18849_v4 }
   0xd   :  { %19056 = vst [vmem:[#allocation5_spill] sm:$0xff] %v19055_v36  ;;  %vm12636_vm0 = vcmp.ne.s16.totalorder %v10959_v35, 0  ;;  %v11023_v44 = vcombine.low %v1810_v39, %v1810_v39  ;;  %v11024_v45 = vcombine.high %v1810_v39, %v1810_v39  ;;  %v11008_v46 = vcombine.low %v1716_v41, %v12581_v17  ;;  %846 = vrot.lane.b32.xlu1 %v11976_v31, %s12468_s13  ;;  %vm1686_vm7 = vmpackc.low %vm12642_vm3, %vm12642_vm3  ;;  %v12110_v39 = vld [vmem:[%s18822_s1 + $0x80] sm:$0xff]  }
   0xe   :  { %v19058_v43 = vsel %vm12636_vm0, 4294967295, %v19057_v43  ;;  %v1157_v54 = vsel %vm12636_vm0, %v740_v23, 0  ;;  %v19065_v58 = vsel %vm12663_vm5, 4294967295, %v19064_v58  ;;  %vm12684_vm8 = vcmp.ne.s16.totalorder %v10960_v52, 0  ;;  %vm1034_vm9 = vmpackc.low %vm12658_vm4, %vm12658_vm4  ;;  %2603 = vmatpush1.bf16.msra.mxu0 %v12106_v6 }
   0xf   :  { %19059 = vst [vmem:[#allocation6_spill] sm:$0xff] %v19058_v43  ;;  %v1910_v50 = vshll.u32 %v11023_v44, 16  ;;  %v1913_v51 = vshrl.u32 %v11023_v44, 16  ;;  %v1919_v55 = vshll.u32 %v11024_v45, 16  ;;  %v1923_v56 = vshrl.u32 %v11024_v45, 16  ;;  %19066 = vst [vmem:[#allocation7_spill] sm:$0xff] %v19065_v58  ;;  %2850 = vmatpush1.bf16.msra.mxu1 %v12105_v1  ;;  %2604 = vmatprep.subr.bf16.mxu0 %v18849_v4 }
  0x10   :  { %vm12667_vm6 = vcmp.ne.s16.totalorder %v11008_v46, 0  ;;  %v12682_v2 = vcombine.low %v1157_v54, %v1157_v54  ;;  %v19070_v3 = vmov 0  ;;  %vm12696_vm11 = vmor %vm18830_vm12, %vm1907_vm1  ;;  %v19073_v7 = vmov 0  ;;  %2851 = vmatprep.subr.bf16.mxu1 %v18849_v4 }
  0x11   :  { %v19068_v60 = vsel %vm12667_vm6, 4294967295, %v19067_v60  ;;  %850 = vrot.lane.b32.xlu1 %v11978_v42, %s12468_s13  ;;  %v1912_v61 = vrot.slane %v1910_v50, 5  ;;  %v1915_v62 = vrot.slane %v1913_v51, 4  ;;  %v12672_v63 = vrot.slane %v1919_v55, 5 }
  0x12   :  { %19069 = vst [vmem:[#allocation8_spill] sm:$0xff] %v19068_v60  ;;  %v1925_v0 = vrot.slane %v1923_v56, 4  ;;  %v19071_v3 = vsel %vm12684_vm8, 4294967295, %v19070_v3  ;;  %v19074_v7 = vsel %vm12696_vm11, 4294967295, %v19073_v7  ;;  %v1811_v11 = vsel %vm12667_vm6, %v741_v53, 0  ;;  %2605 = vmatpush1.bf16.msra.mxu0 %v12108_v24 }
  0x13   :  { %19072 = vst [vmem:[#allocation9_spill] sm:$0xff] %v19071_v3  ;;  %19075 = vst [vmem:[#allocation10_spill] sm:$0xff] %v19074_v7  ;;  %v1916_v8 = vor.u32 %v1915_v62, %v1912_v61  ;;  %v2264_v10 = vsel %vm12663_vm5, %v1912_v61, %v2263_v59  ;;  %vm18834_vm13 = vcmask 519168   ;;  %v12707_v12 = vpack.c.bf16 %v12589_v22, %v12576_v16  ;;  %2852 = vmatpush1.bf16.msra.mxu1 %v12107_v14 }
  0x14   :  { %v1926_v9 = vor.u32 %v1925_v0, %v12672_v63  ;;  %2265 = vst [vmem:[#allocation2 + $0x14] sm:$0x8] %v2264_v10  ;;  %v1718_v13 = vsel %vm1686_vm7, 65537, %v18849_v4  ;;  %v1066_v18 = vsel %vm1034_vm9, 65537, %v18849_v4  ;;  %v12722_v16 = vadd.s32 48, %v12526_v5  ;;  %2853 = vmatprep.subr.bf16.mxu1 %v18849_v4  ;;  %2606 = vmatprep.subr.bf16.mxu0 %v18849_v4  ;;  %v12799_v10 = vld [vmem:[%s18821_s0 + $0x48] sm:$0xff] }
  0x15   :  { %v12718_v15 = vrot.slane %v1916_v8, 4  ;;  %v12725_v19 = vadd.s32 56, %v12526_v5  ;;  %v12729_v20 = vcombine.high %v1157_v54, %v1157_v54  ;;  %v12733_v21 = vsel %vm12684_vm8, %v741_v53, 0  ;;  %v12111_v53 = vld [vmem:[%s18822_s1 + $0x10] sm:$0xff]  }
  0x16   :  { %v11025_v22 = vcombine.low %v1811_v11, %v1811_v11  ;;  %v11026_v23 = vcombine.high %v1811_v11, %v1811_v11  ;;  %v1256_v25 = vshrl.u32 %v12682_v2, 16  ;;  %v1927_v27 = vrot.slane %v1926_v9, 4  ;;  %2607 = vmatpush1.bf16.msra.mxu0 %v12110_v39 }
  0x17   :  { %v11009_v28 = vcombine.low %v1718_v13, %v12581_v17  ;;  %v1259_v35 = vshll.u32 %v12682_v2, 16  ;;  %v19076_v38 = vmov 0  ;;  %v1264_v40 = vshrl.u32 %v12729_v20, 16  ;;  %2854 = vmatpush1.bf16.msra.mxu1 %v12109_v34  ;;  %2608 = vmatprep.subr.bf16.mxu0 %v18849_v4 }
  0x18   :  { %v1929_v29 = vshll.u32 %v11025_v22, 16  ;;  %v1933_v30 = vshrl.u32 %v11025_v22, 16  ;;  %v1939_v31 = vshll.u32 %v11026_v23, 16  ;;  %v1943_v37 = vshrl.u32 %v11026_v23, 16  ;;  %2855 = vmatprep.subr.bf16.mxu1 %v18849_v4  ;;  %v12113_v22 = vld [vmem:[%s18822_s1 + $0x8] sm:$0xff]  }
  0x19   :  { %vm12753_vm15 = vcmp.ne.s16.totalorder %v11009_v28, 0  ;;  %v10961_v46 = vcombine.low %v12581_v17, %v1066_v18  ;;  %v12769_v48 = vpack.c.bf16 %v12612_v32, %v12747_v33  ;;  %v12776_v54 = vrot.slane %v1256_v25, 7 }
  0x1a   :  { %v19077_v38 = vsel %vm12753_vm15, 4294967295, %v19076_v38  ;;  %v1931_v41 = vrot.slane %v1929_v29, 5  ;;  %v1935_v42 = vrot.slane %v1933_v30, 4  ;;  %v1941_v44 = vrot.slane %v1939_v31, 5  ;;  %2609 = vmatpush1.bf16.msra.mxu0 %v12112_v57  ;;  %v12828_v31 = vld [vmem:[%s18821_s0 + $0x58] sm:$0xff] }
  0x1b   :  { %19078 = vst [vmem:[#allocation11_spill] sm:$0xff] %v19077_v38  ;;  %v1945_v45 = vrot.slane %v1943_v37, 4  ;;  %v1812_v47 = vsel %vm12753_vm15, %v12707_v12, 0  ;;  %v1267_v55 = vshll.u32 %v12729_v20, 16  ;;  %v265_v32 = vand.u32 15, %v12722_v16  ;;  %v12806_v16 = vld [vmem:[%s18821_s0 + $0x40] sm:$0xff]  ;;  %2856 = vmatpush1.bf16.msra.mxu1 %v12111_v53  ;;  %2610 = vmatprep.subr.bf16.mxu0 %v18849_v4 }
  0x1c   :  { %v1932_v49 = vsel %vm12696_vm11, %v1927_v27, %v1931_v41  ;;  %v1936_v50 = vor.u32 %v1935_v42, %v1931_v41  ;;  %v11027_v51 = vcombine.low %v1812_v47, %v1812_v47  ;;  %v11028_v52 = vcombine.high %v1812_v47, %v1812_v47  ;;  %2857 = vmatprep.subr.bf16.mxu1 %v18849_v4  ;;  %v12114_v27 = vld [vmem:[%s18822_s1 + $0x70] sm:$0xff]  }
  0x1d   :  { %v1946_v56 = vor.u32 %v1945_v45, %v1941_v44  ;;  %2267 = vst.msk [vmem:[#allocation2 + $0x24] sm:$0xf] %vm18834_vm13, %v1932_v49  ;;  %v12785_v59 = vrot.slane %v1264_v40, 7  ;;  %v12790_v1 = vcombine.low %v12733_v21, %v12733_v21  ;;  %vm12792_vm1 = vcmp.ne.s16.totalorder %v10961_v46, 0  ;;  %v12116_v49 = vld [vmem:[%s18822_s1 + $0x68] sm:$0xff]  }
  0x1e   :  { %v1937_v61 = vrot.slane %v1936_v50, 4  ;;  %v1949_v62 = vshll.u32 %v11027_v51, 16  ;;  %v1953_v0 = vshrl.u32 %v11027_v51, 16  ;;  %v19079_v8 = vmov 0  ;;  %2611 = vmatpush1.bf16.msra.mxu0 %v12114_v27 }
  0x1f   :  { %v1947_v6 = vrot.slane %v1946_v56, 4  ;;  %v19080_v8 = vsel %vm12792_vm1, 4294967295, %v19079_v8  ;;  %v1959_v9 = vshll.u32 %v11028_v52, 16  ;;  %v1963_v18 = vshrl.u32 %v11028_v52, 16  ;;  %2858 = vmatpush1.bf16.msra.mxu1 %v12113_v22  ;;  %2612 = vmatprep.subr.bf16.mxu0 %v18849_v4 }
  0x20   :  { %19081 = vst [vmem:[#allocation12_spill] sm:$0xff] %v19080_v8  ;;  %v1942_v11 = vsel %vm12696_vm11, %v1937_v61, %v1941_v44  ;;  %v1951_v13 = vrot.slane %v1949_v62, 5  ;;  %v1955_v14 = vrot.slane %v1953_v0, 4  ;;  %v272_v24 = vand.u32 15, %v12725_v19  ;;  %v12115_v44 = vld [vmem:[%s18822_s1] sm:$0xff]   ;;  %2859 = vmatprep.subr.bf16.mxu1 %v18849_v4  ;;  %v12117_v61 = vld [vmem:[%s18822_s1 + $0x58] sm:$0xff]  }
  0x21   :  { %2268 = vst.msk [vmem:[#allocation2 + $0x2c] sm:$0xf] %vm18834_vm13, %v1942_v11  ;;  %v12812_v23 = vrot.slane %v1959_v9, 5  ;;  %vm641_vm2 = vcmp.ne.s32.totalorder %v265_v32, 0  ;;  %v11977_v25 = vpack.c.bf16 %v12747_v33, %v12747_v33  ;;  %v1965_v30 = vrot.slane %v1963_v18, 4  ;;  %v12118_v18 = vld [vmem:[%s18822_s1 + $0x60] sm:$0xff]  }
  0x22   :  { %v1952_v28 = vsel %vm12696_vm11, %v1947_v6, %v1951_v13  ;;  %v1956_v29 = vor.u32 %v1955_v14, %v1951_v13  ;;  %vm1688_vm3 = vmpackc.low %vm641_vm2, %vm641_vm2  ;;  %v11980_v19 = vpack.c.bf16 %v12799_v10, %v12799_v10  ;;  %vm610_vm4 = vcmp.ne.s32.totalorder %v272_v24, 15  ;;  %2613 = vmatpush1.bf16.msra.mxu0 %v12116_v49 }
  0x23   :  { %2269 = vst.msk [vmem:[#allocation2 + $0x34] sm:$0xf] %vm18834_vm13, %v1952_v28  ;;  %v1720_v33 = vsel %vm1688_vm3, 65537, %v18849_v4  ;;  %848 = vrot.lane.b32.xlu0 %v11977_v25, %s12468_s13  ;;  %v195_v34 = vadd.s32 64, %v12526_v5  ;;  %v196_v37 = vadd.s32 72, %v12526_v5  ;;  %v12838_v39 = vcombine.high %v12733_v21, %v12733_v21  ;;  %vm1036_vm7 = vmpackc.low %vm610_vm4, %vm610_vm4  ;;  %2860 = vmatpush1.bf16.msra.mxu1 %v12115_v44 }
  0x24   :  { %v1273_v40 = vshrl.u32 %v12790_v1, 16  ;;  %v1957_v41 = vrot.slane %v1956_v29, 4  ;;  %v11010_v42 = vcombine.low %v1720_v33, %v12581_v17  ;;  %854 = vrot.lane.b32.xlu1 %v11980_v19, %s12468_s13  ;;  %v1068_v45 = vsel %vm1036_vm7, 65537, %v18849_v4  ;;  %2869 = vmatprep.subr.bf16.mxu1 %v18849_v4 }
  0x25   :  { %v279_v46 = vand.u32 15, %v195_v34  ;;  %v286_v47 = vand.u32 15, %v196_v37  ;;  %v11979_v21 = vpack.c.bf16 %v12806_v16, %v12806_v16  ;;  %v1159_v50 = vsel %vm12792_vm1, %v12707_v12, 0  ;;  %2614 = vmatprep.subr.bf16.mxu0 %v18849_v4 }
  0x26   :  { %v1962_v51 = vsel %vm12696_vm11, %v1957_v41, %v12812_v23  ;;  %v1966_v52 = vor.u32 %v1965_v30, %v12812_v23  ;;  %vm12860_vm9 = vcmp.ne.s16.totalorder %v11010_v42, 0  ;;  %v19082_v53 = vmov 0  ;;  %2615 = vmatpush1.bf16.msra.mxu0 %v12118_v18  ;;  %v12122_v18 = vld [vmem:[%s18822_s1 + $0xb0] sm:$0xff]  }
  0x27   :  { %v19083_v53 = vsel %vm12860_vm9, 4294967295, %v19082_v53  ;;  %2270 = vst.msk [vmem:[#allocation2 + $0x3c] sm:$0xf] %vm18834_vm13, %v1962_v51  ;;  %v1813_v56 = vsel %vm12860_vm9, %v12769_v48, 0  ;;  %vm12869_vm2 = vcmp.ne.s32.totalorder %v286_v47, 15  ;;  %vm12873_vm3 = vcmp.ne.s32.totalorder %v279_v46, 0  ;;  %852 = vrot.lane.b32.xlu0 %v11979_v21, %s12468_s13  ;;  %2870 = vmatpush2.bf16.msra.mxu1 %v12117_v61 }
  0x28   :  { %19084 = vst [vmem:[#allocation13_spill] sm:$0xff] %v19083_v53  ;;  %v11982_v57 = vpack.c.bf16 %v12828_v31, %v12828_v31  ;;  %v1276_v62 = vshll.u32 %v12790_v1, 16  ;;  %v10962_v0 = vcombine.low %v12581_v17, %v1068_v45  ;;  %v11029_v6 = vcombine.low %v1813_v56, %v1813_v56  ;;  %vm1038_vm4 = vmpackc.low %vm12869_vm2, %vm12869_vm2  ;;  %2871 = vmatprep.subr.bf16.mxu1 %v18849_v4  ;;  %v722_v1 = vld [vmem:[%s18821_s0 + $0x70] sm:$0xff] }
  0x29   :  { %v11030_v9 = vcombine.high %v1813_v56, %v1813_v56  ;;  %v12888_v11 = vrot.slane %v1273_v40, 7  ;;  %v1282_v13 = vshrl.u32 %v12838_v39, 16  ;;  %v1285_v14 = vshll.u32 %v12838_v39, 16  ;;  %vm1690_vm7 = vmpackc.low %vm12873_vm3, %vm12873_vm3  ;;  %v12119_v40 = vld [vmem:[%s18822_s1 + $0x50] sm:$0xff]   ;;  %2624 = vmatprep.subr.bf16.mxu0 %v18849_v4  ;;  %v725_v39 = vld [vmem:[%s18821_s0 + $0x88] sm:$0xff] }
  0x2a   :  { %858 = vrot.lane.b32.xlu1 %v11982_v57, %s12468_s13  ;;  %v12899_v22 = vcombine.low %v1159_v50, %v1159_v50  ;;  %v12901_v23 = vcombine.high %v1159_v50, %v1159_v50  ;;  %v1969_v24 = vshll.u32 %v11029_v6, 16  ;;  %v1973_v25 = vshrl.u32 %v11029_v6, 16  ;;  %v718_v56 = vld [vmem:[%s18821_s0 + $0x50] sm:$0xff] }
  0x2b   :  { %v1967_v27 = vrot.slane %v1966_v52, 4  ;;  %v1979_v28 = vshll.u32 %v11030_v9, 16  ;;  %v1983_v29 = vshrl.u32 %v11030_v9, 16  ;;  %v1722_v30 = vsel %vm1690_vm7, 65537, %v18849_v4  ;;  %2872 = vmatpush2.bf16.msra.mxu1 %v12119_v40  ;;  %v12976_v40 = vld [vmem:[%s18821_s0 + $0x68] sm:$0xff] }
  0x2c   :  { %vm12906_vm3 = vcmp.ne.s16.totalorder %v10962_v0, 0  ;;  %v19089_v19 = vmov 0  ;;  %v12912_v33 = vpack.c.bf16 %v12799_v10, %v12806_v16  ;;  %v1070_v34 = vsel %vm1038_vm4, 65537, %v18849_v4  ;;  %v12120_v10 = vld [vmem:[%s18822_s1 + $0xb8] sm:$0xff]   ;;  %2873 = vmatprep.subr.bf16.mxu1 %v18849_v4 }
  0x2d   :  { %v19090_v19 = vsel %vm12906_vm3, 4294967295, %v19089_v19  ;;  %v197_v37 = vadd.s32 80, %v12526_v5  ;;  %v1971_v41 = vrot.slane %v1969_v24, 5  ;;  %v1975_v42 = vrot.slane %v1973_v25, 4  ;;  %2625 = vmatpush2.bf16.msra.mxu0 %v12120_v10 }
  0x2e   :  { %19091 = vst [vmem:[#allocation14_spill] sm:$0xff] %v19090_v19  ;;  %v1981_v44 = vrot.slane %v1979_v28, 5  ;;  %v1985_v45 = vrot.slane %v1983_v29, 4  ;;  %v1291_v16 = vshrl.u32 %v12899_v22, 16  ;;  %v1300_v46 = vshrl.u32 %v12901_v23, 16  ;;  %2626 = vmatprep.subr.bf16.mxu0 %v18849_v4 }
  0x2f   :  { %v11011_v47 = vcombine.low %v1722_v30, %v12581_v17  ;;  %v198_v21 = vadd.s32 88, %v12526_v5  ;;  %v12933_v49 = vrot.slane %v1282_v13, 7  ;;  %v1160_v50 = vsel %vm12906_vm3, %v12769_v48, 0  ;;  %v12121_v48 = vld [vmem:[%s18822_s1 + $0x48] sm:$0xff]  }
  0x30   :  { %v1972_v51 = vsel %vm12696_vm11, %v1967_v27, %v1971_v41  ;;  %v1976_v52 = vor.u32 %v1975_v42, %v1971_v41  ;;  %v1986_v12 = vor.u32 %v1985_v45, %v1981_v44  ;;  %v10963_v32 = vcombine.low %v12581_v17, %v1070_v34  ;;  %2874 = vmatpush2.bf16.msra.mxu1 %v12121_v48 }
  0x31   :  { %2271 = vst.msk [vmem:[#allocation2 + $0x44] sm:$0xf] %vm18834_vm13, %v1972_v51  ;;  %vm12945_vm2 = vcmp.ne.s16.totalorder %v11011_v47, 0  ;;  %v19092_v57 = vmov 0  ;;  %v293_v61 = vand.u32 15, %v197_v37  ;;  %v12961_v24 = vrot.slane %v1291_v16, 7  ;;  %2627 = vmatpush2.bf16.msra.mxu0 %v12122_v18  ;;  %2875 = vmatprep.subr.bf16.mxu1 %v18849_v4 }
  0x32   :  { %v19093_v57 = vsel %vm12945_vm2, 4294967295, %v19092_v57  ;;  %v1977_v9 = vrot.slane %v1976_v52, 4  ;;  %v1814_v13 = vsel %vm12945_vm2, %v12912_v33, 0  ;;  %v12963_v25 = vrot.slane %v1300_v46, 7  ;;  %v12127_v47 = vld [vmem:[%s18822_s1 + $0xa8] sm:$0xff]   ;;  %2628 = vmatprep.subr.bf16.mxu0 %v18849_v4 }
  0x33   :  { %19094 = vst [vmem:[#allocation15_spill] sm:$0xff] %v19093_v57  ;;  %v300_v27 = vand.u32 15, %v198_v21  ;;  %v12966_v28 = vpack.c.bf16 %v12828_v31, %v718_v56  ;;  %v12969_v29 = vcombine.low %v1160_v50, %v1160_v50  ;;  %v11031_v34 = vcombine.low %v1814_v13, %v1814_v13  ;;  %v13066_v21 = vld [vmem:[%s18821_s0 + $0x78] sm:$0xff] }
  0x34   :  { %v1982_v30 = vsel %vm12696_vm11, %v1977_v9, %v1981_v44  ;;  %v11032_v37 = vcombine.high %v1814_v13, %v1814_v13  ;;  %v1987_v41 = vrot.slane %v1986_v12, 4  ;;  %vm12979_vm4 = vcmp.ne.s16.totalorder %v10963_v32, 0  ;;  %v12123_v44 = vld [vmem:[%s18822_s1 + $0x40] sm:$0xff]  }
  0x35   :  { %2272 = vst.msk [vmem:[#allocation2 + $0x4c] sm:$0xf] %vm18834_vm13, %v1982_v30  ;;  %v19095_v31 = vmov 0  ;;  %vm645_vm7 = vcmp.ne.s32.totalorder %v293_v61, 0  ;;  %v11981_v42 = vpack.c.bf16 %v718_v56, %v718_v56  ;;  %v1989_v45 = vshll.u32 %v11031_v34, 16  ;;  %2876 = vmatpush2.bf16.msra.mxu1 %v12123_v44  ;;  %2629 = vmatpush2.bf16.msra.mxu0 %v12127_v47  ;;  %v720_v44 = vld [vmem:[%s18821_s0 + $0x60] sm:$0xff] }
  0x36   :  { %v19096_v31 = vsel %vm12979_vm4, 4294967295, %v19095_v31  ;;  %v1993_v10 = vshrl.u32 %v11031_v34, 16  ;;  %v1999_v16 = vshll.u32 %v11032_v37, 16  ;;  %v2003_v46 = vshrl.u32 %v11032_v37, 16  ;;  %vm1692_vm12 = vmpackc.low %vm645_vm7, %vm645_vm7  ;;  %2630 = vmatprep.subr.bf16.mxu0 %v18849_v4  ;;  %5128 = vmatprep.subr.bf16.mxu1 %v18849_v4 }
  0x37   :  { %19097 = vst [vmem:[#allocation16_spill] sm:$0xff] %v19096_v31  ;;  %vm12990_vm10 = vcmp.ne.s32.totalorder %v300_v27, 15  ;;  %v1724_v51 = vsel %vm1692_vm12, 65537, %v18849_v4  ;;  %856 = vrot.lane.b32.xlu0 %v11981_v42, %s12468_s13  ;;  %v11984_v52 = vpack.c.bf16 %v12976_v40, %v12976_v40  ;;  %v199_v56 = vadd.s32 96, %v12526_v5  ;;  %v12128_v42 = vld [vmem:[%s18822_s1 + $0xa0] sm:$0xff]  }
  0x38   :  { %v1991_v12 = vrot.slane %v1989_v45, 5  ;;  %v1995_v32 = vrot.slane %v1993_v10, 4  ;;  %v2001_v61 = vrot.slane %v1999_v16, 5  ;;  %v2005_v48 = vrot.slane %v2003_v46, 4  ;;  %vm1040_vm12 = vmpackc.low %vm12990_vm10, %vm12990_vm10 }
  0x39   :  { %v11012_v9 = vcombine.low %v1724_v51, %v12581_v17  ;;  %862 = vrot.lane.b32.xlu1 %v11984_v52, %s12468_s13  ;;  %v200_v13 = vadd.s32 104, %v12526_v5  ;;  %v307_v18 = vand.u32 15, %v199_v56  ;;  %v13003_v27 = vcombine.high %v1160_v50, %v1160_v50  ;;  %2631 = vmatpush2.bf16.msra.mxu0 %v12128_v42 }
  0x3a   :  { %v1309_v30 = vshrl.u32 %v12969_v29, 16  ;;  %v1992_v34 = vsel %vm12696_vm11, %v1987_v41, %v1991_v12  ;;  %v1996_v37 = vor.u32 %v1995_v32, %v1991_v12  ;;  %v2006_v10 = vor.u32 %v2005_v48, %v2001_v61  ;;  %3302 = vmatprep.subr.bf16.mxu0 %v18849_v4 }
  0x3b   :  { %2273 = vst.msk [vmem:[#allocation2 + $0x54] sm:$0xf] %vm18834_vm13, %v1992_v34  ;;  %vm13016_vm7 = vcmp.ne.s16.totalorder %v11012_v9, 0  ;;  %v19100_v50 = vmov 0  ;;  %vm13020_vm3 = vcmp.ne.s32.totalorder %v307_v18, 0  ;;  %v1161_v16 = vsel %vm12979_vm4, %v12912_v33, 0 }
  0x3c   :  { %v19101_v50 = vsel %vm13016_vm7, 4294967295, %v19100_v50  ;;  %v1997_v46 = vrot.slane %v1996_v37, 4  ;;  %v1815_v47 = vsel %vm13016_vm7, %v12966_v28, 0  ;;  %v314_v51 = vand.u32 15, %v200_v13  ;;  %vm1694_vm13 = vmpackc.low %vm13020_vm3, %vm13020_vm3 }
  0x3d   :  { %19102 = vst [vmem:[#allocation17_spill] sm:$0xff] %v19101_v50  ;;  %v13041_v52 = vor.u32 %v1259_v35, %v12776_v54  ;;  %v13046_v56 = vor.u32 %v1267_v55, %v12785_v59  ;;  %v11033_v33 = vcombine.low %v1815_v47, %v1815_v47  ;;  %v11034_v12 = vcombine.high %v1815_v47, %v1815_v47 }
  0x3e   :  { %v2002_v32 = vsel %vm12696_vm11, %v1997_v46, %v2001_v61  ;;  %v1072_v48 = vsel %vm1040_vm12, 65537, %v18849_v4  ;;  %v11983_v2 = vpack.c.bf16 %v720_v44, %v720_v44  ;;  %v1726_v35 = vsel %vm1694_vm13, 65537, %v18849_v4 }
  0x3f   :  { %v1318_v20 = vshrl.u32 %v13003_v27, 16  ;;  %v2007_v9 = vrot.slane %v2006_v10, 4  ;;  %vm19105_vm3 = vcmask 519168   ;;  %v13061_v61 = vpack.c.bf16 %v12976_v40, %v720_v44 }
  0x40   :  { %2274 = vst.msk [vmem:[#allocation2 + $0x5c] sm:$0xf] %vm19105_vm3, %v2002_v32  ;;  %v2009_v13 = vshll.u32 %v11033_v33, 16  ;;  %v2013_v18 = vshrl.u32 %v11033_v33, 16  ;;  %v2019_v34 = vshll.u32 %v11034_v12, 16  ;;  %v2023_v37 = vshrl.u32 %v11034_v12, 16  ;;  %860 = vrot.lane.b32.xlu0 %v11983_v2, %s12468_s13  ;;  %vm19111_vm12 = vmmov %vm19105_vm3 }
  0x41   :  { %v13070_v42 = vcombine.low %v1161_v16, %v1161_v16  ;;  %v10964_v10 = vcombine.low %v12581_v17, %v1072_v48  ;;  %vm13073_vm10 = vcmp.ne.s32.totalorder %v314_v51, 15  ;;  %v11013_v41 = vcombine.low %v1726_v35, %v12581_v17 }
  0x42   :  { %v2011_v44 = vrot.slane %v2009_v13, 5  ;;  %v2015_v46 = vrot.slane %v2013_v18, 4  ;;  %v2021_v47 = vrot.slane %v2019_v34, 5  ;;  %v2025_v32 = vrot.slane %v2023_v37, 4 }
  0x43   :  { %v13078_v45 = vcombine.high %v1161_v16, %v1161_v16  ;;  %vm13080_vm13 = vcmp.ne.s16.totalorder %v11013_v41, 0  ;;  %v19108_v33 = vmov 0  ;;  %v11986_v12 = vpack.c.bf16 %v13066_v21, %v13066_v21 }
  0x44   :  { %v19109_v33 = vsel %vm13080_vm13, 4294967295, %v19108_v33  ;;  %v201_v51 = vadd.s32 112, %v12526_v5  ;;  %v2012_v48 = vsel %vm12696_vm11, %v2007_v9, %v2011_v44  ;;  %v2016_v2 = vor.u32 %v2015_v46, %v2011_v44 }
  0x45   :  { %19110 = vst [vmem:[#allocation18_spill] sm:$0xff] %v19109_v33  ;;  %v2026_v35 = vor.u32 %v2025_v32, %v2021_v47  ;;  %v1816_v13 = vsel %vm13080_vm13, %v13061_v61, 0  ;;  %v1327_v16 = vshrl.u32 %v13070_v42, 16  ;;  %2275 = vst.msk [vmem:[#allocation2 + $0x64] sm:$0xf] %vm19111_vm12, %v2012_v48  ;;  %866 = vrot.lane.b32.xlu1 %v11986_v12, %s12468_s13  ;;  %v202_v37 = vadd.s32 120, %v12526_v5 }
  0x46   :  { %v11035_v18 = vcombine.low %v1816_v13, %v1816_v13  ;;  %v11036_v34 = vcombine.high %v1816_v13, %v1816_v13  ;;  %vm13096_vm3 = vcmp.ne.s16.totalorder %v10964_v10, 0  ;;  %v19112_v41 = vmov 0  ;;  %vm1042_vm12 = vmpackc.low %vm13073_vm10, %vm13073_vm10 }
  0x47   :  { %v19113_v41 = vsel %vm13096_vm3, 4294967295, %v19112_v41  ;;  %v2017_v9 = vrot.slane %v2016_v2, 4  ;;  %v2027_v44 = vrot.slane %v2026_v35, 4  ;;  %v321_v46 = vand.u32 15, %v201_v51 }
  0x48   :  { %19114 = vst [vmem:[#allocation19_spill] sm:$0xff] %v19113_v41  ;;  %v13103_v32 = vor.u32 %v1276_v62, %v12888_v11  ;;  %v13108_v48 = vor.u32 %v1285_v14, %v12933_v49  ;;  %v2029_v10 = vshll.u32 %v11035_v18, 16  ;;  %v2033_v12 = vshrl.u32 %v11035_v18, 16 }
  0x49   :  { %v2022_v2 = vsel %vm12696_vm11, %v2017_v9, %v2021_v47  ;;  %v2039_v51 = vshll.u32 %v11036_v34, 16  ;;  %v2043_v35 = vshrl.u32 %v11036_v34, 16  ;;  %v328_v13 = vand.u32 15, %v202_v37 }
  0x4a   :  { %v13123_v62 = vrot.slane %v1309_v30, 7  ;;  %v13125_v14 = vrot.slane %v1318_v20, 7  ;;  %v1336_v47 = vshrl.u32 %v13078_v45, 16  ;;  %vm19115_vm10 = vcmask 519168  }
  0x4b   :  { %2276 = vst.msk [vmem:[#allocation2 + $0x6c] sm:$0xf] %vm19115_vm10, %v2022_v2  ;;  %v1162_v18 = vsel %vm13096_vm3, %v12966_v28, 0  ;;  %v1074_v34 = vsel %vm1042_vm12, 65537, %v18849_v4  ;;  %v2031_v37 = vrot.slane %v2029_v10, 5  ;;  %v2035_v9 = vrot.slane %v2033_v12, 4 }
  0x4c   :  { %v2041_v55 = vrot.slane %v2039_v51, 5  ;;  %v2045_v0 = vrot.slane %v2043_v35, 4  ;;  %vm13134_vm4 = vcmp.ne.s32.totalorder %v328_v13, 15  ;;  %vm13138_vm1 = vcmp.ne.s32.totalorder %v321_v46, 0  ;;  %v13163_v51 = vld [vmem:[%s18821_s0 + $0x98] sm:$0xff] }
  0x4d   :  { %v13142_v40 = vrot.slane %v1327_v16, 7  ;;  %v2032_v28 = vsel %vm12696_vm11, %v2027_v44, %v2031_v37  ;;  %v2036_v6 = vor.u32 %v2035_v9, %v2031_v37  ;;  %vm1044_vm12 = vmpackc.low %vm13134_vm4, %vm13134_vm4  ;;  %v13150_v10 = vcombine.low %v1162_v18, %v1162_v18  ;;  %v724_v44 = vld [vmem:[%s18821_s0 + $0x80] sm:$0xff] }
  0x4e   :  { %2277 = vst.msk [vmem:[#allocation2 + $0x74] sm:$0xf] %vm19115_vm10, %v2032_v28  ;;  %v11985_v46 = vpack.c.bf16 %v722_v1, %v722_v1  ;;  %vm1696_vm3 = vmpackc.low %vm13138_vm1, %vm13138_vm1  ;;  %v11988_v16 = vpack.c.bf16 %v725_v39, %v725_v39  ;;  %v203_v12 = vadd.s32 128, %v12526_v5  ;;  %v10965_v35 = vcombine.low %v12581_v17, %v1074_v34 }
  0x4f   :  { %v2037_v13 = vrot.slane %v2036_v6, 4  ;;  %v747_v37 = vpack.c.bf16 %v13066_v21, %v722_v1  ;;  %v1728_v9 = vsel %vm1696_vm3, 65537, %v18849_v4  ;;  %v2046_v30 = vor.u32 %v2045_v0, %v2041_v55  ;;  %vm19120_vm1 = vmmov %vm19115_vm10 }
  0x50   :  { %v1076_v20 = vsel %vm1044_vm12, 65537, %v18849_v4  ;;  %v11014_v28 = vcombine.low %v1728_v9, %v12581_v17  ;;  %864 = vrot.lane.b32.xlu0 %v11985_v46, %s12468_s13  ;;  %870 = vrot.lane.b32.xlu1 %v11988_v16, %s12468_s13  ;;  %v335_v2 = vand.u32 15, %v203_v12  ;;  %v204_v34 = vadd.s32 136, %v12526_v5 }
  0x51   :  { %v2042_v26 = vsel %vm12696_vm11, %v2037_v13, %v2041_v55  ;;  %v11987_v6 = vpack.c.bf16 %v724_v44, %v724_v44  ;;  %v11990_v21 = vpack.c.bf16 %v13163_v51, %v13163_v51  ;;  %v13177_v1 = vrot.slane %v1336_v47, 7 }
  0x52   :  { %v13179_v0 = vcombine.high %v1162_v18, %v1162_v18  ;;  %2278 = vst.msk [vmem:[#allocation2 + $0x7c] sm:$0xf] %vm19120_vm1, %v2042_v26  ;;  %vm13182_vm4 = vcmp.ne.s16.totalorder %v11014_v28, 0  ;;  %v19121_v46 = vmov 0  ;;  %vm651_vm3 = vcmp.ne.s32.totalorder %v335_v2, 0 }
  0x53   :  { %v19122_v46 = vsel %vm13182_vm4, 4294967295, %v19121_v46  ;;  %v1345_v16 = vshrl.u32 %v13150_v10, 16  ;;  %v10966_v12 = vcombine.low %v12581_v17, %v1076_v20  ;;  %v1817_v13 = vsel %vm13182_vm4, %v747_v37, 0  ;;  %vm1698_vm12 = vmpackc.low %vm651_vm3, %vm651_vm3 }
  0x54   :  { %19123 = vst [vmem:[#allocation20_spill] sm:$0xff] %v19122_v46  ;;  %vm13191_vm10 = vcmp.ne.s16.totalorder %v10965_v35, 0  ;;  %v19124_v47 = vmov 0  ;;  %v11037_v26 = vcombine.low %v1817_v13, %v1817_v13  ;;  %v11038_v18 = vcombine.high %v1817_v13, %v1817_v13  ;;  %868 = vrot.lane.b32.xlu0 %v11987_v6, %s12468_s13  ;;  %874 = vrot.lane.b32.xlu1 %v11990_v21, %s12468_s13 }
  0x55   :  { %v19125_v47 = vsel %vm13191_vm10, 4294967295, %v19124_v47  ;;  %v1730_v9 = vsel %vm1698_vm12, 65537, %v18849_v4  ;;  %v2047_v2 = vrot.slane %v2046_v30, 4  ;;  %v342_v28 = vand.u32 15, %v204_v34 }
  0x56   :  { %19126 = vst [vmem:[#allocation21_spill] sm:$0xff] %v19125_v47  ;;  %v13198_v55 = vpack.c.bf16 %v725_v39, %v724_v44  ;;  %v205_v20 = vadd.s32 144, %v12526_v5  ;;  %v2049_v41 = vshll.u32 %v11037_v26, 16  ;;  %v2053_v31 = vshrl.u32 %v11037_v26, 16 }
  0x57   :  { %v2059_v35 = vshll.u32 %v11038_v18, 16  ;;  %v2063_v19 = vshrl.u32 %v11038_v18, 16  ;;  %v1354_v46 = vshrl.u32 %v13179_v0, 16  ;;  %v1163_v13 = vsel %vm13191_vm10, %v13061_v61, 0 }
  0x58   :  { %vm13205_vm1 = vcmp.ne.s16.totalorder %v10966_v12, 0  ;;  %v19127_v6 = vmov 0  ;;  %v11015_v30 = vcombine.low %v1730_v9, %v12581_v17  ;;  %v2051_v39 = vrot.slane %v2049_v41, 5 }
  0x59   :  { %v19128_v6 = vsel %vm13205_vm1, 4294967295, %v19127_v6  ;;  %v2055_v44 = vrot.slane %v2053_v31, 4  ;;  %v2061_v34 = vrot.slane %v2059_v35, 5  ;;  %v2065_v21 = vrot.slane %v2063_v19, 4 }
  0x5a   :  { %19129 = vst [vmem:[#allocation22_spill] sm:$0xff] %v19128_v6  ;;  %vm13210_vm3 = vcmp.ne.s32.totalorder %v342_v28, 15  ;;  %vm13214_vm12 = vcmp.ne.s16.totalorder %v11015_v30, 0  ;;  %v19132_v18 = vmov 0  ;;  %v206_v61 = vadd.s32 152, %v12526_v5 }
  0x5b   :  { %v19133_v18 = vsel %vm13214_vm12, 4294967295, %v19132_v18  ;;  %v349_v12 = vand.u32 15, %v205_v20  ;;  %v2052_v4 = vsel %vm12696_vm11, %v2047_v2, %v2051_v39  ;;  %v2056_v47 = vor.u32 %v2055_v44, %v2051_v39 }
  0x5c   :  { %19134 = vst [vmem:[#allocation23_spill] sm:$0xff] %v19133_v18  ;;  %v2066_v9 = vor.u32 %v2065_v21, %v2061_v34  ;;  %v1818_v19 = vsel %vm13214_vm12, %v13198_v55, 0  ;;  %v13225_v41 = vcombine.low %v1163_v13, %v1163_v13  ;;  %vm19136_vm10 = vcmask 519168   ;;  %vm1046_vm12 = vmpackc.low %vm13210_vm3, %vm13210_vm3  ;;  %v728_v18 = vld [vmem:[%s18821_s0 + $0xa0] sm:$0xff] }
  0x5d   :  { %2279 = vst.msk [vmem:[#allocation2 + $0x84] sm:$0xf] %vm19136_vm10, %v2052_v4  ;;  %v11039_v28 = vcombine.low %v1818_v19, %v1818_v19  ;;  %v11040_v35 = vcombine.high %v1818_v19, %v1818_v19  ;;  %v13228_v30 = vrot.slane %v1345_v16, 7  ;;  %v13230_v20 = vcombine.high %v1163_v13, %v1163_v13 }
  0x5e   :  { %19135 = vst [vmem:[#allocation24_spill] sm:$0xff] %v13225_v41  ;;  %v1164_v2 = vsel %vm13205_vm1, %v747_v37, 0  ;;  %v2057_v39 = vrot.slane %v2056_v47, 4  ;;  %v356_v31 = vand.u32 15, %v206_v61  ;;  %vm13237_vm4 = vcmp.ne.s32.totalorder %v349_v12, 0  ;;  %v726_v37 = vld [vmem:[%s18821_s0 + $0x90] sm:$0xff] }
  0x5f   :  { %19137 = vst [vmem:[#allocation25_spill] sm:$0xff] %v13230_v20  ;;  %v2069_v44 = vshll.u32 %v11039_v28, 16  ;;  %v2073_v21 = vshrl.u32 %v11039_v28, 16  ;;  %v2067_v16 = vrot.slane %v2066_v9, 4  ;;  %v2079_v13 = vshll.u32 %v11040_v35, 16  ;;  %vm1700_vm3 = vmpackc.low %vm13237_vm4, %vm13237_vm4 }
  0x60   :  { %v2062_v4 = vsel %vm12696_vm11, %v2057_v39, %v2061_v34  ;;  %v2083_v19 = vshrl.u32 %v11040_v35, 16  ;;  %v13246_v47 = vrot.slane %v1354_v46, 7  ;;  %v1363_v26 = vshrl.u32 %v13225_v41, 16  ;;  %v729_v46 = vld [vmem:[%s18821_s0 + $0xa8] sm:$0xff]  ;;  %vm19144_vm4 = vmmov %vm19136_vm10 }
  0x61   :  { %2280 = vst.msk [vmem:[#allocation2 + $0x8c] sm:$0xf] %vm19136_vm10, %v2062_v4  ;;  %v19140_v12 = vmov 0   ;;  %v1372_v6 = vshrl.u32 %v13230_v20, 16  ;;  %v2071_v9 = vrot.slane %v2069_v44, 5  ;;  %v2075_v35 = vrot.slane %v2073_v21, 4 }
  0x62   :  { %v1078_v28 = vsel %vm1046_vm12, 65537, %v19140_v12  ;;  %v13260_v39 = vcombine.low %v1164_v2, %v1164_v2  ;;  %v2081_v61 = vrot.slane %v2079_v13, 5  ;;  %v2085_v4 = vrot.slane %v2083_v19, 4 }
  0x63   :  { %v11989_v8 = vpack.c.bf16 %v726_v37, %v726_v37  ;;  %v10967_v33 = vcombine.low %v12581_v17, %v1078_v28  ;;  %v2072_v34 = vsel %vm12696_vm11, %v2067_v16, %v2071_v9  ;;  %v2076_v44 = vor.u32 %v2075_v35, %v2071_v9 }
  0x64   :  { %19141 = vst [vmem:[#allocation26_spill] sm:$0xff] %v13260_v39  ;;  %vm13265_vm12 = vcmp.ne.s32.totalorder %v356_v31, 15  ;;  %2281 = vst.msk [vmem:[#allocation2 + $0x94] sm:$0xf] %vm19144_vm4, %v2072_v34  ;;  %v13274_v13 = vpack.c.bf16 %v13163_v51, %v726_v37  ;;  %v1732_v19 = vsel %vm1700_vm3, 65537, %v19140_v12  ;;  %v11992_v28 = vpack.c.bf16 %v729_v46, %v729_v46 }
  0x65   :  { %872 = vrot.lane.b32.xlu0 %v11989_v8, %s12468_s13  ;;  %v207_v16 = vadd.s32 160, %v12526_v5  ;;  %v13279_v31 = vrot.slane %v1363_v26, 7  ;;  %v13281_v9 = vcombine.high %v1164_v2, %v1164_v2  ;;  %v2077_v35 = vrot.slane %v2076_v44, 4  ;;  %v13292_v26 = vld [vmem:[%s18821_s0 + $0xb8] sm:$0xff]  ;;  %vm19154_vm13 = vmpackc.low %vm13265_vm12, %vm13265_vm12 }
  0x66   :  { %v11016_v3 = vcombine.low %v1732_v19, %v12581_v17  ;;  %v2086_v50 = vor.u32 %v2085_v4, %v2081_v61  ;;  %878 = vrot.lane.b32.xlu1 %v11992_v28, %s12468_s13  ;;  %v208_v51 = vadd.s32 168, %v12526_v5  ;;  %v11991_v37 = vpack.c.bf16 %v728_v18, %v728_v18 }
  0x67   :  { %19145 = vst [vmem:[#allocation27_spill] sm:$0xff] %v13281_v9  ;;  %v363_v8 = vand.u32 15, %v207_v16  ;;  %v13294_v2 = vrot.slane %v1372_v6, 7  ;;  %vm13296_vm3 = vcmp.ne.s16.totalorder %v10967_v33, 0  ;;  %v19146_v34 = vmov 0 }
  0x68   :  { %v19147_v34 = vsel %vm13296_vm3, 4294967295, %v19146_v34  ;;  %v2082_v4 = vsel %vm12696_vm11, %v2077_v35, %v2081_v61  ;;  %vm13302_vm4 = vcmp.ne.s16.totalorder %v11016_v3, 0  ;;  %v19149_v44 = vmov 0 }
  0x69   :  { %19148 = vst [vmem:[#allocation28_spill] sm:$0xff] %v19147_v34  ;;  %v19150_v44 = vsel %vm13302_vm4, 4294967295, %v19149_v44  ;;  %v1381_v19 = vshrl.u32 %v13260_v39, 16  ;;  %2282 = vst.msk [vmem:[#allocation2 + $0x9c] sm:$0xf] %vm19136_vm10, %v2082_v4  ;;  %v1819_v33 = vsel %vm13302_vm4, %v13274_v13, 0  ;;  %876 = vrot.lane.b32.xlu0 %v11991_v37, %s12468_s13  ;;  %v11994_v35 = vpack.c.bf16 %v13292_v26, %v13292_v26 }
  0x6a   :  { %19151 = vst [vmem:[#allocation29_spill] sm:$0xff] %v19150_v44  ;;  %vm13312_vm1 = vcmp.ne.s32.totalorder %v363_v8, 0  ;;  %v1080_v3 = vsel %vm19154_vm13, 65537, %v19140_v12  ;;  %v11041_v61 = vcombine.low %v1819_v33, %v1819_v33  ;;  %v11042_v16 = vcombine.high %v1819_v33, %v1819_v33 }
  0x6b   :  { %vm1702_vm10 = vmpackc.low %vm13312_vm1, %vm13312_vm1  ;;  %v1390_v8 = vshrl.u32 %v13281_v9, 16  ;;  %v1165_v37 = vsel %vm13296_vm3, %v13198_v55, 0  ;;  %v2087_v4 = vrot.slane %v2086_v50, 4  ;;  %v370_v28 = vand.u32 15, %v208_v51  ;;  %882 = vrot.lane.b32.xlu1 %v11994_v35, %s12468_s13 }
  0x6c   :  { %v2089_v21 = vshll.u32 %v11041_v61, 16  ;;  %v2093_v44 = vshrl.u32 %v11041_v61, 16  ;;  %v2099_v57 = vshll.u32 %v11042_v16, 16  ;;  %v2103_v43 = vshrl.u32 %v11042_v16, 16 }
  0x6d   :  { %v10968_v6 = vcombine.low %v12581_v17, %v1080_v3  ;;  %v13335_v53 = vpack.c.bf16 %v729_v46, %v728_v18  ;;  %v1734_v38 = vsel %vm1702_vm10, 65537, %v19140_v12  ;;  %v13338_v50 = vcombine.low %v1165_v37, %v1165_v37 }
  0x6e   :  { %v2091_v60 = vrot.slane %v2089_v21, 5  ;;  %v2095_v58 = vrot.slane %v2093_v44, 4  ;;  %v2101_v34 = vrot.slane %v2099_v57, 5  ;;  %v2105_v55 = vrot.slane %v2103_v43, 4 }
  0x6f   :  { %19155 = vst [vmem:[#allocation30_spill] sm:$0xff] %v13338_v50  ;;  %v11017_v51 = vcombine.low %v1734_v38, %v12581_v17  ;;  %v209_v61 = vadd.s32 176, %v12526_v5  ;;  %v210_v16 = vadd.s32 184, %v12526_v5  ;;  %v13343_v35 = vcombine.high %v1165_v37, %v1165_v37  ;;  %v730_v37 = vld [vmem:[%s18821_s0 + $0xb0] sm:$0xff] }
  0x70   :  { %v2092_v46 = vsel %vm12696_vm11, %v2087_v4, %v2091_v60  ;;  %v2096_v18 = vor.u32 %v2095_v58, %v2091_v60  ;;  %vm13347_vm13 = vcmp.ne.s32.totalorder %v370_v28, 15  ;;  %v2106_v57 = vor.u32 %v2105_v55, %v2101_v34 }
  0x71   :  { %19156 = vst [vmem:[#allocation31_spill] sm:$0xff] %v13343_v35  ;;  %vm19159_vm1 = vcmask 519168   ;;  %vm13352_vm12 = vcmp.ne.s16.totalorder %v11017_v51, 0  ;;  %v19160_v43 = vmov 0  ;;  %v377_v38 = vand.u32 15, %v209_v61 }
  0x72   :  { %2283 = vst.msk [vmem:[#allocation2 + $0xa4] sm:$0xf] %vm19159_vm1, %v2092_v46  ;;  %v19161_v43 = vsel %vm13352_vm12, 4294967295, %v19160_v43  ;;  %v384_v44 = vand.u32 15, %v210_v16  ;;  %v13359_v21 = vrot.slane %v1381_v19, 7  ;;  %vm13361_vm10 = vcmp.ne.s16.totalorder %v10968_v6, 0 }
  0x73   :  { %19162 = vst [vmem:[#allocation32_spill] sm:$0xff] %v19161_v43  ;;  %v19164_v58 = vmov 0  ;;  %v2097_v60 = vrot.slane %v2096_v18, 4  ;;  %v1820_v28 = vsel %vm13352_vm12, %v13335_v53, 0  ;;  %v13368_v4 = vrot.slane %v1390_v8, 7  ;;  %vm19170_vm12 = vmmov %vm19159_vm1 }
  0x74   :  { %19163 = vst [vmem:[#allocation33_spill] sm:$0xff] %v13359_v21  ;;  %v19165_v58 = vsel %vm13361_vm10, 4294967295, %v19164_v58  ;;  %v1399_v55 = vshrl.u32 %v13338_v50, 16  ;;  %v11043_v51 = vcombine.low %v1820_v28, %v1820_v28  ;;  %v11044_v61 = vcombine.high %v1820_v28, %v1820_v28 }
  0x75   :  { %19166 = vst [vmem:[#allocation34_spill] sm:$0xff] %v19165_v58  ;;  %19167 = vst [vmem:[#allocation35_spill] sm:$0xff] %v13368_v4  ;;  %v2102_v19 = vsel %vm12696_vm11, %v2097_v60, %v2101_v34  ;;  %vm13377_vm3 = vcmp.ne.s32.totalorder %v377_v38, 0  ;;  %v11993_v46 = vpack.c.bf16 %v730_v37, %v730_v37  ;;  %v1408_v8 = vshrl.u32 %v13343_v35, 16 }
  0x76   :  { %v1166_v18 = vsel %vm13361_vm10, %v13274_v13, 0  ;;  %v2107_v28 = vrot.slane %v2106_v57, 4  ;;  %2284 = vst.msk [vmem:[#allocation2 + $0xac] sm:$0xf] %vm19170_vm12, %v2102_v19  ;;  %vm13386_vm4 = vcmp.ne.s32.totalorder %v384_v44, 15  ;;  %v2109_v60 = vshll.u32 %v11043_v51, 16  ;;  %vm1704_vm1 = vmpackc.low %vm13377_vm3, %vm13377_vm3 }
  0x77   :  { %v2113_v16 = vshrl.u32 %v11043_v51, 16  ;;  %v2119_v38 = vshll.u32 %v11044_v61, 16  ;;  %v2123_v33 = vshrl.u32 %v11044_v61, 16  ;;  %880 = vrot.lane.b32.xlu0 %v11993_v46, %s12468_s13  ;;  %v733_v13 = vld [vmem:[%s18821_s0 + $0xc8] sm:$0xff]  ;;  %vm19173_vm12 = vmpackc.low %vm13347_vm13, %vm13347_vm13  ;;  %v13405_v51 = vpack.c.bf16 %v13292_v26, %v730_v37 }
  0x78   :  { %v1082_v44 = vsel %vm19173_vm12, 65537, %v19140_v12  ;;  %v1736_v61 = vsel %vm1704_vm1, 65537, %v19140_v12  ;;  %v2111_v19 = vrot.slane %v2109_v60, 5  ;;  %v13408_v43 = vcombine.low %v1166_v18, %v1166_v18  ;;  %vm1052_vm3 = vmpackc.low %vm13386_vm4, %vm13386_vm4 }
  0x79   :  { %v2115_v6 = vrot.slane %v2113_v16, 4  ;;  %v2121_v46 = vrot.slane %v2119_v38, 5  ;;  %v2125_v58 = vrot.slane %v2123_v33, 4  ;;  %v11018_v57 = vcombine.low %v1736_v61, %v12581_v17 }
  0x7a   :  { %19174 = vst [vmem:[#allocation36_spill] sm:$0xff] %v13408_v43  ;;  %v11996_v3 = vpack.c.bf16 %v733_v13, %v733_v13  ;;  %v211_v36 = vadd.s32 192, %v12526_v5  ;;  %v13415_v35 = vrot.slane %v1399_v55, 7  ;;  %v2112_v26 = vsel %vm12696_vm11, %v2107_v28, %v2111_v19  ;;  %v732_v55 = vld [vmem:[%s18821_s0 + $0xc0] sm:$0xff] }
  0x7b   :  { %v2116_v37 = vor.u32 %v2115_v6, %v2111_v19  ;;  %v212_v16 = vadd.s32 200, %v12526_v5  ;;  %v10969_v33 = vcombine.low %v12581_v17, %v1082_v44  ;;  %v2126_v60 = vor.u32 %v2125_v58, %v2121_v46 }
  0x7c   :  { %19175 = vst [vmem:[#allocation37_spill] sm:$0xff] %v13415_v35  ;;  %vm19176_vm13 = vcmask 519168   ;;  %vm13422_vm1 = vcmp.ne.s16.totalorder %v11018_v57, 0  ;;  %v19177_v38 = vmov 0  ;;  %886 = vrot.lane.b32.xlu1 %v11996_v3, %s12468_s13  ;;  %v391_v61 = vand.u32 15, %v211_v36 }
  0x7d   :  { %2285 = vst.msk [vmem:[#allocation2 + $0xb4] sm:$0xf] %vm19176_vm13, %v2112_v26  ;;  %v19178_v38 = vsel %vm13422_vm1, 4294967295, %v19177_v38  ;;  %v13430_v28 = vrot.slane %v1408_v8, 7  ;;  %v2117_v19 = vrot.slane %v2116_v37, 4  ;;  %v1084_v58 = vsel %vm1052_vm3, 65537, %v19140_v12  ;;  %vm19187_vm3 = vmmov %vm19176_vm13 }
  0x7e   :  { %19179 = vst [vmem:[#allocation38_spill] sm:$0xff] %v19178_v38  ;;  %v1821_v57 = vsel %vm13422_vm1, %v13405_v51, 0  ;;  %v13441_v44 = vcombine.high %v1166_v18, %v1166_v18  ;;  %v1417_v36 = vshrl.u32 %v13408_v43, 16  ;;  %v398_v26 = vand.u32 15, %v212_v16 }
  0x7f   :  { %19180 = vst [vmem:[#allocation39_spill] sm:$0xff] %v13430_v28  ;;  %v11045_v6 = vcombine.low %v1821_v57, %v1821_v57  ;;  %v11046_v3 = vcombine.high %v1821_v57, %v1821_v57  ;;  %v2122_v8 = vsel %vm12696_vm11, %v2117_v19, %v2121_v46  ;;  %vm13446_vm12 = vcmp.ne.s32.totalorder %v391_v61, 0  ;;  %v13464_v28 = vpop.permute.xlu1 %840 }
  0x80   :  { %19181 = vst [vmem:[#allocation40_spill] sm:$0xff] %v13441_v44  ;;  %v11995_v34 = vpack.c.bf16 %v732_v55, %v732_v55  ;;  %vm13451_vm4 = vcmp.ne.s16.totalorder %v10969_v33, 0  ;;  %v19184_v38 = vmov 0  ;;  %v2127_v18 = vrot.slane %v2126_v60, 4  ;;  %2286 = vst.msk [vmem:[#allocation2 + $0xbc] sm:$0xf] %vm19187_vm3, %v2122_v8 }
  0x81   :  { %v19185_v38 = vsel %vm13451_vm4, 4294967295, %v19184_v38  ;;  %v10970_v57 = vcombine.low %v12581_v17, %v1084_v58  ;;  %vm1706_vm13 = vmpackc.low %vm13446_vm12, %vm13446_vm12  ;;  %v2129_v46 = vshll.u32 %v11045_v6, 16  ;;  %v2133_v16 = vshrl.u32 %v11045_v6, 16  ;;  %v735_v33 = vld [vmem:[%s18821_s0 + $0xd8] sm:$0xff] }
  0x82   :  { %19186 = vst [vmem:[#allocation41_spill] sm:$0xff] %v19185_v38  ;;  %v2139_v61 = vshll.u32 %v11046_v3, 16  ;;  %v2143_v19 = vshrl.u32 %v11046_v3, 16  ;;  %884 = vrot.lane.b32.xlu0 %v11995_v34, %s12468_s13  ;;  %v1426_v60 = vshrl.u32 %v13441_v44, 16  ;;  %vm13467_vm3 = vcmp.ne.s32.totalorder %v398_v26, 15 }
  0x83   :  { %v13471_v8 = vpack.c.bf16 %v733_v13, %v732_v55  ;;  %v1738_v6 = vsel %vm1706_vm13, 65537, %v19140_v12  ;;  %v2131_v37 = vrot.slane %v2129_v46, 5  ;;  %v2135_v3 = vrot.slane %v2133_v16, 4  ;;  %vm1054_vm13 = vmpackc.low %vm13467_vm3, %vm13467_vm3 }
  0x84   :  { %v2141_v43 = vrot.slane %v2139_v61, 5  ;;  %v2145_v34 = vrot.slane %v2143_v19, 4  ;;  %v1167_v50 = vsel %vm13451_vm4, %v13335_v53, 0  ;;  %v11019_v35 = vcombine.low %v1738_v6, %v12581_v17 }
  0x85   :  { %v11998_v39 = vpack.c.bf16 %v735_v33, %v735_v33  ;;  %v213_v26 = vadd.s32 208, %v12526_v5  ;;  %vm13479_vm12 = vcmp.ne.s16.totalorder %v10970_v57, 0  ;;  %v19190_v9 = vmov 0 }
  0x86   :  { %v19191_v9 = vsel %vm13479_vm12, 4294967295, %v19190_v9  ;;  %v2132_v13 = vsel %vm12696_vm11, %v2127_v18, %v2131_v37  ;;  %v2136_v55 = vor.u32 %v2135_v3, %v2131_v37  ;;  %v2146_v46 = vor.u32 %v2145_v34, %v2141_v43  ;;  %v13503_v37 = vpop.permute.xlu0 %836 }
  0x87   :  { %19192 = vst [vmem:[#allocation42_spill] sm:$0xff] %v19191_v9  ;;  %vm19193_vm4 = vcmask 519168   ;;  %vm13490_vm10 = vcmp.ne.s16.totalorder %v11019_v35, 0  ;;  %v19194_v16 = vmov 0  ;;  %890 = vrot.lane.b32.xlu1 %v11998_v39, %s12468_s13  ;;  %v214_v57 = vadd.s32 216, %v12526_v5  ;;  %v843_v35 = vpop.permute.xlu1 %842 }
  0x88   :  { %2287 = vst.msk [vmem:[#allocation2 + $0xc4] sm:$0xf] %vm19193_vm4, %v2132_v13  ;;  %v19195_v16 = vsel %vm13490_vm10, 4294967295, %v19194_v16  ;;  %v405_v61 = vand.u32 15, %v213_v26  ;;  %v13496_v18 = vrot.slane %v1417_v36, 7  ;;  %v13498_v19 = vcombine.low %v1167_v50, %v1167_v50 }
  0x89   :  { %19196 = vst [vmem:[#allocation43_spill] sm:$0xff] %v19195_v16  ;;  %v2137_v58 = vrot.slane %v2136_v55, 4  ;;  %v1822_v6 = vsel %vm13490_vm10, %v13471_v8, 0  ;;  %v1168_v3 = vsel %vm13479_vm12, %v13405_v51, 0  ;;  %v1086_v39 = vsel %vm1054_vm13, 65537, %v19140_v12  ;;  %v734_v51 = vld [vmem:[%s18821_s0 + $0xd0] sm:$0xff] }
  0x8a   :  { %19197 = vst [vmem:[#allocation44_spill] sm:$0xff] %v13496_v18  ;;  %v11047_v34 = vcombine.low %v1822_v6, %v1822_v6  ;;  %v11048_v26 = vcombine.high %v1822_v6, %v1822_v6  ;;  %v2147_v13 = vrot.slane %v2146_v46, 4  ;;  %v412_v55 = vand.u32 15, %v214_v57  ;;  %v839_v57 = vpop.permute.xlu0 %838 }
  0x8b   :  { %v2142_v36 = vsel %vm12696_vm11, %v2137_v58, %v2141_v43  ;;  %vm13511_vm4 = vcmp.ne.s32.totalorder %v405_v61, 0  ;;  %vm19200_vm3 = vcmask 519168   ;;  %v13519_v6 = vrot.slane %v1426_v60, 7  ;;  %v847_v61 = vpop.permute.xlu1 %846 }
  0x8c   :  { %2288 = vst.msk [vmem:[#allocation2 + $0xcc] sm:$0xf] %vm19200_vm3, %v2142_v36  ;;  %v2149_v38 = vshll.u32 %v11047_v34, 16  ;;  %v2153_v16 = vshrl.u32 %v11047_v34, 16  ;;  %v2159_v44 = vshll.u32 %v11048_v26, 16  ;;  %v2163_v9 = vshrl.u32 %v11048_v26, 16  ;;  %vm1708_vm13 = vmpackc.low %vm13511_vm4, %vm13511_vm4 }
  0x8d   :  { %19201 = vst [vmem:[#allocation45_spill] sm:$0xff] %v13519_v6  ;;  %v13521_v18 = vcombine.high %v1167_v50, %v1167_v50  ;;  %v1435_v43 = vshrl.u32 %v13498_v19, 16  ;;  %v13524_v46 = vcombine.low %v1168_v3, %v1168_v3  ;;  %v13529_v58 = vcombine.high %v1168_v3, %v1168_v3 }
  0x8e   :  { %v10971_v34 = vcombine.low %v12581_v17, %v1086_v39  ;;  %v2151_v26 = vrot.slane %v2149_v38, 5  ;;  %v2155_v36 = vrot.slane %v2153_v16, 4  ;;  %v2161_v60 = vrot.slane %v2159_v44, 5 }
  0x8f   :  { %v2165_v6 = vrot.slane %v2163_v9, 4  ;;  %v13532_v50 = vpack.c.bf16 %v735_v33, %v734_v51  ;;  %v11997_v4 = vpack.c.bf16 %v734_v51, %v734_v51  ;;  %vm13536_vm3 = vcmp.ne.s32.totalorder %v412_v55, 15  ;;  %v845_v9 = vpop.permute.xlu0 %844  ;;  %v851_v44 = vpop.permute.xlu1 %850 }
  0x90   :  { %v2152_v21 = vsel %vm12696_vm11, %v2147_v13, %v2151_v26  ;;  %v2156_v41 = vor.u32 %v2155_v36, %v2151_v26  ;;  %v1740_v3 = vsel %vm1708_vm13, 65537, %v19140_v12  ;;  %v1444_v20 = vshrl.u32 %v13521_v18, 16  ;;  %vm1056_vm8 = vmpackc.low %vm13536_vm3, %vm13536_vm3 }
  0x91   :  { %vm19204_vm4 = vcmask 519168   ;;  %v11020_v38 = vcombine.low %v1740_v3, %v12581_v17  ;;  %888 = vrot.lane.b32.xlu0 %v11997_v4, %s12468_s13  ;;  %vm673_vm12 = vcmask 1040384   ;;  %vm18946_vm10 = vsmask.f32 256 }
  0x92   :  { %2289 = vst.msk [vmem:[#allocation2 + $0xd4] sm:$0xf] %vm19204_vm4, %v2152_v21  ;;  %vm13546_vm1 = vcmp.ne.s16.totalorder %v10971_v34, 0  ;;  %v19205_v16 = vmov 0  ;;  %v2157_v39 = vrot.slane %v2156_v41, 4  ;;  %vm13551_vm13 = vmand %vm673_vm12, %vm18946_vm10  ;;  %v19208_v13 = vmov 0 }
  0x93   :  { %v19206_v16 = vsel %vm13546_vm1, 4294967295, %v19205_v16  ;;  %v19209_v13 = vsel %vm13551_vm13, 4294967295, %v19208_v13  ;;  %vm676_vm4 = vcmask 520196   ;;  %v680_v21 = vld [vmem:[#allocation2 + $0x18] sm:$0x11]  ;;  %v2166_v55 = vor.u32 %v2165_v6, %v2161_v60  ;;  %v13565_v41 = vld [vmem:[%s18821_s0 + $0xe8] sm:$0xff] }
  0x94   :  { %19207 = vst [vmem:[#allocation46_spill] sm:$0xff] %v19206_v16  ;;  %19210 = vst [vmem:[#allocation47_spill] sm:$0xff] %v19209_v13  ;;  %vm13558_vm7 = vcmp.ne.s16.totalorder %v11020_v38, 0  ;;  %v19211_v4 = vmov 0  ;;  %vm677_vm2 = vsmask.f32 4352  ;;  %v2162_v6 = vsel %vm12696_vm11, %v2157_v39, %v2161_v60 }
  0x95   :  { %v19212_v4 = vsel %vm13558_vm7, 4294967295, %v19211_v4  ;;  %vm18950_vm0 = vcmask 1043968   ;;  %v1453_v51 = vshrl.u32 %v13524_v46, 16  ;;  %v1462_v34 = vshrl.u32 %v13529_v58, 16  ;;  %vm13574_vm12 = vmand %vm676_vm4, %vm677_vm2 }
  0x96   :  { %19213 = vst [vmem:[#allocation48_spill] sm:$0xff] %v19212_v4  ;;  %v1823_v26 = vsel %vm13558_vm7, %v13532_v50, 0  ;;  %934 = vst.msk [vmem:[#allocation2 + $0x20] sm:$0xf] %vm18950_vm0, %v839_v57  ;;  %v13585_v60 = vrot.slane %v1435_v43, 7  ;;  %v13587_v3 = vrot.slane %v1444_v20, 7  ;;  %v12000_v43 = vpack.c.bf16 %v13565_v41, %v13565_v41 }
  0x97   :  { %935 = vst.msk [vmem:[#allocation2 + $0x28] sm:$0xf] %vm18950_vm0, %v13464_v28  ;;  %936 = vst.msk [vmem:[#allocation2 + $0x30] sm:$0xf] %vm18950_vm0, %v843_v35  ;;  %vm19216_vm2 = vcmask 519168   ;;  %v11049_v38 = vcombine.low %v1823_v26, %v1823_v26  ;;  %v11050_v39 = vcombine.high %v1823_v26, %v1823_v26  ;;  %v1169_v35 = vsel %vm13546_vm1, %v13471_v8, 0 }
  0x98   :  { %938 = vst.msk [vmem:[#allocation2 + $0x40] sm:$0xf] %vm18950_vm0, %v847_v61  ;;  %937 = vst.msk [vmem:[#allocation2 + $0x38] sm:$0xf] %vm18950_vm0, %v845_v9  ;;  %v2167_v57 = vrot.slane %v2166_v55, 4  ;;  %v13607_v26 = vrot.slane %v1462_v34, 7  ;;  %894 = vrot.lane.b32.xlu1 %v12000_v43, %s12468_s13  ;;  %v13626_v55 = vcombine.low %v1169_v35, %v1169_v35 }
  0x99   :  { %940 = vst.msk [vmem:[#allocation2 + $0x50] sm:$0xf] %vm18950_vm0, %v851_v44  ;;  %vm18943_vm4 = vmor %vm13574_vm12, %vm13551_vm13  ;;  %v2169_v61 = vshll.u32 %v11049_v38, 16  ;;  %v2173_v9 = vshrl.u32 %v11049_v38, 16  ;;  %v2179_v44 = vshll.u32 %v11050_v39, 16  ;;  %v13615_v8 = vsel %vm1056_vm8, 65537, %v19140_v12 }
  0x9a   :  { %2290 = vst.msk [vmem:[#allocation2 + $0xdc] sm:$0xf] %vm19216_vm2, %v2162_v6  ;;  %v681_v20 = vsel %vm18943_vm4, 0, %v680_v21  ;;  %v13605_v6 = vrot.slane %v1453_v51, 7  ;;  %vm1253_vm2 = vsmask.f32 4368  ;;  %v19217_v21 = vsel %vm12696_vm11, %v12718_v15, %v12672_v63 }
  0x9b   :  { %682 = vst [vmem:[#allocation2 + $0x18] sm:$0x11] %v681_v20  ;;  %vm19218_vm4 = vcmask 519168   ;;  %v2171_v51 = vrot.slane %v2169_v61, 5  ;;  %v2175_v53 = vrot.slane %v2173_v9, 4  ;;  %v2183_v34 = vshrl.u32 %v11050_v39, 16  ;;  %vm13643_vm3 = vmor %vm18946_vm10, %vm1253_vm2 }
  0x9c   :  { %933 = vst.msk [vmem:[#allocation2 + $0x18] sm:$0xf] %vm18950_vm0, %v13503_v37  ;;  %v736_v38 = vld [vmem:[%s18821_s0 + $0xe0] sm:$0xff]  ;;  %v13631_v20 = vcombine.high %v1169_v35, %v1169_v35  ;;  %vm1576_vm8 = vsmask.f32 7938  ;;  %v215_v37 = vadd.s32 224, %v12526_v5  ;;  %v10972_v43 = vcombine.low %v12581_v17, %v13615_v8  ;;  %vm19222_vm2 = vmmov %vm19218_vm4 }
  0x9d   :  { %2266 = vst.msk [vmem:[#allocation2 + $0x1c] sm:$0xf] %vm19218_vm4, %v19217_v21  ;;  %v216_v63 = vadd.s32 232, %v12526_v5  ;;  %v12126_v15 = vld [vmem:[#allocation2 + $0xc] ss:$8 sps:$4 sm:$0xff]   ;;  %v2172_v61 = vsel %vm12696_vm11, %v2167_v57, %v2171_v51  ;;  %v2176_v9 = vor.u32 %v2175_v53, %v2171_v51  ;;  %v13639_v39 = vrot.slane %v2179_v44, 5  ;;  %v849_v51 = vpop.permute.xlu0 %848  ;;  %vm13658_vm10 = vmand %vm19222_vm2, %vm1576_vm8 }
  0x9e   :  { %v19219_v35 = vmov 0  ;;  %v12124_v21 = vld [vmem:[#allocation2 + $0x8] ss:$8 sps:$4 sm:$0xff]   ;;  %v13650_v28 = vld [vmem:[%s18821_s0 + $0xf8] sm:$0xff]  ;;  %2291 = vst.msk [vmem:[#allocation2 + $0xe4] sm:$0xf] %vm19218_vm4, %v2172_v61  ;;  %v11999_v57 = vpack.c.bf16 %v736_v38, %v736_v38 }
  0x9f   :  { %v19220_v35 = vsel %vm13643_vm3, 4294967295, %v19219_v35  ;;  %v419_v8 = vand.u32 15, %v215_v37  ;;  %v426_v33 = vand.u32 15, %v216_v63  ;;  %v1262_v44 = vrot.slane %v12776_v54, 4  ;;  %v13666_v37 = vld [vmem:[%s18821_s0 + $0xf0] sm:$0xff]  ;;  %v855_v54 = vpop.permute.xlu1 %854 }
  0xa0   :  { %19221 = vst [vmem:[#allocation49_spill] sm:$0xff] %v19220_v35  ;;  %v2177_v53 = vrot.slane %v2176_v9, 4  ;;  %v13654_v16 = vrot.slane %v2183_v34, 4  ;;  %v19223_v4 = vmov 0  ;;  %v1271_v13 = vrot.slane %v12785_v59, 4  ;;  %892 = vrot.lane.b32.xlu0 %v11999_v57, %s12468_s13 }
  0xa1   :  { %v19224_v4 = vsel %vm13658_vm10, 4294967295, %v19223_v4  ;;  %vm18955_vm0 = vcmask 523264   ;;  %vm19226_vm4 = vcmask 1043968   ;;  %vm13669_vm1 = vcmp.ne.s32.totalorder %v426_v33, 15 }
  0xa2   :  { %19225 = vst [vmem:[#allocation50_spill] sm:$0xff] %v19224_v4  ;;  %939 = vst.msk [vmem:[#allocation2 + $0x48] sm:$0xf] %vm19226_vm4, %v849_v51  ;;  %vm13673_vm7 = vcmp.ne.s32.totalorder %v419_v8, 0  ;;  %v1270_v59 = vsel %vm13643_vm3, %v1262_v44, %v13046_v56  ;;  %11129 = vmatprep.mubr.msk.bf16.mxu1 %vm18955_vm0, %v12126_v15  ;;  %v12002_v61 = vpack.c.bf16 %v13650_v28, %v13650_v28  ;;  %v217_v56 = vadd.s32 240, %v12526_v5 }
  0xa3   :  { %vm19231_vm8 = vmmov %vm19226_vm4  ;;  %v2182_v33 = vsel %vm12696_vm11, %v2177_v53, %v13639_v39  ;;  %v1578_v9 = vld [vmem:[#allocation2 + $0x18] sm:$0xf]  ;;  %1582 = vst.msk [vmem:[#allocation2 + $0x20] sm:$0xf] %vm19222_vm2, %v1270_v59  ;;  %v1279_v8 = vsel %vm13643_vm3, %v1271_v13, %v13103_v32  ;;  %2878 = vmatmul.mubr.bf16.vlgmr.msra.gmra.mxu1 %v12124_v21  ;;  %v218_v15 = vadd.s32 248, %v12526_v5  ;;  %v1471_v57 = vshrl.u32 %v13626_v55, 16  ;;  %v853_v32 = vpop.permute.xlu0 %852 }
  0xa4   :  { %942 = vst.msk [vmem:[#allocation2 + $0x60] sm:$0xf] %vm19231_vm8, %v855_v54  ;;  %v1480_v44 = vshrl.u32 %v13631_v20, 16  ;;  %vm19232_vm4 = vmmov %vm19222_vm2  ;;  %v1579_v51 = vsel %vm13658_vm10, %v13041_v52, %v1578_v9  ;;  %898 = vrot.lane.b32.xlu1 %v12002_v61, %s12468_s13  ;;  %v12001_v5 = vpack.c.bf16 %v13666_v37, %v13666_v37  ;;  %v13708_v13 = vpack.c.bf16 %v13565_v41, %v736_v38  ;;  %v859_v61 = vpop.permute.xlu1 %858 }
  0xa5   :  { %2292 = vst.msk [vmem:[#allocation2 + $0xec] sm:$0xf] %vm19232_vm4, %v2182_v33  ;;  %vm1710_vm8 = vmpackc.low %vm13673_vm7, %vm13673_vm7  ;;  %v433_v21 = vand.u32 15, %v217_v56  ;;  %v440_v53 = vand.u32 15, %v218_v15  ;;  %vm19233_vm7 = vcmask 1043968   ;;  %v1280_v63 = vrot.slane %v12888_v11, 4 }
  0xa6   :  { %1583 = vst.msk [vmem:[#allocation2 + $0x28] sm:$0xf] %vm19222_vm2, %v1279_v8  ;;  %1580 = vst [vmem:[#allocation2 + $0x18] sm:$0xf] %v1579_v51  ;;  %v1742_v52 = vsel %vm1710_vm8, 65537, %v19140_v12  ;;  %896 = vrot.lane.b32.xlu0 %v12001_v5, %s12468_s13  ;;  %v1298_v59 = vrot.slane %v12961_v24, 4  ;;  %v2186_v9 = vor.u32 %v13654_v16, %v13639_v39 }
  0xa7   :  { %vm1058_vm4 = vmpackc.low %vm13669_vm1, %vm13669_vm1  ;;  %941 = vst.msk [vmem:[#allocation2 + $0x58] sm:$0xf] %vm19233_vm7, %v853_v32  ;;  %v11021_v54 = vcombine.low %v1742_v52, %v12581_v17  ;;  %v19234_v41 = vshll.u32 %v12901_v23, 16  ;;  %vm13722_vm2 = vcmp.ne.s16.totalorder %v10972_v43, 0  ;;  %v19235_v33 = vmov 0 }
  0xa8   :  { %v19236_v33 = vsel %vm13722_vm2, 4294967295, %v19235_v33  ;;  %vm634_vm8 = vcmp.ne.s32.totalorder %v440_v53, 15  ;;  %vm13728_vm7 = vcmp.ne.s32.totalorder %v433_v21, 0  ;;  %vm19240_vm0 = vcmask 1043968   ;;  %v12129_v8 = vld [vmem:[#allocation2 + $0x1c] ss:$8 sps:$4 sm:$0xff]  }
  0xa9   :  { %v1305_v38 = vor.u32 %v19234_v41, %v12963_v25  ;;  %19237 = vst [vmem:[#allocation51_spill] sm:$0xff] %v19236_v33  ;;  %944 = vst.msk [vmem:[#allocation2 + $0x70] sm:$0xf] %vm19240_vm0, %v859_v61  ;;  %v1090_v11 = vsel %vm1058_vm4, 65537, %v19140_v12  ;;  %vm13739_vm10 = vcmp.ne.s16.totalorder %v11021_v54, 0  ;;  %v19241_v23 = vmov 0 }
  0xaa   :  { %v19242_v23 = vsel %vm13739_vm10, 4294967295, %v19241_v23  ;;  %vm1060_vm9 = vmpackc.low %vm634_vm8, %vm634_vm8  ;;  %v1288_v16 = vsel %vm13643_vm3, %v1280_v63, %v13108_v48  ;;  %v13748_v39 = vrot.slane %v1471_v57, 7  ;;  %v1474_v56 = vshll.u32 %v13626_v55, 16 }
  0xab   :  { %19243 = vst [vmem:[#allocation52_spill] sm:$0xff] %v19242_v23  ;;  %v1306_v43 = vsel %vm13643_vm3, %v1298_v59, %v1305_v38  ;;  %v1824_v34 = vsel %vm13739_vm10, %v13708_v13, 0  ;;  %v1092_v15 = vsel %vm1060_vm9, 65537, %v19140_v12  ;;  %vm1712_vm0 = vmpackc.low %vm13728_vm7, %vm13728_vm7  ;;  %vm19244_vm1 = vcmask 519168  }
  0xac   :  { %1584 = vst.msk [vmem:[#allocation2 + $0x30] sm:$0xf] %vm19244_vm1, %v1288_v16  ;;  %vm19245_vm4 = vmmov %vm19244_vm1  ;;  %v11051_v48 = vcombine.low %v1824_v34, %v1824_v34  ;;  %v11052_v51 = vcombine.high %v1824_v34, %v1824_v34  ;;  %v10974_v57 = vcombine.low %v12581_v17, %v1092_v15  ;;  %v1744_v5 = vsel %vm1712_vm0, 65537, %v19140_v12 }
  0xad   :  { %1586 = vst.msk [vmem:[#allocation2 + $0x40] sm:$0xf] %vm19245_vm4, %v1306_v43  ;;  %v13762_v32 = vrot.slane %v1480_v44, 7  ;;  %v1170_v52 = vsel %vm13722_vm2, %v13532_v50, 0  ;;  %v2187_v21 = vrot.slane %v2186_v9, 4  ;;  %v10973_v53 = vcombine.low %v12581_v17, %v1090_v11  ;;  %v12132_v50 = vld [vmem:[%s18822_s1 + $0xf8] sm:$0xff]  }
  0xae   :  { %v2189_v54 = vshll.u32 %v11051_v48, 16  ;;  %v2193_v63 = vshrl.u32 %v11051_v48, 16  ;;  %v2199_v59 = vshll.u32 %v11052_v51, 16  ;;  %v2203_v41 = vshrl.u32 %v11052_v51, 16  ;;  %v12131_v15 = vld [vmem:[#allocation2 + $0x18] ss:$8 sps:$4 sm:$0xff]  }
  0xaf   :  { %v755_v38 = vpack.c.bf16 %v13650_v28, %v13666_v37  ;;  %vm13770_vm9 = vcmp.ne.s16.totalorder %v10974_v57, 0  ;;  %v19246_v61 = vmov 0  ;;  %v11022_v44 = vcombine.low %v1744_v5, %v12581_v17 }
  0xb0   :  { %v19247_v61 = vsel %vm13770_vm9, 4294967295, %v19246_v61  ;;  %v1289_v9 = vrot.slane %v12933_v49, 4  ;;  %v2191_v11 = vrot.slane %v2189_v54, 5  ;;  %v2195_v16 = vrot.slane %v2193_v63, 4 }
  0xb1   :  { %19248 = vst [vmem:[#allocation53_spill] sm:$0xff] %v19247_v61  ;;  %v2201_v43 = vrot.slane %v2199_v59, 5  ;;  %v2205_v34 = vrot.slane %v2203_v41, 4  ;;  %vm13779_vm8 = vcmp.ne.s16.totalorder %v10973_v53, 0  ;;  %v19249_v28 = vmov 0  ;;  %v12136_v41 = vld [vmem:[%s18822_s1 + $0xf0] sm:$0xff]  }
  0xb2   :  { %v19250_v28 = vsel %vm13779_vm8, 4294967295, %v19249_v28  ;;  %v1172_v37 = vsel %vm13770_vm9, %v755_v38, 0  ;;  %vm13785_vm7 = vcmp.ne.s16.totalorder %v11022_v44, 0  ;;  %v19252_v17 = vmov 0  ;;  %v13796_v53 = vld [vmem:[#allocation2 + $0x2c] ss:$8 sps:$4 sm:$0xff]  }
  0xb3   :  { %19251 = vst [vmem:[#allocation54_spill] sm:$0xff] %v19250_v28  ;;  %v19253_v17 = vsel %vm13785_vm7, 4294967295, %v19252_v17  ;;  %vm19255_vm0 = vcmask 523264   ;;  %v19257_v49 = vshll.u32 %v12899_v22, 16  ;;  %v2192_v51 = vsel %vm12696_vm11, %v2187_v21, %v2191_v11 }
  0xb4   :  { %19254 = vst [vmem:[#allocation55_spill] sm:$0xff] %v19253_v17  ;;  %11099 = vmatprep.mubr.msk.bf16.mxu0 %vm19255_vm0, %v12129_v8  ;;  %vm19256_vm1 = vmmov %vm19255_vm0  ;;  %v2196_v57 = vor.u32 %v2195_v16, %v2191_v11  ;;  %v2206_v5 = vor.u32 %v2205_v34, %v2201_v43  ;;  %v1316_v54 = vrot.slane %v13123_v62, 4  ;;  %v11006_v63 = vcombine.high %v1172_v37, %v1172_v37  ;;  %v857_v16 = vpop.permute.xlu0 %856 }
  0xb5   :  { %11130 = vmatprep.mubr.msk.bf16.mxu1 %vm19256_vm1, %v12129_v8  ;;  %v1296_v48 = vor.u32 %v19257_v49, %v12961_v24  ;;  %2633 = vmatmul.mubr.bf16.vlgmr.msra.gmra.mxu0 %v12131_v15  ;;  %2293 = vst.msk [vmem:[#allocation2 + $0xf4] sm:$0xf] %vm19245_vm4, %v2192_v51  ;;  %v1825_v59 = vsel %vm13785_vm7, %v755_v38, 0  ;;  %v19258_v24 = vshll.u32 %v13003_v27, 16  ;;  %v13810_v44 = vcombine.low %v1170_v52, %v1170_v52  ;;  %vm19259_vm1 = vmmov %vm19245_vm4 }
  0xb6   :  { %2886 = vmatmul.mubr.bf16.gmra.mxu1 %v12131_v15  ;;  %3303 = vmatpush1.bf16.msra.mxu0 %v12132_v50  ;;  %v13812_v8 = vcombine.high %v1170_v52, %v1170_v52  ;;  %v2197_v11 = vrot.slane %v2196_v57, 4  ;;  %vm19260_vm4 = vmmov %vm19255_vm0  ;;  %v1534_v38 = vshrl.u32 %v11006_v63, 16  ;;  %v1537_v27 = vshll.u32 %v11006_v63, 16  ;;  %v13827_v15 = vld [vmem:[#allocation2 + $0x28] ss:$8 sps:$4 sm:$0xff]  }
  0xb7   :  { %v1297_v22 = vsel %vm13643_vm3, %v1289_v9, %v1296_v48  ;;  %v1323_v21 = vor.u32 %v19258_v24, %v13125_v14  ;;  %11100 = vmatprep.mubr.msk.bf16.mxu0 %vm19260_vm4, %v13796_v53  ;;  %3304 = vmatprep.subr.bf16.mxu0 %v19140_v12  ;;  %v11053_v50 = vcombine.low %v1825_v59, %v1825_v59  ;;  %vm19261_vm2 = vmmov %vm19255_vm0  ;;  %v1171_v52 = vsel %vm13779_vm8, %v13708_v13, 0  ;;  %v12140_v13 = vld [vmem:[%s18822_s1 + $0xe8] sm:$0xff]  }
  0xb8   :  { %1585 = vst.msk [vmem:[#allocation2 + $0x38] sm:$0xf] %vm19259_vm1, %v1297_v22  ;;  %v13818_v9 = vcombine.high %v1825_v59, %v1825_v59  ;;  %11131 = vmatprep.mubr.msk.bf16.mxu1 %vm19261_vm2, %v13796_v53  ;;  %v2202_v34 = vsel %vm12696_vm11, %v2197_v11, %v2201_v43  ;;  %v1307_v48 = vrot.slane %v12963_v25, 4  ;;  %vm19262_vm1 = vcmask 1043968   ;;  %v863_v43 = vpop.permute.xlu1 %862 }
  0xb9   :  { %v1324_v49 = vsel %vm13643_vm3, %v1316_v54, %v1323_v21  ;;  %943 = vst.msk [vmem:[#allocation2 + $0x68] sm:$0xf] %vm19262_vm1, %v857_v16  ;;  %v2207_v51 = vrot.slane %v2206_v5, 4  ;;  %vm19263_vm4 = vcmask 519168   ;;  %v1536_v57 = vrot.slane %v1534_v38, 7 }
  0xba   :  { %2294 = vst.msk [vmem:[#allocation2 + $0xfc] sm:$0xf] %vm19263_vm4, %v2202_v34  ;;  %v2209_v63 = vshll.u32 %v11053_v50, 16  ;;  %v2213_v59 = vshrl.u32 %v11053_v50, 16  ;;  %vm19264_vm2 = vmmov %vm19263_vm4  ;;  %3305 = vmatpush1.bf16.msra.mxu0 %v12136_v41  ;;  %v1489_v54 = vshrl.u32 %v13810_v44, 16  ;;  %vm19266_vm8 = vcmask 516096  }
  0xbb   :  { %1588 = vst.msk [vmem:[#allocation2 + $0x50] sm:$0xf] %vm19264_vm2, %v1324_v49  ;;  %vm19265_vm0 = vsmask.f32 256  ;;  %v19267_v25 = vmov 0  ;;  %v2219_v22 = vshll.u32 %v13818_v9, 16  ;;  %3306 = vmatprep.subr.bf16.mxu0 %v19140_v12  ;;  %v13852_v11 = vor.u32 %v1537_v27, %v1536_v57 }
  0xbc   :  { %vm13841_vm7 = vmand %vm19266_vm8, %vm19265_vm0  ;;  %v1615_v5 = vld [vmem:[#allocation2 + $0x118] sm:$0x1]  ;;  %v19270_v24 = vshll.u32 %v12969_v29, 16  ;;  %v1334_v41 = vrot.slane %v13142_v40, 4  ;;  %946 = vst.msk [vmem:[#allocation2 + $0x80] sm:$0xf] %vm19262_vm1, %v863_v43  ;;  %v13854_v34 = vcombine.low %v1171_v52, %v1171_v52  ;;  %v13856_v49 = vcombine.low %v1172_v37, %v1172_v37 }
  0xbd   :  { %v19268_v25 = vsel %vm13841_vm7, 4294967295, %v19267_v25  ;;  %v1541_v38 = vrot.slane %v1536_v57, 4  ;;  %v2211_v50 = vrot.slane %v2209_v63, 5  ;;  %v2215_v16 = vrot.slane %v2213_v59, 4  ;;  %2641 = vmatmul.mubr.bf16.gmra.mxu0 %v13827_v15  ;;  %vm19272_vm8 = vmmov %vm19264_vm2  ;;  %v13869_v37 = vld [vmem:[#allocation2 + $0x3c] ss:$8 sps:$4 sm:$0xff]  }
  0xbe   :  { %19269 = vst [vmem:[#allocation56_spill] sm:$0xff] %v19268_v25  ;;  %v1314_v21 = vor.u32 %v19270_v24, %v13123_v62  ;;  %v19271_v62 = vshll.u32 %v13078_v45, 16  ;;  %2894 = vmatmul.mubr.bf16.gmra.mxu1 %v13827_v15  ;;  %v1325_v59 = vrot.slane %v13125_v14, 4  ;;  %3307 = vmatpush1.bf16.msra.mxu0 %v12140_v13  ;;  %v12147_v45 = vld [vmem:[%s18822_s1 + $0xe0] sm:$0xff]   ;;  %vm19273_vm0 = vmmov %vm19264_vm2  ;;  %v19274_v43 = vshll.u32 %v13070_v42, 16 }
  0xbf   :  { %v1616_v27 = vsel %vm13841_vm7, %v1541_v38, %v1615_v5  ;;  %v2212_v57 = vsel %vm12696_vm11, %v2207_v51, %v2211_v50  ;;  %v2216_v63 = vor.u32 %v2215_v16, %v2211_v50  ;;  %3308 = vmatprep.subr.bf16.mxu0 %v19140_v12  ;;  %vm19275_vm4 = vcmask 523264   ;;  %vm19276_vm2 = vmmov %vm19273_vm0  ;;  %v13900_v50 = vld [vmem:[#allocation2 + $0x38] ss:$8 sps:$4 sm:$0xff]  }
  0xc0   :  { %v1315_v29 = vsel %vm13643_vm3, %v1307_v48, %v1314_v21  ;;  %v1341_v24 = vor.u32 %v19271_v62, %v13177_v1  ;;  %1617 = vst [vmem:[#allocation2 + $0x118] sm:$0x1] %v1616_v27  ;;  %v13876_v48 = vrot.slane %v2219_v22, 5  ;;  %2295 = vst.msk [vmem:[#allocation2 + $0x104] sm:$0xf] %vm19273_vm0, %v2212_v57  ;;  %v1332_v5 = vor.u32 %v19274_v43, %v13142_v40  ;;  %v19280_v62 = vld [vmem:[#allocation25_spill] sm:$0xff]  ;;  %v861_v27 = vpop.permute.xlu0 %860 }
  0xc1   :  { %1587 = vst.msk [vmem:[#allocation2 + $0x48] sm:$0xf] %vm19272_vm8, %v1315_v29  ;;  %v1352_v21 = vrot.slane %v13228_v30, 4  ;;  %v2217_v14 = vrot.slane %v2216_v63, 4  ;;  %11101 = vmatprep.mubr.msk.bf16.mxu0 %vm19275_vm4, %v13869_v37  ;;  %vm19277_vm1 = vmmov %vm19275_vm4  ;;  %v19278_v13 = vshll.u32 %v13179_v0, 16  ;;  %v1343_v42 = vrot.slane %v13177_v1, 4 }
  0xc2   :  { %v1342_v51 = vsel %vm13643_vm3, %v1334_v41, %v1341_v24  ;;  %11132 = vmatprep.mubr.msk.bf16.mxu1 %vm19277_vm1, %v13869_v37  ;;  %v19279_v40 = vshll.u32 %v13150_v10, 16  ;;  %v13898_v38 = vcombine.high %v1171_v52, %v1171_v52  ;;  %v1333_v16 = vsel %vm13643_vm3, %v1325_v59, %v1332_v5  ;;  %vm19282_vm8 = vmmov %vm19273_vm0  ;;  %3309 = vmatpush1.bf16.msra.mxu0 %v12147_v45  ;;  %v12151_v57 = vld [vmem:[%s18822_s1 + $0xd8] sm:$0xff]   ;;  %v19289_v5 = vld [vmem:[#allocation35_spill] sm:$0xff] }
  0xc3   :  { %1590 = vst.msk [vmem:[#allocation2 + $0x60] sm:$0xf] %vm19276_vm2, %v1342_v51  ;;  %v1359_v22 = vor.u32 %v19278_v13, %v13246_v47  ;;  %v1370_v29 = vrot.slane %v13279_v31, 4  ;;  %v19281_v24 = vshll.u32 %v19280_v62, 16  ;;  %v2222_v1 = vsel %vm12696_vm11, %v2217_v14, %v13876_v48  ;;  %vm19284_vm4 = vmmov %vm19276_vm2  ;;  %v19286_v59 = vld [vmem:[#allocation24_spill] sm:$0xff]  ;;  %3310 = vmatprep.subr.bf16.mxu0 %v19140_v12 }
  0xc4   :  { %v1350_v41 = vor.u32 %v19279_v40, %v13228_v30  ;;  %1589 = vst.msk [vmem:[#allocation2 + $0x58] sm:$0xf] %vm19282_vm8, %v1333_v16  ;;  %v1361_v52 = vrot.slane %v13246_v47, 4  ;;  %vm19283_vm0 = vcmask 1043968   ;;  %vm19285_vm1 = vmmov %vm19276_vm2  ;;  %v19287_v45 = vshll.u32 %v19286_v59, 16  ;;  %v19288_v47 = vld [vmem:[#allocation33_spill] sm:$0xff] }
  0xc5   :  { %v1377_v0 = vor.u32 %v19281_v24, %v13294_v2  ;;  %v1360_v10 = vsel %vm13643_vm3, %v1352_v21, %v1359_v22  ;;  %945 = vst.msk [vmem:[#allocation2 + $0x78] sm:$0xf] %vm19283_vm0, %v861_v27  ;;  %v1388_v43 = vrot.slane %v19288_v47, 4  ;;  %v19290_v21 = vld [vmem:[#allocation27_spill] sm:$0xff]  ;;  %v1492_v22 = vshll.u32 %v13810_v44, 16  ;;  %vm19292_vm8 = vmmov %vm19285_vm1  ;;  %2649 = vmatmul.mubr.bf16.gmra.mxu0 %v13900_v50  ;;  %v19295_v27 = vld [vmem:[#allocation37_spill] sm:$0xff] }
  0xc6   :  { %v1351_v30 = vsel %vm13643_vm3, %v1343_v42, %v1350_v41  ;;  %2296 = vst.msk [vmem:[#allocation2 + $0x10c] sm:$0xf] %vm19284_vm4, %v2222_v1  ;;  %v1368_v51 = vor.u32 %v19287_v45, %v13279_v31  ;;  %v19291_v14 = vshll.u32 %v19290_v21, 16  ;;  %v1525_v42 = vshrl.u32 %v13856_v49, 16  ;;  %v19293_v41 = vld [vmem:[#allocation26_spill] sm:$0xff]  ;;  %2902 = vmatmul.mubr.bf16.gmra.mxu1 %v13900_v50  ;;  %vm19298_vm0 = vmmov %vm19285_vm1  ;;  %3311 = vmatpush1.bf16.msra.mxu0 %v12151_v57  ;;  %v12155_v44 = vld [vmem:[%s18822_s1 + $0xd0] sm:$0xff]  }
  0xc7   :  { %1592 = vst.msk [vmem:[#allocation2 + $0x70] sm:$0xf] %vm19276_vm2, %v1360_v10  ;;  %v1378_v63 = vsel %vm13643_vm3, %v1370_v29, %v1377_v0  ;;  %v1379_v40 = vrot.slane %v13294_v2, 4  ;;  %v19294_v16 = vshll.u32 %v19293_v41, 16  ;;  %v13942_v29 = vld [vmem:[#allocation2 + $0x4c] ss:$8 sps:$4 sm:$0xff]   ;;  %3312 = vmatprep.subr.bf16.mxu0 %v19140_v12 }
  0xc8   :  { %1591 = vst.msk [vmem:[#allocation2 + $0x68] sm:$0xf] %vm19285_vm1, %v1351_v30  ;;  %v1395_v13 = vor.u32 %v19291_v14, %v19289_v5  ;;  %v1369_v62 = vsel %vm13643_vm3, %v1361_v52, %v1368_v51  ;;  %v1397_v0 = vrot.slane %v19289_v5, 4  ;;  %v19296_v1 = vld [vmem:[#allocation30_spill] sm:$0xff]  ;;  %v13954_v30 = vrot.slane %v1489_v54, 7  ;;  %v867_v52 = vpop.permute.xlu1 %866  ;;  %v19304_v5 = vld [vmem:[#allocation36_spill] sm:$0xff] }
  0xc9   :  { %1594 = vst.msk [vmem:[#allocation2 + $0x80] sm:$0xf] %vm19292_vm8, %v1378_v63  ;;  %v1386_v31 = vor.u32 %v19294_v16, %v19288_v47  ;;  %v19297_v10 = vshll.u32 %v19296_v1, 16  ;;  %v1498_v63 = vshrl.u32 %v13812_v8, 16  ;;  %v1507_v59 = vshrl.u32 %v13854_v34, 16  ;;  %v19302_v47 = vld [vmem:[#allocation39_spill] sm:$0xff]  ;;  %vm19306_vm8 = vmmov %vm19298_vm0 }
  0xca   :  { %v1396_v24 = vsel %vm13643_vm3, %v1388_v43, %v1395_v13  ;;  %1593 = vst.msk [vmem:[#allocation2 + $0x78] sm:$0xf] %vm19298_vm0, %v1369_v62  ;;  %v1516_v54 = vshrl.u32 %v13898_v38, 16  ;;  %vm19299_vm4 = vcmask 523264   ;;  %vm19301_vm1 = vcmask 1043968   ;;  %v19303_v43 = vld [vmem:[#allocation44_spill] sm:$0xff]  ;;  %3313 = vmatpush1.bf16.msra.mxu0 %v12155_v44 }
  0xcb   :  { %v1404_v2 = vor.u32 %v19297_v10, %v19295_v27  ;;  %v13962_v45 = vsel %vm13643_vm3, %v1379_v40, %v1386_v31  ;;  %11102 = vmatprep.mubr.msk.bf16.mxu0 %vm19299_vm4, %v13942_v29  ;;  %vm19300_vm2 = vmmov %vm19299_vm4  ;;  %948 = vst.msk [vmem:[#allocation2 + $0x90] sm:$0xf] %vm19301_vm1, %v867_v52  ;;  %v1415_v57 = vrot.slane %v19302_v47, 4  ;;  %v19305_v21 = vshll.u32 %v19304_v5, 16  ;;  %v19307_v41 = vld [vmem:[#allocation45_spill] sm:$0xff]  ;;  %v19309_v10 = vld [vmem:[#allocation31_spill] sm:$0xff]  ;;  %3314 = vmatprep.subr.bf16.mxu0 %v19140_v12 }
  0xcc   :  { %11133 = vmatprep.mubr.msk.bf16.mxu1 %vm19300_vm2, %v13942_v29  ;;  %v1510_v13 = vshll.u32 %v13854_v34, 16  ;;  %v1527_v40 = vrot.slane %v1525_v42, 7  ;;  %1596 = vst.msk [vmem:[#allocation2 + $0x90] sm:$0xf] %vm19306_vm8, %v1396_v24  ;;  %v1433_v16 = vrot.slane %v19307_v41, 4  ;;  %v19308_v31 = vshll.u32 %v13498_v19, 16  ;;  %vm19312_vm0 = vmmov %vm19300_vm2 }
  0xcd   :  { %v13975_v51 = vsel %vm13643_vm3, %v1397_v0, %v1404_v2  ;;  %v1422_v14 = vor.u32 %v19305_v21, %v19303_v43  ;;  %v13988_v0 = vld [vmem:[#allocation2 + $0x48] ss:$8 sps:$4 sm:$0xff]   ;;  %v1406_v1 = vrot.slane %v19295_v27, 4  ;;  %v19310_v2 = vshll.u32 %v19309_v10, 16  ;;  %v14003_v19 = vld [vmem:[#allocation2 + $0x5c] ss:$8 sps:$4 sm:$0xff]   ;;  %vm19315_vm4 = vmmov %vm19312_vm0 }
  0xce   :  { %v1440_v62 = vor.u32 %v19308_v31, %v13585_v60  ;;  %v19311_v42 = vshll.u32 %v13524_v46, 16  ;;  %v14001_v5 = vrot.slane %v1507_v59, 7  ;;  %v1451_v21 = vrot.slane %v13587_v3, 4  ;;  %v12162_v46 = vld [vmem:[%s18822_s1 + $0xc8] sm:$0xff]   ;;  %2657 = vmatmul.mubr.bf16.gmra.mxu0 %v13988_v0  ;;  %2910 = vmatmul.mubr.bf16.gmra.mxu1 %v13988_v0 }
  0xcf   :  { %v1413_v52 = vor.u32 %v19310_v2, %v19302_v47  ;;  %v13996_v34 = vsel %vm13643_vm3, %v1415_v57, %v1422_v14  ;;  %v14010_v47 = vrot.slane %v1498_v63, 7  ;;  %v14012_v31 = vrot.slane %v1516_v54, 7  ;;  %11103 = vmatprep.mubr.msk.bf16.mxu0 %vm19312_vm0, %v14003_v19  ;;  %11134 = vmatprep.mubr.msk.bf16.mxu1 %vm19315_vm4, %v14003_v19 }
  0xd0   :  { %v1458_v24 = vor.u32 %v19311_v42, %v13605_v6  ;;  %v14007_v27 = vsel %vm13643_vm3, %v1433_v16, %v1440_v62  ;;  %v1469_v59 = vrot.slane %v13607_v26, 4  ;;  %v1476_v44 = vor.u32 %v1474_v56, %v13748_v39  ;;  %3315 = vmatpush1.bf16.msra.mxu0 %v12162_v46  ;;  %v690_v46 = vld [vmem:[#allocation2 + $0x110] sm:$0x88] }
  0xd1   :  { %v1532_v57 = vrot.slane %v1527_v40, 4  ;;  %v2223_v14 = vshrl.u32 %v13818_v9, 16  ;;  %v1487_v54 = vrot.slane %v13762_v32, 4  ;;  %v1528_v16 = vshll.u32 %v13856_v49, 16  ;;  %v19313_v49 = vld [vmem:[#allocation40_spill] sm:$0xff]  ;;  %3316 = vmatprep.subr.bf16.mxu0 %v19140_v12 }
  0xd2   :  { %v14025_v63 = vsel %vm13643_vm3, %v1451_v21, %v1458_v24  ;;  %v1414_v62 = vsel %vm13643_vm3, %v1406_v1, %v1413_v52  ;;  %v14034_v55 = vsel %vm13643_vm3, %v1469_v59, %v1476_v44  ;;  %v1494_v56 = vor.u32 %v1492_v22, %v13954_v30  ;;  %v12166_v22 = vld [vmem:[%s18822_s1 + $0xc0] sm:$0xff]   ;;  %v871_v24 = vpop.permute.xlu1 %870 }
  0xd3   :  { %v1424_v9 = vrot.slane %v19303_v43, 4  ;;  %v19314_v10 = vshll.u32 %v19313_v49, 16  ;;  %v1505_v42 = vrot.slane %v14010_v47, 4  ;;  %v1512_v1 = vor.u32 %v1510_v13, %v14001_v5  ;;  %v14079_v49 = vld [vmem:[#allocation2 + $0x6c] ss:$8 sps:$4 sm:$0xff]  }
  0xd4   :  { %v14053_v52 = vsel %vm13643_vm3, %v1487_v54, %v1494_v56  ;;  %vm683_vm2 = vcmask 1043459   ;;  %vm686_vm1 = vcmask 523271   ;;  %vm687_vm8 = vsmask.f32 7966  ;;  %3317 = vmatpush1.bf16.msra.mxu0 %v12166_v22  ;;  %v12181_v22 = vld [vmem:[%s18822_s1 + $0x108] sm:$0xff]  }
  0xd5   :  { %v1431_v2 = vor.u32 %v19314_v10, %v19307_v41  ;;  %v2225_v43 = vrot.slane %v2223_v14, 4  ;;  %v865_v41 = vpop.permute.xlu0 %864  ;;  %v14058_v13 = vsel %vm13643_vm3, %v1505_v42, %v1512_v1  ;;  %vm19316_vm0 = vsmask.f32 7950  ;;  %v14071_v14 = vld [vmem:[#allocation2 + $0x58] ss:$8 sps:$4 sm:$0xff]   ;;  %vm14075_vm10 = vmand %vm686_vm1, %vm687_vm8  ;;  %3326 = vmatprep.subr.bf16.mxu0 %v19140_v12 }
  0xd6   :  { %vm14061_vm4 = vmand %vm683_vm2, %vm19316_vm0  ;;  %v19317_v21 = vmov 0  ;;  %v14068_v59 = vsel %vm13643_vm3, %v1532_v57, %v13852_v11  ;;  %v1523_v44 = vrot.slane %v14012_v31, 4  ;;  %vm19320_vm7 = vcmask 1043968   ;;  %v875_v10 = vpop.permute.xlu1 %874  ;;  %2665 = vmatmul.mubr.bf16.gmra.mxu0 %v14071_v14  ;;  %2918 = vmatmul.mubr.bf16.gmra.mxu1 %v14071_v14 }
  0xd7   :  { %v19318_v21 = vsel %vm14061_vm4, 4294967295, %v19317_v21  ;;  %947 = vst.msk [vmem:[#allocation2 + $0x88] sm:$0xf] %vm19320_vm7, %v865_v41  ;;  %vm19321_vm9 = vmmov %vm19320_vm7  ;;  %v19322_v54 = vmov 0  ;;  %v1530_v56 = vor.u32 %v1528_v16, %v1527_v40  ;;  %vm19325_vm2 = vcmask 519168   ;;  %v12170_v40 = vld [vmem:[%s18822_s1 + $0x118] sm:$0xff]  }
  0xd8   :  { %19319 = vst [vmem:[#allocation25_spill] sm:$0xff] %v19318_v21  ;;  %950 = vst.msk [vmem:[#allocation2 + $0xa0] sm:$0xf] %vm19321_vm9, %v871_v24  ;;  %v19323_v54 = vsel %vm14075_vm10, 4294967295, %v19322_v54  ;;  %v1432_v11 = vsel %vm13643_vm3, %v1424_v9, %v1431_v2  ;;  %v2226_v16 = vor.u32 %v2225_v43, %v13876_v48  ;;  %vm19328_vm1 = vcmask 523264   ;;  %3327 = vmatpush2.bf16.msra.mxu0 %v12170_v40  ;;  %v12177_v48 = vld [vmem:[%s18822_s1 + $0x110] sm:$0xff]  }
  0xd9   :  { %19324 = vst [vmem:[#allocation24_spill] sm:$0xff] %v19323_v54  ;;  %1595 = vst.msk [vmem:[#allocation2 + $0x88] sm:$0xf] %vm19325_vm2, %v13962_v45  ;;  %v14100_v57 = vsel %vm13643_vm3, %v1523_v44, %v1530_v56  ;;  %11104 = vmatprep.mubr.msk.bf16.mxu0 %vm19328_vm1, %v14079_v49  ;;  %3328 = vmatprep.subr.bf16.mxu0 %v19140_v12  ;;  %v14119_v2 = vld [vmem:[#allocation2 + $0x68] ss:$8 sps:$4 sm:$0xff]   ;;  %v19334_v42 = vmov 0 }
  0xda   :  { %vm19326_vm0 = vmmov %vm19325_vm2  ;;  %952 = vst.msk [vmem:[#allocation2 + $0xb0] sm:$0xf] %vm19320_vm7, %v875_v10  ;;  %v2227_v9 = vrot.slane %v2226_v16, 4  ;;  %v1447_v43 = vshll.u32 %v13521_v18, 16  ;;  %v12185_v18 = vld [vmem:[%s18822_s1 + $0x100] sm:$0xff]   ;;  %v1442_v24 = vrot.slane %v13585_v60, 4  ;;  %v879_v60 = vpop.permute.xlu1 %878 }
  0xdb   :  { %1598 = vst.msk [vmem:[#allocation2 + $0xa0] sm:$0xf] %vm19326_vm0, %v1414_v62  ;;  %vm18974_vm15 = vmor %vm14075_vm10, %vm14061_vm4  ;;  %v869_v62 = vpop.permute.xlu0 %868  ;;  %v1465_v44 = vshll.u32 %v13529_v58, 16  ;;  %v14149_v56 = vld [vmem:[#allocation2 + $0x78] ss:$8 sps:$4 sm:$0xff]   ;;  %v1460_v58 = vrot.slane %v13605_v6, 4 }
  0xdc   :  { %v691_v45 = vsel %vm18974_vm15, 0, %v690_v46  ;;  %vm19327_vm9 = vmmov %vm19320_vm7  ;;  %3329 = vmatpush2.bf16.msra.mxu0 %v12177_v48  ;;  %v1449_v46 = vor.u32 %v1447_v43, %v13587_v3  ;;  %v14189_v48 = vld [vmem:[#allocation2 + $0xac] ss:$8 sps:$4 sm:$0xff]   ;;  %v1501_v43 = vshll.u32 %v13812_v8, 16 }
  0xdd   :  { %692 = vst [vmem:[#allocation2 + $0x110] sm:$0x88] %v691_v45  ;;  %949 = vst.msk [vmem:[#allocation2 + $0x98] sm:$0xf] %vm19327_vm9, %v869_v62  ;;  %vm19332_vm9 = vsmask.f32 3328  ;;  %3330 = vmatprep.subr.bf16.mxu0 %v19140_v12  ;;  %v1467_v3 = vor.u32 %v1465_v44, %v13607_v26 }
  0xde   :  { %vm19329_vm8 = vmmov %vm19326_vm0  ;;  %2673 = vmatmul.mubr.bf16.gmra.mxu0 %v14119_v2  ;;  %v1450_v45 = vsel %vm13643_vm3, %v1442_v24, %v1449_v46  ;;  %v14176_v26 = vld [vmem:[#allocation2 + $0x9c] ss:$8 sps:$4 sm:$0xff]   ;;  %v883_v62 = vpop.permute.xlu1 %882  ;;  %v1503_v24 = vor.u32 %v1501_v43, %v14010_v47  ;;  %v14224_v46 = vld [vmem:[#allocation2 + $0xcc] ss:$8 sps:$4 sm:$0xff]   ;;  %v1519_v47 = vshll.u32 %v13898_v38, 16 }
  0xdf   :  { %1597 = vst.msk [vmem:[#allocation2 + $0x98] sm:$0xf] %vm19329_vm8, %v13975_v51  ;;  %vm19330_vm2 = vmmov %vm19326_vm0  ;;  %v14127_v51 = vld [vmem:[#allocation2 + $0x7c] ss:$8 sps:$4 sm:$0xff]   ;;  %v873_v40 = vpop.permute.xlu0 %872  ;;  %v1468_v6 = vsel %vm13643_vm3, %v1460_v58, %v1467_v3 }
  0xe0   :  { %1600 = vst.msk [vmem:[#allocation2 + $0xb0] sm:$0xf] %vm19330_vm2, %v1432_v11  ;;  %vm19331_vm0 = vmmov %vm19328_vm1  ;;  %3331 = vmatpush2.bf16.msra.mxu0 %v12181_v22  ;;  %v14151_v11 = vld [vmem:[#allocation2 + $0x8c] ss:$8 sps:$4 sm:$0xff]   ;;  %v1521_v58 = vor.u32 %v1519_v47, %v14012_v31 }
  0xe1   :  { %11135 = vmatprep.mubr.msk.bf16.mxu1 %vm19331_vm0, %v14079_v49  ;;  %vm19333_vm7 = vmmov %vm19330_vm2  ;;  %3332 = vmatprep.subr.bf16.mxu0 %v19140_v12 }
  0xe2   :  { %vm14123_vm1 = vmand %vm19333_vm7, %vm19332_vm9  ;;  %2926 = vmatmul.mubr.bf16.gmra.mxu1 %v14119_v2 }
  0xe3   :  { %v19335_v42 = vsel %vm14123_vm1, 4294967295, %v19334_v42  ;;  %vm19337_vm8 = vmmov %vm19331_vm0  ;;  %v877_v16 = vpop.permute.xlu0 %876 }
  0xe4   :  { %19336 = vst [vmem:[#allocation33_spill] sm:$0xff] %v19335_v42  ;;  %v2298_v1 = vld [vmem:[#allocation2 + $0x114] sm:$0xf]  ;;  %11105 = vmatprep.mubr.msk.bf16.mxu0 %vm19337_vm8, %v14127_v51  ;;  %vm19338_vm2 = vmmov %vm19331_vm0  ;;  %3333 = vmatpush2.bf16.msra.mxu0 %v12185_v18  ;;  %vm19339_vm0 = vcmask 1043968   ;;  %v1496_v18 = vrot.slane %v13954_v30, 4 }
  0xe5   :  { %v2299_v41 = vsel %vm14123_vm1, %v2227_v9, %v2298_v1  ;;  %11136 = vmatprep.mubr.msk.bf16.mxu1 %vm19338_vm2, %v14127_v51  ;;  %951 = vst.msk [vmem:[#allocation2 + $0xa8] sm:$0xf] %vm19339_vm0, %v873_v40  ;;  %5373 = vmatprep.subr.bf16.mxu0 %v19140_v12  ;;  %vm19340_vm9 = vmmov %vm19333_vm7  ;;  %v1478_v1 = vrot.slane %v13748_v39, 4 }
  0xe6   :  { %2300 = vst [vmem:[#allocation2 + $0x114] sm:$0xf] %v2299_v41  ;;  %2681 = vmatmul.mubr.bf16.gmra.mxu0 %v14149_v56  ;;  %1599 = vst.msk [vmem:[#allocation2 + $0xa8] sm:$0xf] %vm19340_vm9, %v13996_v34  ;;  %v14170_v34 = vld [vmem:[#allocation2 + $0x88] ss:$8 sps:$4 sm:$0xff]   ;;  %v1504_v44 = vsel %vm13643_vm3, %v1496_v18, %v1503_v24 }
  0xe7   :  { %vm19341_vm7 = vmmov %vm19338_vm2  ;;  %v14187_v10 = vld [vmem:[#allocation2 + $0x98] ss:$8 sps:$4 sm:$0xff]   ;;  %v14207_v41 = vld [vmem:[#allocation2 + $0xbc] ss:$8 sps:$4 sm:$0xff]  }
  0xe8   :  { %11106 = vmatprep.mubr.msk.bf16.mxu0 %vm19341_vm7, %v14151_v11  ;;  %vm19342_vm8 = vmmov %vm19339_vm0 }
  0xe9   :  { %954 = vst.msk [vmem:[#allocation2 + $0xc0] sm:$0xf] %vm19342_vm8, %v879_v60  ;;  %vm19343_vm0 = vmmov %vm19340_vm9  ;;  %v881_v9 = vpop.permute.xlu0 %880  ;;  %v1514_v60 = vrot.slane %v14001_v5, 4 }
  0xea   :  { %2934 = vmatmul.mubr.bf16.gmra.mxu1 %v14149_v56  ;;  %1602 = vst.msk [vmem:[#allocation2 + $0xc0] sm:$0xf] %vm19343_vm0, %v1450_v45  ;;  %vm19344_vm15 = vmmov %vm19342_vm8 }
  0xeb   :  { %11137 = vmatprep.mubr.msk.bf16.mxu1 %vm19338_vm2, %v14151_v11  ;;  %953 = vst.msk [vmem:[#allocation2 + $0xb8] sm:$0xf] %vm19344_vm15, %v877_v16  ;;  %vm19345_vm9 = vmmov %vm19343_vm0  ;;  %v1522_v3 = vsel %vm13643_vm3, %v1514_v60, %v1521_v58 }
  0xec   :  { %1601 = vst.msk [vmem:[#allocation2 + $0xb8] sm:$0xf] %vm19345_vm9, %v14007_v27  ;;  %vm19346_vm7 = vmmov %vm19342_vm8  ;;  %v1483_v27 = vshll.u32 %v13631_v20, 16 }
  0xed   :  { %956 = vst.msk [vmem:[#allocation2 + $0xd0] sm:$0xf] %vm19346_vm7, %v883_v62  ;;  %vm19347_vm8 = vmmov %vm19343_vm0  ;;  %v14204_v39 = vld [vmem:[#allocation2 + $0xa8] ss:$8 sps:$4 sm:$0xff]  }
  0xee   :  { %1604 = vst.msk [vmem:[#allocation2 + $0xd0] sm:$0xf] %vm19347_vm8, %v1468_v6  ;;  %2689 = vmatmul.mubr.bf16.gmra.mxu0 %v14170_v34  ;;  %vm19348_vm15 = vmmov %vm19338_vm2  ;;  %v1485_v22 = vor.u32 %v1483_v27, %v13762_v32  ;;  %v887_v32 = vpop.permute.xlu1 %886  ;;  %v14279_v27 = vld [vmem:[#allocation2 + $0xfc] ss:$8 sps:$4 sm:$0xff]  }
  0xef   :  { %11107 = vmatprep.mubr.msk.bf16.mxu0 %vm19338_vm2, %v14176_v26  ;;  %vm19349_vm0 = vmmov %vm19346_vm7 }
  0xf0   :  { %955 = vst.msk [vmem:[#allocation2 + $0xc8] sm:$0xf] %vm19349_vm0, %v881_v9  ;;  %vm19350_vm9 = vmmov %vm19338_vm2  ;;  %v1486_v20 = vsel %vm13643_vm3, %v1478_v1, %v1485_v22  ;;  %v12197_v1 = vld [vmem:[%s18823_s5 + $0x10] sm:$0xff]  }
  0xf1   :  { %vm19351_vm7 = vmmov %vm19347_vm8 }
  0xf2   :  { %2942 = vmatmul.mubr.bf16.gmra.mxu1 %v14170_v34  ;;  %1603 = vst.msk [vmem:[#allocation2 + $0xc8] sm:$0xf] %vm19351_vm7, %v14025_v63  ;;  %vm19352_vm8 = vmmov %vm19338_vm2 }
  0xf3   :  { %11138 = vmatprep.mubr.msk.bf16.mxu1 %vm19348_vm15, %v14176_v26  ;;  %vm19353_vm2 = vmmov %vm19349_vm0  ;;  %v14222_v8 = vld [vmem:[#allocation2 + $0xb8] ss:$8 sps:$4 sm:$0xff]  }
  0xf4   :  { %958 = vst.msk [vmem:[#allocation2 + $0xe0] sm:$0xf] %vm19353_vm2, %v887_v32  ;;  %vm19354_vm15 = vmmov %vm19351_vm7  ;;  %v885_v63 = vpop.permute.xlu0 %884 }
  0xf5   :  { %1606 = vst.msk [vmem:[#allocation2 + $0xe0] sm:$0xf] %vm19354_vm15, %v1486_v20  ;;  %vm19355_vm0 = vmmov %vm19352_vm8 }
  0xf6   :  { %2697 = vmatmul.mubr.bf16.gmra.mxu0 %v14187_v10  ;;  %vm19357_vm7 = vmmov %vm19355_vm0 }
  0xf7   :  { %11108 = vmatprep.mubr.msk.bf16.mxu0 %vm19350_vm9, %v14189_v48  ;;  %vm19356_vm9 = vmmov %vm19353_vm2 }
  0xf8   :  { %957 = vst.msk [vmem:[#allocation2 + $0xd8] sm:$0xf] %vm19356_vm9, %v885_v63  ;;  %vm19360_vm9 = vmmov %vm19355_vm0 }
  0xf9   :  { %v891_v40 = vpop.permute.xlu1 %890  ;;  %v14236_v30 = vld [vmem:[#allocation2 + $0xc8] ss:$8 sps:$4 sm:$0xff]  }
  0xfa   :  { %2950 = vmatmul.mubr.bf16.gmra.mxu1 %v14187_v10  ;;  %960 = vst.msk [vmem:[#allocation2 + $0xf0] sm:$0xf] %vm19353_vm2, %v891_v40 }
  0xfb   :  { %11139 = vmatprep.mubr.msk.bf16.mxu1 %vm19352_vm8, %v14189_v48  ;;  %vm19358_vm8 = vmmov %vm19354_vm15 }
  0xfc   :  { %1605 = vst.msk [vmem:[#allocation2 + $0xd8] sm:$0xf] %vm19358_vm8, %v14034_v55  ;;  %vm19359_vm15 = vmmov %vm19358_vm8  ;;  %v14239_v55 = vld [vmem:[#allocation2 + $0xdc] ss:$8 sps:$4 sm:$0xff]  }
  0xfd   :  { %1608 = vst.msk [vmem:[#allocation2 + $0xf0] sm:$0xf] %vm19359_vm15, %v1504_v44  ;;  %vm19363_vm15 = vmmov %vm19355_vm0 }
  0xfe   :  { %2705 = vmatmul.mubr.bf16.gmra.mxu0 %v14204_v39 }
  0xff   :  { %11109 = vmatprep.mubr.msk.bf16.mxu0 %vm19355_vm0, %v14207_v41 }
 0x102   :  { %2958 = vmatmul.mubr.bf16.gmra.mxu1 %v14204_v39 }
 0x103   :  { %11140 = vmatprep.mubr.msk.bf16.mxu1 %vm19357_vm7, %v14207_v41  ;;  %v889_v45 = vpop.permute.xlu0 %888  ;;  %vm19361_vm7 = vmmov %vm19353_vm2  ;;  %v14252_v38 = vld [vmem:[#allocation2 + $0xd8] ss:$8 sps:$4 sm:$0xff]  }
 0x104   :  { %959 = vst.msk [vmem:[#allocation2 + $0xe8] sm:$0xf] %vm19361_vm7, %v889_v45  ;;  %vm19362_vm2 = vmmov %vm19355_vm0 }
 0x105   :  { %1607 = vst.msk [vmem:[#allocation2 + $0xe8] sm:$0xf] %vm19358_vm8, %v14053_v52  ;;  %v14259_v52 = vld [vmem:[#allocation2 + $0xec] ss:$8 sps:$4 sm:$0xff]  }
 0x106   :  { %2713 = vmatmul.mubr.bf16.gmra.mxu0 %v14222_v8 }
 0x107   :  { %11110 = vmatprep.mubr.msk.bf16.mxu0 %vm19355_vm0, %v14224_v46  ;;  %vm19364_vm0 = vmmov %vm19361_vm7 }
 0x108   :  { %vm19366_vm7 = vmmov %vm19362_vm2 }
 0x10a   :  { %2966 = vmatmul.mubr.bf16.gmra.mxu1 %v14222_v8  ;;  %v895_v16 = vpop.permute.xlu1 %894 }
 0x10b   :  { %11141 = vmatprep.mubr.msk.bf16.mxu1 %vm19360_vm9, %v14224_v46  ;;  %962 = vst.msk [vmem:[#allocation2 + $0x100] sm:$0xf] %vm19364_vm0, %v895_v16  ;;  %vm19365_vm9 = vmmov %vm19358_vm8  ;;  %v12201_v16 = vld [vmem:[%s18823_s5 + $0x58] sm:$0xff]  }
 0x10c   :  { %1610 = vst.msk [vmem:[#allocation2 + $0x100] sm:$0xf] %vm19365_vm9, %v1522_v3  ;;  %vm19367_vm8 = vmmov %vm19362_vm2  ;;  %v14266_v31 = vld [vmem:[#allocation2 + $0xe8] ss:$8 sps:$4 sm:$0xff]  }
 0x10e   :  { %2721 = vmatmul.mubr.bf16.gmra.mxu0 %v14236_v30 }
 0x10f   :  { %11111 = vmatprep.mubr.msk.bf16.mxu0 %vm19362_vm2, %v14239_v55  ;;  %vm19368_vm2 = vmmov %vm19364_vm0 }
 0x112   :  { %2974 = vmatmul.mubr.bf16.gmra.mxu1 %v14236_v30  ;;  %v893_v5 = vpop.permute.xlu0 %892 }
 0x113   :  { %11142 = vmatprep.mubr.msk.bf16.mxu1 %vm19363_vm15, %v14239_v55  ;;  %961 = vst.msk [vmem:[#allocation2 + $0xf8] sm:$0xf] %vm19368_vm2, %v893_v5  ;;  %vm19369_vm15 = vmmov %vm19365_vm9  ;;  %vm19372_vm2 = vcmask 523264  }
 0x114   :  { %1609 = vst.msk [vmem:[#allocation2 + $0xf8] sm:$0xf] %vm19369_vm15, %v14058_v13  ;;  %vm19373_vm15 = vmmov %vm19372_vm2  ;;  %v14288_v13 = vld [vmem:[#allocation2 + $0x10c] ss:$8 sps:$4 sm:$0xff]  }
 0x116   :  { %2729 = vmatmul.mubr.bf16.gmra.mxu0 %v14252_v38  ;;  %v899_v6 = vpop.permute.xlu1 %898 }
 0x117   :  { %11112 = vmatprep.mubr.msk.bf16.mxu0 %vm19366_vm7, %v14259_v52  ;;  %964 = vst.msk [vmem:[#allocation2 + $0x110] sm:$0xf] %vm19364_vm0, %v899_v6  ;;  %vm19370_vm7 = vmmov %vm19364_vm0 }
 0x118   :  { %1612 = vst.msk [vmem:[#allocation2 + $0x110] sm:$0xf] %vm19365_vm9, %v14068_v59  ;;  %v897_v62 = vpop.permute.xlu0 %896  ;;  %vm19374_vm0 = vmmov %vm19372_vm2 }
 0x119   :  { %963 = vst.msk [vmem:[#allocation2 + $0x108] sm:$0xf] %vm19370_vm7, %v897_v62  ;;  %vm19376_vm7 = vmmov %vm19374_vm0 }
 0x11a   :  { %2982 = vmatmul.mubr.bf16.gmra.mxu1 %v14252_v38 }
 0x11b   :  { %11143 = vmatprep.mubr.msk.bf16.mxu1 %vm19367_vm8, %v14259_v52  ;;  %vm19371_vm8 = vmmov %vm19365_vm9  ;;  %v14281_v9 = vld [vmem:[#allocation2 + $0xf8] ss:$8 sps:$4 sm:$0xff]  }
 0x11c   :  { %1611 = vst.msk [vmem:[#allocation2 + $0x108] sm:$0xf] %vm19371_vm8, %v14100_v57  ;;  %vm19375_vm9 = vmmov %vm19374_vm0 }
 0x11d   :  { %vm19377_vm8 = vmmov %vm19374_vm0 }
 0x11e   :  { %2737 = vmatmul.mubr.bf16.gmra.mxu0 %v14266_v31 }
 0x11f   :  { %11113 = vmatprep.mubr.msk.bf16.mxu0 %vm19372_vm2, %v14279_v27  ;;  %vm19378_vm2 = vmmov %vm19374_vm0 }
 0x122   :  { %2990 = vmatmul.mubr.bf16.gmra.mxu1 %v14266_v31 }
 0x123   :  { %11144 = vmatprep.mubr.msk.bf16.mxu1 %vm19373_vm15, %v14279_v27  ;;  %v14293_v59 = vld [vmem:[#allocation2 + $0x108] ss:$8 sps:$4 sm:$0xff]   ;;  %vm19379_vm15 = vmmov %vm19374_vm0 }
 0x126   :  { %2745 = vmatmul.mubr.bf16.gmra.mxu0 %v14281_v9 }
 0x127   :  { %11114 = vmatprep.mubr.msk.bf16.mxu0 %vm19374_vm0, %v14288_v13 }
 0x12a   :  { %2998 = vmatmul.mubr.bf16.gmra.mxu1 %v14281_v9 }
 0x12e   :  { %2753 = vmatmul.mubr.bf16.gmra.mxu0 %v14293_v59 }
 0x12f   :  { %11189 = vmatprep.mubr.msk.bf16.mxu0 %vm19375_vm9, %v13796_v53  ;;  %vm19380_vm9 = vmmov %vm19374_vm0  ;;  %v12192_v53 = vld [vmem:[%s18823_s5 + $0x38] sm:$0xff]  }
 0x136   :  { %3335 = vmatmul.mubr.bf16.vlgmr.msra.gmra.mxu0 %v13827_v15 }
 0x137   :  { %11190 = vmatprep.mubr.msk.bf16.mxu0 %vm19376_vm7, %v13869_v37  ;;  %vm19381_vm7 = vmmov %vm19374_vm0  ;;  %5374 = vmatpush1.bf16.msra.mxu0 %v12192_v53 }
 0x138   :  { %5375 = vmatprep.subr.bf16.mxu0 %v19140_v12 }
 0x13e   :  { %3343 = vmatmul.mubr.bf16.gmra.mxu0 %v13900_v50  ;;  %v12193_v50 = vld [vmem:[%s18823_s5 + $0x30] sm:$0xff]  }
 0x13f   :  { %11191 = vmatprep.mubr.msk.bf16.mxu0 %vm19377_vm8, %v13942_v29  ;;  %vm19382_vm8 = vmmov %vm19374_vm0  ;;  %5376 = vmatpush1.bf16.msra.mxu0 %v12193_v50 }
 0x140   :  { %5377 = vmatprep.subr.bf16.mxu0 %v19140_v12 }
 0x146   :  { %3351 = vmatmul.mubr.bf16.gmra.mxu0 %v13988_v0 }
 0x147   :  { %11192 = vmatprep.mubr.msk.bf16.mxu0 %vm19378_vm2, %v14003_v19  ;;  %v12194_v19 = vld [vmem:[%s18823_s5 + $0x28] sm:$0xff]   ;;  %vm19383_vm2 = vmmov %vm19374_vm0 }
 0x148   :  { %5378 = vmatpush1.bf16.msra.mxu0 %v12194_v19  ;;  %v12200_v19 = vld [vmem:[%s18823_s5 + $0x98] sm:$0xff]  }
 0x149   :  { %5379 = vmatprep.subr.bf16.mxu0 %v19140_v12  ;;  %5129 = vmatpush1.bf16.msra.mxu1 %v12200_v19 }
 0x14a   :  { %5130 = vmatprep.subr.bf16.mxu1 %v19140_v12 }
 0x14e   :  { %3359 = vmatmul.mubr.bf16.gmra.mxu0 %v14071_v14  ;;  %v12195_v14 = vld [vmem:[%s18823_s5 + $0x20] sm:$0xff]  }
 0x14f   :  { %11193 = vmatprep.mubr.msk.bf16.mxu0 %vm19379_vm15, %v14079_v49  ;;  %5380 = vmatpush1.bf16.msra.mxu0 %v12195_v14  ;;  %vm19384_vm15 = vmmov %vm19374_vm0 }
 0x150   :  { %5381 = vmatprep.subr.bf16.mxu0 %v19140_v12 }
 0x156   :  { %3367 = vmatmul.mubr.bf16.gmra.mxu0 %v14119_v2 }
 0x157   :  { %11194 = vmatprep.mubr.msk.bf16.mxu0 %vm19374_vm0, %v14127_v51 }
 0x15e   :  { %3375 = vmatmul.mubr.bf16.gmra.mxu0 %v14149_v56  ;;  %v12196_v56 = vld [vmem:[%s18823_s5 + $0x18] sm:$0xff]  }
 0x15f   :  { %11195 = vmatprep.mubr.msk.bf16.mxu0 %vm19380_vm9, %v14151_v11  ;;  %5382 = vmatpush1.bf16.msra.mxu0 %v12196_v56  ;;  %vm19385_vm9 = vmmov %vm19374_vm0 }
 0x160   :  { %5383 = vmatprep.subr.bf16.mxu0 %v19140_v12 }
 0x163   :  { %v2879_v15 = vpop.f32.mrf.mxu1  ;;  %5384 = vmatpush1.bf16.msra.mxu0 %v12197_v1 }
 0x164   :  { %5385 = vmatprep.subr.bf16.mxu0 %v19140_v12 }
 0x165   :  { %v2881_v37 = vpop.f32.mrf.mxu1 }
 0x166   :  { %3383 = vmatmul.mubr.bf16.gmra.mxu0 %v14170_v34 }
 0x167   :  { %11196 = vmatprep.mubr.msk.bf16.mxu0 %vm19381_vm7, %v14176_v26  ;;  %v2882_v29 = vpop.f32.mrf.mxu1  ;;  %vm19386_vm7 = vmmov %vm19374_vm0 }
 0x169   :  { %v2884_v0 = vpop.f32.mrf.mxu1 }
 0x16e   :  { %3391 = vmatmul.mubr.bf16.gmra.mxu0 %v14187_v10 }
 0x16f   :  { %11197 = vmatprep.mubr.msk.bf16.mxu0 %vm19382_vm8, %v14189_v48  ;;  %vm19387_vm8 = vmmov %vm19374_vm0 }
 0x175   :  { %v2634_v49 = vpop.f32.mrf.mxu0 }
 0x176   :  { %3399 = vmatmul.mubr.bf16.gmra.mxu0 %v14204_v39  ;;  %v14338_v57 = vadd.f32 %v2879_v15, %v2634_v49  ;;  %v2887_v2 = vpop.f32.mrf.mxu1  ;;  %v12202_v15 = vld [vmem:[%s18823_s5 + $0x50] sm:$0xff]  }
 0x177   :  { %11198 = vmatprep.mubr.msk.bf16.mxu0 %vm19383_vm2, %v14207_v41  ;;  %v2636_v51 = vpop.f32.mrf.mxu0  ;;  %v12198_v41 = vld [vmem:[%s18823_s5 + $0x8] sm:$0xff]   ;;  %vm19388_vm2 = vmmov %vm19374_vm0 }
 0x178   :  { %v2889_v11 = vpop.f32.mrf.mxu1  ;;  %5386 = vmatpush1.bf16.msra.mxu0 %v12198_v41 }
 0x179   :  { %v2637_v34 = vpop.f32.mrf.mxu0  ;;  %5387 = vmatprep.subr.bf16.mxu0 %v19140_v12 }
 0x17a   :  { %v14346_v26 = vadd.f32 %v2882_v29, %v2637_v34  ;;  %v2890_v10 = vpop.f32.mrf.mxu1 }
 0x17b   :  { %v2639_v48 = vpop.f32.mrf.mxu0 }
 0x17c   :  { %v2892_v22 = vpop.f32.mrf.mxu1 }
 0x17d   :  { %v2642_v20 = vpop.f32.mrf.mxu0 }
 0x17e   :  { %3407 = vmatmul.mubr.bf16.gmra.mxu0 %v14222_v8  ;;  %v14353_v39 = vadd.f32 %v2887_v2, %v2642_v20  ;;  %v2895_v32 = vpop.f32.mrf.mxu1  ;;  %v12203_v2 = vld [vmem:[%s18823_s5 + $0x48] sm:$0xff]  }
 0x17f   :  { %11199 = vmatprep.mubr.msk.bf16.mxu0 %vm19384_vm15, %v14224_v46  ;;  %v2644_v43 = vpop.f32.mrf.mxu0  ;;  %v12199_v46 = vld [vmem:[%s18823_s5] sm:$0xff]   ;;  %vm19390_vm15 = vmor %vm13574_vm12, %vm13551_vm13 }
 0x180   :  { %v2897_v63 = vpop.f32.mrf.mxu1  ;;  %5388 = vmatpush1.bf16.msra.mxu0 %v12199_v46 }
 0x181   :  { %v2645_v18 = vpop.f32.mrf.mxu0  ;;  %5397 = vmatprep.subr.bf16.mxu0 %v19140_v12 }
 0x182   :  { %v14361_v24 = vadd.f32 %v2890_v10, %v2645_v18  ;;  %v2898_v44 = vpop.f32.mrf.mxu1  ;;  %v12205_v10 = vld [vmem:[%s18823_s5 + $0x40] sm:$0xff]  }
 0x183   :  { %v2647_v8 = vpop.f32.mrf.mxu0 }
 0x184   :  { %v2900_v40 = vpop.f32.mrf.mxu1  ;;  %5398 = vmatpush2.bf16.msra.mxu0 %v12201_v16 }
 0x185   :  { %v2650_v47 = vpop.f32.mrf.mxu0  ;;  %5399 = vmatprep.subr.bf16.mxu0 %v19140_v12 }
 0x186   :  { %3415 = vmatmul.mubr.bf16.gmra.mxu0 %v14236_v30  ;;  %v14368_v45 = vadd.f32 %v2895_v32, %v2650_v47  ;;  %v2903_v60 = vpop.f32.mrf.mxu1 }
 0x187   :  { %11200 = vmatprep.mubr.msk.bf16.mxu0 %vm19374_vm0, %v14239_v55  ;;  %v2652_v58 = vpop.f32.mrf.mxu0 }
 0x188   :  { %v2905_v3 = vpop.f32.mrf.mxu1  ;;  %5400 = vmatpush2.bf16.msra.mxu0 %v12202_v15 }
 0x189   :  { %v2653_v5 = vpop.f32.mrf.mxu0  ;;  %5401 = vmatprep.subr.bf16.mxu0 %v19140_v12 }
 0x18a   :  { %v14376_v6 = vadd.f32 %v2898_v44, %v2653_v5  ;;  %v2906_v62 = vpop.f32.mrf.mxu1 }
 0x18b   :  { %v2655_v30 = vpop.f32.mrf.mxu0 }
 0x18c   :  { %v2908_v53 = vpop.f32.mrf.mxu1  ;;  %5402 = vmatpush2.bf16.msra.mxu0 %v12203_v2 }
 0x18d   :  { %5403 = vmatprep.subr.bf16.mxu0 %v19140_v12  ;;  %v12191_v53 = vld [vmem:[#allocation2 + $0x118] ss:$8 sps:$4 sm:$0xff]  }
 0x18e   :  { %v2658_v55 = vpop.f32.mrf.mxu0  ;;  %3423 = vmatmul.mubr.bf16.gmra.mxu0 %v14252_v38  ;;  %v2911_v50 = vpop.f32.mrf.mxu1 }
 0x18f   :  { %v14383_v37 = vadd.f32 %v2903_v60, %v2658_v55  ;;  %11201 = vmatprep.mubr.msk.bf16.mxu0 %vm19385_vm9, %v14259_v52  ;;  %v699_v55 = vld [vmem:[#allocation3 + $0x18] sm:$0x11] }
 0x190   :  { %v2660_v29 = vpop.f32.mrf.mxu0  ;;  %v2913_v0 = vpop.f32.mrf.mxu1  ;;  %5404 = vmatpush2.bf16.msra.mxu0 %v12205_v10 }
 0x191   :  { %7616 = vmatprep.subr.bf16.mxu0 %v19140_v12  ;;  %v700_v0 = vsel %vm19390_vm15, 0, %v699_v55  ;;  %vm19396_vm15 = vcmask 523264  }
 0x192   :  { %v2661_v38 = vpop.f32.mrf.mxu0  ;;  %v2914_v49 = vpop.f32.mrf.mxu1  ;;  %701 = vst [vmem:[#allocation3 + $0x18] sm:$0x11] %v700_v0 }
 0x193   :  { %v14391_v14 = vadd.f32 %v2906_v62, %v2661_v38 }
 0x194   :  { %v2663_v52 = vpop.f32.mrf.mxu0  ;;  %v2916_v51 = vpop.f32.mrf.mxu1 }
 0x196   :  { %v2666_v56 = vpop.f32.mrf.mxu0  ;;  %3431 = vmatmul.mubr.bf16.gmra.mxu0 %v14266_v31  ;;  %v2919_v34 = vpop.f32.mrf.mxu1 }
 0x197   :  { %v14399_v11 = vadd.f32 %v2911_v50, %v2666_v56  ;;  %11202 = vmatprep.mubr.msk.bf16.mxu0 %vm19386_vm7, %v14279_v27  ;;  %v12204_v27 = vld [vmem:[%s18823_s5 + $0x90] sm:$0xff]  }
 0x198   :  { %v2668_v48 = vpop.f32.mrf.mxu0  ;;  %v2921_v1 = vpop.f32.mrf.mxu1  ;;  %5131 = vmatpush1.bf16.msra.mxu1 %v12204_v27 }
 0x199   :  { %5132 = vmatprep.subr.bf16.mxu1 %v19140_v12 }
 0x19a   :  { %v2669_v22 = vpop.f32.mrf.mxu0  ;;  %v2922_v31 = vpop.f32.mrf.mxu1 }
 0x19b   :  { %v14407_v20 = vadd.f32 %v2914_v49, %v2669_v22 }
 0x19c   :  { %v2671_v32 = vpop.f32.mrf.mxu0  ;;  %v2924_v43 = vpop.f32.mrf.mxu1 }
 0x19e   :  { %v2674_v41 = vpop.f32.mrf.mxu0  ;;  %3439 = vmatmul.mubr.bf16.gmra.mxu0 %v14281_v9  ;;  %v12189_v9 = vld [vmem:[#allocation2 + $0x11c] ss:$8 sps:$4 sm:$0xff]  }
 0x19f   :  { %v14413_v63 = vadd.f32 %v2919_v34, %v2674_v41  ;;  %11203 = vmatprep.mubr.msk.bf16.mxu0 %vm19387_vm8, %v14288_v13  ;;  %v12209_v34 = vld [vmem:[%s18823_s5 + $0x88] sm:$0xff]  }
 0x1a0   :  { %v2676_v44 = vpop.f32.mrf.mxu0  ;;  %5133 = vmatpush1.bf16.msra.mxu1 %v12209_v34 }
 0x1a1   :  { %5134 = vmatprep.subr.bf16.mxu1 %v19140_v12 }
 0x1a2   :  { %v2927_v18 = vpop.f32.mrf.mxu1  ;;  %v2677_v46 = vpop.f32.mrf.mxu0 }
 0x1a3   :  { %v14418_v40 = vadd.f32 %v2922_v31, %v2677_v46 }
 0x1a4   :  { %v2929_v8 = vpop.f32.mrf.mxu1  ;;  %v2679_v60 = vpop.f32.mrf.mxu0 }
 0x1a5   :  { %v12210_v8 = vld [vmem:[%s18823_s5 + $0x80] sm:$0xff]  }
 0x1a6   :  { %v2930_v47 = vpop.f32.mrf.mxu1  ;;  %v2682_v3 = vpop.f32.mrf.mxu0  ;;  %3447 = vmatmul.mubr.bf16.gmra.mxu0 %v14293_v59  ;;  %5135 = vmatpush1.bf16.msra.mxu1 %v12210_v8 }
 0x1a7   :  { %v14421_v16 = vadd.f32 %v2927_v18, %v2682_v3  ;;  %11204 = vmatprep.mubr.msk.bf16.mxu0 %vm19388_vm2, %v12189_v9  ;;  %5136 = vmatprep.subr.bf16.mxu1 %v19140_v12  ;;  %vm19395_vm2 = vcmask 519168  }
 0x1a8   :  { %v2932_v58 = vpop.f32.mrf.mxu1  ;;  %v2684_v5 = vpop.f32.mrf.mxu0 }
 0x1aa   :  { %v2935_v13 = vpop.f32.mrf.mxu1  ;;  %v2685_v30 = vpop.f32.mrf.mxu0 }
 0x1ab   :  { %v14424_v15 = vadd.f32 %v2930_v47, %v2685_v30 }
 0x1ac   :  { %v2937_v62 = vpop.f32.mrf.mxu1  ;;  %v2687_v59 = vpop.f32.mrf.mxu0 }
 0x1ae   :  { %v2938_v50 = vpop.f32.mrf.mxu1  ;;  %v2690_v38 = vpop.f32.mrf.mxu0  ;;  %3455 = vmatmul.mubr.bf16.gmra.mxu0 %v12191_v53 }
 0x1af   :  { %v14431_v49 = vadd.f32 %v2935_v13, %v2690_v38 }
 0x1b0   :  { %v2940_v19 = vpop.f32.mrf.mxu1  ;;  %v2692_v52 = vpop.f32.mrf.mxu0 }
 0x1b2   :  { %v2943_v2 = vpop.f32.mrf.mxu1  ;;  %v2693_v56 = vpop.f32.mrf.mxu0 }
 0x1b3   :  { %v14436_v36 = vadd.f32 %v2938_v50, %v2693_v56  ;;  %v12211_v50 = vld [vmem:[%s18823_s5 + $0x78] sm:$0xff]  }
 0x1b4   :  { %v2945_v51 = vpop.f32.mrf.mxu1  ;;  %v2695_v48 = vpop.f32.mrf.mxu0  ;;  %5137 = vmatpush1.bf16.msra.mxu1 %v12211_v50 }
 0x1b5   :  { %5138 = vmatprep.subr.bf16.mxu1 %v19140_v12 }
 0x1b6   :  { %v2946_v10 = vpop.f32.mrf.mxu1  ;;  %v2698_v22 = vpop.f32.mrf.mxu0 }
 0x1b7   :  { %v14439_v31 = vadd.f32 %v2943_v2, %v2698_v22 }
 0x1b8   :  { %v2948_v1 = vpop.f32.mrf.mxu1  ;;  %v2700_v43 = vpop.f32.mrf.mxu0 }
 0x1ba   :  { %v2951_v32 = vpop.f32.mrf.mxu1  ;;  %v2701_v27 = vpop.f32.mrf.mxu0 }
 0x1bb   :  { %v14441_v18 = vadd.f32 %v2946_v10, %v2701_v27 }
 0x1bc   :  { %v2953_v41 = vpop.f32.mrf.mxu1  ;;  %v2703_v46 = vpop.f32.mrf.mxu0 }
 0x1be   :  { %v2954_v44 = vpop.f32.mrf.mxu1  ;;  %v2706_v9 = vpop.f32.mrf.mxu0 }
 0x1bf   :  { %v14447_v60 = vadd.f32 %v2951_v32, %v2706_v9 }
 0x1c0   :  { %v2956_v47 = vpop.f32.mrf.mxu1  ;;  %v2708_v3 = vpop.f32.mrf.mxu0 }
 0x1c2   :  { %v2959_v58 = vpop.f32.mrf.mxu1  ;;  %v2709_v5 = vpop.f32.mrf.mxu0 }
 0x1c3   :  { %v14449_v62 = vadd.f32 %v2954_v44, %v2709_v5 }
 0x1c4   :  { %v2961_v13 = vpop.f32.mrf.mxu1  ;;  %v2711_v53 = vpop.f32.mrf.mxu0 }
 0x1c5   :  { %v12212_v13 = vld [vmem:[%s18823_s5 + $0x70] sm:$0xff]  }
 0x1c6   :  { %v2962_v30 = vpop.f32.mrf.mxu1  ;;  %v2714_v29 = vpop.f32.mrf.mxu0  ;;  %5139 = vmatpush1.bf16.msra.mxu1 %v12212_v13  ;;  %v12214_v13 = vld [vmem:[%s18823_s5 + $0x60] sm:$0xff]  }
 0x1c7   :  { %v14454_v0 = vadd.f32 %v2959_v58, %v2714_v29  ;;  %5140 = vmatprep.subr.bf16.mxu1 %v19140_v12 }
 0x1c8   :  { %v2964_v55 = vpop.f32.mrf.mxu1  ;;  %v2716_v19 = vpop.f32.mrf.mxu0 }
 0x1ca   :  { %v2967_v59 = vpop.f32.mrf.mxu1  ;;  %v2717_v2 = vpop.f32.mrf.mxu0 }
 0x1cb   :  { %v14457_v52 = vadd.f32 %v2962_v30, %v2717_v2 }
 0x1cc   :  { %v2969_v38 = vpop.f32.mrf.mxu1  ;;  %v2719_v56 = vpop.f32.mrf.mxu0 }
 0x1cd   :  { %v12213_v56 = vld [vmem:[%s18823_s5 + $0x68] sm:$0xff]  }
 0x1ce   :  { %v2970_v51 = vpop.f32.mrf.mxu1  ;;  %v2722_v10 = vpop.f32.mrf.mxu0  ;;  %5141 = vmatpush1.bf16.msra.mxu1 %v12213_v56 }
 0x1cf   :  { %v14459_v48 = vadd.f32 %v2967_v59, %v2722_v10  ;;  %5142 = vmatprep.subr.bf16.mxu1 %v19140_v12 }
 0x1d0   :  { %v2972_v34 = vpop.f32.mrf.mxu1  ;;  %v2724_v22 = vpop.f32.mrf.mxu0 }
 0x1d2   :  { %v2975_v1 = vpop.f32.mrf.mxu1  ;;  %v2725_v43 = vpop.f32.mrf.mxu0  ;;  %5143 = vmatpush1.bf16.msra.mxu1 %v12214_v13 }
 0x1d3   :  { %v14461_v41 = vadd.f32 %v2970_v51, %v2725_v43  ;;  %5152 = vmatprep.subr.bf16.mxu1 %v19140_v12 }
 0x1d4   :  { %v2977_v32 = vpop.f32.mrf.mxu1  ;;  %v2727_v44 = vpop.f32.mrf.mxu0 }
 0x1d6   :  { %v2978_v27 = vpop.f32.mrf.mxu1  ;;  %v2730_v46 = vpop.f32.mrf.mxu0 }
 0x1d7   :  { %v14463_v47 = vadd.f32 %v2975_v1, %v2730_v46 }
 0x1d8   :  { %v2980_v8 = vpop.f32.mrf.mxu1  ;;  %v2732_v58 = vpop.f32.mrf.mxu0 }
 0x1da   :  { %v2983_v9 = vpop.f32.mrf.mxu1  ;;  %v2733_v5 = vpop.f32.mrf.mxu0 }
 0x1db   :  { %v14468_v30 = vadd.f32 %v2978_v27, %v2733_v5 }
 0x1dc   :  { %v2985_v3 = vpop.f32.mrf.mxu1  ;;  %v2735_v55 = vpop.f32.mrf.mxu0 }
 0x1de   :  { %v2986_v53 = vpop.f32.mrf.mxu1  ;;  %v2738_v29 = vpop.f32.mrf.mxu0 }
 0x1df   :  { %v14471_v59 = vadd.f32 %v2983_v9, %v2738_v29 }
 0x1e0   :  { %v2988_v50 = vpop.f32.mrf.mxu1  ;;  %v2740_v38 = vpop.f32.mrf.mxu0 }
 0x1e2   :  { %v2991_v19 = vpop.f32.mrf.mxu1  ;;  %v2741_v51 = vpop.f32.mrf.mxu0 }
 0x1e3   :  { %v14476_v34 = vadd.f32 %v2986_v53, %v2741_v51 }
 0x1e4   :  { %v2993_v2 = vpop.f32.mrf.mxu1  ;;  %v2743_v1 = vpop.f32.mrf.mxu0 }
 0x1e5   :  { %v14494_v2 = vld [vmem:[%s18824_s2] ss:$0 sm:$0xff] }
 0x1e6   :  { %v2994_v10 = vpop.f32.mrf.mxu1  ;;  %v2746_v32 = vpop.f32.mrf.mxu0 }
 0x1e7   :  { %v14479_v43 = vadd.f32 %v2991_v19, %v2746_v32  ;;  %v14506_v32 = vstv %s18826_s4 }
 0x1e8   :  { %v2996_v22 = vpop.f32.mrf.mxu1  ;;  %v2748_v44 = vpop.f32.mrf.mxu0  ;;  %19391 = vst [vmem:[#allocation35_spill] sm:$0xff] %v14506_v32 }
 0x1ea   :  { %v2999_v27 = vpop.f32.mrf.mxu1  ;;  %v2749_v46 = vpop.f32.mrf.mxu0 }
 0x1eb   :  { %v14481_v9 = vadd.f32 %v2994_v10, %v2749_v46  ;;  %v14500_v10 = vld [vmem:[%s18825_s3] ss:$0 sm:$0xff] }
 0x1ec   :  { %v3001_v8 = vpop.f32.mrf.mxu1  ;;  %v2751_v3 = vpop.f32.mrf.mxu0 }
 0x1ee   :  { %v3002_v58 = vpop.f32.mrf.mxu1  ;;  %v2754_v53 = vpop.f32.mrf.mxu0 }
 0x1ef   :  { %v14486_v55 = vadd.f32 %v2999_v27, %v2754_v53 }
 0x1f0   :  { %v3004_v5 = vpop.f32.mrf.mxu1  ;;  %v2756_v50 = vpop.f32.mrf.mxu0 }
 0x1f2   :  { %v2757_v29 = vpop.f32.mrf.mxu0 }
 0x1f3   :  { %v14489_v19 = vadd.f32 %v3002_v58, %v2757_v29 }
 0x1f4   :  { %v2759_v38 = vpop.f32.mrf.mxu0 }
 0x1f5   :  { %v12215_v38 = vld [vmem:[%s18823_s5 + $0xb8] sm:$0xff]  }
 0x1f6   :  { %v3336_v51 = vpop.f32.mrf.mxu0  ;;  %5153 = vmatpush2.bf16.msra.mxu1 %v12215_v38 }
 0x1f7   :  { %v3463_v56 = vadd.f32 %v3336_v51, %v14338_v57  ;;  %5154 = vmatprep.subr.bf16.mxu1 %v19140_v12 }
 0x1f8   :  { %v3338_v1 = vpop.f32.mrf.mxu0 }
 0x1f9   :  { %v3501_v22 = vmul.f32 %v14494_v2, %v3463_v56 }
 0x1fa   :  { %v3339_v27 = vpop.f32.mrf.mxu0 }
 0x1fb   :  { %v3539_v44 = vadd.f32 %v14500_v10, %v3501_v22  ;;  %v3464_v8 = vadd.f32 %v3339_v27, %v14346_v26 }
 0x1fc   :  { %v3341_v46 = vpop.f32.mrf.mxu0 }
 0x1fd   :  { %v3604_v57 = vmul.f32 %v14506_v32, %v3539_v44  ;;  %v3502_v58 = vmul.f32 %v14494_v2, %v3464_v8  ;;  %vm3571_vm13 = vcmp.ge.f32.partialorder %v3539_v44, 0.0 }
 0x1fe   :  { %v3344_v3 = vpop.f32.mrf.mxu0 }
 0x1ff   :  { %v3540_v13 = vadd.f32 %v14500_v10, %v3502_v58  ;;  %v3465_v5 = vadd.f32 %v3344_v3, %v14353_v39  ;;  %v3636_v53 = vsel %vm3571_vm13, %v3539_v44, %v3604_v57  ;;  %vm19397_vm13 = vmmov %vm19395_vm2 }
 0x200   :  { %v3346_v50 = vpop.f32.mrf.mxu0  ;;  %v12003_v29 = vpack.c.bf16 %v3636_v53, %v3636_v53 }
 0x201   :  { %v3605_v26 = vmul.f32 %v14506_v32, %v3540_v13  ;;  %v3503_v51 = vmul.f32 %v14494_v2, %v3465_v5  ;;  %vm3572_vm12 = vcmp.ge.f32.partialorder %v3540_v13, 0.0 }
 0x202   :  { %3764 = vrot.lane.b32.xlu0 %v12003_v29, %s12468_s13  ;;  %v3347_v56 = vpop.f32.mrf.mxu0 }
 0x203   :  { %v3541_v1 = vadd.f32 %v14500_v10, %v3503_v51  ;;  %v3466_v39 = vadd.f32 %v3347_v56, %v14361_v24  ;;  %v3637_v22 = vsel %vm3572_vm12, %v3540_v13, %v3605_v26  ;;  %v12216_v26 = vld [vmem:[%s18823_s5 + $0xb0] sm:$0xff]  }
 0x204   :  { %v3349_v27 = vpop.f32.mrf.mxu0  ;;  %v12004_v44 = vpack.c.bf16 %v3637_v22, %v3637_v22  ;;  %v14523_v8 = vpack.c.bf16 %v3637_v22, %v3636_v53  ;;  %5155 = vmatpush2.bf16.msra.mxu1 %v12216_v26 }
 0x205   :  { %v3606_v46 = vmul.f32 %v14506_v32, %v3541_v1  ;;  %v3504_v57 = vmul.f32 %v14494_v2, %v3466_v39  ;;  %vm3573_vm0 = vcmp.ge.f32.partialorder %v3541_v1, 0.0  ;;  %5156 = vmatprep.subr.bf16.mxu1 %v19140_v12 }
 0x206   :  { %3766 = vrot.lane.b32.xlu1 %v12004_v44, %s12468_s13  ;;  %v4345_v3 = vsel %vm12619_vm14, %v14523_v8, 0  ;;  %v3352_v5 = vpop.f32.mrf.mxu0  ;;  %v4793_v44 = vld [vmem:[#allocation3 + $0x14] sm:$0x8] }
 0x207   :  { %v3542_v24 = vadd.f32 %v14500_v10, %v3504_v57  ;;  %v11271_v13 = vcombine.low %v4345_v3, %v4345_v3  ;;  %v11272_v50 = vcombine.high %v4345_v3, %v4345_v3  ;;  %v3467_v29 = vadd.f32 %v3352_v5, %v14368_v45 }
 0x208   :  { %v3354_v53 = vpop.f32.mrf.mxu0  ;;  %v3638_v38 = vsel %vm3573_vm0, %v3541_v1, %v3606_v46 }
 0x209   :  { %v3607_v51 = vmul.f32 %v14506_v32, %v3542_v24  ;;  %v4442_v56 = vshll.u32 %v11271_v13, 16  ;;  %v4445_v39 = vshrl.u32 %v11271_v13, 16  ;;  %v4451_v22 = vshll.u32 %v11272_v50, 16 }
 0x20a   :  { %v3355_v27 = vpop.f32.mrf.mxu0  ;;  %v4455_v42 = vshrl.u32 %v11272_v50, 16  ;;  %v3505_v57 = vmul.f32 %v14494_v2, %v3467_v29  ;;  %v12005_v21 = vpack.c.bf16 %v3638_v38, %v3638_v38  ;;  %vm3574_vm9 = vcmp.ge.f32.partialorder %v3542_v24, 0.0 }
 0x20b   :  { %v4444_v3 = vrot.slane %v4442_v56, 5  ;;  %v4447_v45 = vrot.slane %v4445_v39, 4  ;;  %v3468_v1 = vadd.f32 %v3355_v27, %v14376_v6  ;;  %v4453_v5 = vrot.slane %v4451_v22, 5 }
 0x20c   :  { %v3357_v46 = vpop.f32.mrf.mxu0  ;;  %v4457_v53 = vrot.slane %v4455_v42, 4  ;;  %v3543_v54 = vadd.f32 %v14500_v10, %v3505_v57  ;;  %3768 = vrot.lane.b32.xlu0 %v12005_v21, %s12468_s13  ;;  %v3639_v56 = vsel %vm3574_vm9, %v3542_v24, %v3607_v51  ;;  %vm19400_vm9 = vmmov %vm19395_vm2 }
 0x20d   :  { %v4448_v13 = vor.u32 %v4447_v45, %v4444_v3  ;;  %v4794_v29 = vsel %vm12663_vm5, %v4444_v3, %v4793_v44  ;;  %v3506_v26 = vmul.f32 %v14494_v2, %v3468_v1  ;;  %v12006_v27 = vpack.c.bf16 %v3639_v56, %v3639_v56 }
 0x20e   :  { %v3360_v39 = vpop.f32.mrf.mxu0  ;;  %4795 = vst [vmem:[#allocation3 + $0x14] sm:$0x8] %v4794_v29  ;;  %v3608_v6 = vmul.f32 %v14506_v32, %v3543_v54  ;;  %v14546_v46 = vpack.c.bf16 %v3639_v56, %v3638_v38  ;;  %vm3575_vm7 = vcmp.ge.f32.partialorder %v3543_v54, 0.0  ;;  %v4458_v3 = vor.u32 %v4457_v53, %v4453_v5 }
 0x20f   :  { %v3544_v42 = vadd.f32 %v14500_v10, %v3506_v26  ;;  %v3469_v22 = vadd.f32 %v3360_v39, %v14383_v37  ;;  %3770 = vrot.lane.b32.xlu1 %v12006_v27, %s12468_s13  ;;  %v4449_v51 = vrot.slane %v4448_v13, 4  ;;  %v12217_v37 = vld [vmem:[%s18823_s5 + $0xa8] sm:$0xff]  }
 0x210   :  { %v3362_v21 = vpop.f32.mrf.mxu0  ;;  %v4346_v57 = vsel %vm12667_vm6, %v14546_v46, 0  ;;  %v3640_v24 = vsel %vm3575_vm7, %v3543_v54, %v3608_v6  ;;  %5157 = vmatpush2.bf16.msra.mxu1 %v12217_v37 }
 0x211   :  { %v11273_v45 = vcombine.low %v4346_v57, %v4346_v57  ;;  %v11274_v29 = vcombine.high %v4346_v57, %v4346_v57  ;;  %v3507_v38 = vmul.f32 %v14494_v2, %v3469_v22  ;;  %v12007_v56 = vpack.c.bf16 %v3640_v24, %v3640_v24  ;;  %v12206_v22 = vld [vmem:[#allocation3 + $0x8] ss:$8 sps:$4 sm:$0xff]   ;;  %5158 = vmatprep.subr.bf16.mxu1 %v19140_v12 }
 0x212   :  { %v3363_v1 = vpop.f32.mrf.mxu0  ;;  %v3609_v39 = vmul.f32 %v14506_v32, %v3544_v42  ;;  %vm3576_vm8 = vcmp.ge.f32.partialorder %v3544_v42, 0.0 }
 0x213   :  { %v3470_v26 = vadd.f32 %v3363_v1, %v14391_v14  ;;  %v4461_v21 = vshll.u32 %v11273_v45, 16  ;;  %v4465_v28 = vshrl.u32 %v11273_v45, 16  ;;  %v4471_v54 = vshll.u32 %v11274_v29, 16  ;;  %3772 = vrot.lane.b32.xlu0 %v12007_v56, %s12468_s13 }
 0x214   :  { %v3365_v27 = vpop.f32.mrf.mxu0  ;;  %v4475_v13 = vshrl.u32 %v11274_v29, 16  ;;  %v3545_v53 = vadd.f32 %v14500_v10, %v3507_v38  ;;  %v4454_v1 = vsel %vm12696_vm11, %v4449_v51, %v4453_v5  ;;  %v3641_v37 = vsel %vm3576_vm8, %v3544_v42, %v3609_v39 }
 0x215   :  { %v3508_v6 = vmul.f32 %v14494_v2, %v3470_v26  ;;  %v12208_v57 = vld [vmem:[#allocation3 + $0xc] ss:$8 sps:$4 sm:$0xff]   ;;  %v4459_v27 = vrot.slane %v4458_v3, 4  ;;  %v4463_v45 = vrot.slane %v4461_v21, 5  ;;  %v4467_v33 = vrot.slane %v4465_v28, 4 }
 0x216   :  { %v3368_v14 = vpop.f32.mrf.mxu0  ;;  %v4473_v29 = vrot.slane %v4471_v54, 5  ;;  %4796 = vst.msk [vmem:[#allocation3 + $0x1c] sm:$0xf] %vm19395_vm2, %v4454_v1  ;;  %v4477_v56 = vrot.slane %v4475_v13, 4  ;;  %v3610_v38 = vmul.f32 %v14506_v32, %v3545_v53  ;;  %11377 = vmatprep.mubr.msk.bf16.mxu0 %vm19396_vm15, %v12208_v57  ;;  %v12008_v21 = vpack.c.bf16 %v3641_v37, %v3641_v37 }
 0x217   :  { %v3471_v26 = vadd.f32 %v3368_v14, %v14399_v11  ;;  %v4464_v5 = vsel %vm12696_vm11, %v4459_v27, %v4463_v45  ;;  %v4468_v51 = vor.u32 %v4467_v33, %v4463_v45  ;;  %v3546_v3 = vadd.f32 %v14500_v10, %v3508_v6  ;;  %5406 = vmatmul.mubr.bf16.vlgmr.msra.gmra.mxu0 %v12206_v22  ;;  %v12384_v11 = vld [vmem:[%s18822_s1 + $0x98] sm:$0xff]  }
 0x218   :  { %v3370_v44 = vpop.f32.mrf.mxu0  ;;  %4797 = vst.msk [vmem:[#allocation3 + $0x24] sm:$0xf] %vm19397_vm13, %v4464_v5  ;;  %v14574_v28 = vpack.c.bf16 %v3641_v37, %v3640_v24  ;;  %vm3577_vm12 = vcmp.ge.f32.partialorder %v3545_v53, 0.0  ;;  %7617 = vmatpush1.bf16.msra.mxu0 %v12384_v11  ;;  %3774 = vrot.lane.b32.xlu1 %v12008_v21, %s12468_s13  ;;  %v19398_v24 = vld [vmem:[#allocation11_spill] sm:$0xff]  ;;  %v4478_v1 = vor.u32 %v4477_v56, %v4473_v29  ;;  %vm19403_vm13 = vmmov %vm19395_vm2 }
 0x219   :  { %v3509_v54 = vmul.f32 %v14494_v2, %v3471_v26  ;;  %v4469_v44 = vrot.slane %v4468_v51, 4  ;;  %v3642_v33 = vsel %vm3577_vm12, %v3545_v53, %v3610_v38  ;;  %7618 = vmatprep.subr.bf16.mxu0 %v19140_v12  ;;  %vm19399_vm0 = vnez %v19398_v24  ;;  %v12385_v38 = vld [vmem:[%s18822_s1 + $0x90] sm:$0xff]  }
 0x21a   :  { %v3371_v42 = vpop.f32.mrf.mxu0  ;;  %v4347_v13 = vsel %vm19399_vm0, %v14574_v28, 0  ;;  %v12009_v14 = vpack.c.bf16 %v3642_v33, %v3642_v33  ;;  %v3611_v27 = vmul.f32 %v14506_v32, %v3546_v3  ;;  %vm3578_vm7 = vcmp.ge.f32.partialorder %v3546_v3, 0.0 }
 0x21b   :  { %v3472_v39 = vadd.f32 %v3371_v42, %v14407_v20  ;;  %v3547_v6 = vadd.f32 %v14500_v10, %v3509_v54  ;;  %v4474_v57 = vsel %vm12696_vm11, %v4469_v44, %v4473_v29  ;;  %v11275_v45 = vcombine.low %v4347_v13, %v4347_v13 }
 0x21c   :  { %v3373_v22 = vpop.f32.mrf.mxu0  ;;  %4798 = vst.msk [vmem:[#allocation3 + $0x2c] sm:$0xf] %vm19400_vm9, %v4474_v57  ;;  %v11276_v20 = vcombine.high %v4347_v13, %v4347_v13  ;;  %3776 = vrot.lane.b32.xlu0 %v12009_v14, %s12468_s13  ;;  %7619 = vmatpush1.bf16.msra.mxu0 %v12385_v38  ;;  %v4479_v54 = vrot.slane %v4478_v1, 4  ;;  %v3643_v42 = vsel %vm3578_vm7, %v3546_v3, %v3611_v27 }
 0x21d   :  { %v3612_v37 = vmul.f32 %v14506_v32, %v3547_v6  ;;  %v3510_v26 = vmul.f32 %v14494_v2, %v3472_v39  ;;  %7620 = vmatprep.subr.bf16.mxu0 %v19140_v12  ;;  %v4481_v29 = vshll.u32 %v11275_v45, 16  ;;  %v4485_v56 = vshrl.u32 %v11275_v45, 16  ;;  %v12386_v39 = vld [vmem:[%s18822_s1 + $0x88] sm:$0xff]  }
 0x21e   :  { %v3376_v53 = vpop.f32.mrf.mxu0  ;;  %v4491_v5 = vshll.u32 %v11276_v20, 16  ;;  %v4495_v51 = vshrl.u32 %v11276_v20, 16  ;;  %vm3579_vm8 = vcmp.ge.f32.partialorder %v3547_v6, 0.0  ;;  %v12010_v38 = vpack.c.bf16 %v3643_v42, %v3643_v42 }
 0x21f   :  { %v3473_v11 = vadd.f32 %v3376_v53, %v14413_v63  ;;  %v4483_v44 = vrot.slane %v4481_v29, 5  ;;  %v4487_v13 = vrot.slane %v4485_v56, 4  ;;  %v3548_v45 = vadd.f32 %v14500_v10, %v3510_v26  ;;  %v19401_v26 = vld [vmem:[#allocation13_spill] sm:$0xff] }
 0x220   :  { %v3378_v21 = vpop.f32.mrf.mxu0  ;;  %v4493_v14 = vrot.slane %v4491_v5, 5  ;;  %v4497_v22 = vrot.slane %v4495_v51, 4  ;;  %7621 = vmatpush1.bf16.msra.mxu0 %v12386_v39  ;;  %v14603_v20 = vpack.c.bf16 %v3643_v42, %v3642_v33  ;;  %v3644_v53 = vsel %vm3579_vm8, %v3547_v6, %v3612_v37  ;;  %3778 = vrot.lane.b32.xlu1 %v12010_v38, %s12468_s13  ;;  %vm19406_vm8 = vmmov %vm19395_vm2 }
 0x221   :  { %v3511_v3 = vmul.f32 %v14494_v2, %v3473_v11  ;;  %7622 = vmatprep.subr.bf16.mxu0 %v19140_v12  ;;  %v4484_v63 = vsel %vm12696_vm11, %v4479_v54, %v4483_v44  ;;  %v4488_v1 = vor.u32 %v4487_v13, %v4483_v44  ;;  %vm19402_vm15 = vnez %v19401_v26  ;;  %v12387_v54 = vld [vmem:[%s18822_s1 + $0x80] sm:$0xff]  }
 0x222   :  { %v3379_v57 = vpop.f32.mrf.mxu0  ;;  %v4498_v27 = vor.u32 %v4497_v22, %v4493_v14  ;;  %4799 = vst.msk [vmem:[#allocation3 + $0x34] sm:$0xf] %vm19395_vm2, %v4484_v63  ;;  %v4348_v33 = vsel %vm19402_vm15, %v14603_v20, 0  ;;  %v12011_v5 = vpack.c.bf16 %v3644_v53, %v3644_v53  ;;  %v3613_v6 = vmul.f32 %v14506_v32, %v3548_v45 }
 0x223   :  { %v3549_v56 = vadd.f32 %v14500_v10, %v3511_v3  ;;  %v4489_v51 = vrot.slane %v4488_v1, 4  ;;  %v11277_v37 = vcombine.low %v4348_v33, %v4348_v33  ;;  %v11278_v42 = vcombine.high %v4348_v33, %v4348_v33  ;;  %v12218_v1 = vld [vmem:[%s18823_s5 + $0xa0] sm:$0xff]  }
 0x224   :  { %v3381_v29 = vpop.f32.mrf.mxu0  ;;  %7623 = vmatpush1.bf16.msra.mxu0 %v12387_v54  ;;  %3780 = vrot.lane.b32.xlu0 %v12011_v5, %s12468_s13  ;;  %v3474_v11 = vadd.f32 %v3379_v57, %v14418_v40  ;;  %v4499_v13 = vrot.slane %v4498_v27, 4  ;;  %vm3580_vm12 = vcmp.ge.f32.partialorder %v3548_v45, 0.0  ;;  %v12388_v27 = vld [vmem:[%s18822_s1 + $0x78] sm:$0xff]  }
 0x225   :  { %v4494_v44 = vsel %vm12696_vm11, %v4489_v51, %v4493_v14  ;;  %7624 = vmatprep.subr.bf16.mxu0 %v19140_v12  ;;  %v4501_v39 = vshll.u32 %v11277_v37, 16  ;;  %v4505_v38 = vshrl.u32 %v11277_v37, 16  ;;  %v4511_v3 = vshll.u32 %v11278_v42, 16  ;;  %5159 = vmatpush2.bf16.msra.mxu1 %v12218_v1 }
 0x226   :  { %v3384_v21 = vpop.f32.mrf.mxu0  ;;  %4800 = vst.msk [vmem:[#allocation3 + $0x3c] sm:$0xf] %vm19403_vm13, %v4494_v44  ;;  %v3614_v63 = vmul.f32 %v14506_v32, %v3549_v56  ;;  %v4515_v29 = vshrl.u32 %v11278_v42, 16  ;;  %v3512_v40 = vmul.f32 %v14494_v2, %v3474_v11  ;;  %v3645_v54 = vsel %vm3580_vm12, %v3548_v45, %v3613_v6  ;;  %5830 = vmatprep.subr.bf16.mxu1 %v19140_v12  ;;  %v19404_v45 = vld [vmem:[#allocation6_spill] sm:$0xff]  ;;  %vm19409_vm13 = vmmov %vm19406_vm8 }
 0x227   :  { %v3475_v14 = vadd.f32 %v3384_v21, %v14421_v16  ;;  %v4503_v33 = vrot.slane %v4501_v39, 5  ;;  %v4507_v5 = vrot.slane %v4505_v38, 4  ;;  %v4513_v51 = vrot.slane %v4511_v3, 5 }
 0x228   :  { %v3386_v22 = vpop.f32.mrf.mxu0  ;;  %7625 = vmatpush1.bf16.msra.mxu0 %v12388_v27  ;;  %v4517_v37 = vrot.slane %v4515_v29, 4  ;;  %v3550_v42 = vadd.f32 %v14500_v10, %v3512_v40  ;;  %v12012_v11 = vpack.c.bf16 %v3645_v54, %v3645_v54  ;;  %v14637_v44 = vpack.c.bf16 %v3645_v54, %v3644_v53  ;;  %v19407_v53 = vld [vmem:[#allocation15_spill] sm:$0xff] }
 0x229   :  { %7626 = vmatprep.subr.bf16.mxu0 %v19140_v12  ;;  %v4504_v21 = vsel %vm12696_vm11, %v4499_v13, %v4503_v33  ;;  %v4508_v22 = vor.u32 %v4507_v5, %v4503_v33  ;;  %v3513_v39 = vmul.f32 %v14494_v2, %v3475_v14  ;;  %vm3581_vm9 = vcmp.ge.f32.partialorder %v3549_v56, 0.0  ;;  %v12389_v13 = vld [vmem:[%s18822_s1 + $0x70] sm:$0xff]  }
 0x22a   :  { %v3387_v57 = vpop.f32.mrf.mxu0  ;;  %vm19405_vm7 = vnez %v19404_v45  ;;  %v4518_v38 = vor.u32 %v4517_v37, %v4513_v51  ;;  %4801 = vst.msk [vmem:[#allocation3 + $0x44] sm:$0xf] %vm19406_vm8, %v4504_v21  ;;  %3782 = vrot.lane.b32.xlu1 %v12012_v11, %s12468_s13  ;;  %vm19408_vm2 = vnez %v19407_v53  ;;  %v3646_v27 = vsel %vm3581_vm9, %v3549_v56, %v3614_v63  ;;  %v12390_v56 = vld [vmem:[%s18822_s1 + $0x68] sm:$0xff]   ;;  %vm19410_vm9 = vmmov %vm19406_vm8 }
 0x22b   :  { %v14646_v6 = vsel %vm19405_vm7, %v14523_v8, 0  ;;  %v4349_v3 = vsel %vm19408_vm2, %v14637_v44, 0  ;;  %v4509_v29 = vrot.slane %v4508_v22, 4  ;;  %v3551_v14 = vadd.f32 %v14500_v10, %v3513_v39 }
 0x22c   :  { %v3389_v16 = vpop.f32.mrf.mxu0  ;;  %7627 = vmatpush1.bf16.msra.mxu0 %v12389_v13  ;;  %v11279_v40 = vcombine.low %v4349_v3, %v4349_v3  ;;  %v11280_v8 = vcombine.high %v4349_v3, %v4349_v3  ;;  %v14660_v5 = vcombine.low %v14646_v6, %v14646_v6  ;;  %v3615_v37 = vmul.f32 %v14506_v32, %v3550_v42 }
 0x22d   :  { %7628 = vmatprep.subr.bf16.mxu0 %v19140_v12  ;;  %v4514_v54 = vsel %vm12696_vm11, %v4509_v29, %v4513_v51  ;;  %v4519_v11 = vrot.slane %v4518_v38, 4  ;;  %v3616_v39 = vmul.f32 %v14506_v32, %v3551_v14  ;;  %v12013_v13 = vpack.c.bf16 %v3646_v27, %v3646_v27 }
 0x22e   :  { %v3392_v1 = vpop.f32.mrf.mxu0  ;;  %4802 = vst.msk [vmem:[#allocation3 + $0x4c] sm:$0xf] %vm19409_vm13, %v4514_v54  ;;  %v4521_v16 = vshll.u32 %v11279_v40, 16  ;;  %v4525_v21 = vshrl.u32 %v11279_v40, 16  ;;  %v4531_v22 = vshll.u32 %v11280_v8, 16  ;;  %v4535_v63 = vshrl.u32 %v11280_v8, 16 }
 0x22f   :  { %v3476_v51 = vadd.f32 %v3387_v57, %v14424_v15  ;;  %vm3582_vm12 = vcmp.ge.f32.partialorder %v3550_v42, 0.0  ;;  %3784 = vrot.lane.b32.xlu0 %v12013_v13, %s12468_s13  ;;  %v3477_v8 = vadd.f32 %v3392_v1, %v14431_v49  ;;  %vm3583_vm8 = vcmp.ge.f32.partialorder %v3551_v14, 0.0 }
 0x230   :  { %v3394_v33 = vpop.f32.mrf.mxu0  ;;  %7629 = vmatpush1.bf16.msra.mxu0 %v12390_v56  ;;  %v4523_v38 = vrot.slane %v4521_v16, 5  ;;  %v4527_v29 = vrot.slane %v4525_v21, 4  ;;  %v4537_v54 = vrot.slane %v4535_v63, 4  ;;  %v3647_v26 = vsel %vm3582_vm12, %v3550_v42, %v3615_v37  ;;  %v12391_v21 = vld [vmem:[%s18822_s1 + $0x60] sm:$0xff]   ;;  %vm19413_vm12 = vmmov %vm19410_vm9 }
 0x231   :  { %7630 = vmatprep.subr.bf16.mxu0 %v19140_v12  ;;  %v4533_v33 = vrot.slane %v4531_v22, 5  ;;  %v3514_v53 = vmul.f32 %v14494_v2, %v3476_v51  ;;  %v12014_v15 = vpack.c.bf16 %v3647_v26, %v3647_v26  ;;  %v14677_v57 = vpack.c.bf16 %v3647_v26, %v3646_v27  ;;  %v19411_v26 = vld [vmem:[#allocation17_spill] sm:$0xff] }
 0x232   :  { %v3395_v3 = vpop.f32.mrf.mxu0  ;;  %v4524_v56 = vsel %vm12696_vm11, %v4519_v11, %v4523_v38  ;;  %v4528_v24 = vor.u32 %v4527_v29, %v4523_v38  ;;  %v3989_v22 = vshrl.u32 %v14660_v5, 16  ;;  %v3515_v49 = vmul.f32 %v14494_v2, %v3477_v8 }
 0x233   :  { %4803 = vst.msk [vmem:[#allocation3 + $0x54] sm:$0xf] %vm19410_vm9, %v4524_v56  ;;  %v3552_v42 = vadd.f32 %v14500_v10, %v3514_v53  ;;  %3786 = vrot.lane.b32.xlu1 %v12014_v15, %s12468_s13  ;;  %vm19412_vm13 = vnez %v19411_v26  ;;  %v4538_v11 = vor.u32 %v4537_v54, %v4533_v33  ;;  %v3648_v63 = vsel %vm3583_vm8, %v3551_v14, %v3616_v39 }
 0x234   :  { %v3397_v40 = vpop.f32.mrf.mxu0  ;;  %7631 = vmatpush1.bf16.msra.mxu0 %v12391_v21  ;;  %v4529_v1 = vrot.slane %v4528_v24, 4  ;;  %v4350_v27 = vsel %vm19412_vm13, %v14677_v57, 0  ;;  %v3553_v38 = vadd.f32 %v14500_v10, %v3515_v49  ;;  %v12392_v24 = vld [vmem:[%s18822_s1 + $0xb8] sm:$0xff]   ;;  %v14701_v8 = vrot.slane %v3989_v22, 7 }
 0x235   :  { %7640 = vmatprep.subr.bf16.mxu0 %v19140_v12  ;;  %v11281_v51 = vcombine.low %v4350_v27, %v4350_v27  ;;  %v11282_v53 = vcombine.high %v4350_v27, %v4350_v27  ;;  %v14699_v40 = vcombine.high %v14646_v6, %v14646_v6  ;;  %v3992_v14 = vshll.u32 %v14660_v5, 16 }
 0x236   :  { %v3400_v16 = vpop.f32.mrf.mxu0  ;;  %v4534_v13 = vsel %vm12696_vm11, %v4529_v1, %v4533_v33  ;;  %v3617_v39 = vmul.f32 %v14506_v32, %v3552_v42  ;;  %v3618_v49 = vmul.f32 %v14506_v32, %v3553_v38  ;;  %v12015_v1 = vpack.c.bf16 %v3648_v63, %v3648_v63 }
 0x237   :  { %4804 = vst.msk [vmem:[#allocation3 + $0x5c] sm:$0xf] %vm19413_vm12, %v4534_v13  ;;  %v4541_v33 = vshll.u32 %v11281_v51, 16  ;;  %v4545_v54 = vshrl.u32 %v11281_v51, 16  ;;  %v4551_v56 = vshll.u32 %v11282_v53, 16  ;;  %v4555_v15 = vshrl.u32 %v11282_v53, 16 }
 0x238   :  { %v3402_v37 = vpop.f32.mrf.mxu0  ;;  %7641 = vmatpush2.bf16.msra.mxu0 %v12392_v24  ;;  %v3478_v6 = vadd.f32 %v3395_v3, %v14436_v36  ;;  %vm3584_vm9 = vcmp.ge.f32.partialorder %v3552_v42, 0.0  ;;  %v4539_v22 = vrot.slane %v4538_v11, 4  ;;  %v12393_v24 = vld [vmem:[%s18822_s1 + $0xb0] sm:$0xff]   ;;  %3788 = vrot.lane.b32.xlu0 %v12015_v1, %s12468_s13  ;;  %vm3585_vm8 = vcmp.ge.f32.partialorder %v3553_v38, 0.0 }
 0x239   :  { %7642 = vmatprep.subr.bf16.mxu0 %v19140_v12  ;;  %v4543_v27 = vrot.slane %v4541_v33, 5  ;;  %v4547_v5 = vrot.slane %v4545_v54, 4  ;;  %v4553_v37 = vrot.slane %v4551_v56, 5  ;;  %v3649_v53 = vsel %vm3584_vm9, %v3552_v42, %v3617_v39 }
 0x23a   :  { %v3403_v29 = vpop.f32.mrf.mxu0  ;;  %v3516_v51 = vmul.f32 %v14494_v2, %v3478_v6  ;;  %v4557_v11 = vrot.slane %v4555_v15, 4  ;;  %v12016_v33 = vpack.c.bf16 %v3649_v53, %v3649_v53  ;;  %v14720_v1 = vpack.c.bf16 %v3649_v53, %v3648_v63  ;;  %v12394_v63 = vld [vmem:[%s18822_s1 + $0xa8] sm:$0xff]  }
 0x23b   :  { %v4544_v36 = vsel %vm12696_vm11, %v4539_v22, %v4543_v27  ;;  %v4548_v3 = vor.u32 %v4547_v5, %v4543_v27  ;;  %v3650_v39 = vsel %vm3585_vm8, %v3553_v38, %v3618_v49  ;;  %v3480_v15 = vadd.f32 %v3403_v29, %v14441_v18  ;;  %v19416_v49 = vld [vmem:[#allocation18_spill] sm:$0xff] }
 0x23c   :  { %v3405_v21 = vpop.f32.mrf.mxu0  ;;  %7643 = vmatpush2.bf16.msra.mxu0 %v12393_v24  ;;  %4805 = vst.msk [vmem:[#allocation3 + $0x64] sm:$0xf] %vm19413_vm12, %v4544_v36  ;;  %v3554_v56 = vadd.f32 %v14500_v10, %v3516_v51  ;;  %3790 = vrot.lane.b32.xlu1 %v12016_v33, %s12468_s13  ;;  %v12017_v22 = vpack.c.bf16 %v3650_v39, %v3650_v39  ;;  %vm19417_vm8 = vnez %v19416_v49  ;;  %vm19456_vm2 = vcmask 1043968  }
 0x23d   :  { %v3479_v21 = vadd.f32 %v3400_v16, %v14439_v31  ;;  %7644 = vmatprep.subr.bf16.mxu0 %v19140_v12  ;;  %v19414_v31 = vld [vmem:[#allocation9_spill] sm:$0xff]  ;;  %v4549_v6 = vrot.slane %v4548_v3, 4  ;;  %v4558_v29 = vor.u32 %v4557_v11, %v4553_v37  ;;  %v14745_v36 = vor.u32 %v3992_v14, %v14701_v8 }
 0x23e   :  { %v3408_v13 = vpop.f32.mrf.mxu0  ;;  %vm19415_vm9 = vnez %v19414_v31  ;;  %v3619_v51 = vmul.f32 %v14506_v32, %v3554_v56  ;;  %3792 = vrot.lane.b32.xlu0 %v12017_v22, %s12468_s13  ;;  %vm3586_vm1 = vcmp.ge.f32.partialorder %v3554_v56, 0.0  ;;  %v12395_v14 = vld [vmem:[%s18822_s1 + $0xa0] sm:$0xff]  }
 0x23f   :  { %v3517_v42 = vmul.f32 %v14494_v2, %v3479_v21  ;;  %v3893_v16 = vsel %vm19415_vm9, %v14546_v46, 0  ;;  %v4351_v46 = vsel %vm19417_vm8, %v14720_v1, 0  ;;  %v4554_v18 = vsel %vm12696_vm11, %v4549_v6, %v4553_v37 }
 0x240   :  { %v3410_v54 = vpop.f32.mrf.mxu0  ;;  %7645 = vmatpush2.bf16.msra.mxu0 %v12394_v63  ;;  %v11283_v53 = vcombine.low %v4351_v46, %v4351_v46  ;;  %v14747_v3 = vcombine.low %v3893_v16, %v3893_v16  ;;  %4806 = vst.msk [vmem:[#allocation3 + $0x6c] sm:$0xf] %vm19413_vm12, %v4554_v18  ;;  %v11284_v33 = vcombine.high %v4351_v46, %v4351_v46 }
 0x241   :  { %v3555_v24 = vadd.f32 %v14500_v10, %v3517_v42  ;;  %7646 = vmatprep.subr.bf16.mxu0 %v19140_v12  ;;  %v14750_v54 = vcombine.high %v3893_v16, %v3893_v16  ;;  %v19418_v42 = vld [vmem:[#allocation12_spill] sm:$0xff]  ;;  %v3518_v6 = vmul.f32 %v14494_v2, %v3480_v15  ;;  %v4559_v16 = vrot.slane %v4558_v29, 4 }
 0x242   :  { %v14728_v27 = vpop.f32.mrf.mxu0  ;;  %vm19419_vm4 = vnez %v19418_v42  ;;  %v4561_v63 = vshll.u32 %v11283_v53, 16  ;;  %v4565_v18 = vshrl.u32 %v11283_v53, 16  ;;  %v4571_v46 = vshll.u32 %v11284_v33, 16 }
 0x243   :  { %v3894_v37 = vsel %vm19419_vm4, %v14574_v28, 0  ;;  %v3620_v11 = vmul.f32 %v14506_v32, %v3555_v24  ;;  %v3651_v38 = vsel %vm3586_vm1, %v3554_v56, %v3619_v51  ;;  %v3481_v28 = vadd.f32 %v3408_v13, %v14447_v60  ;;  %v19421_v51 = vld [vmem:[#allocation20_spill] sm:$0xff] }
 0x244   :  { %v3413_v21 = vpop.f32.mrf.mxu0  ;;  %7647 = vmatpush2.bf16.msra.mxu0 %v12395_v14  ;;  %vm3587_vm12 = vcmp.ge.f32.partialorder %v3555_v24, 0.0  ;;  %v4563_v49 = vrot.slane %v4561_v63, 5  ;;  %v4567_v15 = vrot.slane %v4565_v18, 4  ;;  %v4573_v26 = vrot.slane %v4571_v46, 5 }
 0x245   :  { %v4575_v21 = vshrl.u32 %v11284_v33, 16  ;;  %8174 = vmatprep.subr.bf16.mxu0 %v19140_v12  ;;  %v3556_v31 = vadd.f32 %v14500_v10, %v3518_v6  ;;  %v12018_v50 = vpack.c.bf16 %v3651_v38, %v3651_v38  ;;  %v14763_v14 = vpack.c.bf16 %v3651_v38, %v3650_v39 }
 0x246   :  { %v3416_v22 = vpop.f32.mrf.mxu0  ;;  %v3519_v53 = vmul.f32 %v14494_v2, %v3481_v28  ;;  %v4564_v56 = vsel %vm12696_vm11, %v4559_v16, %v4563_v49  ;;  %v4568_v29 = vor.u32 %v4567_v15, %v4563_v49  ;;  %v3652_v13 = vsel %vm3587_vm12, %v3555_v24, %v3620_v11  ;;  %v19423_v15 = vld [vmem:[#allocation14_spill] sm:$0xff] }
 0x247   :  { %v4577_v42 = vrot.slane %v4575_v21, 4  ;;  %vm19420_vm1 = vcmask 519168   ;;  %3794 = vrot.lane.b32.xlu1 %v12018_v50, %s12468_s13  ;;  %vm19422_vm10 = vnez %v19421_v51  ;;  %v12019_v6 = vpack.c.bf16 %v3652_v13, %v3652_v13 }
 0x248   :  { %v3418_v5 = vpop.f32.mrf.mxu0  ;;  %4807 = vst.msk [vmem:[#allocation3 + $0x74] sm:$0xf] %vm19420_vm1, %v4564_v56  ;;  %v4352_v39 = vsel %vm19422_vm10, %v14763_v14, 0  ;;  %v3557_v38 = vadd.f32 %v14500_v10, %v3519_v53  ;;  %v4569_v24 = vrot.slane %v4568_v29, 4  ;;  %v3621_v11 = vmul.f32 %v14506_v32, %v3556_v31 }
 0x249   :  { %v4578_v60 = vor.u32 %v4577_v42, %v4573_v26  ;;  %v14779_v42 = vcombine.low %v3894_v37, %v3894_v37  ;;  %v11285_v46 = vcombine.low %v4352_v39, %v4352_v39  ;;  %v11286_v21 = vcombine.high %v4352_v39, %v4352_v39  ;;  %3796 = vrot.lane.b32.xlu0 %v12019_v6, %s12468_s13 }
 0x24a   :  { %v14766_v33 = vpop.f32.mrf.mxu0  ;;  %v3482_v50 = vadd.f32 %v14728_v27, %v14449_v62  ;;  %v14787_v28 = vcombine.high %v3894_v37, %v3894_v37  ;;  %vm19424_vm12 = vnez %v19423_v15  ;;  %v4574_v56 = vsel %vm12696_vm11, %v4569_v24, %v4573_v26 }
 0x24b   :  { %v3895_v53 = vsel %vm19424_vm12, %v14603_v20, 0  ;;  %v4579_v29 = vrot.slane %v4578_v60, 4  ;;  %4808 = vst.msk [vmem:[#allocation3 + $0x7c] sm:$0xf] %vm19420_vm1, %v4574_v56  ;;  %v4581_v39 = vshll.u32 %v11285_v46, 16  ;;  %v4591_v6 = vshll.u32 %v11286_v21, 16 }
 0x24c   :  { %v3421_v63 = vpop.f32.mrf.mxu0  ;;  %v3622_v49 = vmul.f32 %v14506_v32, %v3557_v38  ;;  %v4595_v27 = vshrl.u32 %v11286_v21, 16  ;;  %v3520_v37 = vmul.f32 %v14494_v2, %v3482_v50  ;;  %vm3588_vm10 = vcmp.ge.f32.partialorder %v3556_v31, 0.0 }
 0x24d   :  { %v4585_v63 = vshrl.u32 %v11285_v46, 16  ;;  %v3483_v18 = vadd.f32 %v3416_v22, %v14454_v0  ;;  %v4583_v5 = vrot.slane %v4581_v39, 5  ;;  %v4593_v51 = vrot.slane %v4591_v6, 5 }
 0x24e   :  { %v14785_v16 = vpop.f32.mrf.mxu0  ;;  %v3653_v15 = vsel %vm3588_vm10, %v3556_v31, %v3621_v11  ;;  %v4597_v60 = vrot.slane %v4595_v27, 4  ;;  %v3558_v24 = vadd.f32 %v14500_v10, %v3520_v37  ;;  %vm3589_vm1 = vcmp.ge.f32.partialorder %v3557_v38, 0.0 }
 0x24f   :  { %v4587_v20 = vrot.slane %v4585_v63, 4  ;;  %v12020_v46 = vpack.c.bf16 %v3653_v15, %v3653_v15  ;;  %v14801_v56 = vpack.c.bf16 %v3653_v15, %v3652_v13  ;;  %v4584_v21 = vsel %vm12696_vm11, %v4579_v29, %v4583_v5  ;;  %v19426_v13 = vld [vmem:[#allocation23_spill] sm:$0xff] }
 0x250   :  { %v3426_v62 = vpop.f32.mrf.mxu0  ;;  %v3521_v50 = vmul.f32 %v14494_v2, %v3483_v18  ;;  %v4598_v11 = vor.u32 %v4597_v60, %v4593_v51  ;;  %vm19425_vm10 = vcmask 519168   ;;  %vm19427_vm8 = vnez %v19426_v13 }
 0x251   :  { %v4588_v62 = vor.u32 %v4587_v20, %v4583_v5  ;;  %4809 = vst.msk [vmem:[#allocation3 + $0x84] sm:$0xf] %vm19425_vm10, %v4584_v21  ;;  %3798 = vrot.lane.b32.xlu1 %v12020_v46, %s12468_s13  ;;  %v4353_v15 = vsel %vm19427_vm8, %v14801_v56, 0  ;;  %v14817_v6 = vcombine.low %v3895_v53, %v3895_v53  ;;  %v3654_v20 = vsel %vm3589_vm1, %v3557_v38, %v3622_v49  ;;  %v19428_v46 = vld [vmem:[#allocation16_spill] sm:$0xff] }
 0x252   :  { %v14798_v26 = vpop.f32.mrf.mxu0  ;;  %v11287_v39 = vcombine.low %v4353_v15, %v4353_v15  ;;  %v11288_v27 = vcombine.high %v4353_v15, %v4353_v15  ;;  %v3559_v37 = vadd.f32 %v14500_v10, %v3521_v50  ;;  %v14821_v60 = vcombine.high %v3895_v53, %v3895_v53 }
 0x253   :  { %v4589_v18 = vrot.slane %v4588_v62, 4  ;;  %vm19429_vm10 = vnez %v19428_v46  ;;  %v3623_v62 = vmul.f32 %v14506_v32, %v3558_v24  ;;  %v4599_v29 = vrot.slane %v4598_v11, 4 }
 0x254   :  { %v3429_v0 = vpop.f32.mrf.mxu0  ;;  %v3896_v21 = vsel %vm19429_vm10, %v14637_v44, 0  ;;  %vm19430_vm8 = vcmask 519168   ;;  %v4601_v15 = vshll.u32 %v11287_v39, 16  ;;  %v4605_v22 = vshrl.u32 %v11287_v39, 16 }
 0x255   :  { %v4594_v0 = vsel %vm12696_vm11, %v4589_v18, %v4593_v51  ;;  %v4611_v50 = vshll.u32 %v11288_v27, 16  ;;  %v4615_v31 = vshrl.u32 %v11288_v27, 16  ;;  %v3624_v38 = vmul.f32 %v14506_v32, %v3559_v37 }
 0x256   :  { %v14815_v63 = vpop.f32.mrf.mxu0  ;;  %4810 = vst.msk [vmem:[#allocation3 + $0x8c] sm:$0xf] %vm19430_vm8, %v4594_v0  ;;  %v12021_v49 = vpack.c.bf16 %v3654_v20, %v3654_v20  ;;  %v3484_v53 = vadd.f32 %v14766_v33, %v14457_v52  ;;  %v4603_v13 = vrot.slane %v4601_v15, 5  ;;  %v4607_v51 = vrot.slane %v4605_v22, 4 }
 0x257   :  { %v4613_v18 = vrot.slane %v4611_v50, 5  ;;  %vm3590_vm1 = vcmp.ge.f32.partialorder %v3558_v24, 0.0  ;;  %v3485_v27 = vadd.f32 %v14785_v16, %v14459_v48  ;;  %v14843_v22 = vcombine.low %v3896_v21, %v3896_v21 }
 0x258   :  { %v3434_v5 = vpop.f32.mrf.mxu0  ;;  %3800 = vrot.lane.b32.xlu0 %v12021_v49, %s12468_s13  ;;  %v3522_v11 = vmul.f32 %v14494_v2, %v3484_v53  ;;  %v3655_v39 = vsel %vm3590_vm1, %v3558_v24, %v3623_v62  ;;  %v4604_v46 = vsel %vm12696_vm11, %v4599_v29, %v4603_v13  ;;  %v4608_v52 = vor.u32 %v4607_v51, %v4603_v13  ;;  %v19431_v13 = vld [vmem:[#allocation29_spill] sm:$0xff] }
 0x259   :  { %v4617_v5 = vrot.slane %v4615_v31, 4  ;;  %v12022_v33 = vpack.c.bf16 %v3655_v39, %v3655_v39  ;;  %v14841_v12 = vpack.c.bf16 %v3655_v39, %v3654_v20  ;;  %4811 = vst.msk [vmem:[#allocation3 + $0x94] sm:$0xf] %vm19430_vm8, %v4604_v46  ;;  %v3523_v15 = vmul.f32 %v14494_v2, %v3485_v27 }
 0x25a   :  { %v14833_v44 = vpop.f32.mrf.mxu0  ;;  %v3560_v31 = vadd.f32 %v14500_v10, %v3522_v11  ;;  %vm3591_vm1 = vcmp.ge.f32.partialorder %v3559_v37, 0.0  ;;  %v4609_v29 = vrot.slane %v4608_v52, 4  ;;  %vm19432_vm13 = vnez %v19431_v13 }
 0x25b   :  { %3802 = vrot.lane.b32.xlu1 %v12022_v33, %s12468_s13  ;;  %v4354_v20 = vsel %vm19432_vm13, %v14841_v12, 0  ;;  %v4618_v50 = vor.u32 %v4617_v5, %v4613_v18  ;;  %v3656_v49 = vsel %vm3591_vm1, %v3559_v37, %v3624_v38  ;;  %v3561_v27 = vadd.f32 %v14500_v10, %v3523_v15 }
 0x25c   :  { %v3437_v0 = vpop.f32.mrf.mxu0  ;;  %v4614_v51 = vsel %vm12696_vm11, %v4609_v29, %v4613_v18  ;;  %v11289_v11 = vcombine.low %v4354_v20, %v4354_v20  ;;  %v11290_v39 = vcombine.high %v4354_v20, %v4354_v20  ;;  %v14862_v52 = vcombine.high %v3896_v21, %v3896_v21 }
 0x25d   :  { %4812 = vst.msk [vmem:[#allocation3 + $0x9c] sm:$0xf] %vm19430_vm8, %v4614_v51  ;;  %v3625_v62 = vmul.f32 %v14506_v32, %v3560_v31  ;;  %v3626_v29 = vmul.f32 %v14506_v32, %v3561_v27  ;;  %v12023_v20 = vpack.c.bf16 %v3656_v49, %v3656_v49  ;;  %v3486_v15 = vadd.f32 %v14798_v26, %v14461_v41 }
 0x25e   :  { %v14848_v24 = vpop.f32.mrf.mxu0  ;;  %19433 = vst [vmem:[#allocation27_spill] sm:$0xff] %v14862_v52  ;;  %v4621_v37 = vshll.u32 %v11289_v11, 16  ;;  %v4625_v38 = vshrl.u32 %v11289_v11, 16  ;;  %v4635_v18 = vshrl.u32 %v11290_v39, 16  ;;  %vm3592_vm1 = vcmp.ge.f32.partialorder %v3560_v31, 0.0 }
 0x25f   :  { %v4619_v0 = vrot.slane %v4618_v50, 4  ;;  %3804 = vrot.lane.b32.xlu0 %v12023_v20, %s12468_s13  ;;  %v3524_v48 = vmul.f32 %v14494_v2, %v3486_v15  ;;  %v3657_v16 = vsel %vm3592_vm1, %v3560_v31, %v3625_v62  ;;  %v3487_v11 = vadd.f32 %v14815_v63, %v14463_v47  ;;  %v14887_v2 = vld [vmem:[%s18824_s2] ss:$0 sm:$0xff]  ;;  %v19435_v62 = vld [vmem:[#allocation19_spill] sm:$0xff] }
 0x260   :  { %v3442_v53 = vpop.f32.mrf.mxu0  ;;  %v4623_v33 = vrot.slane %v4621_v37, 5  ;;  %v4627_v46 = vrot.slane %v4625_v38, 4  ;;  %vm3593_vm8 = vcmp.ge.f32.partialorder %v3561_v27, 0.0  ;;  %v12024_v50 = vpack.c.bf16 %v3657_v16, %v3657_v16 }
 0x261   :  { %v4631_v53 = vshll.u32 %v11290_v39, 16  ;;  %vm19434_vm13 = vcmask 519168   ;;  %v3562_v37 = vadd.f32 %v14500_v10, %v3524_v48  ;;  %v14882_v38 = vpack.c.bf16 %v3657_v16, %v3656_v49  ;;  %v19437_v49 = vld [vmem:[#allocation32_spill] sm:$0xff] }
 0x262   :  { %v14867_v5 = vpop.f32.mrf.mxu0  ;;  %v4624_v41 = vsel %vm12696_vm11, %v4619_v0, %v4623_v33  ;;  %v4628_v26 = vor.u32 %v4627_v46, %v4623_v33  ;;  %v3525_v47 = vmul.f32 %v14887_v2, %v3487_v11  ;;  %v3658_v63 = vsel %vm3593_vm8, %v3561_v27, %v3626_v29  ;;  %3806 = vrot.lane.b32.xlu1 %v12024_v50, %s12468_s13 }
 0x263   :  { %v4633_v51 = vrot.slane %v4631_v53, 5  ;;  %4813 = vst.msk [vmem:[#allocation3 + $0xa4] sm:$0xf] %vm19434_vm13, %v4624_v41  ;;  %vm19436_vm1 = vnez %v19435_v62  ;;  %v12025_v33 = vpack.c.bf16 %v3658_v63, %v3658_v63  ;;  %v3488_v10 = vadd.f32 %v14833_v44, %v14468_v30  ;;  %v14904_v53 = vld [vmem:[%s18825_s3] ss:$0 sm:$0xff] }
 0x264   :  { %v3445_v21 = vpop.f32.mrf.mxu0  ;;  %v3897_v46 = vsel %vm19436_vm1, %v14677_v57, 0  ;;  %v4629_v0 = vrot.slane %v4628_v26, 4  ;;  %vm19438_vm13 = vnez %v19437_v49  ;;  %v3563_v57 = vadd.f32 %v14904_v53, %v3525_v47  ;;  %v19440_v47 = vld [vmem:[#allocation21_spill] sm:$0xff] }
 0x265   :  { %v4637_v21 = vrot.slane %v4635_v18, 4  ;;  %v4355_v27 = vsel %vm19438_vm13, %v14882_v38, 0  ;;  %v3627_v29 = vmul.f32 %v14506_v32, %v3562_v37  ;;  %3808 = vrot.lane.b32.xlu0 %v12025_v33, %s12468_s13  ;;  %v14914_v11 = vcombine.low %v3897_v46, %v3897_v46 }
 0x266   :  { %v14876_v39 = vpop.f32.mrf.mxu0  ;;  %v4634_v30 = vsel %vm12696_vm11, %v4629_v0, %v4633_v51  ;;  %v11291_v20 = vcombine.low %v4355_v27, %v4355_v27  ;;  %vm19439_vm8 = vcmask 519168   ;;  %v11292_v41 = vcombine.high %v4355_v27, %v4355_v27 }
 0x267   :  { %v4638_v44 = vor.u32 %v4637_v21, %v4633_v51  ;;  %4814 = vst.msk [vmem:[#allocation3 + $0xac] sm:$0xf] %vm19439_vm8, %v4634_v30  ;;  %vm3594_vm13 = vcmp.ge.f32.partialorder %v3562_v37, 0.0  ;;  %v14917_v50 = vcombine.high %v3897_v46, %v3897_v46  ;;  %vm19441_vm1 = vnez %v19440_v47 }
 0x268   :  { %v3450_v31 = vpop.f32.mrf.mxu0  ;;  %v3898_v51 = vsel %vm19441_vm1, %v14720_v1, 0  ;;  %v3628_v21 = vmul.f32 %v14506_v32, %v3563_v57  ;;  %v4641_v0 = vshll.u32 %v11291_v20, 16  ;;  %v4645_v33 = vshrl.u32 %v11291_v20, 16 }
 0x269   :  { %v3526_v31 = vmul.f32 %v14887_v2, %v3488_v10  ;;  %v4651_v15 = vshll.u32 %v11292_v41, 16  ;;  %v4655_v16 = vshrl.u32 %v11292_v41, 16  ;;  %v4639_v30 = vrot.slane %v4638_v44, 4 }
 0x26a   :  { %v14907_v18 = vpop.f32.mrf.mxu0  ;;  %v3659_v27 = vsel %vm3594_vm13, %v3562_v37, %v3627_v29  ;;  %v3489_v46 = vadd.f32 %v14848_v24, %v14471_v59  ;;  %vm3595_vm8 = vcmp.ge.f32.partialorder %v3563_v57, 0.0  ;;  %v4647_v49 = vrot.slane %v4645_v33, 4 }
 0x26b   :  { %v4653_v13 = vrot.slane %v4651_v15, 5  ;;  %v4657_v1 = vrot.slane %v4655_v16, 4  ;;  %v3564_v62 = vadd.f32 %v14904_v53, %v3526_v31  ;;  %v12026_v10 = vpack.c.bf16 %v3659_v27, %v3659_v27  ;;  %v19443_v16 = vld [vmem:[#allocation38_spill] sm:$0xff] }
 0x26c   :  { %v3453_v26 = vpop.f32.mrf.mxu0  ;;  %v14929_v52 = vpack.c.bf16 %v3659_v27, %v3658_v63  ;;  %v3527_v20 = vmul.f32 %v14887_v2, %v3489_v46  ;;  %v3660_v41 = vsel %vm3595_vm8, %v3563_v57, %v3628_v21  ;;  %vm19442_vm13 = vcmask 519168  }
 0x26d   :  { %v4643_v26 = vrot.slane %v4641_v0, 5  ;;  %v4658_v29 = vor.u32 %v4657_v1, %v4653_v13  ;;  %3810 = vrot.lane.b32.xlu1 %v12026_v10, %s12468_s13  ;;  %vm19444_vm1 = vnez %v19443_v16  ;;  %v14945_v57 = vcombine.low %v3898_v51, %v3898_v51  ;;  %v19446_v10 = vld [vmem:[#allocation22_spill] sm:$0xff] }
 0x26e   :  { %v14924_v48 = vpop.f32.mrf.mxu0  ;;  %v4356_v63 = vsel %vm19444_vm1, %v14929_v52, 0  ;;  %v3565_v15 = vadd.f32 %v14904_v53, %v3527_v20  ;;  %vm19445_vm8 = vcmask 1043968   ;;  %v14952_v1 = vcombine.high %v3898_v51, %v3898_v51 }
 0x26f   :  { %v4644_v44 = vsel %vm12696_vm11, %v4639_v30, %v4643_v26  ;;  %v4648_v37 = vor.u32 %v4647_v49, %v4643_v26  ;;  %v3629_v30 = vmul.f32 %v14506_v32, %v3564_v62  ;;  %v11293_v27 = vcombine.low %v4356_v63, %v4356_v63 }
 0x270   :  { %v3458_v47 = vpop.f32.mrf.mxu0  ;;  %4815 = vst.msk [vmem:[#allocation3 + $0xb4] sm:$0xf] %vm19442_vm13, %v4644_v44  ;;  %v11294_v46 = vcombine.high %v4356_v63, %v4356_v63  ;;  %v3490_v26 = vadd.f32 %v14867_v5, %v14476_v34  ;;  %vm19447_vm13 = vnez %v19446_v10  ;;  %vm19448_vm1 = vcmask 519168  }
 0x271   :  { %v12027_v47 = vpack.c.bf16 %v3660_v41, %v3660_v41  ;;  %v4649_v21 = vrot.slane %v4648_v37, 4  ;;  %v3899_v20 = vsel %vm19447_vm13, %v14763_v14, 0  ;;  %v4659_v37 = vrot.slane %v4658_v29, 4 }
 0x272   :  { %v14934_v59 = vpop.f32.mrf.mxu0  ;;  %v4661_v63 = vshll.u32 %v11293_v27, 16  ;;  %v3630_v49 = vmul.f32 %v14506_v32, %v3565_v15  ;;  %v4675_v34 = vshrl.u32 %v11294_v46, 16  ;;  %v3528_v5 = vmul.f32 %v14887_v2, %v3490_v26 }
 0x273   :  { %3812 = vrot.lane.b32.xlu0 %v12027_v47, %s12468_s13  ;;  %v4654_v44 = vsel %vm12696_vm11, %v4649_v21, %v4653_v13  ;;  %v4671_v47 = vshll.u32 %v11294_v46, 16  ;;  %v3491_v51 = vadd.f32 %v14876_v39, %v14479_v43  ;;  %vm19449_vm13 = vcmask 1043968  }
 0x274   :  { %v3765_v0 = vpop.permute.xlu0 %3764  ;;  %v3461_v33 = vpop.f32.mrf.mxu0  ;;  %4816 = vst.msk [vmem:[#allocation3 + $0xbc] sm:$0xf] %vm19448_vm1, %v4654_v44  ;;  %v4663_v14 = vrot.slane %v4661_v63, 5  ;;  %v4677_v29 = vrot.slane %v4675_v34, 4  ;;  %v3566_v21 = vadd.f32 %v14904_v53, %v3528_v5  ;;  %vm3597_vm1 = vcmp.ge.f32.partialorder %v3565_v15, 0.0 }
 0x275   :  { %3860 = vst.msk [vmem:[#allocation3 + $0x18] sm:$0xf] %vm19445_vm8, %v3765_v0  ;;  %v4665_v33 = vshrl.u32 %v11293_v27, 16  ;;  %vm3596_vm8 = vcmp.ge.f32.partialorder %v3564_v62, 0.0  ;;  %v4673_v24 = vrot.slane %v4671_v47, 5  ;;  %v3529_v16 = vmul.f32 %v14887_v2, %v3491_v51 }
 0x276   :  { %v3661_v13 = vsel %vm3596_vm8, %v3564_v62, %v3629_v30  ;;  %v4664_v46 = vsel %vm12696_vm11, %v4659_v37, %v4663_v14  ;;  %vm19450_vm8 = vcmask 519168   ;;  %v19451_v30 = vld [vmem:[#allocation43_spill] sm:$0xff]  ;;  %v14980_v47 = vcombine.low %v3899_v20, %v3899_v20 }
 0x277   :  { %v4667_v31 = vrot.slane %v4665_v33, 4  ;;  %v12028_v27 = vpack.c.bf16 %v3661_v13, %v3661_v13  ;;  %v14966_v44 = vpack.c.bf16 %v3661_v13, %v3660_v41  ;;  %v4678_v62 = vor.u32 %v4677_v29, %v4673_v24  ;;  %4817 = vst.msk [vmem:[#allocation3 + $0xc4] sm:$0xf] %vm19450_vm8, %v4664_v46 }
 0x278   :  { %v3767_v0 = vpop.permute.xlu1 %3766  ;;  %v3567_v5 = vadd.f32 %v14904_v53, %v3529_v16  ;;  %v3662_v51 = vsel %vm3597_vm1, %v3565_v15, %v3630_v49  ;;  %vm3598_vm1 = vcmp.ge.f32.partialorder %v3566_v21, 0.0 }
 0x279   :  { %3861 = vst.msk [vmem:[#allocation3 + $0x20] sm:$0xf] %vm19449_vm13, %v3767_v0  ;;  %v4668_v26 = vor.u32 %v4667_v31, %v4663_v14  ;;  %3814 = vrot.lane.b32.xlu1 %v12028_v27, %s12468_s13  ;;  %vm19452_vm13 = vnez %v19451_v30  ;;  %v14983_v0 = vcombine.high %v3899_v20, %v3899_v20  ;;  %v19453_v14 = vld [vmem:[#allocation28_spill] sm:$0xff]  ;;  %v3631_v27 = vmul.f32 %v14506_v32, %v3566_v21 }
 0x27a   :  { %v4357_v41 = vsel %vm19452_vm13, %v14966_v44, 0  ;;  %vm19454_vm8 = vnez %v19453_v14  ;;  %vm19455_vm13 = vcmask 519168   ;;  %v3632_v15 = vmul.f32 %v14506_v32, %v3567_v5 }
 0x27b   :  { %v4669_v37 = vrot.slane %v4668_v26, 4  ;;  %v11295_v33 = vcombine.low %v4357_v41, %v4357_v41  ;;  %v11296_v34 = vcombine.high %v4357_v41, %v4357_v41  ;;  %v3900_v13 = vsel %vm19454_vm8, %v14801_v56, 0 }
 0x27c   :  { %v4679_v26 = vrot.slane %v4678_v62, 4  ;;  %v12029_v49 = vpack.c.bf16 %v3662_v51, %v3662_v51  ;;  %v3492_v56 = vadd.f32 %v14907_v18, %v14481_v9  ;;  %v15005_v18 = vcombine.low %v3900_v13, %v3900_v13 }
 0x27d   :  { %v4674_v29 = vsel %vm12696_vm11, %v4669_v37, %v4673_v24  ;;  %v4681_v31 = vshll.u32 %v11295_v33, 16  ;;  %v4685_v41 = vshrl.u32 %v11295_v33, 16  ;;  %v4691_v63 = vshll.u32 %v11296_v34, 16 }
 0x27e   :  { %v3769_v46 = vpop.permute.xlu0 %3768  ;;  %4818 = vst.msk [vmem:[#allocation3 + $0xcc] sm:$0xf] %vm19455_vm13, %v4674_v29  ;;  %v4695_v16 = vshrl.u32 %v11296_v34, 16  ;;  %3816 = vrot.lane.b32.xlu0 %v12029_v49, %s12468_s13  ;;  %v3530_v62 = vmul.f32 %v14887_v2, %v3492_v56  ;;  %v3663_v33 = vsel %vm3598_vm1, %v3566_v21, %v3631_v27  ;;  %v3493_v29 = vadd.f32 %v14924_v48, %v14486_v55  ;;  %v12222_v55 = vld [vmem:[#allocation3 + $0x2c] ss:$8 sps:$4 sm:$0xff]  }
 0x27f   :  { %3862 = vst.msk [vmem:[#allocation3 + $0x28] sm:$0xf] %vm19456_vm2, %v3769_v46  ;;  %v4683_v20 = vrot.slane %v4681_v31, 5  ;;  %v4687_v24 = vrot.slane %v4685_v41, 4  ;;  %v4693_v37 = vrot.slane %v4691_v63, 5  ;;  %v12030_v30 = vpack.c.bf16 %v3663_v33, %v3663_v33 }
 0x280   :  { %v4697_v39 = vrot.slane %v4695_v16, 4  ;;  %v15002_v9 = vpack.c.bf16 %v3663_v33, %v3662_v51  ;;  %v3568_v21 = vadd.f32 %v14904_v53, %v3530_v62  ;;  %vm3599_vm1 = vcmp.ge.f32.partialorder %v3567_v5, 0.0  ;;  %v19457_v51 = vld [vmem:[#allocation48_spill] sm:$0xff] }
 0x281   :  { %v3771_v34 = vpop.permute.xlu1 %3770  ;;  %v4684_v46 = vsel %vm12696_vm11, %v4679_v26, %v4683_v20  ;;  %v4688_v43 = vor.u32 %v4687_v24, %v4683_v20  ;;  %3818 = vrot.lane.b32.xlu1 %v12030_v30, %s12468_s13  ;;  %vm19458_vm8 = vnez %v19457_v51  ;;  %v3531_v16 = vmul.f32 %v14887_v2, %v3493_v29  ;;  %v4308_v30 = vld [vmem:[#allocation3 + $0x18] sm:$0xf] }
 0x282   :  { %3863 = vst.msk [vmem:[#allocation3 + $0x30] sm:$0xf] %vm19456_vm2, %v3771_v34  ;;  %v4698_v63 = vor.u32 %v4697_v39, %v4693_v37  ;;  %v4358_v27 = vsel %vm19458_vm8, %v15002_v9, 0  ;;  %v3664_v24 = vsel %vm3599_vm1, %v3567_v5, %v3632_v15  ;;  %v15022_v62 = vcombine.high %v3900_v13, %v3900_v13 }
 0x283   :  { %4819 = vst.msk [vmem:[#allocation3 + $0xd4] sm:$0xf] %vm19455_vm13, %v4684_v46  ;;  %v4689_v31 = vrot.slane %v4688_v43, 4  ;;  %v11297_v20 = vcombine.low %v4358_v27, %v4358_v27  ;;  %v11298_v43 = vcombine.high %v4358_v27, %v4358_v27  ;;  %v3633_v46 = vmul.f32 %v14506_v32, %v3568_v21 }
 0x284   :  { %v4699_v34 = vrot.slane %v4698_v63, 4  ;;  %v3494_v5 = vadd.f32 %v14934_v59, %v14489_v19  ;;  %vm19459_vm1 = vnez %v19224_v4  ;;  %v19461_v59 = vld [vmem:[#allocation34_spill] sm:$0xff]  ;;  %vm19463_vm8 = vcmask 1043968  }
 0x285   :  { %v3773_v49 = vpop.permute.xlu0 %3772  ;;  %v4694_v56 = vsel %vm12696_vm11, %v4689_v31, %v4693_v37  ;;  %v4701_v29 = vshll.u32 %v11297_v20, 16  ;;  %v4705_v41 = vshrl.u32 %v11297_v20, 16  ;;  %v4711_v39 = vshll.u32 %v11298_v43, 16 }
 0x286   :  { %3864 = vst.msk [vmem:[#allocation3 + $0x38] sm:$0xf] %vm19456_vm2, %v3773_v49  ;;  %v4715_v26 = vshrl.u32 %v11298_v43, 16  ;;  %v3569_v37 = vadd.f32 %v14904_v53, %v3531_v16  ;;  %v12031_v31 = vpack.c.bf16 %v3664_v24, %v3664_v24  ;;  %v4309_v13 = vsel %vm19459_vm1, %v14745_v36, %v4308_v30 }
 0x287   :  { %4820 = vst.msk [vmem:[#allocation3 + $0xdc] sm:$0xf] %vm19455_vm13, %v4694_v56  ;;  %v4703_v15 = vrot.slane %v4701_v29, 5  ;;  %v4707_v63 = vrot.slane %v4705_v41, 4  ;;  %v4713_v27 = vrot.slane %v4711_v39, 5  ;;  %v3532_v56 = vmul.f32 %v14887_v2, %v3494_v5 }
 0x288   :  { %v4717_v49 = vrot.slane %v4715_v26, 4  ;;  %4310 = vst [vmem:[#allocation3 + $0x18] sm:$0xf] %v4309_v13  ;;  %3820 = vrot.lane.b32.xlu0 %v12031_v31, %s12468_s13  ;;  %vm3600_vm2 = vcmp.ge.f32.partialorder %v3568_v21, 0.0  ;;  %v3995_v16 = vrot.slane %v14701_v8, 4  ;;  %v19460_v20 = vshrl.u32 %v14699_v40, 16 }
 0x289   :  { %vm19462_vm13 = vnez %v19461_v59  ;;  %v4704_v39 = vsel %vm12696_vm11, %v4699_v34, %v4703_v15  ;;  %v4708_v26 = vor.u32 %v4707_v63, %v4703_v15  ;;  %v3665_v41 = vsel %vm3600_vm2, %v3568_v21, %v3633_v46  ;;  %v11455_v15 = vld [vmem:[%s18821_s0 + $0x100] sm:$0xff] }
 0x28a   :  { %v3999_v43 = vrot.slane %v19460_v20, 7  ;;  %v3775_v19 = vpop.permute.xlu1 %3774  ;;  %v3901_v36 = vsel %vm19462_vm13, %v14841_v12, 0  ;;  %vm19464_vm1 = vcmask 519168   ;;  %v3634_v2 = vmul.f32 %v14506_v32, %v3569_v37 }
 0x28b   :  { %3865 = vst.msk [vmem:[#allocation3 + $0x40] sm:$0xf] %vm19463_vm8, %v3775_v19  ;;  %v12032_v8 = vpack.c.bf16 %v3665_v41, %v3665_v41  ;;  %v15046_v30 = vpack.c.bf16 %v3665_v41, %v3664_v24  ;;  %v19465_v29 = vshll.u32 %v14699_v40, 16  ;;  %v4709_v5 = vrot.slane %v4708_v26, 4 }
 0x28c   :  { %4821 = vst.msk [vmem:[#allocation3 + $0xe4] sm:$0xf] %vm19464_vm1, %v4704_v39  ;;  %v4718_v13 = vor.u32 %v4717_v49, %v4713_v27  ;;  %v3570_v12 = vadd.f32 %v14904_v53, %v3532_v56  ;;  %vm19466_vm8 = vnez %v19242_v23  ;;  %vm19467_vm1 = vcmask 1043968  }
 0x28d   :  { %v4002_v31 = vor.u32 %v19465_v29, %v3999_v43  ;;  %3822 = vrot.lane.b32.xlu1 %v12032_v8, %s12468_s13  ;;  %v4359_v24 = vsel %vm19466_vm8, %v15046_v30, 0  ;;  %v15064_v63 = vcombine.low %v3901_v36, %v3901_v36  ;;  %v4714_v49 = vsel %vm12696_vm11, %v4709_v5, %v4713_v27 }
 0x28e   :  { %v3777_v34 = vpop.permute.xlu0 %3776  ;;  %v11299_v56 = vcombine.low %v4359_v24, %v4359_v24  ;;  %vm19468_vm2 = vcmask 519168   ;;  %v15069_v20 = vcombine.high %v3901_v36, %v3901_v36  ;;  %vm19470_vm8 = vcmp.ge.f32.partialorder %v3569_v37, 0.0 }
 0x28f   :  { %v4003_v40 = vsel %vm13643_vm3, %v3995_v16, %v4002_v31  ;;  %3866 = vst.msk [vmem:[#allocation3 + $0x48] sm:$0xf] %vm19467_vm1, %v3777_v34  ;;  %vm19469_vm13 = vmmov %vm19468_vm2  ;;  %v11300_v16 = vcombine.high %v4359_v24, %v4359_v24  ;;  %v3666_v19 = vsel %vm19470_vm8, %v3569_v37, %v3634_v2  ;;  %v19471_v39 = vshrl.u32 %v14747_v3, 16 }
 0x290   :  { %4311 = vst.msk [vmem:[#allocation3 + $0x20] sm:$0xf] %vm19468_vm2, %v4003_v40  ;;  %v4719_v41 = vrot.slane %v4718_v13, 4  ;;  %v3635_v8 = vmul.f32 %v14506_v32, %v3570_v12  ;;  %v4004_v29 = vrot.slane %v3999_v43, 4  ;;  %v12035_v31 = vpack.c.bf16 %v11455_v15, %v11455_v15  ;;  %vm19475_vm8 = vmmov %vm19467_vm1 }
 0x291   :  { %4822 = vst.msk [vmem:[#allocation3 + $0xec] sm:$0xf] %vm19469_vm13, %v4714_v49  ;;  %v4008_v26 = vrot.slane %v19471_v39, 7  ;;  %v4721_v34 = vshll.u32 %v11299_v56, 16  ;;  %v4725_v27 = vshrl.u32 %v11299_v56, 16  ;;  %v4731_v5 = vshll.u32 %v11300_v16, 16 }
 0x292   :  { %v4735_v53 = vshrl.u32 %v11300_v16, 16  ;;  %v12033_v40 = vpack.c.bf16 %v3666_v19, %v3666_v19  ;;  %v19472_v36 = vshll.u32 %v14747_v3, 16  ;;  %vm3602_vm13 = vcmp.ge.f32.partialorder %v3570_v12, 0.0  ;;  %v3779_v39 = vpop.permute.xlu1 %3778 }
 0x293   :  { %v4013_v24 = vrot.slane %v4008_v26, 4  ;;  %v4723_v49 = vrot.slane %v4721_v34, 5  ;;  %v4727_v37 = vrot.slane %v4725_v27, 4  ;;  %v4733_v2 = vrot.slane %v4731_v5, 5  ;;  %3867 = vst.msk [vmem:[#allocation3 + $0x50] sm:$0xf] %vm19475_vm8, %v3779_v39 }
 0x294   :  { %v4011_v46 = vor.u32 %v19472_v36, %v4008_v26  ;;  %v4737_v21 = vrot.slane %v4735_v53, 4  ;;  %3824 = vrot.lane.b32.xlu0 %v12033_v40, %s12468_s13  ;;  %v3667_v13 = vsel %vm3602_vm13, %v3570_v12, %v3635_v8  ;;  %v19473_v56 = vshrl.u32 %v14750_v54, 16  ;;  %v11456_v26 = vld [vmem:[%s18821_s0 + $0x108] sm:$0xff]  ;;  %v19476_v53 = vld [vmem:[#allocation41_spill] sm:$0xff]  ;;  %vm19478_vm13 = vmmov %vm19468_vm2 }
 0x295   :  { %v19474_v33 = vshrl.u32 %v14779_v42, 16  ;;  %vm19477_vm1 = vnez %v19476_v53  ;;  %v4724_v12 = vsel %vm12696_vm11, %v4719_v41, %v4723_v49  ;;  %v12034_v8 = vpack.c.bf16 %v3667_v13, %v3667_v13 }
 0x296   :  { %v4012_v43 = vsel %vm13643_vm3, %v4004_v29, %v4011_v46  ;;  %v4017_v16 = vrot.slane %v19473_v56, 7  ;;  %v3902_v34 = vsel %vm19477_vm1, %v14882_v38, 0  ;;  %v4728_v46 = vor.u32 %v4727_v37, %v4723_v49  ;;  %v12219_v29 = vld [vmem:[#allocation3 + $0x1c] ss:$8 sps:$4 sm:$0xff]   ;;  %4823 = vst.msk [vmem:[#allocation3 + $0xf4] sm:$0xf] %vm19478_vm13, %v4724_v12 }
 0x297   :  { %v15085_v3 = vrot.slane %v19474_v33, 7  ;;  %4312 = vst.msk [vmem:[#allocation3 + $0x28] sm:$0xf] %vm19468_vm2, %v4012_v43  ;;  %v3781_v33 = vpop.permute.xlu0 %3780  ;;  %v3683_v27 = vpack.c.bf16 %v3667_v13, %v3666_v19  ;;  %v19479_v5 = vshll.u32 %v14750_v54, 16  ;;  %v19480_v39 = vshll.u32 %v14779_v42, 16  ;;  %3826 = vrot.lane.b32.xlu1 %v12034_v8, %s12468_s13 }
 0x298   :  { %v4022_v36 = vrot.slane %v4017_v16, 4  ;;  %3868 = vst.msk [vmem:[#allocation3 + $0x58] sm:$0xf] %vm19475_vm8, %v3781_v33  ;;  %v4729_v41 = vrot.slane %v4728_v46, 4  ;;  %v4738_v49 = vor.u32 %v4737_v21, %v4733_v2  ;;  %v6228_v37 = vpack.c.bf16 %v11456_v26, %v11455_v15  ;;  %6324 = vrot.lane.b32.xlu0 %v12035_v31, %s12468_s13 }
 0x299   :  { %v4020_v40 = vor.u32 %v19479_v5, %v4017_v16  ;;  %v4029_v38 = vor.u32 %v19480_v39, %v15085_v3  ;;  %v12036_v43 = vpack.c.bf16 %v11456_v26, %v11456_v26  ;;  %vm19481_vm2 = vcmask 523264  }
 0x29a   :  { %11347 = vmatprep.mubr.msk.bf16.mxu1 %vm19481_vm2, %v12219_v29  ;;  %vm19482_vm13 = vnez %v19247_v61  ;;  %vm19483_vm1 = vnez %v19253_v17  ;;  %vm19484_vm8 = vmmov %vm19481_vm2  ;;  %v4734_v31 = vsel %vm12696_vm11, %v4729_v41, %v4733_v2  ;;  %vm19485_vm2 = vcmask 519168  }
 0x29b   :  { %v15109_v54 = vsel %vm19482_vm13, %v3683_v27, 0  ;;  %v4360_v42 = vsel %vm19483_vm1, %v3683_v27, 0  ;;  %v4021_v19 = vsel %vm13643_vm3, %v4013_v24, %v4020_v40  ;;  %v4030_v21 = vsel %vm13643_vm3, %v4022_v36, %v4029_v38  ;;  %11378 = vmatprep.mubr.msk.bf16.mxu0 %vm19484_vm8, %v12219_v29  ;;  %vm19486_vm1 = vmmov %vm19485_vm2  ;;  %6326 = vrot.lane.b32.xlu1 %v12036_v43, %s12468_s13  ;;  %v4832_v24 = vld [vmem:[#allocation3 + $0x18] sm:$0xff] }
 0x29c   :  { %v11270_v13 = vcombine.high %v15109_v54, %v15109_v54  ;;  %v11301_v56 = vcombine.low %v4360_v42, %v4360_v42  ;;  %4313 = vst.msk [vmem:[#allocation3 + $0x30] sm:$0xf] %vm19485_vm2, %v4021_v19  ;;  %vm19487_vm13 = vmmov %vm19486_vm1  ;;  %v11302_v26 = vcombine.high %v4360_v42, %v4360_v42  ;;  %v6905_v12 = vsel %vm12619_vm14, %v6228_v37, 0  ;;  %v3783_v36 = vpop.permute.xlu1 %3782 }
 0x29d   :  { %4314 = vst.msk [vmem:[#allocation3 + $0x38] sm:$0xf] %vm19486_vm1, %v4030_v21  ;;  %v15130_v46 = vcombine.low %v3902_v34, %v3902_v34  ;;  %v15132_v2 = vcombine.high %v3902_v34, %v3902_v34  ;;  %v4739_v8 = vrot.slane %v4738_v49, 4  ;;  %v15137_v41 = vsel %vm19405_vm7, %v6228_v37, 0  ;;  %v4342_v34 = vld [vmem:[#allocation3 + $0x118] sm:$0x1] }
 0x29e   :  { %4824 = vst.msk [vmem:[#allocation3 + $0xfc] sm:$0xf] %vm19487_vm13, %v4734_v31  ;;  %v4267_v29 = vshrl.u32 %v11270_v13, 16  ;;  %v4741_v33 = vshll.u32 %v11301_v56, 16  ;;  %v4745_v27 = vshrl.u32 %v11301_v56, 16  ;;  %v4751_v5 = vshll.u32 %v11302_v26, 16 }
 0x29f   :  { %v4755_v40 = vshrl.u32 %v11302_v26, 16  ;;  %v4270_v38 = vshll.u32 %v11270_v13, 16  ;;  %v11551_v42 = vcombine.low %v6905_v12, %v6905_v12  ;;  %vm19488_vm1 = vcmask 1043968   ;;  %v19489_v56 = vld [vmem:[#allocation42_spill] sm:$0xff] }
 0x2a0   :  { %v4269_v39 = vrot.slane %v4267_v29, 7  ;;  %3869 = vst.msk [vmem:[#allocation3 + $0x60] sm:$0xf] %vm19488_vm1, %v3783_v36  ;;  %v4743_v19 = vrot.slane %v4741_v33, 5  ;;  %v4747_v49 = vrot.slane %v4745_v27, 4  ;;  %v15140_v21 = vrot.slane %v4751_v5, 5 }
 0x2a1   :  { %v15142_v43 = vrot.slane %v4755_v40, 4  ;;  %vm19490_vm13 = vnez %v19489_v56  ;;  %v15156_v27 = vcombine.high %v15137_v41, %v15137_v41  ;;  %vm19492_vm8 = vnez %v19268_v25  ;;  %v7353_v40 = vld [vmem:[#allocation2 + $0x14] sm:$0x8] }
 0x2a2   :  { %v3903_v13 = vsel %vm19490_vm13, %v14929_v52, 0  ;;  %v15148_v26 = vor.u32 %v4270_v38, %v4269_v39  ;;  %v4274_v37 = vrot.slane %v4269_v39, 4  ;;  %v4744_v29 = vsel %vm12696_vm11, %v4739_v8, %v4743_v19  ;;  %v11458_v38 = vld [vmem:[%s18821_s0 + $0x118] sm:$0xff] }
 0x2a3   :  { %v4748_v36 = vor.u32 %v4747_v49, %v4743_v19  ;;  %4825 = vst.msk [vmem:[#allocation3 + $0x104] sm:$0xf] %vm19485_vm2, %v4744_v29  ;;  %v11552_v39 = vcombine.high %v6905_v12, %v6905_v12  ;;  %v7002_v49 = vshll.u32 %v11551_v42, 16  ;;  %v15165_v33 = vcombine.low %v3903_v13, %v3903_v13  ;;  %v3785_v12 = vpop.permute.xlu0 %3784 }
 0x2a4   :  { %19491 = vst [vmem:[#allocation26_spill] sm:$0xff] %v15148_v26  ;;  %v4343_v52 = vsel %vm19492_vm8, %v4274_v37, %v4342_v34  ;;  %v15167_v31 = vcombine.high %v3903_v13, %v3903_v13  ;;  %v7005_v5 = vshrl.u32 %v11551_v42, 16  ;;  %v11457_v34 = vld [vmem:[%s18821_s0 + $0x110] sm:$0xff]  ;;  %v6557_v29 = vshrl.u32 %v15156_v27, 16  ;;  %v12221_v42 = vld [vmem:[%s18823_s5 + $0xf8] sm:$0xff]  }
 0x2a5   :  { %4344 = vst [vmem:[#allocation3 + $0x118] sm:$0x1] %v4343_v52  ;;  %v4749_v19 = vrot.slane %v4748_v36, 4  ;;  %v7011_v16 = vshll.u32 %v11552_v39, 16  ;;  %v7004_v36 = vrot.slane %v7002_v49, 5  ;;  %v4833_v52 = vld [vmem:[#allocation3 + $0x20] sm:$0xff]  ;;  %v12037_v17 = vpack.c.bf16 %v11457_v34, %v11457_v34  ;;  %v3787_v61 = vpop.permute.xlu1 %3786 }
 0x2a6   :  { %v4031_v13 = vrot.slane %v15085_v3, 4  ;;  %3870 = vst.msk [vmem:[#allocation3 + $0x68] sm:$0xf] %vm19488_vm1, %v3785_v12  ;;  %v7007_v8 = vrot.slane %v7005_v5, 4  ;;  %v7015_v15 = vshrl.u32 %v11552_v39, 16  ;;  %v19493_v49 = vshrl.u32 %v14787_v28, 16 }
 0x2a7   :  { %v4754_v37 = vsel %vm12696_vm11, %v4749_v19, %v15140_v21  ;;  %v7013_v19 = vrot.slane %v7011_v16, 5  ;;  %v7354_v45 = vsel %vm12663_vm5, %v7004_v36, %v7353_v40  ;;  %v11303_v58 = vcombine.low %v4832_v24, %v4833_v52  ;;  %v19496_v12 = vld [vmem:[#allocation46_spill] sm:$0xff]  ;;  %6328 = vrot.lane.b32.xlu0 %v12037_v17, %s12468_s13 }
 0x2a8   :  { %4826 = vst.msk [vmem:[#allocation3 + $0x10c] sm:$0xf] %vm19485_vm2, %v4754_v37  ;;  %v4035_v48 = vrot.slane %v19493_v49, 7  ;;  %v19495_v32 = vshrl.u32 %v14817_v6, 16  ;;  %vm19497_vm1 = vnez %v19496_v12  ;;  %v7008_v16 = vor.u32 %v7007_v8, %v7004_v36  ;;  %7355 = vst [vmem:[#allocation2 + $0x14] sm:$0x8] %v7354_v45 }
 0x2a9   :  { %v15194_v37 = vsel %vm19497_vm1, %v14966_v44, 0  ;;  %v7017_v5 = vrot.slane %v7015_v15, 4  ;;  %v19498_v39 = vshll.u32 %v14787_v28, 16  ;;  %vm19499_vm2 = vcmask 1043968   ;;  %5161 = vmatmul.mubr.bf16.vlgmr.msra.gmra.mxu1 %v11303_v58  ;;  %5414 = vmatmul.mubr.bf16.gmra.mxu0 %v11303_v58 }
 0x2aa   :  { %v4044_v25 = vrot.slane %v19495_v32, 7  ;;  %3871 = vst.msk [vmem:[#allocation3 + $0x70] sm:$0xf] %vm19499_vm2, %v3787_v61  ;;  %v4040_v24 = vrot.slane %v4035_v48, 4  ;;  %v19500_v32 = vshll.u32 %v14817_v6, 16  ;;  %v6229_v52 = vpack.c.bf16 %v11458_v38, %v11457_v34  ;;  %5831 = vmatpush1.bf16.msra.mxu1 %v12221_v42  ;;  %v12226_v61 = vld [vmem:[%s18823_s5 + $0xf0] sm:$0xff]  }
 0x2ab   :  { %v4038_v49 = vor.u32 %v19498_v39, %v4035_v48  ;;  %v12038_v3 = vpack.c.bf16 %v11458_v38, %v11458_v38  ;;  %v7009_v23 = vrot.slane %v7008_v16, 4  ;;  %v7018_v51 = vor.u32 %v7017_v5, %v7013_v19  ;;  %v4835_v6 = vld [vmem:[#allocation3 + $0x30] sm:$0xff]  ;;  %v4834_v16 = vld [vmem:[#allocation3 + $0x28] sm:$0xff] }
 0x2ac   :  { %v4047_v40 = vor.u32 %v19500_v32, %v4044_v25  ;;  %vm19501_vm7 = vcmask 523264   ;;  %v19502_v45 = vshrl.u32 %v14821_v60, 16  ;;  %v15211_v58 = vrot.slane %v6557_v29, 7 }
 0x2ad   :  { %v4039_v44 = vsel %vm13643_vm3, %v4031_v13, %v4038_v49  ;;  %11348 = vmatprep.mubr.msk.bf16.mxu1 %vm19501_vm7, %v12222_v55  ;;  %vm19504_vm2 = vcmask 519168   ;;  %vm19505_vm5 = vmmov %vm19501_vm7  ;;  %v6453_v8 = vsel %vm19415_vm9, %v6229_v52, 0  ;;  %v6906_v34 = vsel %vm12667_vm6, %v6229_v52, 0  ;;  %6330 = vrot.lane.b32.xlu1 %v12038_v3, %s12468_s13  ;;  %v3789_v3 = vpop.permute.xlu0 %3788 }
 0x2ae   :  { %v15206_v28 = vrot.slane %v19502_v45, 7  ;;  %19503 = vst [vmem:[#allocation37_spill] sm:$0xff] %v15211_v58  ;;  %4315 = vst.msk [vmem:[#allocation3 + $0x40] sm:$0xf] %vm19504_vm2, %v4039_v44  ;;  %11379 = vmatprep.mubr.msk.bf16.mxu0 %vm19505_vm5, %v12222_v55  ;;  %v4048_v48 = vsel %vm13643_vm3, %v4040_v24, %v4047_v40  ;;  %v7014_v29 = vsel %vm12696_vm11, %v7009_v23, %v7013_v19  ;;  %v4049_v55 = vrot.slane %v4044_v25, 4  ;;  %v12229_v25 = vld [vmem:[%s18823_s5 + $0xe8] sm:$0xff]  }
 0x2af   :  { %vm19508_vm7 = vmmov %vm19504_vm2  ;;  %v11521_v36 = vcombine.low %v6453_v8, %v6453_v8  ;;  %v15225_v13 = vcombine.high %v6453_v8, %v6453_v8  ;;  %v19509_v42 = vmov 0   ;;  %v6564_v17 = vrot.slane %v15211_v58, 4 }
 0x2b0   :  { %4316 = vst.msk [vmem:[#allocation3 + $0x48] sm:$0xf] %vm19508_vm7, %v4048_v48  ;;  %5832 = vmatprep.subr.bf16.mxu1 %v19509_v42  ;;  %vm19510_vm5 = vmmov %vm19504_vm2  ;;  %v11553_v5 = vcombine.low %v6906_v34, %v6906_v34  ;;  %v11554_v39 = vcombine.high %v6906_v34, %v6906_v34  ;;  %v19511_v23 = vshll.u32 %v14821_v60, 16  ;;  %v7019_v49 = vrot.slane %v7018_v51, 4 }
 0x2b1   :  { %7356 = vst.msk [vmem:[#allocation2 + $0x1c] sm:$0xf] %vm19510_vm5, %v7014_v29  ;;  %v6566_v24 = vshrl.u32 %v11521_v36, 16  ;;  %v6569_v32 = vshll.u32 %v11521_v36, 16  ;;  %v11305_v40 = vcombine.low %v4834_v16, %v4835_v6  ;;  %5833 = vmatpush1.bf16.msra.mxu1 %v12226_v61  ;;  %vm19512_vm2 = vcmask 1043968   ;;  %vm19514_vm7 = vmmov %vm19510_vm5 }
 0x2b2   :  { %v4056_v19 = vor.u32 %v19511_v23, %v15206_v28  ;;  %v7021_v52 = vshll.u32 %v11553_v5, 16  ;;  %v7025_v44 = vshrl.u32 %v11553_v5, 16  ;;  %v7031_v45 = vshll.u32 %v11554_v39, 16  ;;  %5834 = vmatprep.subr.bf16.mxu1 %v19509_v42  ;;  %3872 = vst.msk [vmem:[#allocation3 + $0x78] sm:$0xf] %vm19512_vm2, %v3789_v3  ;;  %v11459_v5 = vld [vmem:[%s18821_s0 + $0x120] sm:$0xff]  ;;  %vm19515_vm5 = vmmov %vm19512_vm2 }
 0x2b3   :  { %v7035_v48 = vshrl.u32 %v11554_v39, 16  ;;  %v15239_v60 = vrot.slane %v6566_v24, 7  ;;  %v6575_v51 = vshrl.u32 %v15225_v13, 16  ;;  %v19513_v6 = vshrl.u32 %v14843_v22, 16  ;;  %5169 = vmatmul.mubr.bf16.gmra.mxu1 %v11305_v40  ;;  %5422 = vmatmul.mubr.bf16.gmra.mxu0 %v11305_v40  ;;  %v3791_v39 = vpop.permute.xlu1 %3790  ;;  %v12224_v3 = vld [vmem:[#allocation3 + $0x3c] ss:$8 sps:$4 sm:$0xff]   ;;  %vm19517_vm2 = vmmov %vm19514_vm7 }
 0x2b4   :  { %v4057_v61 = vsel %vm13643_vm3, %v4049_v55, %v4056_v19  ;;  %v7023_v34 = vrot.slane %v7021_v52, 5  ;;  %v7027_v29 = vrot.slane %v7025_v44, 4  ;;  %v7033_v36 = vrot.slane %v7031_v45, 5  ;;  %3873 = vst.msk [vmem:[#allocation3 + $0x80] sm:$0xf] %vm19515_vm5, %v3791_v39  ;;  %v12232_v40 = vld [vmem:[%s18823_s5 + $0xe0] sm:$0xff]  }
 0x2b5   :  { %v15246_v8 = vrot.slane %v19513_v6, 7  ;;  %v7037_v16 = vrot.slane %v7035_v48, 4  ;;  %4317 = vst.msk [vmem:[#allocation3 + $0x50] sm:$0xf] %vm19514_vm7, %v4057_v61  ;;  %v15256_v19 = vcombine.low %v15194_v37, %v15194_v37  ;;  %v6571_v24 = vor.u32 %v6569_v32, %v15239_v60  ;;  %5835 = vmatpush1.bf16.msra.mxu1 %v12229_v25  ;;  %v4837_v45 = vld [vmem:[#allocation3 + $0x40] sm:$0xff]  ;;  %v11460_v32 = vld [vmem:[%s18821_s0 + $0x128] sm:$0xff]  ;;  %v3793_v25 = vpop.permute.xlu0 %3792 }
 0x2b6   :  { %v7024_v52 = vsel %vm12696_vm11, %v7019_v49, %v7023_v34  ;;  %v7028_v44 = vor.u32 %v7027_v29, %v7023_v34  ;;  %v4058_v48 = vrot.slane %v15206_v28, 4  ;;  %v19516_v61 = vshll.u32 %v14843_v22, 16  ;;  %5836 = vmatprep.subr.bf16.mxu1 %v19509_v42  ;;  %v11461_v28 = vld [vmem:[%s18821_s0 + $0x130] sm:$0xff] }
 0x2b7   :  { %v15275_v39 = vsel %vm13643_vm3, %v6564_v17, %v6571_v24  ;;  %v15277_v49 = vrot.slane %v6575_v51, 7  ;;  %v7038_v34 = vor.u32 %v7037_v16, %v7033_v36  ;;  %7357 = vst.msk [vmem:[#allocation2 + $0x24] sm:$0xf] %vm19517_vm2, %v7024_v52  ;;  %vm19518_vm7 = vcmask 523264  }
 0x2b8   :  { %v4065_v6 = vor.u32 %v19516_v61, %v15246_v8  ;;  %11349 = vmatprep.mubr.msk.bf16.mxu1 %vm19518_vm7, %v12224_v3  ;;  %vm19519_vm5 = vmmov %vm19518_vm7  ;;  %v12039_v22 = vpack.c.bf16 %v11459_v5, %v11459_v5  ;;  %vm19520_vm9 = vcmask 1043968   ;;  %v7029_v29 = vrot.slane %v7028_v44, 4  ;;  %v4836_v61 = vld [vmem:[#allocation3 + $0x38] sm:$0xff] }
 0x2b9   :  { %11380 = vmatprep.mubr.msk.bf16.mxu0 %vm19519_vm5, %v12224_v3  ;;  %3874 = vst.msk [vmem:[#allocation3 + $0x88] sm:$0xf] %vm19520_vm9, %v3793_v25  ;;  %v6230_v51 = vpack.c.bf16 %v11460_v32, %v11459_v5  ;;  %v4067_v16 = vrot.slane %v15246_v8, 4  ;;  %v12040_v24 = vpack.c.bf16 %v11460_v32, %v11460_v32  ;;  %v19521_v3 = vld [vmem:[#allocation27_spill] sm:$0xff]  ;;  %v11307_v23 = vcombine.low %v4836_v61, %v4837_v45  ;;  %v12237_v45 = vld [vmem:[%s18823_s5 + $0xd8] sm:$0xff]   ;;  %vm19526_vm9 = vmmov %vm19517_vm2 }
 0x2ba   :  { %v4066_v17 = vsel %vm13643_vm3, %v4058_v48, %v4065_v6  ;;  %6332 = vrot.lane.b32.xlu0 %v12039_v22, %s12468_s13  ;;  %v19522_v52 = vshrl.u32 %v19521_v3, 16  ;;  %v19523_v15 = vshrl.u32 %v14914_v11, 16  ;;  %5837 = vmatpush1.bf16.msra.mxu1 %v12232_v40  ;;  %v7034_v44 = vsel %vm12696_vm11, %v7029_v29, %v7033_v36  ;;  %v12227_v29 = vld [vmem:[#allocation3 + $0x4c] ss:$8 sps:$4 sm:$0xff]   ;;  %vm19529_vm7 = vmmov %vm19519_vm5 }
 0x2bb   :  { %4318 = vst.msk [vmem:[#allocation3 + $0x58] sm:$0xf] %vm19517_vm2, %v4066_v17  ;;  %v6454_v8 = vsel %vm19419_vm4, %v6230_v51, 0  ;;  %v6907_v6 = vsel %vm19399_vm0, %v6230_v51, 0  ;;  %v12041_v22 = vpack.c.bf16 %v11461_v28, %v11461_v28  ;;  %5838 = vmatprep.subr.bf16.mxu1 %v19509_v42  ;;  %6334 = vrot.lane.b32.xlu1 %v12040_v24, %s12468_s13  ;;  %v6582_v61 = vrot.slane %v15277_v49, 4 }
 0x2bc   :  { %v4071_v55 = vrot.slane %v19522_v52, 7  ;;  %v15295_v25 = vrot.slane %v19523_v15, 7  ;;  %7358 = vst.msk [vmem:[#allocation2 + $0x2c] sm:$0xf] %vm19526_vm9, %v7034_v44  ;;  %v11523_v15 = vcombine.low %v6454_v8, %v6454_v8  ;;  %v15308_v40 = vcombine.high %v6454_v8, %v6454_v8  ;;  %5177 = vmatmul.mubr.bf16.gmra.mxu1 %v11307_v23  ;;  %5430 = vmatmul.mubr.bf16.gmra.mxu0 %v11307_v23  ;;  %v11462_v8 = vld [vmem:[%s18821_s0 + $0x138] sm:$0xff] }
 0x2bd   :  { %v11555_v32 = vcombine.low %v6907_v6, %v6907_v6  ;;  %v11556_v36 = vcombine.high %v6907_v6, %v6907_v6  ;;  %v7039_v17 = vrot.slane %v7038_v34, 4  ;;  %v19527_v51 = vshll.u32 %v19521_v3, 16  ;;  %11350 = vmatprep.mubr.msk.bf16.mxu1 %vm19529_vm7, %v12227_v29  ;;  %11381 = vmatprep.mubr.msk.bf16.mxu0 %vm19519_vm5, %v12227_v29  ;;  %vm19531_vm7 = vmmov %vm19526_vm9  ;;  %v3797_v29 = vpop.permute.xlu0 %3796 }
 0x2be   :  { %v19528_v5 = vshll.u32 %v14914_v11, 16  ;;  %v6584_v6 = vshrl.u32 %v11523_v15, 16  ;;  %v6587_v48 = vshll.u32 %v11523_v15, 16  ;;  %v4076_v34 = vrot.slane %v4071_v55, 4  ;;  %6336 = vrot.lane.b32.xlu0 %v12041_v22, %s12468_s13  ;;  %v3795_v11 = vpop.permute.xlu1 %3794  ;;  %5839 = vmatpush1.bf16.msra.mxu1 %v12237_v45 }
 0x2bf   :  { %v4074_v52 = vor.u32 %v19527_v51, %v4071_v55  ;;  %v6231_v24 = vpack.c.bf16 %v11462_v8, %v11461_v28  ;;  %v7041_v3 = vshll.u32 %v11555_v32, 16  ;;  %v7045_v51 = vshrl.u32 %v11555_v32, 16  ;;  %5840 = vmatprep.subr.bf16.mxu1 %v19509_v42 }
 0x2c0   :  { %v4083_v44 = vor.u32 %v19528_v5, %v15295_v25  ;;  %v7051_v38 = vshll.u32 %v11556_v36, 16  ;;  %v7055_v23 = vshrl.u32 %v11556_v36, 16  ;;  %v12240_v5 = vld [vmem:[%s18823_s5 + $0xd0] sm:$0xff]   ;;  %v15326_v58 = vrot.slane %v6584_v6, 7 }
 0x2c1   :  { %v6593_v15 = vshrl.u32 %v15308_v40, 16  ;;  %v4075_v55 = vsel %vm13643_vm3, %v4067_v16, %v4074_v52  ;;  %vm19530_vm2 = vcmask 1043968   ;;  %v7043_v22 = vrot.slane %v7041_v3, 5 }
 0x2c2   :  { %v4084_v28 = vsel %vm13643_vm3, %v4076_v34, %v4083_v44  ;;  %3875 = vst.msk [vmem:[#allocation3 + $0x90] sm:$0xf] %vm19530_vm2, %v3795_v11  ;;  %v7047_v45 = vrot.slane %v7045_v51, 4  ;;  %v7053_v32 = vrot.slane %v7051_v38, 5  ;;  %v7057_v36 = vrot.slane %v7055_v23, 4  ;;  %vm19532_vm5 = vmmov %vm19530_vm2  ;;  %5841 = vmatpush1.bf16.msra.mxu1 %v12240_v5  ;;  %v12243_v23 = vld [vmem:[%s18823_s5 + $0xc8] sm:$0xff]  }
 0x2c3   :  { %4319 = vst.msk [vmem:[#allocation3 + $0x60] sm:$0xf] %vm19526_vm9, %v4075_v55  ;;  %v15341_v52 = vcombine.high %v15194_v37, %v15194_v37  ;;  %v6589_v44 = vor.u32 %v6587_v48, %v15326_v58  ;;  %v7044_v38 = vsel %vm12696_vm11, %v7039_v17, %v7043_v22  ;;  %v12042_v51 = vpack.c.bf16 %v11462_v8, %v11462_v8  ;;  %vm19534_vm2 = vmmov %vm19531_vm7  ;;  %v4839_v11 = vld [vmem:[#allocation3 + $0x50] sm:$0xff]  ;;  %v3799_v6 = vpop.permute.xlu1 %3798  ;;  %v12230_v17 = vld [vmem:[#allocation3 + $0x5c] ss:$8 sps:$4 sm:$0xff]  }
 0x2c4   :  { %4320 = vst.msk [vmem:[#allocation3 + $0x68] sm:$0xf] %vm19531_vm7, %v4084_v28  ;;  %v7048_v34 = vor.u32 %v7047_v45, %v7043_v22  ;;  %v7058_v3 = vor.u32 %v7057_v36, %v7053_v32  ;;  %v6455_v55 = vsel %vm19424_vm12, %v6231_v24, 0  ;;  %v6908_v28 = vsel %vm19402_vm15, %v6231_v24, 0  ;;  %5842 = vmatprep.subr.bf16.mxu1 %v19509_v42  ;;  %vm19538_vm9 = vmmov %vm19534_vm2 }
 0x2c5   :  { %3876 = vst.msk [vmem:[#allocation3 + $0x98] sm:$0xf] %vm19532_vm5, %v3797_v29  ;;  %v15353_v37 = vsel %vm13643_vm3, %v6582_v61, %v6589_v44  ;;  %v15362_v5 = vrot.slane %v6593_v15, 7  ;;  %v11525_v45 = vcombine.low %v6455_v55, %v6455_v55  ;;  %6338 = vrot.lane.b32.xlu1 %v12042_v51, %s12468_s13  ;;  %v11557_v36 = vcombine.low %v6908_v28, %v6908_v28  ;;  %vm19540_vm7 = vmmov %vm19532_vm5 }
 0x2c6   :  { %19533 = vst [vmem:[#allocation30_spill] sm:$0xff] %v15353_v37  ;;  %7359 = vst.msk [vmem:[#allocation2 + $0x34] sm:$0xf] %vm19534_vm2, %v7044_v38  ;;  %v7049_v22 = vrot.slane %v7048_v34, 4  ;;  %v7059_v61 = vrot.slane %v7058_v3, 4  ;;  %v11558_v29 = vcombine.high %v6908_v28, %v6908_v28  ;;  %v19537_v44 = vshrl.u32 %v14917_v50, 16  ;;  %5843 = vmatpush1.bf16.msra.mxu1 %v12243_v23 }
 0x2c7   :  { %v15371_v16 = vcombine.high %v6455_v55, %v6455_v55  ;;  %v6602_v8 = vshrl.u32 %v11525_v45, 16  ;;  %v6605_v15 = vshll.u32 %v11525_v45, 16  ;;  %v12248_v34 = vld [vmem:[%s18823_s5 + $0xc0] sm:$0xff]   ;;  %v7061_v3 = vshll.u32 %v11557_v36, 16  ;;  %5844 = vmatprep.subr.bf16.mxu1 %v19509_v42  ;;  %v4838_v55 = vld [vmem:[#allocation3 + $0x48] sm:$0xff] }
 0x2c8   :  { %v15367_v38 = vrot.slane %v19537_v44, 7  ;;  %v7054_v24 = vsel %vm12696_vm11, %v7049_v22, %v7053_v32  ;;  %v7065_v51 = vshrl.u32 %v11557_v36, 16  ;;  %v7071_v28 = vshll.u32 %v11558_v29, 16  ;;  %3877 = vst.msk [vmem:[#allocation3 + $0xa0] sm:$0xf] %vm19540_vm7, %v3799_v6  ;;  %v19541_v36 = vld [vmem:[#allocation51_spill] sm:$0xff] }
 0x2c9   :  { %7360 = vst.msk [vmem:[#allocation2 + $0x3c] sm:$0xf] %vm19538_vm9, %v7054_v24  ;;  %v4085_v44 = vrot.slane %v15295_v25, 4  ;;  %v6600_v32 = vrot.slane %v15362_v5, 4  ;;  %v15380_v22 = vrot.slane %v6602_v8, 7  ;;  %v7075_v23 = vshrl.u32 %v11558_v29, 16  ;;  %vm19544_vm9 = vmmov %vm19534_vm2 }
 0x2ca   :  { %v19539_v45 = vshll.u32 %v14917_v50, 16  ;;  %vm19542_vm5 = vnez %v19541_v36  ;;  %v7063_v24 = vrot.slane %v7061_v3, 5  ;;  %v7067_v26 = vrot.slane %v7065_v51, 4  ;;  %v11463_v50 = vld [vmem:[%s18821_s0 + $0x140] sm:$0xff]  ;;  %5845 = vmatpush1.bf16.msra.mxu1 %v12248_v34  ;;  %v12251_v6 = vld [vmem:[%s18823_s5 + $0x118] sm:$0xff]   ;;  %v11464_v51 = vld [vmem:[%s18821_s0 + $0x148] sm:$0xff] }
 0x2cb   :  { %v3905_v25 = vsel %vm19542_vm5, %v15002_v9, 0  ;;  %v11309_v4 = vcombine.low %v4838_v55, %v4839_v11  ;;  %v6607_v8 = vor.u32 %v6605_v15, %v15380_v22  ;;  %v6611_v29 = vshrl.u32 %v15371_v16, 16  ;;  %5854 = vmatprep.subr.bf16.mxu1 %v19509_v42 }
 0x2cc   :  { %v4092_v48 = vor.u32 %v19539_v45, %v15367_v38  ;;  %v7073_v12 = vrot.slane %v7071_v28, 5  ;;  %v7064_v9 = vsel %vm12696_vm11, %v7059_v61, %v7063_v24  ;;  %v7068_v11 = vor.u32 %v7067_v26, %v7063_v24  ;;  %v4841_v45 = vld [vmem:[#allocation3 + $0x60] sm:$0xff] }
 0x2cd   :  { %v7077_v3 = vrot.slane %v7075_v23, 4  ;;  %5185 = vmatmul.mubr.bf16.gmra.mxu1 %v11309_v4  ;;  %5438 = vmatmul.mubr.bf16.gmra.mxu0 %v11309_v4  ;;  %v15406_v28 = vcombine.low %v3905_v25, %v3905_v25  ;;  %v15410_v55 = vsel %vm13643_vm3, %v6600_v32, %v6607_v8  ;;  %7361 = vst.msk [vmem:[#allocation2 + $0x44] sm:$0xf] %vm19534_vm2, %v7064_v9  ;;  %vm19545_vm7 = vcmask 523264  }
 0x2ce   :  { %v4093_v15 = vsel %vm13643_vm3, %v4085_v44, %v4092_v48  ;;  %19543 = vst [vmem:[#allocation39_spill] sm:$0xff] %v15410_v55  ;;  %11351 = vmatprep.mubr.msk.bf16.mxu1 %vm19545_vm7, %v12230_v17  ;;  %vm19546_vm12 = vmmov %vm19545_vm7  ;;  %v19547_v4 = vshrl.u32 %v14945_v57, 16  ;;  %v7069_v48 = vrot.slane %v7068_v11, 4  ;;  %v4094_v61 = vrot.slane %v15367_v38, 4  ;;  %5855 = vmatpush2.bf16.msra.mxu1 %v12251_v6  ;;  %v12254_v38 = vld [vmem:[%s18823_s5 + $0x110] sm:$0xff]   ;;  %v4840_v6 = vld [vmem:[#allocation3 + $0x58] sm:$0xff] }
 0x2cf   :  { %4321 = vst.msk [vmem:[#allocation3 + $0x70] sm:$0xf] %vm19544_vm9, %v4093_v15  ;;  %11382 = vmatprep.mubr.msk.bf16.mxu0 %vm19546_vm12, %v12230_v17  ;;  %v12043_v44 = vpack.c.bf16 %v11463_v50, %v11463_v50  ;;  %v6232_v23 = vpack.c.bf16 %v11464_v51, %v11463_v50  ;;  %v7078_v32 = vor.u32 %v7077_v3, %v7073_v12  ;;  %v19548_v24 = vshll.u32 %v14945_v57, 16  ;;  %v3801_v17 = vpop.permute.xlu0 %3800  ;;  %vm19554_vm7 = vmmov %vm19544_vm9 }
 0x2d0   :  { %v4098_v26 = vrot.slane %v19547_v4, 7  ;;  %v12044_v9 = vpack.c.bf16 %v11464_v51, %v11464_v51  ;;  %v19549_v15 = vshrl.u32 %v14952_v1, 16  ;;  %v15429_v11 = vrot.slane %v6611_v29, 7  ;;  %v19551_v51 = vld [vmem:[#allocation15_spill] sm:$0xff]  ;;  %5856 = vmatprep.subr.bf16.mxu1 %v19509_v42 }
 0x2d1   :  { %v7074_v50 = vsel %vm12696_vm11, %v7069_v48, %v7073_v12  ;;  %6340 = vrot.lane.b32.xlu0 %v12043_v44, %s12468_s13  ;;  %v6456_v3 = vsel %vm19429_vm10, %v6232_v23, 0  ;;  %vm19552_vm12 = vnez %v19551_v51  ;;  %vm19553_vm2 = vcmask 1043968  }
 0x2d2   :  { %v4101_v8 = vor.u32 %v19548_v24, %v4098_v26  ;;  %v15424_v34 = vrot.slane %v19549_v15, 7  ;;  %v6909_v4 = vsel %vm19552_vm12, %v6232_v23, 0  ;;  %3878 = vst.msk [vmem:[#allocation3 + $0xa8] sm:$0xf] %vm19553_vm2, %v3801_v17  ;;  %v11527_v24 = vcombine.low %v6456_v3, %v6456_v3  ;;  %6342 = vrot.lane.b32.xlu1 %v12044_v9, %s12468_s13  ;;  %5857 = vmatpush2.bf16.msra.mxu1 %v12254_v38 }
 0x2d3   :  { %7362 = vst.msk [vmem:[#allocation2 + $0x4c] sm:$0xf] %vm19544_vm9, %v7074_v50  ;;  %v11559_v12 = vcombine.low %v6909_v4, %v6909_v4  ;;  %v4103_v48 = vrot.slane %v4098_v26, 4  ;;  %v15444_v44 = vcombine.high %v3905_v25, %v3905_v25  ;;  %v11560_v23 = vcombine.high %v6909_v4, %v6909_v4  ;;  %v3803_v50 = vpop.permute.xlu1 %3802  ;;  %5858 = vmatprep.subr.bf16.mxu1 %v19509_v42  ;;  %vm19557_vm9 = vmmov %vm19554_vm7 }
 0x2d4   :  { %v4102_v29 = vsel %vm13643_vm3, %v4094_v61, %v4101_v8  ;;  %v19555_v15 = vshll.u32 %v14952_v1, 16  ;;  %v11311_v37 = vcombine.low %v4840_v6, %v4841_v45  ;;  %v6618_v57 = vrot.slane %v15429_v11, 4  ;;  %3879 = vst.msk [vmem:[#allocation3 + $0xb0] sm:$0xf] %vm19553_vm2, %v3803_v50  ;;  %v12259_v1 = vld [vmem:[%s18823_s5 + $0x108] sm:$0xff]  }
 0x2d5   :  { %4322 = vst.msk [vmem:[#allocation3 + $0x78] sm:$0xf] %vm19554_vm7, %v4102_v29  ;;  %v7079_v51 = vrot.slane %v7078_v32, 4  ;;  %v6620_v61 = vshrl.u32 %v11527_v24, 16  ;;  %v6623_v8 = vshll.u32 %v11527_v24, 16  ;;  %v7081_v26 = vshll.u32 %v11559_v12, 16 }
 0x2d6   :  { %v4110_v17 = vor.u32 %v19555_v15, %v15424_v34  ;;  %v7085_v25 = vshrl.u32 %v11559_v12, 16  ;;  %v7091_v9 = vshll.u32 %v11560_v23, 16  ;;  %v7095_v36 = vshrl.u32 %v11560_v23, 16  ;;  %5193 = vmatmul.mubr.bf16.gmra.mxu1 %v11311_v37  ;;  %5446 = vmatmul.mubr.bf16.gmra.mxu0 %v11311_v37  ;;  %v12233_v6 = vld [vmem:[#allocation3 + $0x6c] ss:$8 sps:$4 sm:$0xff]  }
 0x2d7   :  { %v15455_v45 = vcombine.high %v6456_v3, %v6456_v3  ;;  %v15457_v4 = vrot.slane %v6620_v61, 7  ;;  %v19556_v38 = vshrl.u32 %v14980_v47, 16  ;;  %v7083_v24 = vrot.slane %v7081_v26, 5  ;;  %v11465_v3 = vld [vmem:[%s18821_s0 + $0x150] sm:$0xff]  ;;  %5859 = vmatpush2.bf16.msra.mxu1 %v12259_v1  ;;  %v4843_v1 = vld [vmem:[#allocation3 + $0x70] sm:$0xff] }
 0x2d8   :  { %v4111_v32 = vsel %vm13643_vm3, %v4103_v48, %v4110_v17  ;;  %v7087_v37 = vrot.slane %v7085_v25, 4  ;;  %v7093_v12 = vrot.slane %v7091_v9, 5  ;;  %v7097_v23 = vrot.slane %v7095_v36, 4  ;;  %v11466_v36 = vld [vmem:[%s18821_s0 + $0x158] sm:$0xff]  ;;  %v3805_v48 = vpop.permute.xlu0 %3804  ;;  %5860 = vmatprep.subr.bf16.mxu1 %v19509_v42 }
 0x2d9   :  { %v15463_v29 = vrot.slane %v19556_v38, 7  ;;  %4323 = vst.msk [vmem:[#allocation3 + $0x80] sm:$0xf] %vm19557_vm9, %v4111_v32  ;;  %v6625_v50 = vor.u32 %v6623_v8, %v15457_v4  ;;  %vm19558_vm7 = vcmask 523264   ;;  %v7084_v61 = vsel %vm12696_vm11, %v7079_v51, %v7083_v24 }
 0x2da   :  { %11352 = vmatprep.mubr.msk.bf16.mxu1 %vm19558_vm7, %v12233_v6  ;;  %vm19559_vm2 = vmmov %vm19558_vm7  ;;  %v7088_v26 = vor.u32 %v7087_v37, %v7083_v24  ;;  %v4112_v25 = vrot.slane %v15424_v34, 4  ;;  %v19560_v9 = vshll.u32 %v14980_v47, 16  ;;  %7363 = vst.msk [vmem:[#allocation2 + $0x54] sm:$0xf] %vm19557_vm9, %v7084_v61  ;;  %v12045_v38 = vpack.c.bf16 %v11465_v3, %v11465_v3  ;;  %v12262_v34 = vld [vmem:[%s18823_s5 + $0x100] sm:$0xff]   ;;  %v15498_v37 = vpop.f32.mrf.mxu0  ;;  %v19566_v61 = vld [vmem:[#allocation19_spill] sm:$0xff] }
 0x2db   :  { %11383 = vmatprep.mubr.msk.bf16.mxu0 %vm19559_vm2, %v12233_v6  ;;  %v15487_v8 = vsel %vm13643_vm3, %v6618_v57, %v6625_v50  ;;  %v6629_v6 = vshrl.u32 %v15455_v45, 16  ;;  %v6233_v17 = vpack.c.bf16 %v11466_v36, %v11465_v3  ;;  %v7098_v51 = vor.u32 %v7097_v23, %v7093_v12  ;;  %19563 = vst [vmem:[#allocation36_spill] sm:$0xff] %v15498_v37  ;;  %v19564_v3 = vld [vmem:[#allocation54_spill] sm:$0xff] }
 0x2dc   :  { %v4119_v32 = vor.u32 %v19560_v9, %v15463_v29  ;;  %19561 = vst [vmem:[#allocation44_spill] sm:$0xff] %v15487_v8  ;;  %v7089_v47 = vrot.slane %v7088_v26, 4  ;;  %v12046_v24 = vpack.c.bf16 %v11466_v36, %v11466_v36  ;;  %vm19562_vm7 = vcmask 1043968   ;;  %6344 = vrot.lane.b32.xlu0 %v12045_v38, %s12468_s13  ;;  %v19568_v26 = vld [vmem:[#allocation17_spill] sm:$0xff]  ;;  %5861 = vmatpush2.bf16.msra.mxu1 %v12262_v34 }
 0x2dd   :  { %3880 = vst.msk [vmem:[#allocation3 + $0xb8] sm:$0xf] %vm19562_vm7, %v3805_v48  ;;  %vm19565_vm2 = vnez %v19564_v3  ;;  %vm19567_vm10 = vnez %v19566_v61  ;;  %vm19569_vm12 = vnez %v19568_v26  ;;  %v19570_v36 = vshrl.u32 %v14983_v0, 16  ;;  %v5409_v61 = vpop.f32.mrf.mxu0  ;;  %vm19571_vm7 = vmmov %vm19557_vm9  ;;  %7789 = vmatprep.subr.bf16.mxu1 %v19509_v42 }
 0x2de   :  { %v4120_v57 = vsel %vm13643_vm3, %v4112_v25, %v4119_v32  ;;  %v3906_v50 = vsel %vm19565_vm2, %v15046_v30, 0  ;;  %v6457_v23 = vsel %vm19567_vm10, %v6233_v17, 0  ;;  %v6910_v9 = vsel %vm19569_vm12, %v6233_v17, 0  ;;  %v4842_v32 = vld [vmem:[#allocation3 + $0x68] sm:$0xff]  ;;  %6346 = vrot.lane.b32.xlu1 %v12046_v24, %s12468_s13  ;;  %v3809_v61 = vpop.permute.xlu0 %3808 }
 0x2df   :  { %4324 = vst.msk [vmem:[#allocation3 + $0x88] sm:$0xf] %vm19557_vm9, %v4120_v57  ;;  %v15511_v25 = vrot.slane %v19570_v36, 7  ;;  %v7094_v48 = vsel %vm12696_vm11, %v7089_v47, %v7093_v12  ;;  %v11529_v15 = vcombine.low %v6457_v23, %v6457_v23  ;;  %v11561_v30 = vcombine.low %v6910_v9, %v6910_v9  ;;  %v3807_v57 = vpop.permute.xlu1 %3806  ;;  %v12235_v12 = vld [vmem:[#allocation3 + $0x7c] ss:$8 sps:$4 sm:$0xff]  }
 0x2e0   :  { %v4121_v38 = vrot.slane %v15463_v29, 4  ;;  %v15517_v37 = vrot.slane %v6629_v6, 7  ;;  %7364 = vst.msk [vmem:[#allocation2 + $0x5c] sm:$0xf] %vm19571_vm7, %v7094_v48  ;;  %v11562_v17 = vcombine.high %v6910_v9, %v6910_v9  ;;  %v19572_v36 = vshll.u32 %v14983_v0, 16  ;;  %v15526_v6 = vpop.f32.mrf.mxu0 }
 0x2e1   :  { %v11313_v8 = vcombine.low %v4842_v32, %v4843_v1  ;;  %vm19573_vm9 = vcmask 1043968   ;;  %v7099_v47 = vrot.slane %v7098_v51, 4  ;;  %v15524_v24 = vcombine.high %v6457_v23, %v6457_v23  ;;  %19574 = vst [vmem:[#allocation45_spill] sm:$0xff] %v15526_v6 }
 0x2e2   :  { %v4128_v26 = vor.u32 %v19572_v36, %v15511_v25  ;;  %3881 = vst.msk [vmem:[#allocation3 + $0xc0] sm:$0xf] %vm19573_vm9, %v3807_v57  ;;  %v6638_v29 = vshrl.u32 %v11529_v15, 16  ;;  %v6641_v3 = vshll.u32 %v11529_v15, 16  ;;  %v7101_v9 = vshll.u32 %v11561_v30, 16  ;;  %vm19575_vm7 = vmmov %vm19573_vm9  ;;  %v5412_v32 = vpop.f32.mrf.mxu0  ;;  %v11467_v36 = vld [vmem:[%s18821_s0 + $0x160] sm:$0xff] }
 0x2e3   :  { %v7105_v48 = vshrl.u32 %v11561_v30, 16  ;;  %v7111_v55 = vshll.u32 %v11562_v17, 16  ;;  %v7115_v0 = vshrl.u32 %v11562_v17, 16  ;;  %5201 = vmatmul.mubr.bf16.gmra.mxu1 %v11313_v8  ;;  %5454 = vmatmul.mubr.bf16.gmra.mxu0 %v11313_v8  ;;  %3882 = vst.msk [vmem:[#allocation3 + $0xc8] sm:$0xf] %vm19575_vm7, %v3809_v61  ;;  %v6636_v34 = vrot.slane %v15517_v37, 4 }
 0x2e4   :  { %v15531_v51 = vrot.slane %v6638_v29, 7  ;;  %v4129_v15 = vsel %vm13643_vm3, %v4121_v38, %v4128_v26  ;;  %vm19577_vm9 = vcmask 523264   ;;  %v19579_v1 = vshrl.u32 %v15005_v18, 16  ;;  %v11468_v61 = vld [vmem:[%s18821_s0 + $0x168] sm:$0xff] }
 0x2e5   :  { %11353 = vmatprep.mubr.msk.bf16.mxu1 %vm19577_vm9, %v12235_v12  ;;  %vm19578_vm10 = vmmov %vm19577_vm9  ;;  %v7103_v30 = vrot.slane %v7101_v9, 5  ;;  %v7107_v8 = vrot.slane %v7105_v48, 4  ;;  %v7113_v57 = vrot.slane %v7111_v55, 5  ;;  %v7117_v17 = vrot.slane %v7115_v0, 4 }
 0x2e6   :  { %19576 = vst [vmem:[#allocation31_spill] sm:$0xff] %v15531_v51  ;;  %11384 = vmatprep.mubr.msk.bf16.mxu0 %vm19578_vm10, %v12235_v12  ;;  %v15539_v23 = vrot.slane %v19579_v1, 7  ;;  %vm19580_vm7 = vcmask 519168   ;;  %v15546_v38 = vcombine.low %v3906_v50, %v3906_v50  ;;  %v6643_v12 = vor.u32 %v6641_v3, %v15531_v51 }
 0x2e7   :  { %4325 = vst.msk [vmem:[#allocation3 + $0x90] sm:$0xf] %vm19580_vm7, %v4129_v15  ;;  %v6647_v29 = vshrl.u32 %v15524_v24, 16  ;;  %v7104_v55 = vsel %vm12696_vm11, %v7099_v47, %v7103_v30  ;;  %v7108_v9 = vor.u32 %v7107_v8, %v7103_v30  ;;  %v4130_v48 = vrot.slane %v15511_v25, 4  ;;  %vm19583_vm10 = vmmov %vm19580_vm7  ;;  %v4845_v47 = vld [vmem:[#allocation3 + $0x80] sm:$0xff] }
 0x2e8   :  { %v19581_v0 = vshll.u32 %v15005_v18, 16  ;;  %v15559_v1 = vcombine.high %v3906_v50, %v3906_v50  ;;  %v15563_v3 = vsel %vm13643_vm3, %v6636_v34, %v6643_v12  ;;  %7365 = vst.msk [vmem:[#allocation2 + $0x64] sm:$0xf] %vm19583_vm10, %v7104_v55  ;;  %v12047_v32 = vpack.c.bf16 %v11467_v36, %v11467_v36  ;;  %vm19584_vm9 = vmmov %vm19580_vm7  ;;  %v19585_v18 = vld [vmem:[#allocation21_spill] sm:$0xff]  ;;  %v19587_v34 = vld [vmem:[#allocation18_spill] sm:$0xff]  ;;  %v3811_v55 = vpop.permute.xlu1 %3810 }
 0x2e9   :  { %19582 = vst [vmem:[#allocation40_spill] sm:$0xff] %v15563_v3  ;;  %v6234_v26 = vpack.c.bf16 %v11468_v61, %v11467_v36  ;;  %v7109_v6 = vrot.slane %v7108_v9, 4  ;;  %v7118_v42 = vor.u32 %v7117_v17, %v7113_v57  ;;  %v12048_v30 = vpack.c.bf16 %v11468_v61, %v11468_v61  ;;  %v4844_v61 = vld [vmem:[#allocation3 + $0x78] sm:$0xff] }
 0x2ea   :  { %v4137_v15 = vor.u32 %v19581_v0, %v15539_v23  ;;  %v15568_v8 = vrot.slane %v6647_v29, 7  ;;  %6348 = vrot.lane.b32.xlu0 %v12047_v32, %s12468_s13  ;;  %vm19586_vm7 = vnez %v19585_v18  ;;  %vm19588_vm10 = vnez %v19587_v34  ;;  %v12238_v18 = vld [vmem:[#allocation3 + $0x8c] ss:$8 sps:$4 sm:$0xff]  }
 0x2eb   :  { %v6458_v50 = vsel %vm19586_vm7, %v6234_v26, 0  ;;  %v6911_v12 = vsel %vm19588_vm10, %v6234_v26, 0  ;;  %v19589_v36 = vshrl.u32 %v15022_v62, 16  ;;  %v7114_v9 = vsel %vm12696_vm11, %v7109_v6, %v7113_v57  ;;  %6350 = vrot.lane.b32.xlu1 %v12048_v30, %s12468_s13  ;;  %v3813_v6 = vpop.permute.xlu0 %3812 }
 0x2ec   :  { %v4138_v25 = vsel %vm13643_vm3, %v4130_v48, %v4137_v15  ;;  %v11531_v29 = vcombine.low %v6458_v50, %v6458_v50  ;;  %v11563_v48 = vcombine.low %v6911_v12, %v6911_v12  ;;  %v4139_v0 = vrot.slane %v15539_v23, 4 }
 0x2ed   :  { %4326 = vst.msk [vmem:[#allocation3 + $0x98] sm:$0xf] %vm19584_vm9, %v4138_v25  ;;  %v4143_v17 = vrot.slane %v19589_v36, 7  ;;  %vm19590_vm9 = vcmask 1043968   ;;  %vm19591_vm7 = vcmask 519168   ;;  %v11564_v26 = vcombine.high %v6911_v12, %v6911_v12 }
 0x2ee   :  { %3883 = vst.msk [vmem:[#allocation3 + $0xd0] sm:$0xf] %vm19590_vm9, %v3811_v55  ;;  %v19592_v32 = vshll.u32 %v15022_v62, 16  ;;  %v11315_v36 = vcombine.low %v4844_v61, %v4845_v47  ;;  %v6654_v57 = vrot.slane %v15568_v8, 4  ;;  %v7119_v34 = vrot.slane %v7118_v42, 4  ;;  %vm19593_vm10 = vmmov %vm19590_vm9 }
 0x2ef   :  { %7366 = vst.msk [vmem:[#allocation2 + $0x6c] sm:$0xf] %vm19591_vm7, %v7114_v9  ;;  %v6656_v3 = vshrl.u32 %v11531_v29, 16  ;;  %v6659_v30 = vshll.u32 %v11531_v29, 16  ;;  %v7121_v23 = vshll.u32 %v11563_v48, 16  ;;  %v7125_v55 = vshrl.u32 %v11563_v48, 16 }
 0x2f0   :  { %v4146_v25 = vor.u32 %v19592_v32, %v4143_v17  ;;  %3884 = vst.msk [vmem:[#allocation3 + $0xd8] sm:$0xf] %vm19593_vm10, %v3813_v6  ;;  %v7131_v51 = vshll.u32 %v11564_v26, 16  ;;  %v7135_v15 = vshrl.u32 %v11564_v26, 16  ;;  %5209 = vmatmul.mubr.bf16.gmra.mxu1 %v11315_v36  ;;  %5462 = vmatmul.mubr.bf16.gmra.mxu0 %v11315_v36  ;;  %v15589_v12 = vcombine.high %v6458_v50, %v6458_v50  ;;  %v3815_v32 = vpop.permute.xlu1 %3814 }
 0x2f1   :  { %v15591_v62 = vrot.slane %v6656_v3, 7  ;;  %vm19595_vm7 = vcmask 523264   ;;  %v19597_v42 = vshrl.u32 %v15064_v63, 16  ;;  %v7123_v61 = vrot.slane %v7121_v23, 5  ;;  %v11469_v3 = vld [vmem:[%s18821_s0 + $0x170] sm:$0xff] }
 0x2f2   :  { %v4147_v47 = vsel %vm13643_vm3, %v4139_v0, %v4146_v25  ;;  %11354 = vmatprep.mubr.msk.bf16.mxu1 %vm19595_vm7, %v12238_v18  ;;  %vm19596_vm9 = vmmov %vm19595_vm7  ;;  %v7127_v29 = vrot.slane %v7125_v55, 4  ;;  %v7133_v48 = vrot.slane %v7131_v51, 5  ;;  %v7137_v26 = vrot.slane %v7135_v15, 4  ;;  %v11470_v25 = vld [vmem:[%s18821_s0 + $0x178] sm:$0xff] }
 0x2f3   :  { %19594 = vst [vmem:[#allocation47_spill] sm:$0xff] %v15591_v62  ;;  %11385 = vmatprep.mubr.msk.bf16.mxu0 %vm19596_vm9, %v12238_v18  ;;  %v4152_v9 = vrot.slane %v19597_v42, 7  ;;  %vm19598_vm10 = vcmask 519168   ;;  %v6661_v18 = vor.u32 %v6659_v30, %v15591_v62  ;;  %v7124_v51 = vsel %vm12696_vm11, %v7119_v34, %v7123_v61  ;;  %v4847_v62 = vld [vmem:[#allocation3 + $0x90] sm:$0xff] }
 0x2f4   :  { %4327 = vst.msk [vmem:[#allocation3 + $0xa0] sm:$0xf] %vm19598_vm10, %v4147_v47  ;;  %v7128_v15 = vor.u32 %v7127_v29, %v7123_v61  ;;  %v4148_v36 = vrot.slane %v4143_v17, 4  ;;  %v19599_v6 = vshll.u32 %v15064_v63, 16  ;;  %v6665_v47 = vshrl.u32 %v15589_v12, 16  ;;  %vm19601_vm7 = vmmov %vm19598_vm10  ;;  %v19605_v61 = vld [vmem:[#allocation20_spill] sm:$0xff] }
 0x2f5   :  { %v15616_v55 = vsel %vm13643_vm3, %v6654_v57, %v6661_v18  ;;  %7367 = vst.msk [vmem:[#allocation2 + $0x74] sm:$0xf] %vm19601_vm7, %v7124_v51  ;;  %v12049_v30 = vpack.c.bf16 %v11469_v3, %v11469_v3  ;;  %v6235_v42 = vpack.c.bf16 %v11470_v25, %v11469_v3  ;;  %v7138_v50 = vor.u32 %v7137_v26, %v7133_v48  ;;  %vm19603_vm10 = vmmov %vm19601_vm7  ;;  %v4846_v18 = vld [vmem:[#allocation3 + $0x88] sm:$0xff] }
 0x2f6   :  { %v4155_v23 = vor.u32 %v19599_v6, %v4152_v9  ;;  %19600 = vst [vmem:[#allocation27_spill] sm:$0xff] %v15616_v55  ;;  %v7129_v0 = vrot.slane %v7128_v15, 4  ;;  %v12050_v17 = vpack.c.bf16 %v11470_v25, %v11470_v25  ;;  %vm19602_vm9 = vcmask 1043968  }
 0x2f7   :  { %3885 = vst.msk [vmem:[#allocation3 + $0xe0] sm:$0xf] %vm19602_vm9, %v3815_v32  ;;  %v15625_v63 = vcombine.low %v15109_v54, %v15109_v54  ;;  %6352 = vrot.lane.b32.xlu0 %v12049_v30, %s12468_s13  ;;  %vm19604_vm7 = vnez %v19446_v10  ;;  %vm19606_vm12 = vnez %v19605_v61  ;;  %v19607_v26 = vshrl.u32 %v15069_v20, 16  ;;  %vm19608_vm9 = vmmov %vm19603_vm10 }
 0x2f8   :  { %v4156_v34 = vsel %vm13643_vm3, %v4148_v36, %v4155_v23  ;;  %v6459_v57 = vsel %vm19604_vm7, %v6235_v42, 0  ;;  %v6912_v29 = vsel %vm19606_vm12, %v6235_v42, 0  ;;  %v7134_v32 = vsel %vm12696_vm11, %v7129_v0, %v7133_v48  ;;  %6354 = vrot.lane.b32.xlu1 %v12050_v17, %s12468_s13  ;;  %v12241_v42 = vld [vmem:[#allocation3 + $0x9c] ss:$8 sps:$4 sm:$0xff]  }
 0x2f9   :  { %4328 = vst.msk [vmem:[#allocation3 + $0xa8] sm:$0xf] %vm19603_vm10, %v4156_v34  ;;  %v4161_v3 = vrot.slane %v19607_v26, 7  ;;  %v11533_v25 = vcombine.low %v6459_v57, %v6459_v57  ;;  %v11565_v54 = vcombine.low %v6912_v29, %v6912_v29  ;;  %v4157_v51 = vrot.slane %v4152_v9, 4 }
 0x2fa   :  { %v15638_v15 = vrot.slane %v6665_v47, 7  ;;  %7368 = vst.msk [vmem:[#allocation2 + $0x7c] sm:$0xf] %vm19608_vm9, %v7134_v32  ;;  %v11566_v36 = vcombine.high %v6912_v29, %v6912_v29  ;;  %v19609_v6 = vshll.u32 %v15069_v20, 16  ;;  %v11317_v30 = vcombine.low %v4846_v18, %v4847_v62 }
 0x2fb   :  { %v7139_v34 = vrot.slane %v7138_v50, 4  ;;  %v15643_v26 = vcombine.high %v6459_v57, %v6459_v57  ;;  %v6674_v48 = vshrl.u32 %v11533_v25, 16  ;;  %v6677_v0 = vshll.u32 %v11533_v25, 16  ;;  %v3817_v57 = vpop.permute.xlu0 %3816 }
 0x2fc   :  { %v4164_v23 = vor.u32 %v19609_v6, %v4161_v3  ;;  %v7141_v10 = vshll.u32 %v11565_v54, 16  ;;  %v7145_v61 = vshrl.u32 %v11565_v54, 16  ;;  %v7151_v55 = vshll.u32 %v11566_v36, 16  ;;  %5217 = vmatmul.mubr.bf16.gmra.mxu1 %v11317_v30  ;;  %5470 = vmatmul.mubr.bf16.gmra.mxu0 %v11317_v30  ;;  %v11471_v54 = vld [vmem:[%s18821_s0 + $0x180] sm:$0xff] }
 0x2fd   :  { %v7155_v17 = vshrl.u32 %v11566_v36, 16  ;;  %v6672_v9 = vrot.slane %v15638_v15, 4  ;;  %v15646_v47 = vrot.slane %v6674_v48, 7  ;;  %vm19611_vm10 = vcmask 523264  }
 0x2fe   :  { %v4165_v20 = vsel %vm13643_vm3, %v4157_v51, %v4164_v23  ;;  %11355 = vmatprep.mubr.msk.bf16.mxu1 %vm19611_vm10, %v12241_v42  ;;  %vm19612_vm9 = vmmov %vm19611_vm10  ;;  %v19613_v62 = vshrl.u32 %v15130_v46, 16  ;;  %v7143_v29 = vrot.slane %v7141_v10, 5  ;;  %v7147_v32 = vrot.slane %v7145_v61, 4  ;;  %v11472_v10 = vld [vmem:[%s18821_s0 + $0x188] sm:$0xff] }
 0x2ff   :  { %19610 = vst [vmem:[#allocation57_spill] sm:$0xff] %v15646_v47  ;;  %11386 = vmatprep.mubr.msk.bf16.mxu0 %vm19612_vm9, %v12241_v42  ;;  %v7153_v18 = vrot.slane %v7151_v55, 5  ;;  %v7157_v25 = vrot.slane %v7155_v17, 4  ;;  %vm19614_vm7 = vcmask 519168   ;;  %vm19615_vm12 = vcmask 1043968   ;;  %v3819_v17 = vpop.permute.xlu1 %3818 }
 0x300   :  { %v15654_v50 = vrot.slane %v19613_v62, 7  ;;  %4329 = vst.msk [vmem:[#allocation3 + $0xb0] sm:$0xf] %vm19614_vm7, %v4165_v20  ;;  %v6679_v6 = vor.u32 %v6677_v0, %v15646_v47  ;;  %v6683_v23 = vshrl.u32 %v15643_v26, 16  ;;  %v7144_v55 = vsel %vm12696_vm11, %v7139_v34, %v7143_v29 }
 0x301   :  { %3886 = vst.msk [vmem:[#allocation3 + $0xe8] sm:$0xf] %vm19615_vm12, %v3817_v57  ;;  %v7148_v61 = vor.u32 %v7147_v32, %v7143_v29  ;;  %v4166_v30 = vrot.slane %v4161_v3, 4  ;;  %v19616_v42 = vshll.u32 %v15130_v46, 16  ;;  %v15675_v20 = vcombine.low %v15137_v41, %v15137_v41  ;;  %vm19618_vm12 = vmmov %vm19614_vm7  ;;  %v4849_v29 = vld [vmem:[#allocation3 + $0xa0] sm:$0xff] }
 0x302   :  { %v15679_v0 = vsel %vm13643_vm3, %v6672_v9, %v6679_v6  ;;  %7369 = vst.msk [vmem:[#allocation2 + $0x84] sm:$0xf] %vm19618_vm12, %v7144_v55  ;;  %v12051_v62 = vpack.c.bf16 %v11471_v54, %v11471_v54  ;;  %v6236_v57 = vpack.c.bf16 %v11472_v10, %v11471_v54  ;;  %vm19619_vm7 = vcmask 1043968   ;;  %vm19620_vm10 = vmmov %vm19618_vm12  ;;  %v19622_v9 = vld [vmem:[#allocation23_spill] sm:$0xff] }
 0x303   :  { %v4173_v48 = vor.u32 %v19616_v42, %v15654_v50  ;;  %19617 = vst [vmem:[#allocation58_spill] sm:$0xff] %v15679_v0  ;;  %3887 = vst.msk [vmem:[#allocation3 + $0xf0] sm:$0xf] %vm19619_vm7, %v3819_v17  ;;  %v7149_v3 = vrot.slane %v7148_v61, 4  ;;  %v7158_v34 = vor.u32 %v7157_v25, %v7153_v18  ;;  %v12052_v32 = vpack.c.bf16 %v11472_v10, %v11472_v10  ;;  %v4848_v61 = vld [vmem:[#allocation3 + $0x98] sm:$0xff] }
 0x304   :  { %v15685_v42 = vrot.slane %v6683_v23, 7  ;;  %6356 = vrot.lane.b32.xlu0 %v12051_v62, %s12468_s13  ;;  %vm19621_vm9 = vnez %v19453_v14  ;;  %vm19623_vm12 = vnez %v19622_v9  ;;  %v19624_v6 = vshrl.u32 %v15132_v2, 16  ;;  %vm19625_vm7 = vmmov %vm19620_vm10 }
 0x305   :  { %v4174_v46 = vsel %vm13643_vm3, %v4166_v30, %v4173_v48  ;;  %v6460_v41 = vsel %vm19621_vm9, %v6236_v57, 0  ;;  %v6913_v54 = vsel %vm19623_vm12, %v6236_v57, 0  ;;  %v7154_v55 = vsel %vm12696_vm11, %v7149_v3, %v7153_v18  ;;  %6358 = vrot.lane.b32.xlu1 %v12052_v32, %s12468_s13 }
 0x306   :  { %4330 = vst.msk [vmem:[#allocation3 + $0xb8] sm:$0xf] %vm19620_vm10, %v4174_v46  ;;  %v4179_v25 = vrot.slane %v19624_v6, 7  ;;  %v11535_v10 = vcombine.low %v6460_v41, %v6460_v41  ;;  %v11567_v23 = vcombine.low %v6913_v54, %v6913_v54  ;;  %v4175_v30 = vrot.slane %v15654_v50, 4  ;;  %v12244_v6 = vld [vmem:[#allocation3 + $0xac] ss:$8 sps:$4 sm:$0xff]   ;;  %v3821_v50 = vpop.permute.xlu0 %3820 }
 0x307   :  { %v6549_v48 = vshrl.u32 %v15675_v20, 16  ;;  %7370 = vst.msk [vmem:[#allocation2 + $0x8c] sm:$0xf] %vm19625_vm7, %v7154_v55  ;;  %v11568_v17 = vcombine.high %v6913_v54, %v6913_v54  ;;  %v19626_v62 = vshll.u32 %v15132_v2, 16  ;;  %v11319_v46 = vcombine.low %v4848_v61, %v4849_v29 }
 0x308   :  { %v6690_v36 = vrot.slane %v15685_v42, 4  ;;  %v7159_v18 = vrot.slane %v7158_v34, 4  ;;  %v6692_v3 = vshrl.u32 %v11535_v10, 16  ;;  %v6695_v51 = vshll.u32 %v11535_v10, 16 }
 0x309   :  { %v4182_v57 = vor.u32 %v19626_v62, %v4179_v25  ;;  %v7161_v14 = vshll.u32 %v11567_v23, 16  ;;  %v7165_v9 = vshrl.u32 %v11567_v23, 16  ;;  %v7171_v32 = vshll.u32 %v11568_v17, 16  ;;  %5225 = vmatmul.mubr.bf16.gmra.mxu1 %v11319_v46  ;;  %5478 = vmatmul.mubr.bf16.gmra.mxu0 %v11319_v46 }
 0x30a   :  { %v7175_v0 = vshrl.u32 %v11568_v17, 16  ;;  %v15704_v47 = vcombine.high %v6460_v41, %v6460_v41  ;;  %v15706_v54 = vrot.slane %v6692_v3, 7  ;;  %vm19627_vm10 = vcmask 523264   ;;  %v11473_v41 = vld [vmem:[%s18821_s0 + $0x190] sm:$0xff] }
 0x30b   :  { %v4183_v2 = vsel %vm13643_vm3, %v4175_v30, %v4182_v57  ;;  %11356 = vmatprep.mubr.msk.bf16.mxu1 %vm19627_vm10, %v12244_v6  ;;  %vm19628_vm7 = vmmov %vm19627_vm10  ;;  %v19629_v34 = vshrl.u32 %v15165_v33, 16  ;;  %vm19630_vm9 = vcmask 1043968   ;;  %v7163_v55 = vrot.slane %v7161_v14, 5  ;;  %v11474_v14 = vld [vmem:[%s18821_s0 + $0x198] sm:$0xff] }
 0x30c   :  { %11387 = vmatprep.mubr.msk.bf16.mxu0 %vm19628_vm7, %v12244_v6  ;;  %3888 = vst.msk [vmem:[#allocation3 + $0xf8] sm:$0xf] %vm19630_vm9, %v3821_v50  ;;  %v7167_v61 = vrot.slane %v7165_v9, 4  ;;  %v7173_v10 = vrot.slane %v7171_v32, 5  ;;  %v7177_v23 = vrot.slane %v7175_v0, 4  ;;  %vm19631_vm12 = vcmask 519168  }
 0x30d   :  { %v4188_v29 = vrot.slane %v19629_v34, 7  ;;  %4331 = vst.msk [vmem:[#allocation3 + $0xc0] sm:$0xf] %vm19631_vm12, %v4183_v2  ;;  %v15719_v30 = vrot.slane %v6549_v48, 7  ;;  %v6552_v17 = vshll.u32 %v15675_v20, 16  ;;  %v6697_v57 = vor.u32 %v6695_v51, %v15706_v54  ;;  %v3823_v48 = vpop.permute.xlu1 %3822  ;;  %vm19633_vm9 = vmmov %vm19631_vm12  ;;  %v4851_v34 = vld [vmem:[#allocation3 + $0xb0] sm:$0xff] }
 0x30e   :  { %v7164_v0 = vsel %vm12696_vm11, %v7159_v18, %v7163_v55  ;;  %v7168_v9 = vor.u32 %v7167_v61, %v7163_v55  ;;  %v4184_v46 = vrot.slane %v4179_v25, 4  ;;  %v19632_v6 = vshll.u32 %v15165_v33, 16  ;;  %vm19636_vm10 = vmmov %vm19633_vm9 }
 0x30f   :  { %v15733_v20 = vsel %vm13643_vm3, %v6690_v36, %v6697_v57  ;;  %v6701_v32 = vshrl.u32 %v15704_v47, 16  ;;  %7371 = vst.msk [vmem:[#allocation2 + $0x94] sm:$0xf] %vm19633_vm9, %v7164_v0  ;;  %v12053_v51 = vpack.c.bf16 %v11473_v41, %v11473_v41  ;;  %v6237_v50 = vpack.c.bf16 %v11474_v14, %v11473_v41  ;;  %v19638_v41 = vld [vmem:[#allocation29_spill] sm:$0xff] }
 0x310   :  { %v4191_v3 = vor.u32 %v19632_v6, %v4188_v29  ;;  %vm19634_vm12 = vcmask 1043968   ;;  %v7169_v2 = vrot.slane %v7168_v9, 4  ;;  %v7178_v18 = vor.u32 %v7177_v23, %v7173_v10  ;;  %v4850_v9 = vld [vmem:[#allocation3 + $0xa8] sm:$0xff] }
 0x311   :  { %3889 = vst.msk [vmem:[#allocation3 + $0x100] sm:$0xf] %vm19634_vm12, %v3823_v48  ;;  %v12054_v25 = vpack.c.bf16 %v11474_v14, %v11474_v14  ;;  %v19635_v55 = vor.u32 %v15142_v43, %v15140_v21  ;;  %6360 = vrot.lane.b32.xlu0 %v12053_v51, %s12468_s13  ;;  %vm19637_vm7 = vnez %v19461_v59  ;;  %vm19639_vm9 = vnez %v19638_v41  ;;  %vm19641_vm12 = vmmov %vm19636_vm10 }
 0x312   :  { %v4192_v33 = vsel %vm13643_vm3, %v4184_v46, %v4191_v3  ;;  %v6461_v61 = vsel %vm19637_vm7, %v6237_v50, 0  ;;  %v6914_v23 = vsel %vm19639_vm9, %v6237_v50, 0  ;;  %v19640_v57 = vshrl.u32 %v15167_v31, 16 }
 0x313   :  { %v15743_v36 = vrot.slane %v19635_v55, 4  ;;  %4332 = vst.msk [vmem:[#allocation3 + $0xc8] sm:$0xf] %vm19636_vm10, %v4192_v33  ;;  %v7174_v14 = vsel %vm12696_vm11, %v7169_v2, %v7173_v10  ;;  %v11537_v21 = vcombine.low %v6461_v61, %v6461_v61  ;;  %v11569_v43 = vcombine.low %v6914_v23, %v6914_v23  ;;  %6362 = vrot.lane.b32.xlu1 %v12054_v25, %s12468_s13  ;;  %v12246_v33 = vld [vmem:[#allocation3 + $0xbc] ss:$8 sps:$4 sm:$0xff]  }
 0x314   :  { %v4197_v0 = vrot.slane %v19640_v57, 7  ;;  %v4193_v46 = vrot.slane %v4188_v29, 4  ;;  %v15756_v6 = vrot.slane %v6701_v32, 7  ;;  %7372 = vst.msk [vmem:[#allocation2 + $0x9c] sm:$0xf] %vm19641_vm12, %v7174_v14  ;;  %v11570_v3 = vcombine.high %v6914_v23, %v6914_v23  ;;  %v3825_v29 = vpop.permute.xlu0 %3824 }
 0x315   :  { %v19642_v48 = vshll.u32 %v15167_v31, 16  ;;  %v11321_v50 = vcombine.low %v4850_v9, %v4851_v34  ;;  %v7179_v55 = vrot.slane %v7178_v18, 4  ;;  %v15761_v57 = vcombine.high %v6461_v61, %v6461_v61 }
 0x316   :  { %v6710_v10 = vshrl.u32 %v11537_v21, 16  ;;  %v6713_v2 = vshll.u32 %v11537_v21, 16  ;;  %v7181_v62 = vshll.u32 %v11569_v43, 16  ;;  %v7185_v59 = vshrl.u32 %v11569_v43, 16  ;;  %v11475_v43 = vld [vmem:[%s18821_s0 + $0x1a0] sm:$0xff] }
 0x317   :  { %v4200_v51 = vor.u32 %v19642_v48, %v4197_v0  ;;  %v7191_v41 = vshll.u32 %v11570_v3, 16  ;;  %v7195_v25 = vshrl.u32 %v11570_v3, 16  ;;  %5233 = vmatmul.mubr.bf16.gmra.mxu1 %v11321_v50  ;;  %5486 = vmatmul.mubr.bf16.gmra.mxu0 %v11321_v50  ;;  %v6708_v32 = vrot.slane %v15756_v6, 4 }
 0x318   :  { %v15764_v23 = vrot.slane %v6710_v10, 7  ;;  %vm19644_vm10 = vcmask 523264   ;;  %v19646_v18 = vshrl.u32 %v15256_v19, 16  ;;  %vm19647_vm7 = vcmask 1043968  }
 0x319   :  { %v4201_v31 = vsel %vm13643_vm3, %v4193_v46, %v4200_v51  ;;  %11357 = vmatprep.mubr.msk.bf16.mxu1 %vm19644_vm10, %v12246_v33  ;;  %vm19645_vm12 = vmmov %vm19644_vm10  ;;  %3890 = vst.msk [vmem:[#allocation3 + $0x108] sm:$0xf] %vm19647_vm7, %v3825_v29  ;;  %v7183_v61 = vrot.slane %v7181_v62, 5  ;;  %v7187_v14 = vrot.slane %v7185_v59, 4  ;;  %v7193_v9 = vrot.slane %v7191_v41, 5  ;;  %v11476_v59 = vld [vmem:[%s18821_s0 + $0x1a8] sm:$0xff]  ;;  %v15788_v62 = vpop.permute.xlu1 %3826 }
 0x31a   :  { %19643 = vst [vmem:[#allocation59_spill] sm:$0xff] %v15764_v23  ;;  %11388 = vmatprep.mubr.msk.bf16.mxu0 %vm19645_vm12, %v12246_v33  ;;  %v15772_v34 = vrot.slane %v19646_v18, 7  ;;  %v7197_v21 = vrot.slane %v7195_v25, 4  ;;  %vm19648_vm9 = vcmask 519168   ;;  %v15780_v46 = vor.u32 %v6552_v17, %v15719_v30 }
 0x31b   :  { %4333 = vst.msk [vmem:[#allocation3 + $0xd0] sm:$0xf] %vm19648_vm9, %v4201_v31  ;;  %v6578_v3 = vshll.u32 %v15225_v13, 16  ;;  %v6715_v48 = vor.u32 %v6713_v2, %v15764_v23  ;;  %v6719_v51 = vshrl.u32 %v15761_v57, 16  ;;  %v7184_v41 = vsel %vm12696_vm11, %v7179_v55, %v7183_v61  ;;  %v6325_v13 = vpop.permute.xlu0 %6324  ;;  %vm19651_vm7 = vmmov %vm19648_vm9 }
 0x31c   :  { %v7188_v50 = vor.u32 %v7187_v14, %v7183_v61  ;;  %v4202_v33 = vrot.slane %v4197_v0, 4  ;;  %v19649_v17 = vshll.u32 %v15256_v19, 16  ;;  %v6573_v2 = vrot.slane %v15239_v60, 4  ;;  %7373 = vst.msk [vmem:[#allocation2 + $0xa4] sm:$0xf] %vm19651_vm7, %v7184_v41  ;;  %v4853_v0 = vld [vmem:[#allocation3 + $0xc0] sm:$0xff]  ;;  %vm19653_vm10 = vmmov %vm19651_vm7 }
 0x31d   :  { %v15798_v25 = vsel %vm13643_vm3, %v6708_v32, %v6715_v48  ;;  %v12055_v29 = vpack.c.bf16 %v11475_v43, %v11475_v43  ;;  %v6238_v31 = vpack.c.bf16 %v11476_v59, %v11475_v43  ;;  %vm19652_vm9 = vcmask 1043968   ;;  %v19655_v32 = vld [vmem:[#allocation32_spill] sm:$0xff]  ;;  %v6327_v41 = vpop.permute.xlu1 %6326 }
 0x31e   :  { %v4209_v10 = vor.u32 %v19649_v17, %v15772_v34  ;;  %19650 = vst [vmem:[#allocation60_spill] sm:$0xff] %v15798_v25  ;;  %6420 = vst.msk [vmem:[#allocation2 + $0x18] sm:$0xf] %vm19652_vm9, %v6325_v13  ;;  %v7189_v55 = vrot.slane %v7188_v50, 4  ;;  %v7198_v18 = vor.u32 %v7197_v21, %v7193_v9  ;;  %v12056_v61 = vpack.c.bf16 %v11476_v59, %v11476_v59  ;;  %v4852_v59 = vld [vmem:[#allocation3 + $0xb8] sm:$0xff] }
 0x31f   :  { %v15804_v14 = vrot.slane %v6719_v51, 7  ;;  %6364 = vrot.lane.b32.xlu0 %v12055_v29, %s12468_s13  ;;  %vm19654_vm12 = vnez %v19476_v53  ;;  %vm19656_vm7 = vnez %v19655_v32  ;;  %v19657_v48 = vshrl.u32 %v15341_v52, 16  ;;  %6421 = vst.msk [vmem:[#allocation2 + $0x20] sm:$0xf] %vm19652_vm9, %v6327_v41 }
 0x320   :  { %v4210_v19 = vsel %vm13643_vm3, %v4202_v33, %v4209_v10  ;;  %v6462_v60 = vsel %vm19654_vm12, %v6238_v31, 0  ;;  %v6915_v43 = vsel %vm19656_vm7, %v6238_v31, 0  ;;  %v7194_v50 = vsel %vm12696_vm11, %v7189_v55, %v7193_v9  ;;  %6366 = vrot.lane.b32.xlu1 %v12056_v61, %s12468_s13 }
 0x321   :  { %4334 = vst.msk [vmem:[#allocation3 + $0xd8] sm:$0xf] %vm19653_vm10, %v4210_v19  ;;  %v4215_v21 = vrot.slane %v19657_v48, 7  ;;  %v11539_v51 = vcombine.low %v6462_v60, %v6462_v60  ;;  %v11571_v33 = vcombine.low %v6915_v43, %v6915_v43  ;;  %v4211_v17 = vrot.slane %v15772_v34, 4  ;;  %7374 = vst.msk [vmem:[#allocation2 + $0xac] sm:$0xf] %vm19653_vm10, %v7194_v50 }
 0x322   :  { %v6580_v10 = vor.u32 %v6578_v3, %v15277_v49  ;;  %v11572_v13 = vcombine.high %v6915_v43, %v6915_v43  ;;  %v19658_v29 = vshll.u32 %v15341_v52, 16  ;;  %v11323_v19 = vcombine.low %v4852_v59, %v4853_v0  ;;  %v12249_v48 = vld [vmem:[#allocation3 + $0xcc] ss:$8 sps:$4 sm:$0xff]  }
 0x323   :  { %v6726_v9 = vrot.slane %v15804_v14, 4  ;;  %v7199_v55 = vrot.slane %v7198_v18, 4  ;;  %v6728_v53 = vshrl.u32 %v11539_v51, 16  ;;  %v6731_v32 = vshll.u32 %v11539_v51, 16 }
 0x324   :  { %v4218_v31 = vor.u32 %v19658_v29, %v4215_v21  ;;  %v7201_v61 = vshll.u32 %v11571_v33, 16  ;;  %v7205_v25 = vshrl.u32 %v11571_v33, 16  ;;  %v7211_v34 = vshll.u32 %v11572_v13, 16  ;;  %5241 = vmatmul.mubr.bf16.gmra.mxu1 %v11323_v19  ;;  %5494 = vmatmul.mubr.bf16.gmra.mxu0 %v11323_v19 }
 0x325   :  { %v7215_v23 = vshrl.u32 %v11572_v13, 16  ;;  %v15824_v49 = vcombine.high %v6462_v60, %v6462_v60  ;;  %v15826_v3 = vrot.slane %v6728_v53, 7  ;;  %vm19659_vm9 = vcmask 523264   ;;  %v11477_v53 = vld [vmem:[%s18821_s0 + $0x1b0] sm:$0xff] }
 0x326   :  { %v4219_v52 = vsel %vm13643_vm3, %v4211_v17, %v4218_v31  ;;  %11358 = vmatprep.mubr.msk.bf16.mxu1 %vm19659_vm9, %v12249_v48  ;;  %vm19660_vm10 = vmmov %vm19659_vm9  ;;  %v19661_v18 = vshrl.u32 %v15406_v28, 16  ;;  %v7203_v43 = vrot.slane %v7201_v61, 5  ;;  %v7207_v41 = vrot.slane %v7205_v25, 4 }
 0x327   :  { %11389 = vmatprep.mubr.msk.bf16.mxu0 %vm19660_vm10, %v12249_v48  ;;  %v7213_v50 = vrot.slane %v7211_v34, 5  ;;  %v7217_v59 = vrot.slane %v7215_v23, 4  ;;  %vm19662_vm12 = vcmask 519168   ;;  %v15840_v60 = vsel %vm13643_vm3, %v6573_v2, %v6580_v10  ;;  %v11478_v23 = vld [vmem:[%s18821_s0 + $0x1b8] sm:$0xff]  ;;  %v4855_v34 = vld [vmem:[#allocation3 + $0xd0] sm:$0xff] }
 0x328   :  { %v4224_v0 = vrot.slane %v19661_v18, 7  ;;  %4335 = vst.msk [vmem:[#allocation3 + $0xe0] sm:$0xf] %vm19662_vm12, %v4219_v52  ;;  %v6596_v33 = vshll.u32 %v15308_v40, 16  ;;  %v6733_v17 = vor.u32 %v6731_v32, %v15826_v3  ;;  %v7204_v25 = vsel %vm12696_vm11, %v7199_v55, %v7203_v43  ;;  %vm19664_vm9 = vmmov %vm19662_vm12  ;;  %v19665_v52 = vld [vmem:[#allocation38_spill] sm:$0xff] }
 0x329   :  { %v7208_v13 = vor.u32 %v7207_v41, %v7203_v43  ;;  %v4220_v29 = vrot.slane %v4215_v21, 4  ;;  %v19663_v31 = vshll.u32 %v15406_v28, 16  ;;  %v6737_v40 = vshrl.u32 %v15824_v49, 16  ;;  %7375 = vst.msk [vmem:[#allocation2 + $0xb4] sm:$0xf] %vm19662_vm12, %v7204_v25  ;;  %vm19668_vm12 = vmmov %vm19664_vm9 }
 0x32a   :  { %v15854_v2 = vsel %vm13643_vm3, %v6726_v9, %v6733_v17  ;;  %v12057_v32 = vpack.c.bf16 %v11477_v53, %v11477_v53  ;;  %v6239_v10 = vpack.c.bf16 %v11478_v23, %v11477_v53  ;;  %v7218_v61 = vor.u32 %v7217_v59, %v7213_v50  ;;  %v4854_v53 = vld [vmem:[#allocation3 + $0xc8] sm:$0xff] }
 0x32b   :  { %v4227_v19 = vor.u32 %v19663_v31, %v4224_v0  ;;  %v7209_v48 = vrot.slane %v7208_v13, 4  ;;  %v12058_v21 = vpack.c.bf16 %v11478_v23, %v11478_v23  ;;  %v6598_v28 = vor.u32 %v6596_v33, %v15362_v5 }
 0x32c   :  { %6368 = vrot.lane.b32.xlu0 %v12057_v32, %s12468_s13  ;;  %v6463_v9 = vsel %vm19490_vm13, %v6239_v10, 0  ;;  %vm19666_vm10 = vnez %v19665_v52  ;;  %v19667_v43 = vshrl.u32 %v15444_v44, 16  ;;  %v4229_v5 = vrot.slane %v4224_v0, 4  ;;  %v6329_v0 = vpop.permute.xlu0 %6328 }
 0x32d   :  { %v4228_v55 = vsel %vm13643_vm3, %v4220_v29, %v4227_v19  ;;  %v6916_v18 = vsel %vm19666_vm10, %v6239_v10, 0  ;;  %v7214_v59 = vsel %vm12696_vm11, %v7209_v48, %v7213_v50  ;;  %v11541_v17 = vcombine.low %v6463_v9, %v6463_v9  ;;  %6370 = vrot.lane.b32.xlu1 %v12058_v21, %s12468_s13  ;;  %v12252_v19 = vld [vmem:[#allocation3 + $0xdc] ss:$8 sps:$4 sm:$0xff]  }
 0x32e   :  { %4336 = vst.msk [vmem:[#allocation3 + $0xe8] sm:$0xf] %vm19664_vm9, %v4228_v55  ;;  %v4233_v41 = vrot.slane %v19667_v43, 7  ;;  %v11573_v23 = vcombine.low %v6916_v18, %v6916_v18  ;;  %v15872_v33 = vrot.slane %v6737_v40, 7  ;;  %v11574_v25 = vcombine.high %v6916_v18, %v6916_v18 }
 0x32f   :  { %7376 = vst.msk [vmem:[#allocation2 + $0xbc] sm:$0xf] %vm19668_vm12, %v7214_v59  ;;  %v19669_v13 = vshll.u32 %v15444_v44, 16  ;;  %v11325_v31 = vcombine.low %v4854_v53, %v4855_v34  ;;  %v7219_v32 = vrot.slane %v7218_v61, 4  ;;  %v15877_v10 = vcombine.high %v6463_v9, %v6463_v9  ;;  %v6331_v9 = vpop.permute.xlu1 %6330 }
 0x330   :  { %v6746_v50 = vshrl.u32 %v11541_v17, 16  ;;  %v6749_v48 = vshll.u32 %v11541_v17, 16  ;;  %v7221_v55 = vshll.u32 %v11573_v23, 16  ;;  %v7225_v43 = vshrl.u32 %v11573_v23, 16 }
 0x331   :  { %v4236_v29 = vor.u32 %v19669_v13, %v4233_v41  ;;  %v7231_v51 = vshll.u32 %v11574_v25, 16  ;;  %v7235_v21 = vshrl.u32 %v11574_v25, 16  ;;  %5249 = vmatmul.mubr.bf16.gmra.mxu1 %v11325_v31  ;;  %5502 = vmatmul.mubr.bf16.gmra.mxu0 %v11325_v31  ;;  %v6744_v40 = vrot.slane %v15872_v33, 4 }
 0x332   :  { %v15880_v18 = vrot.slane %v6746_v50, 7  ;;  %vm19670_vm9 = vcmask 523264   ;;  %v19672_v61 = vshrl.u32 %v15546_v38, 16  ;;  %vm19673_vm13 = vcmask 1043968  }
 0x333   :  { %v4237_v44 = vsel %vm13643_vm3, %v4229_v5, %v4236_v29  ;;  %11359 = vmatprep.mubr.msk.bf16.mxu1 %vm19670_vm9, %v12252_v19  ;;  %vm19671_vm12 = vmmov %vm19670_vm9  ;;  %6422 = vst.msk [vmem:[#allocation2 + $0x28] sm:$0xf] %vm19673_vm13, %v6329_v0  ;;  %v7223_v59 = vrot.slane %v7221_v55, 5  ;;  %v7227_v53 = vrot.slane %v7225_v43, 4  ;;  %v7233_v17 = vrot.slane %v7231_v51, 5  ;;  %v11479_v5 = vld [vmem:[%s18821_s0 + $0x1c0] sm:$0xff] }
 0x334   :  { %11390 = vmatprep.mubr.msk.bf16.mxu0 %vm19671_vm12, %v12252_v19  ;;  %v15888_v34 = vrot.slane %v19672_v61, 7  ;;  %v7237_v23 = vrot.slane %v7235_v21, 4  ;;  %vm19674_vm10 = vcmask 519168   ;;  %vm19676_vm12 = vmmov %vm19673_vm13  ;;  %v19677_v25 = vrot.slane %v15326_v58, 4  ;;  %v11480_v19 = vld [vmem:[%s18821_s0 + $0x1c8] sm:$0xff] }
 0x335   :  { %4337 = vst.msk [vmem:[#allocation3 + $0xf0] sm:$0xf] %vm19674_vm10, %v4237_v44  ;;  %vm19675_vm9 = vmmov %vm19674_vm10  ;;  %v6614_v51 = vshll.u32 %v15371_v16, 16  ;;  %v6751_v29 = vor.u32 %v6749_v48, %v15880_v18  ;;  %v6755_v31 = vshrl.u32 %v15877_v10, 16  ;;  %v7224_v58 = vsel %vm12696_vm11, %v7219_v32, %v7223_v59  ;;  %v4857_v44 = vld [vmem:[#allocation3 + $0xe0] sm:$0xff] }
 0x336   :  { %6872 = vst.msk [vmem:[#allocation2 + $0x28] sm:$0xf] %vm19675_vm9, %v15275_v39  ;;  %v15902_v13 = vsel %vm13643_vm3, %v19677_v25, %v6598_v28  ;;  %vm19678_vm13 = vmmov %vm19675_vm9  ;;  %v7228_v39 = vor.u32 %v7227_v53, %v7223_v59  ;;  %v4238_v50 = vrot.slane %v4233_v41, 4  ;;  %v19679_v28 = vshll.u32 %v15546_v38, 16 }
 0x337   :  { %6423 = vst.msk [vmem:[#allocation2 + $0x30] sm:$0xf] %vm19676_vm12, %v6331_v9  ;;  %v6609_v48 = vrot.slane %v15380_v22, 4  ;;  %v15920_v55 = vsel %vm13643_vm3, %v6744_v40, %v6751_v29  ;;  %vm19680_vm10 = vmmov %vm19675_vm9  ;;  %v12059_v43 = vpack.c.bf16 %v11479_v5, %v11479_v5  ;;  %v6240_v21 = vpack.c.bf16 %v11480_v19, %v11479_v5  ;;  %v19682_v40 = vld [vmem:[#allocation43_spill] sm:$0xff]  ;;  %v4856_v5 = vld [vmem:[#allocation3 + $0xd8] sm:$0xff] }
 0x338   :  { %6873 = vst.msk [vmem:[#allocation2 + $0x30] sm:$0xf] %vm19678_vm13, %v15840_v60  ;;  %v4245_v16 = vor.u32 %v19679_v28, %v15888_v34  ;;  %v7229_v60 = vrot.slane %v7228_v39, 4  ;;  %v7238_v0 = vor.u32 %v7237_v23, %v7233_v17  ;;  %v12060_v32 = vpack.c.bf16 %v11480_v19, %v11480_v19  ;;  %vm19685_vm13 = vmmov %vm19675_vm9 }
 0x339   :  { %7377 = vst.msk [vmem:[#allocation2 + $0xc4] sm:$0xf] %vm19680_vm10, %v7224_v58  ;;  %v15925_v61 = vrot.slane %v6755_v31, 7  ;;  %6372 = vrot.lane.b32.xlu0 %v12059_v43, %s12468_s13  ;;  %v6464_v38 = vsel %vm19497_vm1, %v6240_v21, 0  ;;  %vm19683_vm12 = vnez %v19682_v40  ;;  %v19684_v59 = vshrl.u32 %v15559_v1, 16 }
 0x33a   :  { %v4246_v41 = vsel %vm13643_vm3, %v4238_v50, %v4245_v16  ;;  %v6917_v9 = vsel %vm19683_vm12, %v6240_v21, 0  ;;  %v7234_v23 = vsel %vm12696_vm11, %v7229_v60, %v7233_v17  ;;  %v11543_v25 = vcombine.low %v6464_v38, %v6464_v38  ;;  %6374 = vrot.lane.b32.xlu1 %v12060_v32, %s12468_s13  ;;  %v12255_v16 = vld [vmem:[#allocation3 + $0xec] ss:$8 sps:$4 sm:$0xff]  }
 0x33b   :  { %4338 = vst.msk [vmem:[#allocation3 + $0xf8] sm:$0xf] %vm19675_vm9, %v4246_v41  ;;  %v15935_v53 = vrot.slane %v19684_v59, 7  ;;  %v11575_v29 = vcombine.low %v6917_v9, %v6917_v9  ;;  %v4247_v31 = vrot.slane %v15888_v34, 4  ;;  %v6616_v19 = vor.u32 %v6614_v51, %v15429_v11  ;;  %v6333_v11 = vpop.permute.xlu0 %6332 }
 0x33c   :  { %7378 = vst.msk [vmem:[#allocation2 + $0xcc] sm:$0xf] %vm19685_vm13, %v7234_v23  ;;  %v11576_v58 = vcombine.high %v6917_v9, %v6917_v9  ;;  %v19686_v39 = vshll.u32 %v15559_v1, 16  ;;  %v11327_v28 = vcombine.low %v4856_v5, %v4857_v44  ;;  %v6762_v17 = vrot.slane %v15925_v61, 4 }
 0x33d   :  { %v7239_v43 = vrot.slane %v7238_v0, 4  ;;  %v6764_v21 = vshrl.u32 %v11543_v25, 16  ;;  %v6767_v60 = vshll.u32 %v11543_v25, 16  ;;  %v7241_v41 = vshll.u32 %v11575_v29, 16 }
 0x33e   :  { %v4254_v50 = vor.u32 %v19686_v39, %v15935_v53  ;;  %v7245_v32 = vshrl.u32 %v11575_v29, 16  ;;  %v7251_v59 = vshll.u32 %v11576_v58, 16  ;;  %v7255_v34 = vshrl.u32 %v11576_v58, 16  ;;  %5257 = vmatmul.mubr.bf16.gmra.mxu1 %v11327_v28  ;;  %5510 = vmatmul.mubr.bf16.gmra.mxu0 %v11327_v28  ;;  %v6335_v58 = vpop.permute.xlu1 %6334 }
 0x33f   :  { %v15947_v51 = vcombine.high %v6464_v38, %v6464_v38  ;;  %v15949_v9 = vrot.slane %v6764_v21, 7  ;;  %vm19687_vm10 = vcmask 523264   ;;  %v19689_v0 = vshrl.u32 %v15625_v63, 16  ;;  %v11481_v38 = vld [vmem:[%s18821_s0 + $0x1d0] sm:$0xff] }
 0x340   :  { %v4255_v1 = vsel %vm13643_vm3, %v4247_v31, %v4254_v50  ;;  %11360 = vmatprep.mubr.msk.bf16.mxu1 %vm19687_vm10, %v12255_v16  ;;  %vm19688_vm9 = vmmov %vm19687_vm10  ;;  %vm19690_vm13 = vcmask 1043968   ;;  %v7243_v23 = vrot.slane %v7241_v41, 5  ;;  %v7247_v5 = vrot.slane %v7245_v32, 4  ;;  %v19692_v31 = vld [vmem:[#allocation30_spill] sm:$0xff] }
 0x341   :  { %11391 = vmatprep.mubr.msk.bf16.mxu0 %vm19688_vm9, %v12255_v16  ;;  %v4260_v44 = vrot.slane %v19689_v0, 7  ;;  %6424 = vst.msk [vmem:[#allocation2 + $0x38] sm:$0xf] %vm19690_vm13, %v6333_v11  ;;  %v7253_v25 = vrot.slane %v7251_v59, 5  ;;  %v7257_v29 = vrot.slane %v7255_v34, 4  ;;  %vm19691_vm1 = vcmask 519168   ;;  %vm19694_vm10 = vmmov %vm19690_vm13 }
 0x342   :  { %4339 = vst.msk [vmem:[#allocation3 + $0x100] sm:$0xf] %vm19691_vm1, %v4255_v1  ;;  %vm19693_vm12 = vmmov %vm19691_vm1  ;;  %v15966_v39 = vsel %vm13643_vm3, %v6609_v48, %v6616_v19  ;;  %v6632_v28 = vshll.u32 %v15455_v45, 16  ;;  %v6769_v16 = vor.u32 %v6767_v60, %v15949_v9  ;;  %v7244_v21 = vsel %vm12696_vm11, %v7239_v43, %v7243_v23  ;;  %v11482_v48 = vld [vmem:[%s18821_s0 + $0x1d8] sm:$0xff]  ;;  %v702_v11 = vld [vmem:[#allocation3 + $0x110] sm:$0x88]  ;;  %v6337_v1 = vpop.permute.xlu0 %6336 }
 0x343   :  { %6874 = vst.msk [vmem:[#allocation2 + $0x38] sm:$0xf] %vm19693_vm12, %v19692_v31  ;;  %v7248_v41 = vor.u32 %v7247_v5, %v7243_v23  ;;  %v4256_v32 = vrot.slane %v15935_v53, 4  ;;  %v19695_v59 = vshll.u32 %v15625_v63, 16  ;;  %v6868_v19 = vld [vmem:[#allocation2 + $0x18] sm:$0xf]  ;;  %vm19696_vm12 = vmmov %vm19691_vm1  ;;  %v12061_v60 = vpack.c.bf16 %v11481_v38, %v11481_v38 }
 0x344   :  { %6425 = vst.msk [vmem:[#allocation2 + $0x40] sm:$0xf] %vm19694_vm10, %v6335_v58  ;;  %v15984_v45 = vsel %vm13643_vm3, %v6762_v17, %v6769_v16  ;;  %v6773_v43 = vshrl.u32 %v15947_v51, 16  ;;  %v4859_v53 = vld [vmem:[#allocation3 + $0xf0] sm:$0xff]  ;;  %v4265_v63 = vrot.slane %v4260_v44, 4  ;;  %v7258_v23 = vor.u32 %v7257_v29, %v7253_v25  ;;  %vm19697_vm9 = vmmov %vm19694_vm10  ;;  %v19699_v58 = vld [vmem:[#allocation50_spill] sm:$0xff] }
 0x345   :  { %v4263_v34 = vor.u32 %v19695_v59, %v4260_v44  ;;  %6875 = vst.msk [vmem:[#allocation2 + $0x40] sm:$0xf] %vm19691_vm1, %v15902_v13  ;;  %v7249_v0 = vrot.slane %v7248_v41, 4  ;;  %v6241_v31 = vpack.c.bf16 %v11482_v48, %v11481_v38  ;;  %v4858_v13 = vld [vmem:[#allocation3 + $0xe8] sm:$0xff]  ;;  %vm19698_vm13 = vmmov %vm19691_vm1  ;;  %6376 = vrot.lane.b32.xlu0 %v12061_v60, %s12468_s13  ;;  %v12062_v17 = vpack.c.bf16 %v11482_v48, %v11482_v48  ;;  %v19706_v41 = vld [vmem:[#allocation26_spill] sm:$0xff] }
 0x346   :  { %7379 = vst.msk [vmem:[#allocation2 + $0xd4] sm:$0xf] %vm19696_vm12, %v7244_v21  ;;  %vm19700_vm10 = vnez %v19699_v58  ;;  %v19701_v16 = vld [vmem:[#allocation24_spill] sm:$0xff]  ;;  %v19703_v21 = vld [vmem:[#allocation25_spill] sm:$0xff]  ;;  %v4273_v38 = vsel %vm13643_vm3, %v4265_v63, %v19706_v41  ;;  %v11484_v59 = vld [vmem:[%s18821_s0 + $0x1e8] sm:$0xff]  ;;  %v16018_v60 = vcombine.low %v4858_v13, %v4859_v53  ;;  %v19740_v52 = vmov 0  }
 0x347   :  { %v4264_v5 = vsel %vm13643_vm3, %v4256_v32, %v4263_v34  ;;  %6426 = vst.msk [vmem:[#allocation2 + $0x48] sm:$0xf] %vm19697_vm9, %v6337_v1  ;;  %v6869_v44 = vsel %vm19700_vm10, %v15780_v46, %v6868_v19  ;;  %vm19702_vm1 = vnez %v19701_v16  ;;  %vm19704_vm12 = vnez %v19703_v21  ;;  %v11483_v32 = vld [vmem:[%s18821_s0 + $0x1e0] sm:$0xff]  ;;  %v19707_v34 = vld [vmem:[#allocation39_spill] sm:$0xff]  ;;  %vm19708_vm9 = vmmov %vm19698_vm13  ;;  %6378 = vrot.lane.b32.xlu1 %v12062_v17, %s12468_s13  ;;  %v6339_v17 = vpop.permute.xlu1 %6338 }
 0x348   :  { %4340 = vst.msk [vmem:[#allocation3 + $0x108] sm:$0xf] %vm19698_vm13, %v4264_v5  ;;  %vm19705_vm7 = vmor %vm19702_vm1, %vm19704_vm12  ;;  %v7254_v46 = vsel %vm12696_vm11, %v7249_v0, %v7253_v25  ;;  %v6465_v19 = vsel %vm19542_vm5, %v6241_v31, 0  ;;  %vm19713_vm1 = vcmask 1043968   ;;  %v12257_v25 = vld [vmem:[#allocation3 + $0xfc] ss:$8 sps:$4 sm:$0xff]   ;;  %v6634_v0 = vor.u32 %v6632_v28, %v15517_v37  ;;  %5265 = vmatmul.mubr.bf16.gmra.mxu1 %v16018_v60  ;;  %5518 = vmatmul.mubr.bf16.gmra.mxu0 %v16018_v60 }
 0x349   :  { %v703_v29 = vsel %vm19705_vm7, 0, %v702_v11  ;;  %6876 = vst.msk [vmem:[#allocation2 + $0x48] sm:$0xf] %vm19708_vm9, %v19707_v34  ;;  %v19710_v11 = vld [vmem:[#allocation48_spill] sm:$0xff]  ;;  %6870 = vst [vmem:[#allocation2 + $0x18] sm:$0xf] %v6869_v44  ;;  %v11545_v1 = vcombine.low %v6465_v19, %v6465_v19  ;;  %v16021_v5 = vcombine.high %v6465_v19, %v6465_v19  ;;  %v12063_v53 = vpack.c.bf16 %v11483_v32, %v11483_v32 }
 0x34a   :  { %vm19711_vm7 = vnez %v19710_v11  ;;  %704 = vst [vmem:[#allocation3 + $0x110] sm:$0x88] %v703_v29  ;;  %vm19712_vm13 = vmmov %vm19708_vm9  ;;  %v12064_v13 = vpack.c.bf16 %v11484_v59, %v11484_v59  ;;  %v7259_v44 = vrot.slane %v7258_v23, 4  ;;  %v19720_v58 = vld [vmem:[#allocation33_spill] sm:$0xff]  ;;  %vm19732_vm10 = vcmask 523264  }
 0x34b   :  { %v6918_v63 = vsel %vm19711_vm7, %v6241_v31, 0  ;;  %7380 = vst.msk [vmem:[#allocation2 + $0xdc] sm:$0xf] %vm19712_vm13, %v7254_v46  ;;  %v16027_v31 = vrot.slane %v6773_v43, 7  ;;  %vm19714_vm12 = vmmov %vm19708_vm9  ;;  %v6782_v29 = vshrl.u32 %v11545_v1, 16  ;;  %v6785_v41 = vshll.u32 %v11545_v1, 16  ;;  %6380 = vrot.lane.b32.xlu0 %v12063_v53, %s12468_s13 }
 0x34c   :  { %v11577_v16 = vcombine.low %v6918_v63, %v6918_v63  ;;  %v11578_v21 = vcombine.high %v6918_v63, %v6918_v63  ;;  %3891 = vst.msk [vmem:[#allocation3 + $0x110] sm:$0xf] %vm19713_vm1, %v15788_v62  ;;  %vm19715_vm9 = vcmask 523264   ;;  %v6242_v62 = vpack.c.bf16 %v11484_v59, %v11483_v32  ;;  %6427 = vst.msk [vmem:[#allocation2 + $0x50] sm:$0xf] %vm19713_vm1, %v6339_v17  ;;  %6382 = vrot.lane.b32.xlu1 %v12064_v13, %s12468_s13 }
 0x34d   :  { %4341 = vst.msk [vmem:[#allocation3 + $0x110] sm:$0xf] %vm19714_vm12, %v4273_v38  ;;  %11361 = vmatprep.mubr.msk.bf16.mxu1 %vm19715_vm9, %v12257_v25  ;;  %vm19716_vm13 = vmmov %vm19715_vm9  ;;  %v6780_v38 = vrot.slane %v16027_v31, 4  ;;  %v16037_v46 = vrot.slane %v6782_v29, 7  ;;  %v6791_v23 = vshrl.u32 %v16021_v5, 16  ;;  %v19718_v29 = vld [vmem:[#allocation52_spill] sm:$0xff] }
 0x34e   :  { %11392 = vmatprep.mubr.msk.bf16.mxu0 %vm19716_vm13, %v12257_v25  ;;  %v7261_v37 = vshll.u32 %v11577_v16, 16  ;;  %v7265_v28 = vshrl.u32 %v11577_v16, 16  ;;  %v7271_v43 = vshll.u32 %v11578_v21, 16  ;;  %v7275_v34 = vshrl.u32 %v11578_v21, 16  ;;  %6877 = vst.msk [vmem:[#allocation2 + $0x50] sm:$0xf] %vm19714_vm12, %v15966_v39  ;;  %vm19725_vm1 = vmmov %vm19714_vm12 }
 0x34f   :  { %v6466_v63 = vsel %vm19565_vm2, %v6242_v62, 0  ;;  %v6555_v21 = vrot.slane %v15719_v30, 4  ;;  %v6787_v25 = vor.u32 %v6785_v41, %v16037_v46  ;;  %vm19719_vm9 = vnez %v19718_v29  ;;  %vm19726_vm12 = vmmov %vm19725_vm1 }
 0x350   :  { %v7263_v32 = vrot.slane %v7261_v37, 5  ;;  %v7267_v59 = vrot.slane %v7265_v28, 4  ;;  %v7273_v1 = vrot.slane %v7271_v43, 5  ;;  %v7277_v16 = vrot.slane %v7275_v34, 4  ;;  %v19722_v37 = vld [vmem:[#allocation37_spill] sm:$0xff]  ;;  %vm19731_vm2 = vmmov %vm19725_vm1 }
 0x351   :  { %v4827_v53 = vld [vmem:[#allocation3 + $0x114] sm:$0xf]  ;;  %v6919_v17 = vsel %vm19719_vm9, %v6242_v62, 0  ;;  %vm19721_vm13 = vnez %v19720_v58  ;;  %v19723_v28 = vshll.u32 %v15156_v27, 16  ;;  %v19724_v30 = vrot.slane %v15457_v4, 4  ;;  %v19773_v58 = vld [vmem:[#allocation60_spill] sm:$0xff] }
 0x352   :  { %v7264_v50 = vsel %vm12696_vm11, %v7259_v44, %v7263_v32  ;;  %v7268_v19 = vor.u32 %v7267_v59, %v7263_v32  ;;  %v7278_v13 = vor.u32 %v7277_v16, %v7273_v1  ;;  %v4828_v39 = vsel %vm19721_vm13, %v15743_v36, %v4827_v53  ;;  %v4861_v16 = vld [vmem:[#allocation3 + $0x100] sm:$0xff] }
 0x353   :  { %v6562_v43 = vor.u32 %v19723_v28, %v19722_v37  ;;  %v6635_v41 = vsel %vm13643_vm3, %v19724_v30, %v6634_v0  ;;  %v16063_v62 = vsel %vm13643_vm3, %v6780_v38, %v6787_v25  ;;  %7381 = vst.msk [vmem:[#allocation2 + $0xe4] sm:$0xf] %vm19725_vm1, %v7264_v50  ;;  %4829 = vst [vmem:[#allocation3 + $0x114] sm:$0xf] %v4828_v39  ;;  %v16066_v34 = vrot.slane %v6791_v23, 7  ;;  %v4860_v23 = vld [vmem:[#allocation3 + $0xf8] sm:$0xff] }
 0x354   :  { %v11547_v44 = vcombine.low %v6466_v63, %v6466_v63  ;;  %v7269_v36 = vrot.slane %v7268_v19, 4  ;;  %v11579_v32 = vcombine.low %v6919_v17, %v6919_v17  ;;  %v11580_v59 = vcombine.high %v6919_v17, %v6919_v17 }
 0x355   :  { %v7279_v27 = vrot.slane %v7278_v13, 4  ;;  %v16068_v53 = vcombine.high %v6466_v63, %v6466_v63  ;;  %v6798_v50 = vrot.slane %v16066_v34, 4  ;;  %v6563_v63 = vsel %vm13643_vm3, %v6555_v21, %v6562_v43  ;;  %v11485_v13 = vld [vmem:[%s18821_s0 + $0x1f0] sm:$0xff] }
 0x356   :  { %v6800_v4 = vshrl.u32 %v11547_v44, 16  ;;  %v6803_v37 = vshll.u32 %v11547_v44, 16  ;;  %v7274_v0 = vsel %vm12696_vm11, %v7269_v36, %v7273_v1  ;;  %v7281_v38 = vshll.u32 %v11579_v32, 16  ;;  %6871 = vst.msk [vmem:[#allocation2 + $0x20] sm:$0xf] %vm19725_vm1, %v6563_v63  ;;  %v11486_v36 = vld [vmem:[%s18821_s0 + $0x1f8] sm:$0xff] }
 0x357   :  { %v7285_v25 = vshrl.u32 %v11579_v32, 16  ;;  %v7291_v28 = vshll.u32 %v11580_v59, 16  ;;  %7382 = vst.msk [vmem:[#allocation2 + $0xec] sm:$0xf] %vm19726_vm12, %v7274_v0  ;;  %v7295_v17 = vshrl.u32 %v11580_v59, 16  ;;  %v16082_v44 = vcombine.low %v4860_v23, %v4861_v16  ;;  %v6341_v32 = vpop.permute.xlu0 %6340 }
 0x358   :  { %v16074_v19 = vrot.slane %v6800_v4, 7  ;;  %v7283_v39 = vrot.slane %v7281_v38, 5  ;;  %v6650_v59 = vshll.u32 %v15524_v24, 16  ;;  %v6809_v43 = vshrl.u32 %v16068_v53, 16  ;;  %v6343_v4 = vpop.permute.xlu1 %6342  ;;  %v19728_v24 = vld [vmem:[#allocation44_spill] sm:$0xff] }
 0x359   :  { %v7287_v1 = vrot.slane %v7285_v25, 4  ;;  %v7293_v30 = vrot.slane %v7291_v28, 5  ;;  %vm19727_vm12 = vcmask 1043968   ;;  %v7297_v16 = vrot.slane %v7295_v17, 4  ;;  %5273 = vmatmul.mubr.bf16.gmra.mxu1 %v16082_v44  ;;  %5526 = vmatmul.mubr.bf16.gmra.mxu0 %v16082_v44 }
 0x35a   :  { %v6805_v21 = vor.u32 %v6803_v37, %v16074_v19  ;;  %6428 = vst.msk [vmem:[#allocation2 + $0x58] sm:$0xf] %vm19727_vm12, %v6341_v32  ;;  %v7284_v0 = vsel %vm12696_vm11, %v7279_v27, %v7283_v39  ;;  %v16095_v25 = vld [vmem:[#allocation3 + $0x10c] ss:$8 sps:$4 sm:$0xff]   ;;  %v12065_v28 = vpack.c.bf16 %v11485_v13, %v11485_v13  ;;  %vm19729_vm9 = vmmov %vm19727_vm12  ;;  %v6243_v27 = vpack.c.bf16 %v11486_v36, %v11485_v13 }
 0x35b   :  { %v7288_v38 = vor.u32 %v7287_v1, %v7283_v39  ;;  %6878 = vst.msk [vmem:[#allocation2 + $0x58] sm:$0xf] %vm19725_vm1, %v19728_v24  ;;  %vm19730_vm12 = vmmov %vm19725_vm1  ;;  %v12066_v23 = vpack.c.bf16 %v11486_v36, %v11486_v36  ;;  %v7298_v63 = vor.u32 %v7297_v16, %v7293_v30  ;;  %v4863_v39 = vld [vmem:[#allocation3 + $0x110] sm:$0xff]  ;;  %11362 = vmatprep.mubr.msk.bf16.mxu1 %vm19732_vm10, %v16095_v25  ;;  %v19733_v1 = vld [vmem:[#allocation31_spill] sm:$0xff] }
 0x35c   :  { %6429 = vst.msk [vmem:[#allocation2 + $0x60] sm:$0xf] %vm19729_vm9, %v6343_v4  ;;  %v16102_v37 = vsel %vm13643_vm3, %v6798_v50, %v6805_v21  ;;  %6384 = vrot.lane.b32.xlu0 %v12065_v28, %s12468_s13  ;;  %v6645_v32 = vrot.slane %v19733_v1, 4  ;;  %v6652_v4 = vor.u32 %v6650_v59, %v15568_v8  ;;  %v19734_v50 = vld [vmem:[#allocation53_spill] sm:$0xff] }
 0x35d   :  { %7383 = vst.msk [vmem:[#allocation2 + $0xf4] sm:$0xf] %vm19730_vm12, %v7284_v0  ;;  %v7289_v17 = vrot.slane %v7288_v38, 4  ;;  %vm19735_vm9 = vnez %v19734_v50  ;;  %v19736_v0 = vld [vmem:[#allocation55_spill] sm:$0xff]  ;;  %6386 = vrot.lane.b32.xlu1 %v12066_v23, %s12468_s13  ;;  %v4862_v38 = vld [vmem:[#allocation3 + $0x108] sm:$0xff]  ;;  %v7299_v24 = vrot.slane %v7298_v63, 4  ;;  %vm19738_vm12 = vmmov %vm19732_vm10 }
 0x35e   :  { %6879 = vst.msk [vmem:[#allocation2 + $0x60] sm:$0xf] %vm19731_vm2, %v6635_v41  ;;  %v6467_v21 = vsel %vm19735_vm9, %v6243_v27, 0  ;;  %vm19737_vm1 = vnez %v19736_v0  ;;  %v16116_v41 = vrot.slane %v6809_v43, 7  ;;  %v16121_v1 = vcombine.low %v4862_v38, %v4863_v39  ;;  %v12263_v50 = vld [vmem:[#allocation3 + $0x2c] ss:$8 sps:$4 sm:$0xff]  }
 0x35f   :  { %v6920_v13 = vsel %vm19737_vm1, %v6243_v27, 0  ;;  %v7294_v36 = vsel %vm12696_vm11, %v7289_v17, %v7293_v30  ;;  %v11549_v16 = vcombine.low %v6467_v21, %v6467_v21  ;;  %v11550_v28 = vcombine.high %v6467_v21, %v6467_v21  ;;  %v16123_v0 = vld [vmem:[#allocation2 + $0x18] ss:$8 sps:$4 sm:$0xff]   ;;  %v16125_v27 = vld [vmem:[#allocation2 + $0x1c] ss:$8 sps:$4 sm:$0xff]  }
 0x360   :  { %7384 = vst.msk [vmem:[#allocation2 + $0xfc] sm:$0xf] %vm19731_vm2, %v7294_v36  ;;  %v11581_v8 = vcombine.low %v6920_v13, %v6920_v13  ;;  %v11582_v59 = vcombine.high %v6920_v13, %v6920_v13  ;;  %v16127_v30 = vld [vmem:[#allocation2 + $0x2c] ss:$8 sps:$4 sm:$0xff]   ;;  %11615 = vmatprep.mubr.msk.bf16.mxu0 %vm19732_vm10, %v16125_v27  ;;  %v6653_v39 = vsel %vm13643_vm3, %v6645_v32, %v6652_v4  ;;  %v6816_v13 = vrot.slane %v16116_v41, 4  ;;  %v6345_v32 = vpop.permute.xlu0 %6344  ;;  %vm19739_vm2 = vmmov %vm19732_vm10 }
 0x361   :  { %v6818_v43 = vshrl.u32 %v11549_v16, 16  ;;  %v6821_v23 = vshll.u32 %v11549_v16, 16  ;;  %v6827_v29 = vshrl.u32 %v11550_v28, 16  ;;  %v6830_v11 = vshll.u32 %v11550_v28, 16  ;;  %5281 = vmatmul.mubr.bf16.gmra.mxu1 %v16121_v1  ;;  %7649 = vmatmul.mubr.bf16.vlgmr.msra.gmra.mxu0 %v16123_v0  ;;  %v6902_v16 = vld [vmem:[#allocation2 + $0x118] sm:$0x1] }
 0x362   :  { %v7301_v17 = vshll.u32 %v11581_v8, 16  ;;  %v7305_v21 = vshrl.u32 %v11581_v8, 16  ;;  %v7311_v63 = vshll.u32 %v11582_v59, 16  ;;  %v7315_v48 = vshrl.u32 %v11582_v59, 16  ;;  %11437 = vmatprep.mubr.msk.bf16.mxu1 %vm19738_vm12, %v12263_v50  ;;  %v12398_v59 = vld [vmem:[%s18822_s1 + $0xf8] sm:$0xff]   ;;  %11616 = vmatprep.mubr.msk.bf16.mxu0 %vm19739_vm2, %v16127_v30 }
 0x363   :  { %v6820_v36 = vrot.slane %v6818_v43, 7  ;;  %v6829_v38 = vrot.slane %v6827_v29, 7  ;;  %8175 = vmatpush1.bf16.msra.mxu0 %v12398_v59  ;;  %vm19741_vm10 = vcmask 1043968   ;;  %v19742_v59 = vld [vmem:[#allocation40_spill] sm:$0xff]  ;;  %vm19743_vm12 = vcmask 519168  }
 0x364   :  { %v7303_v28 = vrot.slane %v7301_v17, 5  ;;  %v7307_v22 = vrot.slane %v7305_v21, 4  ;;  %v7313_v8 = vrot.slane %v7311_v63, 5  ;;  %v7317_v40 = vrot.slane %v7315_v48, 4  ;;  %8176 = vmatprep.subr.bf16.mxu0 %v19740_v52  ;;  %6430 = vst.msk [vmem:[#allocation2 + $0x68] sm:$0xf] %vm19741_vm10, %v6345_v32  ;;  %v6347_v48 = vpop.permute.xlu1 %6346  ;;  %vm19744_vm1 = vmmov %vm19741_vm10 }
 0x365   :  { %v6823_v4 = vor.u32 %v6821_v23, %v6820_v36  ;;  %v6825_v43 = vrot.slane %v6820_v36, 4  ;;  %v6832_v29 = vor.u32 %v6830_v11, %v6829_v38  ;;  %v6834_v56 = vrot.slane %v6829_v38, 4  ;;  %v5535_v63 = vld [vmem:[#allocation3 + $0x30] sm:$0xff]  ;;  %6880 = vst.msk [vmem:[#allocation2 + $0x68] sm:$0xf] %vm19743_vm12, %v19742_v59  ;;  %vm19746_vm2 = vmmov %vm19743_vm12  ;;  %v5534_v32 = vld [vmem:[#allocation3 + $0x28] sm:$0xff]  ;;  %v6349_v59 = vpop.permute.xlu0 %6348 }
 0x366   :  { %v7304_v50 = vsel %vm12696_vm11, %v7299_v24, %v7303_v28  ;;  %v7308_v17 = vor.u32 %v7307_v22, %v7303_v28  ;;  %v7318_v21 = vor.u32 %v7317_v40, %v7313_v8  ;;  %6431 = vst.msk [vmem:[#allocation2 + $0x70] sm:$0xf] %vm19744_vm1, %v6347_v48  ;;  %v6668_v11 = vshll.u32 %v15589_v12, 16  ;;  %v7387_v40 = vld [vmem:[#allocation2 + $0x114] sm:$0xf]  ;;  %vm19747_vm10 = vmmov %vm19746_vm2 }
 0x367   :  { %v16152_v23 = vsel %vm13643_vm3, %v6816_v13, %v6823_v4  ;;  %v16156_v36 = vsel %vm13643_vm3, %v6825_v43, %v6832_v29  ;;  %v6903_v22 = vsel %vm19492_vm8, %v6834_v56, %v6902_v16  ;;  %7385 = vst.msk [vmem:[#allocation2 + $0x104] sm:$0xf] %vm19746_vm2, %v7304_v50  ;;  %v16161_v24 = vld [vmem:[#allocation2 + $0x28] ss:$8 sps:$4 sm:$0xff]   ;;  %v11393_v4 = vcombine.low %v5534_v32, %v5535_v63  ;;  %v16167_v43 = vld [vmem:[#allocation2 + $0x3c] ss:$8 sps:$4 sm:$0xff]   ;;  %vm19749_vm1 = vmmov %vm19746_vm2 }
 0x368   :  { %6881 = vst.msk [vmem:[#allocation2 + $0x70] sm:$0xf] %vm19747_vm10, %v6653_v39  ;;  %6904 = vst [vmem:[#allocation2 + $0x118] sm:$0x1] %v6903_v22  ;;  %v7309_v12 = vrot.slane %v7308_v17, 4  ;;  %v7319_v28 = vrot.slane %v7318_v21, 4  ;;  %v6670_v50 = vor.u32 %v6668_v11, %v15638_v15 }
 0x369   :  { %v12399_v13 = vld [vmem:[%s18822_s1 + $0xf0] sm:$0xff]   ;;  %5863 = vmatmul.mubr.bf16.vlgmr.msra.gmra.mxu1 %v11393_v4  ;;  %7657 = vmatmul.mubr.bf16.gmra.mxu0 %v16161_v24  ;;  %v12400_v17 = vld [vmem:[%s18822_s1 + $0x38] sm:$0xff]   ;;  %vm19750_vm12 = vcmask 523264   ;;  %v12401_v15 = vld [vmem:[%s18822_s1 + $0xe8] sm:$0xff]   ;;  %vm19752_vm10 = vcmask 1043968  }
 0x36a   :  { %8177 = vmatpush1.bf16.msra.mxu0 %v12399_v13  ;;  %v7314_v56 = vsel %vm12696_vm11, %v7309_v12, %v7313_v8  ;;  %v7388_v39 = vsel %vm19721_vm13, %v7319_v28, %v7387_v40  ;;  %v12268_v16 = vld [vmem:[#allocation3 + $0x3c] ss:$8 sps:$4 sm:$0xff]   ;;  %7790 = vmatpush1.bf16.msra.mxu1 %v12400_v17  ;;  %vm19751_vm2 = vmmov %vm19750_vm12  ;;  %v16190_v63 = vld [vmem:[#allocation2 + $0x38] ss:$8 sps:$4 sm:$0xff]   ;;  %6432 = vst.msk [vmem:[#allocation2 + $0x78] sm:$0xf] %vm19752_vm10, %v6349_v59  ;;  %v6351_v12 = vpop.permute.xlu1 %6350 }
 0x36b   :  { %8178 = vmatprep.subr.bf16.mxu0 %v19740_v52  ;;  %v19748_v29 = vld [vmem:[#allocation47_spill] sm:$0xff]  ;;  %7386 = vst.msk [vmem:[#allocation2 + $0x10c] sm:$0xf] %vm19749_vm1, %v7314_v56  ;;  %7389 = vst [vmem:[#allocation2 + $0x114] sm:$0xf] %v7388_v39  ;;  %11438 = vmatprep.mubr.msk.bf16.mxu1 %vm19750_vm12, %v12268_v16  ;;  %v5536_v11 = vld [vmem:[#allocation3 + $0x38] sm:$0xff] }
 0x36c   :  { %v6663_v48 = vrot.slane %v19748_v29, 4  ;;  %7791 = vmatprep.subr.bf16.mxu1 %v19740_v52  ;;  %11617 = vmatprep.mubr.msk.bf16.mxu0 %vm19751_vm2, %v16167_v43  ;;  %v5537_v8 = vld [vmem:[#allocation3 + $0x40] sm:$0xff]  ;;  %vm19754_vm12 = vmmov %vm19752_vm10  ;;  %v6686_v13 = vshll.u32 %v15643_v26, 16  ;;  %v12273_v4 = vld [vmem:[#allocation3 + $0x4c] ss:$8 sps:$4 sm:$0xff]   ;;  %vm19756_vm10 = vcmask 523264  }
 0x36d   :  { %v12402_v22 = vld [vmem:[%s18822_s1 + $0x30] sm:$0xff]   ;;  %v11395_v28 = vcombine.low %v5536_v11, %v5537_v8  ;;  %6433 = vst.msk [vmem:[#allocation2 + $0x80] sm:$0xf] %vm19754_vm12, %v6351_v12  ;;  %vm19755_vm2 = vmmov %vm19749_vm1  ;;  %v12403_v56 = vld [vmem:[%s18822_s1 + $0xe0] sm:$0xff]  }
 0x36e   :  { %8179 = vmatpush1.bf16.msra.mxu0 %v12401_v15  ;;  %v6671_v21 = vsel %vm13643_vm3, %v6663_v48, %v6670_v50  ;;  %7792 = vmatpush1.bf16.msra.mxu1 %v12402_v22  ;;  %v16196_v40 = vld [vmem:[#allocation2 + $0x4c] ss:$8 sps:$4 sm:$0xff]   ;;  %vm19757_vm13 = vmmov %vm19756_vm10  ;;  %v19758_v39 = vld [vmem:[#allocation57_spill] sm:$0xff]  ;;  %v6688_v29 = vor.u32 %v6686_v13, %v15685_v42  ;;  %v6353_v22 = vpop.permute.xlu0 %6352  ;;  %v6704_v13 = vshll.u32 %v15704_v47, 16 }
 0x36f   :  { %8180 = vmatprep.subr.bf16.mxu0 %v19740_v52  ;;  %7793 = vmatprep.subr.bf16.mxu1 %v19740_v52  ;;  %v19753_v32 = vld [vmem:[#allocation27_spill] sm:$0xff]  ;;  %6883 = vst.msk [vmem:[#allocation2 + $0x80] sm:$0xf] %vm19755_vm2, %v6671_v21  ;;  %v12404_v26 = vld [vmem:[%s18822_s1 + $0x28] sm:$0xff]   ;;  %v6681_v16 = vrot.slane %v19758_v39, 4  ;;  %v5539_v48 = vld [vmem:[#allocation3 + $0x50] sm:$0xff] }
 0x370   :  { %6882 = vst.msk [vmem:[#allocation2 + $0x78] sm:$0xf] %vm19749_vm1, %v19753_v32  ;;  %v12405_v50 = vld [vmem:[%s18822_s1 + $0xd8] sm:$0xff]   ;;  %v16222_v17 = vld [vmem:[#allocation2 + $0x48] ss:$8 sps:$4 sm:$0xff]   ;;  %v12406_v42 = vld [vmem:[%s18822_s1 + $0x20] sm:$0xff]  }
 0x371   :  { %5871 = vmatmul.mubr.bf16.gmra.mxu1 %v11395_v28  ;;  %7665 = vmatmul.mubr.bf16.gmra.mxu0 %v16190_v63  ;;  %v5538_v8 = vld [vmem:[#allocation3 + $0x48] sm:$0xff]  ;;  %v6689_v59 = vsel %vm13643_vm3, %v6681_v16, %v6688_v29  ;;  %v12278_v11 = vld [vmem:[#allocation3 + $0x5c] ss:$8 sps:$4 sm:$0xff]   ;;  %v6355_v28 = vpop.permute.xlu1 %6354  ;;  %vm19760_vm1 = vmmov %vm19756_vm10  ;;  %v6699_v29 = vrot.slane %v15706_v54, 4  ;;  %v16272_v54 = vpop.f32.mrf.mxu1 }
 0x372   :  { %8181 = vmatpush1.bf16.msra.mxu0 %v12403_v56  ;;  %11439 = vmatprep.mubr.msk.bf16.mxu1 %vm19756_vm10, %v12273_v4  ;;  %v16225_v15 = vld [vmem:[#allocation2 + $0x5c] ss:$8 sps:$4 sm:$0xff]   ;;  %v11397_v21 = vcombine.low %v5538_v8, %v5539_v48  ;;  %v12407_v12 = vld [vmem:[%s18822_s1 + $0xd0] sm:$0xff]   ;;  %v19762_v32 = vld [vmem:[#allocation58_spill] sm:$0xff]  ;;  %v6706_v48 = vor.u32 %v6704_v13, %v15756_v6  ;;  %v5415_v6 = vpop.f32.mrf.mxu0 }
 0x373   :  { %11618 = vmatprep.mubr.msk.bf16.mxu0 %vm19757_vm13, %v16196_v40  ;;  %7794 = vmatpush1.bf16.msra.mxu1 %v12404_v26  ;;  %vm19759_vm13 = vmmov %vm19754_vm12  ;;  %v12408_v4 = vld [vmem:[%s18822_s1 + $0x18] sm:$0xff]   ;;  %v5541_v56 = vld [vmem:[#allocation3 + $0x60] sm:$0xff] }
 0x374   :  { %8182 = vmatprep.subr.bf16.mxu0 %v19740_v52  ;;  %7795 = vmatprep.subr.bf16.mxu1 %v19740_v52  ;;  %6434 = vst.msk [vmem:[#allocation2 + $0x88] sm:$0xf] %vm19759_vm13, %v6353_v22  ;;  %vm19761_vm12 = vmmov %vm19760_vm1  ;;  %v12409_v26 = vld [vmem:[%s18822_s1 + $0xc8] sm:$0xff]   ;;  %v16254_v39 = vld [vmem:[#allocation2 + $0x58] ss:$8 sps:$4 sm:$0xff]  }
 0x375   :  { %6884 = vst.msk [vmem:[#allocation2 + $0x88] sm:$0xf] %vm19755_vm2, %v19762_v32  ;;  %vm19763_vm10 = vmmov %vm19759_vm13  ;;  %v5540_v47 = vld [vmem:[#allocation3 + $0x58] sm:$0xff]  ;;  %v12410_v8 = vld [vmem:[%s18822_s1 + $0x10] sm:$0xff]   ;;  %v5164_v32 = vpop.f32.mrf.mxu1 }
 0x376   :  { %8183 = vmatpush1.bf16.msra.mxu0 %v12405_v50  ;;  %6435 = vst.msk [vmem:[#allocation2 + $0x90] sm:$0xf] %vm19763_vm10, %v6355_v28  ;;  %vm19764_vm8 = vmmov %vm19755_vm2  ;;  %v16257_v16 = vld [vmem:[#allocation2 + $0x6c] ss:$8 sps:$4 sm:$0xff]   ;;  %v11399_v50 = vcombine.low %v5540_v47, %v5541_v56  ;;  %v12413_v13 = vld [vmem:[%s18822_s1 + $0x118] sm:$0xff]   ;;  %v5417_v56 = vpop.f32.mrf.mxu0 }
 0x377   :  { %8184 = vmatprep.subr.bf16.mxu0 %v19740_v52  ;;  %7796 = vmatpush1.bf16.msra.mxu1 %v12406_v42  ;;  %6885 = vst.msk [vmem:[#allocation2 + $0x90] sm:$0xf] %vm19764_vm8, %v6689_v59  ;;  %v12411_v42 = vld [vmem:[%s18822_s1 + $0xc0] sm:$0xff]   ;;  %vm19765_vm8 = vmmov %vm19760_vm1  ;;  %v6707_v59 = vsel %vm13643_vm3, %v6699_v29, %v6706_v48  ;;  %v12412_v22 = vld [vmem:[%s18822_s1 + $0x8] sm:$0xff]   ;;  %v6359_v28 = vpop.permute.xlu1 %6358  ;;  %v16295_v48 = vpop.f32.mrf.mxu1 }
 0x378   :  { %7797 = vmatprep.subr.bf16.mxu1 %v19740_v52  ;;  %vm19766_vm13 = vmmov %vm19760_vm1  ;;  %v5542_v47 = vld [vmem:[#allocation3 + $0x68] sm:$0xff]  ;;  %v12298_v38 = vld [vmem:[#allocation3 + $0x9c] ss:$8 sps:$4 sm:$0xff]  }
 0x379   :  { %5879 = vmatmul.mubr.bf16.gmra.mxu1 %v11397_v21  ;;  %7673 = vmatmul.mubr.bf16.gmra.mxu0 %v16222_v17  ;;  %v12283_v21 = vld [vmem:[#allocation3 + $0x6c] ss:$8 sps:$4 sm:$0xff]  }
 0x37a   :  { %8185 = vmatpush1.bf16.msra.mxu0 %v12407_v12  ;;  %11440 = vmatprep.mubr.msk.bf16.mxu1 %vm19760_vm1, %v12278_v11  ;;  %v6357_v11 = vpop.permute.xlu0 %6356  ;;  %v5543_v12 = vld [vmem:[#allocation3 + $0x70] sm:$0xff]  ;;  %vm19767_vm1 = vmmov %vm19763_vm10  ;;  %v12416_v56 = vld [vmem:[%s18822_s1 + $0x58] sm:$0xff]  }
 0x37b   :  { %11619 = vmatprep.mubr.msk.bf16.mxu0 %vm19761_vm12, %v16225_v15  ;;  %7798 = vmatpush1.bf16.msra.mxu1 %v12408_v4  ;;  %6436 = vst.msk [vmem:[#allocation2 + $0x98] sm:$0xf] %vm19767_vm1, %v6357_v11  ;;  %v16285_v4 = vld [vmem:[#allocation2 + $0x68] ss:$8 sps:$4 sm:$0xff]   ;;  %vm19768_vm12 = vmmov %vm19755_vm2  ;;  %v16292_v29 = vld [vmem:[#allocation2 + $0x7c] ss:$8 sps:$4 sm:$0xff]  }
 0x37c   :  { %8186 = vmatprep.subr.bf16.mxu0 %v19740_v52  ;;  %7799 = vmatprep.subr.bf16.mxu1 %v19740_v52  ;;  %6886 = vst.msk [vmem:[#allocation2 + $0x98] sm:$0xf] %vm19768_vm12, %v15733_v20  ;;  %vm19769_vm2 = vmmov %vm19767_vm1  ;;  %v12414_v20 = vld [vmem:[%s18822_s1] sm:$0xff]   ;;  %v19771_v11 = vld [vmem:[#allocation59_spill] sm:$0xff] }
 0x37d   :  { %6437 = vst.msk [vmem:[#allocation2 + $0xa0] sm:$0xf] %vm19769_vm2, %v6359_v28  ;;  %vm19770_vm10 = vmmov %vm19768_vm12 }
 0x37e   :  { %8187 = vmatpush1.bf16.msra.mxu0 %v12409_v26  ;;  %v6722_v26 = vshll.u32 %v15761_v57, 16  ;;  %6887 = vst.msk [vmem:[#allocation2 + $0xa0] sm:$0xf] %vm19770_vm10, %v6707_v59  ;;  %v12415_v57 = vld [vmem:[%s18822_s1 + $0x110] sm:$0xff]   ;;  %vm19774_vm12 = vmmov %vm19770_vm10 }
 0x37f   :  { %8188 = vmatprep.subr.bf16.mxu0 %v19740_v52  ;;  %7800 = vmatpush1.bf16.msra.mxu1 %v12410_v8  ;;  %v5418_v8 = vpop.f32.mrf.mxu0  ;;  %vm19775_vm2 = vmmov %vm19767_vm1 }
 0x380   :  { %7801 = vmatprep.subr.bf16.mxu1 %v19740_v52 }
 0x381   :  { %5887 = vmatmul.mubr.bf16.gmra.mxu1 %v11399_v50  ;;  %7681 = vmatmul.mubr.bf16.gmra.mxu0 %v16254_v39  ;;  %v11401_v50 = vcombine.low %v5542_v47, %v5543_v12  ;;  %v5420_v59 = vpop.f32.mrf.mxu0  ;;  %v6724_v12 = vor.u32 %v6722_v26, %v15804_v14  ;;  %v5545_v47 = vld [vmem:[#allocation3 + $0x80] sm:$0xff]  ;;  %v12417_v14 = vld [vmem:[%s18822_s1 + $0x108] sm:$0xff]   ;;  %v16320_v26 = vld [vmem:[#allocation2 + $0x78] ss:$8 sps:$4 sm:$0xff]  }
 0x382   :  { %8189 = vmatpush1.bf16.msra.mxu0 %v12411_v42  ;;  %11441 = vmatprep.mubr.msk.bf16.mxu1 %vm19765_vm8, %v12283_v21  ;;  %v12288_v21 = vld [vmem:[#allocation3 + $0x7c] ss:$8 sps:$4 sm:$0xff]   ;;  %v5167_v42 = vpop.f32.mrf.mxu1 }
 0x383   :  { %11620 = vmatprep.mubr.msk.bf16.mxu0 %vm19766_vm13, %v16257_v16  ;;  %7802 = vmatpush1.bf16.msra.mxu1 %v12412_v22  ;;  %v6717_v22 = vrot.slane %v19771_v11, 4  ;;  %vm19772_vm13 = vmmov %vm19765_vm8  ;;  %v16325_v42 = vld [vmem:[#allocation2 + $0x8c] ss:$8 sps:$4 sm:$0xff]  }
 0x384   :  { %8198 = vmatprep.subr.bf16.mxu0 %v19740_v52  ;;  %7803 = vmatprep.subr.bf16.mxu1 %v19740_v52  ;;  %v5170_v28 = vpop.f32.mrf.mxu1 }
 0x385   :  { %v16310_v32 = vadd.f32 %v5415_v6, %v5170_v28  ;;  %v6363_v28 = vpop.permute.xlu1 %6362 }
 0x386   :  { %8199 = vmatpush2.bf16.msra.mxu0 %v12413_v13  ;;  %v5423_v13 = vpop.f32.mrf.mxu0  ;;  %6439 = vst.msk [vmem:[#allocation2 + $0xb0] sm:$0xf] %vm19775_vm2, %v6363_v28 }
 0x387   :  { %8200 = vmatprep.subr.bf16.mxu0 %v19740_v52  ;;  %7804 = vmatpush1.bf16.msra.mxu1 %v12414_v20  ;;  %v6725_v20 = vsel %vm13643_vm3, %v6717_v22, %v6724_v12  ;;  %v6740_v12 = vshll.u32 %v15824_v49, 16  ;;  %v5547_v49 = vld [vmem:[#allocation3 + $0x90] sm:$0xff] }
 0x388   :  { %7813 = vmatprep.subr.bf16.mxu1 %v19740_v52  ;;  %v5425_v6 = vpop.f32.mrf.mxu0  ;;  %6889 = vst.msk [vmem:[#allocation2 + $0xb0] sm:$0xf] %vm19770_vm10, %v6725_v20  ;;  %v6735_v20 = vrot.slane %v15826_v3, 4 }
 0x389   :  { %5895 = vmatmul.mubr.bf16.gmra.mxu1 %v11401_v50  ;;  %7689 = vmatmul.mubr.bf16.gmra.mxu0 %v16285_v4  ;;  %v5172_v50 = vpop.f32.mrf.mxu1  ;;  %v12293_v6 = vld [vmem:[#allocation3 + $0x8c] ss:$8 sps:$4 sm:$0xff]   ;;  %v6742_v28 = vor.u32 %v6740_v12, %v15872_v33 }
 0x38a   :  { %8201 = vmatpush2.bf16.msra.mxu0 %v12415_v57  ;;  %11442 = vmatprep.mubr.msk.bf16.mxu1 %vm19765_vm8, %v12288_v21  ;;  %v5544_v21 = vld [vmem:[#allocation3 + $0x78] sm:$0xff]  ;;  %v6361_v57 = vpop.permute.xlu0 %6360  ;;  %v5426_v50 = vpop.f32.mrf.mxu0 }
 0x38b   :  { %11621 = vmatprep.mubr.msk.bf16.mxu0 %vm19772_vm13, %v16292_v29  ;;  %7814 = vmatpush2.bf16.msra.mxu1 %v12416_v56  ;;  %v5173_v59 = vpop.f32.mrf.mxu1  ;;  %v11403_v11 = vcombine.low %v5544_v21, %v5545_v47  ;;  %6438 = vst.msk [vmem:[#allocation2 + $0xa8] sm:$0xf] %vm19767_vm1, %v6361_v57  ;;  %vm19776_vm13 = vmmov %vm19765_vm8  ;;  %v6743_v33 = vsel %vm13643_vm3, %v6735_v20, %v6742_v28  ;;  %v6758_v20 = vshll.u32 %v15877_v10, 16  ;;  %v5549_v28 = vld [vmem:[#allocation3 + $0xa0] sm:$0xff] }
 0x38c   :  { %8202 = vmatprep.subr.bf16.mxu0 %v19740_v52  ;;  %7815 = vmatprep.subr.bf16.mxu1 %v19740_v52  ;;  %v16328_v56 = vadd.f32 %v5418_v8, %v5173_v59  ;;  %6888 = vst.msk [vmem:[#allocation2 + $0xa8] sm:$0xf] %vm19774_vm12, %v19773_v58  ;;  %v12419_v8 = vld [vmem:[%s18822_s1 + $0x100] sm:$0xff]   ;;  %v5428_v47 = vpop.f32.mrf.mxu0  ;;  %v12420_v59 = vld [vmem:[%s18822_s1 + $0x48] sm:$0xff]   ;;  %vm19777_vm1 = vmmov %vm19765_vm8 }
 0x38d   :  { %v5175_v22 = vpop.f32.mrf.mxu1  ;;  %vm19778_vm12 = vmmov %vm19777_vm1 }
 0x38e   :  { %8203 = vmatpush2.bf16.msra.mxu0 %v12417_v14  ;;  %v12418_v14 = vld [vmem:[%s18822_s1 + $0x50] sm:$0xff]   ;;  %v5431_v57 = vpop.f32.mrf.mxu0  ;;  %v16357_v22 = vld [vmem:[#allocation2 + $0x9c] ss:$8 sps:$4 sm:$0xff]  }
 0x38f   :  { %8204 = vmatprep.subr.bf16.mxu0 %v19740_v52  ;;  %7816 = vmatpush2.bf16.msra.mxu1 %v12418_v14  ;;  %v5178_v58 = vpop.f32.mrf.mxu1  ;;  %v16355_v14 = vld [vmem:[#allocation2 + $0x88] ss:$8 sps:$4 sm:$0xff]  }
 0x390   :  { %7817 = vmatprep.subr.bf16.mxu1 %v19740_v52  ;;  %v16346_v21 = vadd.f32 %v5423_v13, %v5178_v58  ;;  %v5433_v13 = vpop.f32.mrf.mxu0 }
 0x391   :  { %5903 = vmatmul.mubr.bf16.gmra.mxu1 %v11403_v11  ;;  %7697 = vmatmul.mubr.bf16.gmra.mxu0 %v16320_v26  ;;  %v5180_v11 = vpop.f32.mrf.mxu1  ;;  %v6365_v12 = vpop.permute.xlu0 %6364  ;;  %v16377_v13 = vld [vmem:[#allocation2 + $0x98] ss:$8 sps:$4 sm:$0xff]  }
 0x392   :  { %8205 = vmatpush2.bf16.msra.mxu0 %v12419_v8  ;;  %11443 = vmatprep.mubr.msk.bf16.mxu1 %vm19765_vm8, %v12293_v6  ;;  %v5546_v6 = vld [vmem:[#allocation3 + $0x88] sm:$0xff]  ;;  %v12421_v11 = vld [vmem:[%s18822_s1 + $0x40] sm:$0xff]   ;;  %6440 = vst.msk [vmem:[#allocation2 + $0xb8] sm:$0xf] %vm19775_vm2, %v6365_v12  ;;  %vm19779_vm8 = vmmov %vm19775_vm2 }
 0x393   :  { %11622 = vmatprep.mubr.msk.bf16.mxu0 %vm19776_vm13, %v16325_v42  ;;  %7818 = vmatpush2.bf16.msra.mxu1 %v12420_v59  ;;  %v5181_v8 = vpop.f32.mrf.mxu1  ;;  %v11405_v47 = vcombine.low %v5546_v6, %v5547_v49  ;;  %v5434_v59 = vpop.f32.mrf.mxu0  ;;  %6890 = vst.msk [vmem:[#allocation2 + $0xb8] sm:$0xf] %vm19770_vm10, %v15854_v2  ;;  %vm19780_vm13 = vmmov %vm19770_vm10  ;;  %v5548_v6 = vld [vmem:[#allocation3 + $0x98] sm:$0xff] }
 0x394   :  { %10088 = vmatprep.subr.bf16.mxu0 %v19740_v52  ;;  %7819 = vmatprep.subr.bf16.mxu1 %v19740_v52  ;;  %v16359_v58 = vadd.f32 %v5426_v50, %v5181_v8  ;;  %v6367_v50 = vpop.permute.xlu1 %6366  ;;  %v11407_v8 = vcombine.low %v5548_v6, %v5549_v28 }
 0x395   :  { %v5183_v3 = vpop.f32.mrf.mxu1  ;;  %v5436_v49 = vpop.f32.mrf.mxu0  ;;  %6441 = vst.msk [vmem:[#allocation2 + $0xc0] sm:$0xf] %vm19779_vm8, %v6367_v50  ;;  %v5551_v50 = vld [vmem:[#allocation3 + $0xb0] sm:$0xff]  ;;  %vm19783_vm8 = vmmov %vm19775_vm2 }
 0x396   :  { %6891 = vst.msk [vmem:[#allocation2 + $0xc0] sm:$0xf] %vm19780_vm13, %v6743_v33  ;;  %v12303_v3 = vld [vmem:[#allocation3 + $0xac] ss:$8 sps:$4 sm:$0xff]   ;;  %vm19785_vm13 = vmmov %vm19770_vm10 }
 0x397   :  { %7820 = vmatpush2.bf16.msra.mxu1 %v12421_v11  ;;  %v6760_v11 = vor.u32 %v6758_v20, %v15925_v61  ;;  %v5186_v2 = vpop.f32.mrf.mxu1  ;;  %v5439_v12 = vpop.f32.mrf.mxu0  ;;  %v16391_v20 = vld [vmem:[#allocation2 + $0xa8] ss:$8 sps:$4 sm:$0xff]  }
 0x398   :  { %9915 = vmatprep.subr.bf16.mxu1 %v19740_v52  ;;  %v16387_v10 = vadd.f32 %v5431_v57, %v5186_v2  ;;  %v16397_v57 = vld [vmem:[#allocation2 + $0xbc] ss:$8 sps:$4 sm:$0xff]  }
 0x399   :  { %5911 = vmatmul.mubr.bf16.gmra.mxu1 %v11405_v47  ;;  %7705 = vmatmul.mubr.bf16.gmra.mxu0 %v16355_v14  ;;  %v6753_v47 = vrot.slane %v15880_v18, 4  ;;  %v5188_v33 = vpop.f32.mrf.mxu1  ;;  %v5441_v49 = vpop.f32.mrf.mxu0 }
 0x39a   :  { %11444 = vmatprep.mubr.msk.bf16.mxu1 %vm19777_vm1, %v12298_v38  ;;  %11623 = vmatprep.mubr.msk.bf16.mxu0 %vm19778_vm12, %v16357_v22  ;;  %v16379_v38 = vld [vmem:[#allocation2 + $0xac] ss:$8 sps:$4 sm:$0xff]   ;;  %vm19781_vm12 = vmmov %vm19777_vm1  ;;  %19782 = vst [vmem:[#allocation30_spill] sm:$0xff] %v16387_v10  ;;  %v12313_v10 = vld [vmem:[#allocation3 + $0xcc] ss:$8 sps:$4 sm:$0xff]  }
 0x39b   :  { %v6761_v18 = vsel %vm13643_vm3, %v6753_v47, %v6760_v11  ;;  %v5189_v6 = vpop.f32.mrf.mxu1  ;;  %v5442_v2 = vpop.f32.mrf.mxu0  ;;  %v6776_v47 = vshll.u32 %v15947_v51, 16  ;;  %v12308_v49 = vld [vmem:[#allocation3 + $0xbc] ss:$8 sps:$4 sm:$0xff]   ;;  %v6771_v51 = vrot.slane %v15949_v9, 4 }
 0x39d   :  { %v5191_v33 = vpop.f32.mrf.mxu1 }
 0x39e   :  { %v6369_v61 = vpop.permute.xlu0 %6368  ;;  %v5552_v33 = vld [vmem:[#allocation3 + $0xb8] sm:$0xff] }
 0x39f   :  { %6442 = vst.msk [vmem:[#allocation2 + $0xc8] sm:$0xf] %vm19775_vm2, %v6369_v61  ;;  %v6371_v28 = vpop.permute.xlu1 %6370  ;;  %v5444_v61 = vpop.f32.mrf.mxu0 }
 0x3a0   :  { %6892 = vst.msk [vmem:[#allocation2 + $0xc8] sm:$0xf] %vm19770_vm10, %v15920_v55  ;;  %v5194_v7 = vpop.f32.mrf.mxu1  ;;  %v16413_v61 = vld [vmem:[#allocation2 + $0xcc] ss:$8 sps:$4 sm:$0xff]  }
 0x3a1   :  { %5919 = vmatmul.mubr.bf16.gmra.mxu1 %v11407_v8  ;;  %7713 = vmatmul.mubr.bf16.gmra.mxu0 %v16377_v13  ;;  %v5550_v8 = vld [vmem:[#allocation3 + $0xa8] sm:$0xff]  ;;  %6443 = vst.msk [vmem:[#allocation2 + $0xd0] sm:$0xf] %vm19783_vm8, %v6371_v28  ;;  %v16407_v55 = vadd.f32 %v5439_v12, %v5194_v7  ;;  %v5553_v28 = vld [vmem:[#allocation3 + $0xc0] sm:$0xff]  ;;  %vm19788_vm8 = vmmov %vm19775_vm2 }
 0x3a2   :  { %11445 = vmatprep.mubr.msk.bf16.mxu1 %vm19777_vm1, %v12303_v3  ;;  %11624 = vmatprep.mubr.msk.bf16.mxu0 %vm19781_vm12, %v16379_v38  ;;  %v16399_v3 = vadd.f32 %v5434_v59, %v5189_v6  ;;  %v11409_v11 = vcombine.low %v5550_v8, %v5551_v50  ;;  %6893 = vst.msk [vmem:[#allocation2 + $0xd0] sm:$0xf] %vm19785_vm13, %v6761_v18  ;;  %vm19786_vm12 = vmmov %vm19777_vm1  ;;  %v5447_v59 = vpop.f32.mrf.mxu0  ;;  %v5196_v18 = vpop.f32.mrf.mxu1  ;;  %v16411_v8 = vld [vmem:[#allocation2 + $0xb8] ss:$8 sps:$4 sm:$0xff]  }
 0x3a3   :  { %19787 = vst [vmem:[#allocation25_spill] sm:$0xff] %v16407_v55  ;;  %v6778_v50 = vor.u32 %v6776_v47, %v16027_v31  ;;  %v11411_v12 = vcombine.low %v5552_v33, %v5553_v28  ;;  %vm19789_vm13 = vmmov %vm19777_vm1  ;;  %v6789_v33 = vrot.slane %v16037_v46, 4 }
 0x3a4   :  { %19784 = vst [vmem:[#allocation24_spill] sm:$0xff] %v16399_v3  ;;  %v5449_v6 = vpop.f32.mrf.mxu0 }
 0x3a5   :  { %v6779_v7 = vsel %vm13643_vm3, %v6771_v51, %v6778_v50  ;;  %v5554_v6 = vld [vmem:[#allocation3 + $0xc8] sm:$0xff] }
 0x3a6   :  { %v5450_v3 = vpop.f32.mrf.mxu0 }
 0x3a8   :  { %v5452_v47 = vpop.f32.mrf.mxu0 }
 0x3a9   :  { %5927 = vmatmul.mubr.bf16.gmra.mxu1 %v11409_v11  ;;  %7721 = vmatmul.mubr.bf16.gmra.mxu0 %v16391_v20  ;;  %v5197_v11 = vpop.f32.mrf.mxu1  ;;  %v16429_v18 = vld [vmem:[#allocation2 + $0xc8] ss:$8 sps:$4 sm:$0xff]   ;;  %v16437_v47 = vld [vmem:[#allocation2 + $0xdc] ss:$8 sps:$4 sm:$0xff]  }
 0x3aa   :  { %11446 = vmatprep.mubr.msk.bf16.mxu1 %vm19777_vm1, %v12308_v49  ;;  %11625 = vmatprep.mubr.msk.bf16.mxu0 %vm19786_vm12, %v16397_v57  ;;  %v16415_v49 = vadd.f32 %v5442_v2, %v5197_v11  ;;  %vm19790_vm1 = vmmov %vm19770_vm10  ;;  %v6794_v2 = vshll.u32 %v16021_v5, 16  ;;  %v5455_v50 = vpop.f32.mrf.mxu0 }
 0x3ab   :  { %v6373_v55 = vpop.permute.xlu0 %6372  ;;  %v5199_v9 = vpop.f32.mrf.mxu1 }
 0x3ac   :  { %6444 = vst.msk [vmem:[#allocation2 + $0xd8] sm:$0xf] %vm19775_vm2, %v6373_v55  ;;  %v6375_v31 = vpop.permute.xlu1 %6374  ;;  %v5555_v55 = vld [vmem:[#allocation3 + $0xd0] sm:$0xff]  ;;  %v5457_v11 = vpop.f32.mrf.mxu0  ;;  %v12318_v9 = vld [vmem:[#allocation3 + $0xdc] ss:$8 sps:$4 sm:$0xff]   ;;  %vm19791_vm2 = vmmov %vm19786_vm12 }
 0x3ad   :  { %6894 = vst.msk [vmem:[#allocation2 + $0xd8] sm:$0xf] %vm19770_vm10, %v15984_v45  ;;  %v5202_v51 = vpop.f32.mrf.mxu1  ;;  %vm19792_vm10 = vmmov %vm19788_vm8  ;;  %v5556_v11 = vld [vmem:[#allocation3 + $0xd8] sm:$0xff] }
 0x3ae   :  { %6445 = vst.msk [vmem:[#allocation2 + $0xe0] sm:$0xf] %vm19788_vm8, %v6375_v31  ;;  %v16431_v28 = vadd.f32 %v5447_v59, %v5202_v51  ;;  %v5458_v5 = vpop.f32.mrf.mxu0  ;;  %vm19793_vm8 = vmmov %vm19791_vm2 }
 0x3af   :  { %6895 = vst.msk [vmem:[#allocation2 + $0xe0] sm:$0xf] %vm19790_vm1, %v6779_v7  ;;  %v5204_v45 = vpop.f32.mrf.mxu1  ;;  %v6812_v7 = vshll.u32 %v16068_v53, 16 }
 0x3b1   :  { %5935 = vmatmul.mubr.bf16.gmra.mxu1 %v11411_v12  ;;  %7729 = vmatmul.mubr.bf16.gmra.mxu0 %v16411_v8  ;;  %v11413_v12 = vcombine.low %v5554_v6, %v5555_v55  ;;  %v5205_v31 = vpop.f32.mrf.mxu1  ;;  %v6814_v53 = vor.u32 %v6812_v7, %v16116_v41  ;;  %v5557_v55 = vld [vmem:[#allocation3 + $0xe0] sm:$0xff] }
 0x3b2   :  { %11447 = vmatprep.mubr.msk.bf16.mxu1 %vm19789_vm13, %v12313_v10  ;;  %11626 = vmatprep.mubr.msk.bf16.mxu0 %vm19786_vm12, %v16413_v61  ;;  %v6796_v10 = vor.u32 %v6794_v2, %v16066_v34  ;;  %v16439_v59 = vadd.f32 %v5450_v3, %v5205_v31  ;;  %v6807_v34 = vrot.slane %v16074_v19, 4  ;;  %v5460_v2 = vpop.f32.mrf.mxu0  ;;  %vm19794_vm13 = vmmov %vm19790_vm1  ;;  %v11415_v41 = vcombine.low %v5556_v11, %v5557_v55  ;;  %v12422_v31 = vld [vmem:[#allocation3 + $0xec] ss:$8 sps:$4 sm:$0xff]  }
 0x3b3   :  { %v5207_v45 = vpop.f32.mrf.mxu1  ;;  %vm19795_vm1 = vmmov %vm19792_vm10 }
 0x3b4   :  { %v6797_v46 = vsel %vm13643_vm3, %v6789_v33, %v6796_v10  ;;  %vm19796_vm12 = vmmov %vm19794_vm13  ;;  %v6815_v19 = vsel %vm13643_vm3, %v6807_v34, %v6814_v53  ;;  %v16468_v34 = vld [vmem:[#allocation2 + $0xec] ss:$8 sps:$4 sm:$0xff]  }
 0x3b5   :  { %v5210_v10 = vpop.f32.mrf.mxu1 }
 0x3b6   :  { %v16452_v6 = vld [vmem:[#allocation2 + $0xd8] ss:$8 sps:$4 sm:$0xff]  }
 0x3b7   :  { %v6377_v51 = vpop.permute.xlu0 %6376 }
 0x3b8   :  { %6446 = vst.msk [vmem:[#allocation2 + $0xe8] sm:$0xf] %vm19792_vm10, %v6377_v51  ;;  %vm19798_vm10 = vmmov %vm19796_vm12 }
 0x3b9   :  { %5943 = vmatmul.mubr.bf16.gmra.mxu1 %v11413_v12  ;;  %7737 = vmatmul.mubr.bf16.gmra.mxu0 %v16429_v18  ;;  %6896 = vst.msk [vmem:[#allocation2 + $0xe8] sm:$0xf] %vm19794_vm13, %v16063_v62  ;;  %v6379_v3 = vpop.permute.xlu1 %6378  ;;  %v16458_v12 = vadd.f32 %v5455_v50, %v5210_v10  ;;  %v5463_v62 = vpop.f32.mrf.mxu0  ;;  %vm19800_vm13 = vcmask 523264  }
 0x3ba   :  { %11448 = vmatprep.mubr.msk.bf16.mxu1 %vm19791_vm2, %v12318_v9  ;;  %11627 = vmatprep.mubr.msk.bf16.mxu0 %vm19793_vm8, %v16437_v47  ;;  %6447 = vst.msk [vmem:[#allocation2 + $0xf0] sm:$0xf] %vm19795_vm1, %v6379_v3  ;;  %vm19797_vm2 = vmmov %vm19795_vm1  ;;  %v5212_v9 = vpop.f32.mrf.mxu1  ;;  %v12423_v3 = vld [vmem:[#allocation3 + $0xfc] ss:$8 sps:$4 sm:$0xff]  }
 0x3bb   :  { %6897 = vst.msk [vmem:[#allocation2 + $0xf0] sm:$0xf] %vm19796_vm12, %v6797_v46  ;;  %vm19799_vm8 = vmmov %vm19795_vm1  ;;  %v5465_v51 = vpop.f32.mrf.mxu0 }
 0x3bc   :  { %vm19801_vm1 = vmmov %vm19798_vm10  ;;  %v5213_v45 = vpop.f32.mrf.mxu1 }
 0x3bd   :  { %v6381_v33 = vpop.permute.xlu0 %6380  ;;  %v16466_v46 = vadd.f32 %v5458_v5, %v5213_v45  ;;  %v5466_v50 = vpop.f32.mrf.mxu0  ;;  %vm19802_vm12 = vmmov %vm19800_vm13 }
 0x3be   :  { %6448 = vst.msk [vmem:[#allocation2 + $0xf8] sm:$0xf] %vm19797_vm2, %v6381_v33  ;;  %v6383_v7 = vpop.permute.xlu1 %6382  ;;  %v5215_v2 = vpop.f32.mrf.mxu1  ;;  %vm19803_vm2 = vmmov %vm19802_vm12 }
 0x3bf   :  { %6898 = vst.msk [vmem:[#allocation2 + $0xf8] sm:$0xf] %vm19798_vm10, %v16102_v37  ;;  %v5468_v55 = vpop.f32.mrf.mxu0  ;;  %v16476_v37 = vld [vmem:[#allocation2 + $0xfc] ss:$8 sps:$4 sm:$0xff]   ;;  %vm19804_vm10 = vmmov %vm19803_vm2 }
 0x3c0   :  { %6449 = vst.msk [vmem:[#allocation2 + $0x100] sm:$0xf] %vm19799_vm8, %v6383_v7  ;;  %v5218_v5 = vpop.f32.mrf.mxu1 }
 0x3c1   :  { %5951 = vmatmul.mubr.bf16.gmra.mxu1 %v11415_v41  ;;  %7745 = vmatmul.mubr.bf16.gmra.mxu0 %v16452_v6  ;;  %6899 = vst.msk [vmem:[#allocation2 + $0x100] sm:$0xf] %vm19801_vm1, %v6815_v19  ;;  %v5471_v11 = vpop.f32.mrf.mxu0  ;;  %v16481_v19 = vadd.f32 %v5463_v62, %v5218_v5 }
 0x3c2   :  { %11449 = vmatprep.mubr.msk.bf16.mxu1 %vm19800_vm13, %v12422_v31  ;;  %v16470_v53 = vld [vmem:[#allocation2 + $0xe8] ss:$8 sps:$4 sm:$0xff]   ;;  %11628 = vmatprep.mubr.msk.bf16.mxu0 %vm19802_vm12, %v16468_v34  ;;  %v5220_v41 = vpop.f32.mrf.mxu1  ;;  %vm19805_vm13 = vmmov %vm19801_vm1 }
 0x3c3   :  { %v5473_v33 = vpop.f32.mrf.mxu0  ;;  %vm19806_vm1 = vmmov %vm19799_vm8 }
 0x3c4   :  { %v5221_v9 = vpop.f32.mrf.mxu1  ;;  %vm19807_vm12 = vmmov %vm19805_vm13 }
 0x3c5   :  { %v16489_v31 = vadd.f32 %v5466_v50, %v5221_v9  ;;  %v5474_v51 = vpop.f32.mrf.mxu0  ;;  %v12337_v9 = vld [vmem:[#allocation3 + $0x118] ss:$8 sps:$4 sm:$0xff]  }
 0x3c6   :  { %v5223_v62 = vpop.f32.mrf.mxu1 }
 0x3c7   :  { %v5476_v45 = vpop.f32.mrf.mxu0 }
 0x3c8   :  { %v16483_v7 = vld [vmem:[#allocation2 + $0xf8] ss:$8 sps:$4 sm:$0xff]  }
 0x3c9   :  { %5959 = vmatmul.mubr.bf16.gmra.mxu1 %v16018_v60  ;;  %7753 = vmatmul.mubr.bf16.gmra.mxu0 %v16470_v53  ;;  %v5226_v2 = vpop.f32.mrf.mxu1  ;;  %v5479_v55 = vpop.f32.mrf.mxu0 }
 0x3ca   :  { %11450 = vmatprep.mubr.msk.bf16.mxu1 %vm19803_vm2, %v12423_v3  ;;  %11629 = vmatprep.mubr.msk.bf16.mxu0 %vm19804_vm10, %v16476_v37  ;;  %v16499_v3 = vld [vmem:[#allocation2 + $0x10c] ss:$8 sps:$4 sm:$0xff]   ;;  %vm19808_vm10 = vmmov %vm19803_vm2 }
 0x3cb   :  { %v5228_v5 = vpop.f32.mrf.mxu1  ;;  %v5481_v41 = vpop.f32.mrf.mxu0 }
 0x3cd   :  { %v5482_v33 = vpop.f32.mrf.mxu0 }
 0x3ce   :  { %v6385_v10 = vpop.permute.xlu0 %6384 }
 0x3cf   :  { %6450 = vst.msk [vmem:[#allocation2 + $0x108] sm:$0xf] %vm19799_vm8, %v6385_v10  ;;  %v6387_v60 = vpop.permute.xlu1 %6386  ;;  %vm19809_vm8 = vmmov %vm19803_vm2  ;;  %v5484_v10 = vpop.f32.mrf.mxu0 }
 0x3d0   :  { %6900 = vst.msk [vmem:[#allocation2 + $0x108] sm:$0xf] %vm19805_vm13, %v16152_v23  ;;  %v16497_v23 = vadd.f32 %v5471_v11, %v5226_v2  ;;  %vm19810_vm13 = vmmov %vm19803_vm2 }
 0x3d1   :  { %6451 = vst.msk [vmem:[#allocation2 + $0x110] sm:$0xf] %vm19806_vm1, %v6387_v60  ;;  %5967 = vmatmul.mubr.bf16.gmra.mxu1 %v16082_v44  ;;  %7761 = vmatmul.mubr.bf16.gmra.mxu0 %v16483_v7  ;;  %v5229_v44 = vpop.f32.mrf.mxu1  ;;  %v12340_v60 = vld [vmem:[#allocation2 + $0xc] ss:$8 sps:$4 sm:$0xff]   ;;  %vm19811_vm1 = vmmov %vm19803_vm2 }
 0x3d2   :  { %6901 = vst.msk [vmem:[#allocation2 + $0x110] sm:$0xf] %vm19807_vm12, %v16156_v36  ;;  %11451 = vmatprep.mubr.msk.bf16.mxu1 %vm19803_vm2, %v16095_v25  ;;  %v12332_v36 = vld [vmem:[#allocation3 + $0x11c] ss:$8 sps:$4 sm:$0xff]   ;;  %11630 = vmatprep.mubr.msk.bf16.mxu0 %vm19808_vm10, %v16499_v3  ;;  %v16508_v25 = vadd.f32 %v5474_v51, %v5229_v44  ;;  %vm19812_vm12 = vmmov %vm19811_vm1  ;;  %v12424_v51 = vld [vmem:[%s18823_s5 + $0x38] sm:$0xff]  }
 0x3d3   :  { %v5231_v11 = vpop.f32.mrf.mxu1  ;;  %vm19813_vm2 = vmmov %vm19811_vm1 }
 0x3d4   :  { %vm19814_vm10 = vmmov %vm19811_vm1 }
 0x3d7   :  { %v5234_v62 = vpop.f32.mrf.mxu1 }
 0x3d8   :  { %v16512_v45 = vadd.f32 %v5479_v55, %v5234_v62  ;;  %v12338_v55 = vld [vmem:[#allocation2 + $0x8] ss:$8 sps:$4 sm:$0xff]  }
 0x3d9   :  { %v16501_v50 = vld [vmem:[#allocation2 + $0x108] ss:$8 sps:$4 sm:$0xff]   ;;  %5975 = vmatmul.mubr.bf16.gmra.mxu1 %v16121_v1  ;;  %v5487_v1 = vpop.f32.mrf.mxu0  ;;  %v5236_v2 = vpop.f32.mrf.mxu1 }
 0x3da   :  { %11452 = vmatprep.mubr.msk.bf16.mxu1 %vm19809_vm8, %v12332_v36  ;;  %7769 = vmatmul.mubr.bf16.gmra.mxu0 %v16501_v50  ;;  %v12426_v62 = vld [vmem:[%s18823_s5 + $0x28] sm:$0xff]   ;;  %vm19815_vm8 = vmmov %vm19811_vm1 }
 0x3db   :  { %11681 = vmatprep.mubr.msk.bf16.mxu0 %vm19810_vm13, %v16127_v30  ;;  %v5489_v5 = vpop.f32.mrf.mxu0  ;;  %v5237_v41 = vpop.f32.mrf.mxu1  ;;  %vm19816_vm13 = vmmov %vm19811_vm1 }
 0x3dc   :  { %v16522_v44 = vadd.f32 %v5482_v33, %v5237_v41 }
 0x3dd   :  { %v5490_v36 = vpop.f32.mrf.mxu0  ;;  %v5239_v11 = vpop.f32.mrf.mxu1 }
 0x3de   :  { %v12428_v11 = vld [vmem:[%s18823_s5 + $0x20] sm:$0xff]  }
 0x3df   :  { %v5492_v10 = vpop.f32.mrf.mxu0 }
 0x3e0   :  { %v12429_v10 = vld [vmem:[%s18823_s5 + $0x90] sm:$0xff]  }
 0x3e1   :  { %5983 = vmatmul.mubr.bf16.gmra.mxu1 %v12337_v9 }
 0x3e2   :  { %8207 = vmatmul.mubr.bf16.vlgmr.msra.gmra.mxu0 %v16161_v24  ;;  %11633 = vmatprep.mubr.msk.bf16.mxu1 %vm19811_vm1, %v12340_v60  ;;  %v12425_v60 = vld [vmem:[%s18823_s5 + $0x30] sm:$0xff]  }
 0x3e3   :  { %11682 = vmatprep.mubr.msk.bf16.mxu0 %vm19812_vm12, %v16167_v43  ;;  %10089 = vmatpush1.bf16.msra.mxu0 %v12424_v51  ;;  %vm19817_vm12 = vmmov %vm19811_vm1 }
 0x3e4   :  { %10090 = vmatprep.subr.bf16.mxu0 %v19740_v52  ;;  %v5242_v33 = vpop.f32.mrf.mxu1  ;;  %v5495_v9 = vpop.f32.mrf.mxu0 }
 0x3e5   :  { %v16536_v2 = vadd.f32 %v5487_v1, %v5242_v33 }
 0x3e6   :  { %v5244_v5 = vpop.f32.mrf.mxu1  ;;  %v5497_v51 = vpop.f32.mrf.mxu0 }
 0x3e7   :  { %10091 = vmatpush1.bf16.msra.mxu0 %v12425_v60  ;;  %v12432_v5 = vld [vmem:[%s18823_s5 + $0x10] sm:$0xff]  }
 0x3e8   :  { %10092 = vmatprep.subr.bf16.mxu0 %v19740_v52  ;;  %v5245_v41 = vpop.f32.mrf.mxu1 }
 0x3e9   :  { %7822 = vmatmul.mubr.bf16.vlgmr.msra.gmra.mxu1 %v12338_v55  ;;  %v5498_v55 = vpop.f32.mrf.mxu0  ;;  %v16546_v1 = vadd.f32 %v5490_v36, %v5245_v41  ;;  %v12430_v36 = vld [vmem:[%s18823_s5 + $0x18] sm:$0xff]  }
 0x3ea   :  { %11634 = vmatprep.mubr.msk.bf16.mxu1 %vm19813_vm2, %v16125_v27  ;;  %8215 = vmatmul.mubr.bf16.gmra.mxu0 %v16190_v63  ;;  %v12427_v27 = vld [vmem:[%s18823_s5 + $0x98] sm:$0xff]   ;;  %v5247_v60 = vpop.f32.mrf.mxu1  ;;  %vm19818_vm2 = vmmov %vm19811_vm1 }
 0x3eb   :  { %11683 = vmatprep.mubr.msk.bf16.mxu0 %vm19814_vm10, %v16196_v40  ;;  %10093 = vmatpush1.bf16.msra.mxu0 %v12426_v62  ;;  %v5500_v33 = vpop.f32.mrf.mxu0  ;;  %vm19819_vm10 = vmmov %vm19811_vm1 }
 0x3ec   :  { %10094 = vmatprep.subr.bf16.mxu0 %v19740_v52  ;;  %9916 = vmatpush1.bf16.msra.mxu1 %v12427_v27  ;;  %v12434_v33 = vld [vmem:[%s18823_s5 + $0x8] sm:$0xff]  }
 0x3ed   :  { %9917 = vmatprep.subr.bf16.mxu1 %v19740_v52 }
 0x3ef   :  { %10095 = vmatpush1.bf16.msra.mxu0 %v12428_v11  ;;  %v12433_v11 = vld [vmem:[%s18823_s5 + $0x80] sm:$0xff]  }
 0x3f0   :  { %10096 = vmatprep.subr.bf16.mxu0 %v19740_v52  ;;  %9918 = vmatpush1.bf16.msra.mxu1 %v12429_v10 }
 0x3f1   :  { %7830 = vmatmul.mubr.bf16.gmra.mxu1 %v16123_v0  ;;  %9919 = vmatprep.subr.bf16.mxu1 %v19740_v52  ;;  %v12431_v0 = vld [vmem:[%s18823_s5 + $0x88] sm:$0xff]   ;;  %v5503_v62 = vpop.f32.mrf.mxu0 }
 0x3f2   :  { %11635 = vmatprep.mubr.msk.bf16.mxu1 %vm19815_vm8, %v16127_v30  ;;  %8223 = vmatmul.mubr.bf16.gmra.mxu0 %v16222_v17  ;;  %v5250_v30 = vpop.f32.mrf.mxu1  ;;  %vm19820_vm8 = vmmov %vm19811_vm1 }
 0x3f3   :  { %11684 = vmatprep.mubr.msk.bf16.mxu0 %vm19816_vm13, %v16225_v15  ;;  %10097 = vmatpush1.bf16.msra.mxu0 %v12430_v36  ;;  %v16567_v27 = vadd.f32 %v5495_v9, %v5250_v30  ;;  %v5505_v41 = vpop.f32.mrf.mxu0  ;;  %vm19821_vm13 = vmmov %vm19811_vm1 }
 0x3f4   :  { %10098 = vmatprep.subr.bf16.mxu0 %v19740_v52  ;;  %9920 = vmatpush1.bf16.msra.mxu1 %v12431_v0  ;;  %v5252_v51 = vpop.f32.mrf.mxu1  ;;  %v12437_v0 = vld [vmem:[%s18823_s5 + $0x70] sm:$0xff]  }
 0x3f5   :  { %9921 = vmatprep.subr.bf16.mxu1 %v19740_v52  ;;  %v5506_v10 = vpop.f32.mrf.mxu0 }
 0x3f6   :  { %v5253_v9 = vpop.f32.mrf.mxu1 }
 0x3f7   :  { %10099 = vmatpush1.bf16.msra.mxu0 %v12432_v5  ;;  %v16581_v60 = vadd.f32 %v5498_v55, %v5253_v9  ;;  %v5508_v36 = vpop.f32.mrf.mxu0  ;;  %v12436_v55 = vld [vmem:[%s18823_s5] sm:$0xff]  }
 0x3f8   :  { %10100 = vmatprep.subr.bf16.mxu0 %v19740_v52  ;;  %9922 = vmatpush1.bf16.msra.mxu1 %v12433_v11 }
 0x3f9   :  { %7838 = vmatmul.mubr.bf16.gmra.mxu1 %v16161_v24  ;;  %9923 = vmatprep.subr.bf16.mxu1 %v19740_v52  ;;  %v5255_v24 = vpop.f32.mrf.mxu1 }
 0x3fa   :  { %11636 = vmatprep.mubr.msk.bf16.mxu1 %vm19811_vm1, %v16167_v43  ;;  %8231 = vmatmul.mubr.bf16.gmra.mxu0 %v16254_v39  ;;  %v12435_v43 = vld [vmem:[%s18823_s5 + $0x78] sm:$0xff]  }
 0x3fb   :  { %11685 = vmatprep.mubr.msk.bf16.mxu0 %vm19817_vm12, %v16257_v16  ;;  %10101 = vmatpush1.bf16.msra.mxu0 %v12434_v33  ;;  %vm19822_vm12 = vmmov %vm19811_vm1 }
 0x3fc   :  { %10102 = vmatprep.subr.bf16.mxu0 %v19740_v52  ;;  %9924 = vmatpush1.bf16.msra.mxu1 %v12435_v43  ;;  %v12440_v43 = vld [vmem:[%s18823_s5 + $0x50] sm:$0xff]  }
 0x3fd   :  { %9925 = vmatprep.subr.bf16.mxu1 %v19740_v52 }
 0x3fe   :  { %v5258_v30 = vpop.f32.mrf.mxu1  ;;  %v5511_v5 = vpop.f32.mrf.mxu0 }
 0x3ff   :  { %10103 = vmatpush1.bf16.msra.mxu0 %v12436_v55  ;;  %v16604_v51 = vadd.f32 %v5503_v62, %v5258_v30  ;;  %v12441_v55 = vld [vmem:[%s18823_s5 + $0x60] sm:$0xff]   ;;  %v12442_v30 = vld [vmem:[%s18823_s5 + $0x48] sm:$0xff]  }
 0x400   :  { %10112 = vmatprep.subr.bf16.mxu0 %v19740_v52  ;;  %9926 = vmatpush1.bf16.msra.mxu1 %v12437_v0  ;;  %v5260_v41 = vpop.f32.mrf.mxu1  ;;  %v5513_v11 = vpop.f32.mrf.mxu0 }
 0x401   :  { %7846 = vmatmul.mubr.bf16.gmra.mxu1 %v16190_v63  ;;  %9927 = vmatprep.subr.bf16.mxu1 %v19740_v52  ;;  %v12438_v63 = vld [vmem:[%s18823_s5 + $0x58] sm:$0xff]  }
 0x402   :  { %11637 = vmatprep.mubr.msk.bf16.mxu1 %vm19818_vm2, %v16196_v40  ;;  %8239 = vmatmul.mubr.bf16.gmra.mxu0 %v16285_v4  ;;  %v12439_v40 = vld [vmem:[%s18823_s5 + $0x68] sm:$0xff]   ;;  %v5261_v62 = vpop.f32.mrf.mxu1  ;;  %v5514_v9 = vpop.f32.mrf.mxu0  ;;  %vm19823_vm2 = vmmov %vm19811_vm1 }
 0x403   :  { %11686 = vmatprep.mubr.msk.bf16.mxu0 %vm19819_vm10, %v16292_v29  ;;  %10113 = vmatpush2.bf16.msra.mxu0 %v12438_v63  ;;  %v16617_v33 = vadd.f32 %v5506_v10, %v5261_v62  ;;  %v12444_v62 = vld [vmem:[%s18823_s5 + $0x40] sm:$0xff]   ;;  %vm19824_vm10 = vmmov %vm19811_vm1 }
 0x404   :  { %10114 = vmatprep.subr.bf16.mxu0 %v19740_v52  ;;  %9928 = vmatpush1.bf16.msra.mxu1 %v12439_v40  ;;  %v5263_v24 = vpop.f32.mrf.mxu1  ;;  %v5516_v36 = vpop.f32.mrf.mxu0 }
 0x405   :  { %9929 = vmatprep.subr.bf16.mxu1 %v19740_v52  ;;  %v12445_v24 = vld [vmem:[%s18823_s5 + $0xb0] sm:$0xff]  }
 0x407   :  { %10115 = vmatpush2.bf16.msra.mxu0 %v12440_v43 }
 0x408   :  { %10116 = vmatprep.subr.bf16.mxu0 %v19740_v52  ;;  %9930 = vmatpush1.bf16.msra.mxu1 %v12441_v55  ;;  %v5266_v10 = vpop.f32.mrf.mxu1  ;;  %v5519_v0 = vpop.f32.mrf.mxu0 }
 0x409   :  { %7854 = vmatmul.mubr.bf16.gmra.mxu1 %v16222_v17  ;;  %9939 = vmatprep.subr.bf16.mxu1 %v19740_v52  ;;  %v16636_v41 = vadd.f32 %v5511_v5, %v5266_v10  ;;  %v12443_v17 = vld [vmem:[%s18823_s5 + $0xb8] sm:$0xff]  }
 0x40a   :  { %11638 = vmatprep.mubr.msk.bf16.mxu1 %vm19820_vm8, %v16225_v15  ;;  %8247 = vmatmul.mubr.bf16.gmra.mxu0 %v16320_v26  ;;  %v5268_v15 = vpop.f32.mrf.mxu1  ;;  %v5521_v11 = vpop.f32.mrf.mxu0  ;;  %vm19825_vm8 = vmmov %vm19811_vm1 }
 0x40b   :  { %11687 = vmatprep.mubr.msk.bf16.mxu0 %vm19821_vm13, %v16325_v42  ;;  %10117 = vmatpush2.bf16.msra.mxu0 %v12442_v30  ;;  %vm19826_vm13 = vmmov %vm19811_vm1 }
 0x40c   :  { %10118 = vmatprep.subr.bf16.mxu0 %v19740_v52  ;;  %9940 = vmatpush2.bf16.msra.mxu1 %v12443_v17  ;;  %v5269_v63 = vpop.f32.mrf.mxu1  ;;  %v5522_v40 = vpop.f32.mrf.mxu0 }
 0x40d   :  { %9941 = vmatprep.subr.bf16.mxu1 %v19740_v52  ;;  %v16646_v5 = vadd.f32 %v5514_v9, %v5269_v63  ;;  %v12446_v9 = vld [vmem:[%s18823_s5 + $0xa8] sm:$0xff]  }
 0x40e   :  { %v5271_v36 = vpop.f32.mrf.mxu1  ;;  %v5524_v43 = vpop.f32.mrf.mxu0 }
 0x40f   :  { %10119 = vmatpush2.bf16.msra.mxu0 %v12444_v62 }
 0x410   :  { %9942 = vmatpush2.bf16.msra.mxu1 %v12445_v24 }
 0x411   :  { %7862 = vmatmul.mubr.bf16.gmra.mxu1 %v16254_v39  ;;  %9943 = vmatprep.subr.bf16.mxu1 %v19740_v52  ;;  %v12447_v39 = vld [vmem:[%s18823_s5 + $0xa0] sm:$0xff]  }
 0x412   :  { %11639 = vmatprep.mubr.msk.bf16.mxu1 %vm19811_vm1, %v16257_v16  ;;  %8255 = vmatmul.mubr.bf16.gmra.mxu0 %v16355_v14 }
 0x413   :  { %11688 = vmatprep.mubr.msk.bf16.mxu0 %vm19822_vm12, %v16357_v22  ;;  %vm19828_vm12 = vmmov %vm19811_vm1 }
 0x414   :  { %9944 = vmatpush2.bf16.msra.mxu1 %v12446_v9 }
 0x415   :  { %9945 = vmatprep.subr.bf16.mxu1 %v19740_v52 }
 0x418   :  { %9946 = vmatpush2.bf16.msra.mxu1 %v12447_v39 }
 0x419   :  { %v5274_v55 = vpop.f32.mrf.mxu1  ;;  %v5527_v10 = vpop.f32.mrf.mxu0  ;;  %7870 = vmatmul.mubr.bf16.gmra.mxu1 %v16285_v4  ;;  %10473 = vmatprep.subr.bf16.mxu1 %v19740_v52 }
 0x41a   :  { %v16667_v16 = vadd.f32 %v5519_v0, %v5274_v55  ;;  %11640 = vmatprep.mubr.msk.bf16.mxu1 %vm19823_vm2, %v16292_v29  ;;  %8263 = vmatmul.mubr.bf16.gmra.mxu0 %v16377_v13  ;;  %vm19830_vm2 = vmmov %vm19811_vm1 }
 0x41b   :  { %v5276_v30 = vpop.f32.mrf.mxu1  ;;  %v5529_v17 = vpop.f32.mrf.mxu0  ;;  %11689 = vmatprep.mubr.msk.bf16.mxu0 %vm19824_vm10, %v16379_v38  ;;  %vm19831_vm10 = vmmov %vm19811_vm1 }
 0x41d   :  { %v5277_v15 = vpop.f32.mrf.mxu1  ;;  %v5530_v11 = vpop.f32.mrf.mxu0 }
 0x41e   :  { %v16674_v63 = vadd.f32 %v5522_v40, %v5277_v15 }
 0x41f   :  { %v5279_v62 = vpop.f32.mrf.mxu1  ;;  %v5532_v4 = vpop.f32.mrf.mxu0 }
 0x421   :  { %v5282_v24 = vpop.f32.mrf.mxu1  ;;  %7878 = vmatmul.mubr.bf16.gmra.mxu1 %v16320_v26  ;;  %v16677_v0 = vpop.f32.mrf.mxu0 }
 0x422   :  { %v16679_v36 = vadd.f32 %v5527_v10, %v5282_v24  ;;  %11641 = vmatprep.mubr.msk.bf16.mxu1 %vm19825_vm8, %v16325_v42  ;;  %8271 = vmatmul.mubr.bf16.gmra.mxu0 %v16391_v20  ;;  %v19827_v10 = vld [vmem:[#allocation36_spill] sm:$0xff]  ;;  %v16695_v42 = vld [vmem:[%s18827_s6] ss:$0 sm:$0xff]  ;;  %vm19832_vm8 = vmmov %vm19811_vm1 }
 0x423   :  { %v5284_v29 = vpop.f32.mrf.mxu1  ;;  %v7652_v43 = vpop.f32.mrf.mxu0  ;;  %11690 = vmatprep.mubr.msk.bf16.mxu0 %vm19826_vm13, %v16397_v57  ;;  %v5408_v30 = vadd.f32 %v19827_v10, %v16272_v54  ;;  %v16706_v54 = vld [vmem:[%s18828_s7] ss:$0 sm:$0xff]  ;;  %vm19833_vm13 = vmmov %vm19811_vm1 }
 0x425   :  { %v5285_v40 = vpop.f32.mrf.mxu1  ;;  %v16686_v9 = vpop.f32.mrf.mxu0 }
 0x426   :  { %v16688_v39 = vadd.f32 %v5530_v11, %v5285_v40 }
 0x427   :  { %v5287_v26 = vpop.f32.mrf.mxu1  ;;  %v7655_v55 = vpop.f32.mrf.mxu0 }
 0x429   :  { %v5864_v17 = vpop.f32.mrf.mxu1  ;;  %7886 = vmatmul.mubr.bf16.gmra.mxu1 %v16355_v14  ;;  %v16698_v15 = vpop.f32.mrf.mxu0  ;;  %v19829_v14 = vld [vmem:[#allocation45_spill] sm:$0xff] }
 0x42a   :  { %v5991_v62 = vadd.f32 %v5864_v17, %v5408_v30  ;;  %11642 = vmatprep.mubr.msk.bf16.mxu1 %vm19811_vm1, %v16357_v22  ;;  %8279 = vmatmul.mubr.bf16.gmra.mxu0 %v16411_v8  ;;  %v5411_v24 = vadd.f32 %v19829_v14, %v16295_v48  ;;  %v6099_v22 = vld [vmem:[%s18821_s0] sm:$0xff]  ;;  %v6100_v48 = vld [vmem:[%s18821_s0 + $0x8] sm:$0xff] }
 0x42b   :  { %v5866_v11 = vpop.f32.mrf.mxu1  ;;  %v7660_v4 = vpop.f32.mrf.mxu0  ;;  %11691 = vmatprep.mubr.msk.bf16.mxu0 %vm19828_vm12, %v16413_v61  ;;  %vm19834_vm12 = vmmov %vm19811_vm1 }
 0x42c   :  { %v6029_v29 = vmul.f32 %v16695_v42, %v5991_v62 }
 0x42d   :  { %v5867_v43 = vpop.f32.mrf.mxu1  ;;  %v16716_v40 = vpop.f32.mrf.mxu0 }
 0x42e   :  { %v6067_v26 = vadd.f32 %v16706_v54, %v6029_v29  ;;  %v5992_v55 = vadd.f32 %v5867_v43, %v5411_v24 }
 0x42f   :  { %v5869_v10 = vpop.f32.mrf.mxu1  ;;  %v7663_v30 = vpop.f32.mrf.mxu0 }
 0x430   :  { %v6131_v17 = vadd.f32 %v6099_v22, %v6067_v26  ;;  %v6030_v11 = vmul.f32 %v16695_v42, %v5992_v55  ;;  %v6101_v26 = vld [vmem:[%s18821_s0 + $0x10] sm:$0xff] }
 0x431   :  { %v5872_v62 = vpop.f32.mrf.mxu1  ;;  %7894 = vmatmul.mubr.bf16.gmra.mxu1 %v16377_v13  ;;  %v16724_v4 = vpop.f32.mrf.mxu0 }
 0x432   :  { %6163 = vst.msk [vmem:[%s18829_s8] sm:$0xff] %vm19830_vm2, %v6131_v17  ;;  %v6068_v14 = vadd.f32 %v16706_v54, %v6030_v11  ;;  %v5993_v24 = vadd.f32 %v5872_v62, %v16310_v32  ;;  %11643 = vmatprep.mubr.msk.bf16.mxu1 %vm19831_vm10, %v16379_v38  ;;  %8287 = vmatmul.mubr.bf16.gmra.mxu0 %v16429_v18  ;;  %v6102_v62 = vld [vmem:[%s18821_s0 + $0x18] sm:$0xff]  ;;  %vm19835_vm2 = vmmov %vm19811_vm1 }
 0x433   :  { %v5874_v29 = vpop.f32.mrf.mxu1  ;;  %v7668_v22 = vpop.f32.mrf.mxu0  ;;  %11692 = vmatprep.mubr.msk.bf16.mxu0 %vm19832_vm8, %v16437_v47  ;;  %vm19836_vm10 = vmmov %vm19811_vm1 }
 0x434   :  { %v6132_v13 = vadd.f32 %v6100_v48, %v6068_v14  ;;  %v6031_v43 = vmul.f32 %v16695_v42, %v5993_v24  ;;  %vm19837_vm8 = vmmov %vm19811_vm1 }
 0x435   :  { %v5875_v55 = vpop.f32.mrf.mxu1  ;;  %v16741_v10 = vpop.f32.mrf.mxu0 }
 0x436   :  { %6164 = vst.msk [vmem:[%s18829_s8 + $0x8] sm:$0xff] %vm19833_vm13, %v6132_v13  ;;  %v6069_v32 = vadd.f32 %v16706_v54, %v6031_v43  ;;  %v5994_v38 = vadd.f32 %v5875_v55, %v16328_v56  ;;  %vm19839_vm13 = vmmov %vm19811_vm1 }
 0x437   :  { %v5877_v30 = vpop.f32.mrf.mxu1  ;;  %v7671_v17 = vpop.f32.mrf.mxu0 }
 0x438   :  { %v6133_v11 = vadd.f32 %v6101_v26, %v6069_v32  ;;  %v6032_v48 = vmul.f32 %v16695_v42, %v5994_v38  ;;  %v6103_v26 = vld [vmem:[%s18821_s0 + $0x20] sm:$0xff] }
 0x439   :  { %v5880_v14 = vpop.f32.mrf.mxu1  ;;  %7902 = vmatmul.mubr.bf16.gmra.mxu1 %v16391_v20  ;;  %v16754_v24 = vpop.f32.mrf.mxu0 }
 0x43a   :  { %6165 = vst.msk [vmem:[%s18829_s8 + $0x10] sm:$0xff] %vm19811_vm1, %v6133_v11  ;;  %v6070_v56 = vadd.f32 %v16706_v54, %v6032_v48  ;;  %v5995_v29 = vadd.f32 %v5880_v14, %v16346_v21  ;;  %11644 = vmatprep.mubr.msk.bf16.mxu1 %vm19834_vm12, %v16397_v57  ;;  %8295 = vmatmul.mubr.bf16.gmra.mxu0 %v16452_v6  ;;  %v6104_v48 = vld [vmem:[%s18821_s0 + $0x28] sm:$0xff]  ;;  %vm19840_vm12 = vmmov %vm19811_vm1 }
 0x43b   :  { %v5882_v22 = vpop.f32.mrf.mxu1  ;;  %v7676_v13 = vpop.f32.mrf.mxu0  ;;  %11693 = vmatprep.mubr.msk.bf16.mxu0 %vm19835_vm2, %v16468_v34  ;;  %vm19842_vm2 = vmmov %vm19811_vm1 }
 0x43c   :  { %v6134_v20 = vadd.f32 %v6102_v62, %v6070_v56  ;;  %v6033_v43 = vmul.f32 %v16695_v42, %v5995_v29  ;;  %v19838_v56 = vld [vmem:[#allocation30_spill] sm:$0xff] }
 0x43d   :  { %v5883_v55 = vpop.f32.mrf.mxu1  ;;  %v16771_v32 = vpop.f32.mrf.mxu0 }
 0x43e   :  { %6166 = vst.msk [vmem:[%s18829_s8 + $0x18] sm:$0xff] %vm19836_vm10, %v6134_v20  ;;  %v6071_v21 = vadd.f32 %v16706_v54, %v6033_v43  ;;  %v5996_v57 = vadd.f32 %v5883_v55, %v16359_v58  ;;  %v6105_v43 = vld [vmem:[%s18821_s0 + $0x30] sm:$0xff]  ;;  %vm19844_vm10 = vmmov %vm19811_vm1 }
 0x43f   :  { %v5885_v38 = vpop.f32.mrf.mxu1  ;;  %v7679_v30 = vpop.f32.mrf.mxu0 }
 0x440   :  { %v6135_v17 = vadd.f32 %v6103_v26, %v6071_v21  ;;  %v6034_v11 = vmul.f32 %v16695_v42, %v5996_v57  ;;  %v19841_v21 = vld [vmem:[#allocation24_spill] sm:$0xff] }
 0x441   :  { %v5888_v62 = vpop.f32.mrf.mxu1  ;;  %7910 = vmatmul.mubr.bf16.gmra.mxu1 %v16411_v8  ;;  %v16784_v14 = vpop.f32.mrf.mxu0 }
 0x442   :  { %6167 = vst.msk [vmem:[%s18829_s8 + $0x20] sm:$0xff] %vm19837_vm8, %v6135_v17  ;;  %v6072_v58 = vadd.f32 %v16706_v54, %v6034_v11  ;;  %v5997_v29 = vadd.f32 %v5888_v62, %v19838_v56  ;;  %11645 = vmatprep.mubr.msk.bf16.mxu1 %vm19839_vm13, %v16413_v61  ;;  %8303 = vmatmul.mubr.bf16.gmra.mxu0 %v16470_v53  ;;  %vm19845_vm8 = vmmov %vm19811_vm1 }
 0x443   :  { %v5890_v22 = vpop.f32.mrf.mxu1  ;;  %v7684_v13 = vpop.f32.mrf.mxu0  ;;  %11694 = vmatprep.mubr.msk.bf16.mxu0 %vm19811_vm1, %v16476_v37  ;;  %vm19846_vm13 = vmmov %vm19811_vm1 }
 0x444   :  { %v6136_v8 = vadd.f32 %v6104_v48, %v6072_v58  ;;  %v6035_v20 = vmul.f32 %v16695_v42, %v5997_v29  ;;  %v6106_v48 = vld [vmem:[%s18821_s0 + $0x38] sm:$0xff]  ;;  %v19843_v29 = vld [vmem:[#allocation25_spill] sm:$0xff] }
 0x445   :  { %v5891_v26 = vpop.f32.mrf.mxu1  ;;  %v16801_v55 = vpop.f32.mrf.mxu0 }
 0x446   :  { %6168 = vst.msk [vmem:[%s18829_s8 + $0x28] sm:$0xff] %vm19840_vm12, %v6136_v8  ;;  %v6073_v61 = vadd.f32 %v16706_v54, %v6035_v20  ;;  %v5998_v57 = vadd.f32 %v5891_v26, %v19841_v21  ;;  %vm19847_vm12 = vmmov %vm19811_vm1 }
 0x447   :  { %v5893_v38 = vpop.f32.mrf.mxu1  ;;  %v7687_v30 = vpop.f32.mrf.mxu0 }
 0x448   :  { %v6137_v17 = vadd.f32 %v6105_v43, %v6073_v61  ;;  %v6036_v11 = vmul.f32 %v16695_v42, %v5998_v57  ;;  %v6107_v43 = vld [vmem:[%s18821_s0 + $0x40] sm:$0xff] }
 0x449   :  { %v5896_v62 = vpop.f32.mrf.mxu1  ;;  %7918 = vmatmul.mubr.bf16.gmra.mxu1 %v16429_v18  ;;  %v16814_v58 = vpop.f32.mrf.mxu0  ;;  %v12341_v38 = vld [vmem:[#allocation2 + $0x11c] ss:$8 sps:$4 sm:$0xff]  }
 0x44a   :  { %6169 = vst.msk [vmem:[%s18829_s8 + $0x30] sm:$0xff] %vm19842_vm2, %v6137_v17  ;;  %v6074_v56 = vadd.f32 %v16706_v54, %v6036_v11  ;;  %v5999_v22 = vadd.f32 %v5896_v62, %v19843_v29  ;;  %11646 = vmatprep.mubr.msk.bf16.mxu1 %vm19844_vm10, %v16437_v47  ;;  %8311 = vmatmul.mubr.bf16.gmra.mxu0 %v16483_v7  ;;  %v6108_v11 = vld [vmem:[%s18821_s0 + $0x48] sm:$0xff]  ;;  %vm19848_vm2 = vmmov %vm19811_vm1 }
 0x44b   :  { %v5898_v13 = vpop.f32.mrf.mxu1  ;;  %v7692_v8 = vpop.f32.mrf.mxu0  ;;  %11695 = vmatprep.mubr.msk.bf16.mxu0 %vm19845_vm8, %v16499_v3  ;;  %vm19849_vm10 = vmmov %vm19811_vm1 }
 0x44c   :  { %v6138_v18 = vadd.f32 %v6106_v48, %v6074_v56  ;;  %v6037_v20 = vmul.f32 %v16695_v42, %v5999_v22  ;;  %v7980_v13 = vld [vmem:[#allocation2 + $0x118] sm:$0xff]  ;;  %vm19850_vm8 = vmmov %vm19811_vm1 }
 0x44d   :  { %v5899_v26 = vpop.f32.mrf.mxu1  ;;  %v16831_v61 = vpop.f32.mrf.mxu0 }
 0x44e   :  { %6170 = vst.msk [vmem:[%s18829_s8 + $0x38] sm:$0xff] %vm19846_vm13, %v6138_v18  ;;  %v6075_v47 = vadd.f32 %v16706_v54, %v6037_v20  ;;  %v6000_v21 = vadd.f32 %v5899_v26, %v16415_v49  ;;  %v6109_v20 = vld [vmem:[%s18821_s0 + $0x50] sm:$0xff]  ;;  %vm19851_vm13 = vmmov %vm19811_vm1 }
 0x44f   :  { %v5901_v3 = vpop.f32.mrf.mxu1  ;;  %v7695_v57 = vpop.f32.mrf.mxu0 }
 0x450   :  { %v6139_v30 = vadd.f32 %v6107_v43, %v6075_v47  ;;  %v6038_v17 = vmul.f32 %v16695_v42, %v6000_v21 }
 0x451   :  { %v5904_v48 = vpop.f32.mrf.mxu1  ;;  %7926 = vmatmul.mubr.bf16.gmra.mxu1 %v16452_v6  ;;  %v16844_v62 = vpop.f32.mrf.mxu0  ;;  %v7981_v6 = vld [vmem:[#allocation2 + $0x120] sm:$0xff] }
 0x452   :  { %6171 = vst.msk [vmem:[%s18829_s8 + $0x40] sm:$0xff] %vm19811_vm1, %v6139_v30  ;;  %v6076_v49 = vadd.f32 %v16706_v54, %v6038_v17  ;;  %v6001_v56 = vadd.f32 %v5904_v48, %v16431_v28  ;;  %11647 = vmatprep.mubr.msk.bf16.mxu1 %vm19847_vm12, %v16468_v34  ;;  %8319 = vmatmul.mubr.bf16.gmra.mxu0 %v16501_v50  ;;  %vm19852_vm12 = vmmov %vm19811_vm1 }
 0x453   :  { %v5906_v29 = vpop.f32.mrf.mxu1  ;;  %v7700_v22 = vpop.f32.mrf.mxu0  ;;  %11696 = vmatprep.mubr.msk.bf16.mxu0 %vm19848_vm2, %v12341_v38  ;;  %v11679_v26 = vcombine.low %v7980_v13, %v7981_v6  ;;  %v6110_v38 = vld [vmem:[%s18821_s0 + $0x58] sm:$0xff]  ;;  %vm19853_vm2 = vmmov %vm19811_vm1 }
 0x454   :  { %v6140_v8 = vadd.f32 %v6108_v11, %v6076_v49  ;;  %v6039_v18 = vmul.f32 %v16695_v42, %v6001_v56  ;;  %v6111_v29 = vld [vmem:[%s18821_s0 + $0x60] sm:$0xff] }
 0x455   :  { %v5907_v43 = vpop.f32.mrf.mxu1  ;;  %v16860_v28 = vpop.f32.mrf.mxu0 }
 0x456   :  { %6172 = vst.msk [vmem:[%s18829_s8 + $0x48] sm:$0xff] %vm19849_vm10, %v6140_v8  ;;  %v6077_v34 = vadd.f32 %v16706_v54, %v6039_v18  ;;  %v6002_v50 = vadd.f32 %v5907_v43, %v16439_v59  ;;  %v6112_v43 = vld [vmem:[%s18821_s0 + $0x68] sm:$0xff]  ;;  %vm19854_vm10 = vmmov %vm19811_vm1 }
 0x457   :  { %v5909_v47 = vpop.f32.mrf.mxu1  ;;  %v7703_v21 = vpop.f32.mrf.mxu0 }
 0x458   :  { %v6141_v3 = vadd.f32 %v6109_v20, %v6077_v34  ;;  %v6040_v57 = vmul.f32 %v16695_v42, %v6002_v50 }
 0x459   :  { %v5912_v30 = vpop.f32.mrf.mxu1  ;;  %7934 = vmatmul.mubr.bf16.gmra.mxu1 %v16470_v53  ;;  %v16873_v17 = vpop.f32.mrf.mxu0 }
 0x45a   :  { %6173 = vst.msk [vmem:[%s18829_s8 + $0x50] sm:$0xff] %vm19850_vm8, %v6141_v3  ;;  %v6078_v59 = vadd.f32 %v16706_v54, %v6040_v57  ;;  %v6003_v11 = vadd.f32 %v5912_v30, %v16458_v12  ;;  %11648 = vmatprep.mubr.msk.bf16.mxu1 %vm19851_vm13, %v16476_v37  ;;  %8327 = vmatmul.mubr.bf16.gmra.mxu0 %v11679_v26  ;;  %vm19855_vm8 = vmmov %vm19811_vm1 }
 0x45b   :  { %v5914_v48 = vpop.f32.mrf.mxu1  ;;  %v7708_v49 = vpop.f32.mrf.mxu0  ;;  %vm19856_vm13 = vmmov %vm19811_vm1 }
 0x45c   :  { %v6142_v56 = vadd.f32 %v6110_v38, %v6078_v59  ;;  %v6041_v53 = vmul.f32 %v16695_v42, %v6003_v11 }
 0x45d   :  { %v5915_v22 = vpop.f32.mrf.mxu1  ;;  %v16887_v13 = vpop.f32.mrf.mxu0 }
 0x45e   :  { %6174 = vst.msk [vmem:[%s18829_s8 + $0x58] sm:$0xff] %vm19811_vm1, %v6142_v56  ;;  %v6079_v12 = vadd.f32 %v16706_v54, %v6041_v53  ;;  %v6004_v37 = vadd.f32 %v5915_v22, %v16466_v46  ;;  %v6114_v53 = vld [vmem:[%s18821_s0 + $0x78] sm:$0xff] }
 0x45f   :  { %v5917_v6 = vpop.f32.mrf.mxu1  ;;  %v7711_v8 = vpop.f32.mrf.mxu0 }
 0x460   :  { %v6143_v18 = vadd.f32 %v6111_v29, %v6079_v12  ;;  %v6042_v20 = vmul.f32 %v16695_v42, %v6004_v37 }
 0x461   :  { %v5920_v34 = vpop.f32.mrf.mxu1  ;;  %7942 = vmatmul.mubr.bf16.gmra.mxu1 %v16483_v7  ;;  %v16900_v50 = vpop.f32.mrf.mxu0  ;;  %v6113_v7 = vld [vmem:[%s18821_s0 + $0x70] sm:$0xff] }
 0x462   :  { %6175 = vst.msk [vmem:[%s18829_s8 + $0x60] sm:$0xff] %vm19852_vm12, %v6143_v18  ;;  %v6080_v46 = vadd.f32 %v16706_v54, %v6042_v20  ;;  %v6005_v26 = vadd.f32 %v5920_v34, %v16481_v19  ;;  %v6115_v20 = vld [vmem:[%s18821_s0 + $0x80] sm:$0xff]  ;;  %vm19857_vm12 = vmmov %vm19811_vm1 }
 0x463   :  { %v5922_v47 = vpop.f32.mrf.mxu1  ;;  %v7716_v21 = vpop.f32.mrf.mxu0 }
 0x464   :  { %v6144_v3 = vadd.f32 %v6112_v43, %v6080_v46  ;;  %v6043_v57 = vmul.f32 %v16695_v42, %v6005_v26 }
 0x465   :  { %v5923_v38 = vpop.f32.mrf.mxu1  ;;  %v16912_v30 = vpop.f32.mrf.mxu0 }
 0x466   :  { %6176 = vst.msk [vmem:[%s18829_s8 + $0x68] sm:$0xff] %vm19853_vm2, %v6144_v3  ;;  %v6081_v59 = vadd.f32 %v16706_v54, %v6043_v57  ;;  %v6006_v19 = vadd.f32 %v5923_v38, %v16489_v31  ;;  %v6116_v57 = vld [vmem:[%s18821_s0 + $0x88] sm:$0xff]  ;;  %vm19858_vm2 = vmmov %vm19811_vm1 }
 0x467   :  { %v5925_v11 = vpop.f32.mrf.mxu1  ;;  %v7719_v48 = vpop.f32.mrf.mxu0 }
 0x468   :  { %v6145_v49 = vadd.f32 %v6113_v7, %v6081_v59  ;;  %v6044_v56 = vmul.f32 %v16695_v42, %v6006_v19 }
 0x469   :  { %v5928_v29 = vpop.f32.mrf.mxu1  ;;  %v16924_v22 = vpop.f32.mrf.mxu0 }
 0x46a   :  { %6177 = vst.msk [vmem:[%s18829_s8 + $0x70] sm:$0xff] %vm19854_vm10, %v6145_v49  ;;  %v6082_v12 = vadd.f32 %v16706_v54, %v6044_v56  ;;  %v6007_v31 = vadd.f32 %v5928_v29, %v16497_v23  ;;  %v6117_v56 = vld [vmem:[%s18821_s0 + $0x90] sm:$0xff]  ;;  %vm19859_vm10 = vmmov %vm19811_vm1 }
 0x46b   :  { %v5930_v37 = vpop.f32.mrf.mxu1  ;;  %v7724_v6 = vpop.f32.mrf.mxu0 }
 0x46c   :  { %v6146_v8 = vadd.f32 %v6114_v53, %v6082_v12  ;;  %v6045_v18 = vmul.f32 %v16695_v42, %v6007_v31 }
 0x46d   :  { %v5931_v43 = vpop.f32.mrf.mxu1  ;;  %v16936_v34 = vpop.f32.mrf.mxu0 }
 0x46e   :  { %6178 = vst.msk [vmem:[%s18829_s8 + $0x78] sm:$0xff] %vm19855_vm8, %v6146_v8  ;;  %v6083_v46 = vadd.f32 %v16706_v54, %v6045_v18  ;;  %v6008_v23 = vadd.f32 %v5931_v43, %v16508_v25  ;;  %v6118_v18 = vld [vmem:[%s18821_s0 + $0x98] sm:$0xff]  ;;  %vm19860_vm8 = vmmov %vm19811_vm1 }
 0x46f   :  { %v5933_v26 = vpop.f32.mrf.mxu1  ;;  %v7727_v47 = vpop.f32.mrf.mxu0 }
 0x470   :  { %v6147_v21 = vadd.f32 %v6115_v20, %v6083_v46  ;;  %v6046_v3 = vmul.f32 %v16695_v42, %v6008_v23 }
 0x471   :  { %v5936_v7 = vpop.f32.mrf.mxu1  ;;  %v16948_v38 = vpop.f32.mrf.mxu0 }
 0x472   :  { %6179 = vst.msk [vmem:[%s18829_s8 + $0x80] sm:$0xff] %vm19856_vm13, %v6147_v21  ;;  %v6084_v59 = vadd.f32 %v16706_v54, %v6046_v3  ;;  %v6009_v25 = vadd.f32 %v5936_v7, %v16512_v45  ;;  %v6119_v3 = vld [vmem:[%s18821_s0 + $0xa0] sm:$0xff]  ;;  %vm19861_vm13 = vmmov %vm19811_vm1 }
 0x473   :  { %v5938_v19 = vpop.f32.mrf.mxu1  ;;  %v7732_v11 = vpop.f32.mrf.mxu0 }
 0x474   :  { %v6148_v48 = vadd.f32 %v6116_v57, %v6084_v59  ;;  %v6047_v49 = vmul.f32 %v16695_v42, %v6009_v25 }
 0x475   :  { %v5939_v53 = vpop.f32.mrf.mxu1  ;;  %v16960_v29 = vpop.f32.mrf.mxu0 }
 0x476   :  { %6180 = vst.msk [vmem:[%s18829_s8 + $0x88] sm:$0xff] %vm19811_vm1, %v6148_v48  ;;  %v6085_v12 = vadd.f32 %v16706_v54, %v6047_v49  ;;  %v6010_v45 = vadd.f32 %v5939_v53, %v16522_v44  ;;  %v6120_v49 = vld [vmem:[%s18821_s0 + $0xa8] sm:$0xff] }
 0x477   :  { %v5941_v31 = vpop.f32.mrf.mxu1  ;;  %v7735_v37 = vpop.f32.mrf.mxu0 }
 0x478   :  { %v6149_v6 = vadd.f32 %v6117_v56, %v6085_v12  ;;  %v6048_v8 = vmul.f32 %v16695_v42, %v6010_v45 }
 0x479   :  { %v5944_v20 = vpop.f32.mrf.mxu1  ;;  %v16972_v43 = vpop.f32.mrf.mxu0 }
 0x47a   :  { %6181 = vst.msk [vmem:[%s18829_s8 + $0x90] sm:$0xff] %vm19857_vm12, %v6149_v6  ;;  %v6086_v46 = vadd.f32 %v16706_v54, %v6048_v8  ;;  %v6011_v44 = vadd.f32 %v5944_v20, %v16536_v2  ;;  %v6121_v8 = vld [vmem:[%s18821_s0 + $0xb0] sm:$0xff]  ;;  %vm19862_vm12 = vmmov %vm19811_vm1 }
 0x47b   :  { %v5946_v23 = vpop.f32.mrf.mxu1  ;;  %v7740_v26 = vpop.f32.mrf.mxu0 }
 0x47c   :  { %v6150_v47 = vadd.f32 %v6118_v18, %v6086_v46  ;;  %v6049_v21 = vmul.f32 %v16695_v42, %v6011_v44 }
 0x47d   :  { %v5947_v57 = vpop.f32.mrf.mxu1  ;;  %v16984_v7 = vpop.f32.mrf.mxu0 }
 0x47e   :  { %6182 = vst.msk [vmem:[%s18829_s8 + $0x98] sm:$0xff] %vm19858_vm2, %v6150_v47  ;;  %v6087_v59 = vadd.f32 %v16706_v54, %v6049_v21  ;;  %v6012_v2 = vadd.f32 %v5947_v57, %v16546_v1  ;;  %v6122_v21 = vld [vmem:[%s18821_s0 + $0xb8] sm:$0xff]  ;;  %vm19863_vm2 = vmmov %vm19811_vm1 }
 0x47f   :  { %v5949_v25 = vpop.f32.mrf.mxu1  ;;  %v7743_v19 = vpop.f32.mrf.mxu0 }
 0x480   :  { %v6151_v11 = vadd.f32 %v6119_v3, %v6087_v59  ;;  %v6050_v48 = vmul.f32 %v16695_v42, %v6012_v2 }
 0x481   :  { %v5952_v56 = vpop.f32.mrf.mxu1  ;;  %v16996_v53 = vpop.f32.mrf.mxu0 }
 0x482   :  { %6183 = vst.msk [vmem:[%s18829_s8 + $0xa0] sm:$0xff] %vm19859_vm10, %v6151_v11  ;;  %v6088_v12 = vadd.f32 %v16706_v54, %v6050_v48  ;;  %v6013_v1 = vadd.f32 %v5952_v56, %v16567_v27  ;;  %v6123_v48 = vld [vmem:[%s18821_s0 + $0xc0] sm:$0xff]  ;;  %vm19864_vm10 = vmmov %vm19811_vm1 }
 0x483   :  { %v5954_v45 = vpop.f32.mrf.mxu1  ;;  %v7748_v31 = vpop.f32.mrf.mxu0 }
 0x484   :  { %v6152_v37 = vadd.f32 %v6120_v49, %v6088_v12  ;;  %v6051_v6 = vmul.f32 %v16695_v42, %v6013_v1 }
 0x485   :  { %v5955_v18 = vpop.f32.mrf.mxu1  ;;  %v17008_v20 = vpop.f32.mrf.mxu0 }
 0x486   :  { %6184 = vst.msk [vmem:[%s18829_s8 + $0xa8] sm:$0xff] %vm19860_vm8, %v6152_v37  ;;  %v6089_v46 = vadd.f32 %v16706_v54, %v6051_v6  ;;  %v6014_v27 = vadd.f32 %v5955_v18, %v16581_v60  ;;  %v6124_v6 = vld [vmem:[%s18821_s0 + $0xc8] sm:$0xff]  ;;  %vm19865_vm8 = vmmov %vm19811_vm1 }
 0x487   :  { %v5957_v44 = vpop.f32.mrf.mxu1  ;;  %v7751_v23 = vpop.f32.mrf.mxu0 }
 0x488   :  { %v6153_v26 = vadd.f32 %v6121_v8, %v6089_v46  ;;  %v6052_v47 = vmul.f32 %v16695_v42, %v6014_v27 }
 0x489   :  { %v5960_v3 = vpop.f32.mrf.mxu1  ;;  %v17020_v57 = vpop.f32.mrf.mxu0 }
 0x48a   :  { %6185 = vst.msk [vmem:[%s18829_s8 + $0xb0] sm:$0xff] %vm19861_vm13, %v6153_v26  ;;  %v6090_v59 = vadd.f32 %v16706_v54, %v6052_v47  ;;  %v6015_v60 = vadd.f32 %v5960_v3, %v16604_v51  ;;  %v6125_v47 = vld [vmem:[%s18821_s0 + $0xd0] sm:$0xff]  ;;  %vm19866_vm13 = vmmov %vm19811_vm1 }
 0x48b   :  { %v5962_v2 = vpop.f32.mrf.mxu1  ;;  %v7756_v25 = vpop.f32.mrf.mxu0 }
 0x48c   :  { %v6154_v19 = vadd.f32 %v6122_v21, %v6090_v59  ;;  %v6053_v11 = vmul.f32 %v16695_v42, %v6015_v60 }
 0x48d   :  { %v5963_v49 = vpop.f32.mrf.mxu1  ;;  %v17032_v56 = vpop.f32.mrf.mxu0 }
 0x48e   :  { %6186 = vst.msk [vmem:[%s18829_s8 + $0xb8] sm:$0xff] %vm19811_vm1, %v6154_v19  ;;  %v6091_v12 = vadd.f32 %v16706_v54, %v6053_v11  ;;  %v6016_v51 = vadd.f32 %v5963_v49, %v16617_v33  ;;  %v6126_v11 = vld [vmem:[%s18821_s0 + $0xd8] sm:$0xff] }
 0x48f   :  { %v5965_v1 = vpop.f32.mrf.mxu1  ;;  %v7759_v45 = vpop.f32.mrf.mxu0 }
 0x490   :  { %v6155_v31 = vadd.f32 %v6123_v48, %v6091_v12  ;;  %v6054_v37 = vmul.f32 %v16695_v42, %v6016_v51 }
 0x491   :  { %v5968_v8 = vpop.f32.mrf.mxu1  ;;  %v17044_v18 = vpop.f32.mrf.mxu0 }
 0x492   :  { %6187 = vst.msk [vmem:[%s18829_s8 + $0xc0] sm:$0xff] %vm19862_vm12, %v6155_v31  ;;  %v6092_v46 = vadd.f32 %v16706_v54, %v6054_v37  ;;  %v6017_v33 = vadd.f32 %v5968_v8, %v16636_v41  ;;  %v6127_v37 = vld [vmem:[%s18821_s0 + $0xe0] sm:$0xff]  ;;  %vm19867_vm12 = vmmov %vm19811_vm1 }
 0x493   :  { %v5970_v27 = vpop.f32.mrf.mxu1  ;;  %v7764_v44 = vpop.f32.mrf.mxu0 }
 0x494   :  { %v6156_v23 = vadd.f32 %v6124_v6, %v6092_v46  ;;  %v6055_v26 = vmul.f32 %v16695_v42, %v6017_v33 }
 0x495   :  { %v5971_v21 = vpop.f32.mrf.mxu1  ;;  %v17056_v3 = vpop.f32.mrf.mxu0 }
 0x496   :  { %6188 = vst.msk [vmem:[%s18829_s8 + $0xc8] sm:$0xff] %vm19863_vm2, %v6156_v23  ;;  %v6093_v59 = vadd.f32 %v16706_v54, %v6055_v26  ;;  %v6018_v41 = vadd.f32 %v5971_v21, %v16646_v5  ;;  %v6128_v26 = vld [vmem:[%s18821_s0 + $0xe8] sm:$0xff]  ;;  %vm19868_vm2 = vmmov %vm19811_vm1 }
 0x497   :  { %v5973_v60 = vpop.f32.mrf.mxu1  ;;  %v7767_v2 = vpop.f32.mrf.mxu0 }
 0x498   :  { %v6157_v25 = vadd.f32 %v6125_v47, %v6093_v59  ;;  %v6056_v19 = vmul.f32 %v16695_v42, %v6018_v41 }
 0x499   :  { %v5976_v48 = vpop.f32.mrf.mxu1 }
 0x49a   :  { %6189 = vst.msk [vmem:[%s18829_s8 + $0xd0] sm:$0xff] %vm19864_vm10, %v6157_v25  ;;  %v6094_v49 = vadd.f32 %v16706_v54, %v6056_v19  ;;  %v6019_v12 = vadd.f32 %v5976_v48, %v16667_v16  ;;  %v17074_v5 = vpop.f32.mrf.mxu0  ;;  %v6129_v19 = vld [vmem:[%s18821_s0 + $0xf0] sm:$0xff] }
 0x49b   :  { %v5978_v51 = vpop.f32.mrf.mxu1 }
 0x49c   :  { %v6158_v1 = vadd.f32 %v6126_v11, %v6094_v49  ;;  %v6057_v45 = vmul.f32 %v16695_v42, %v6019_v12  ;;  %v7772_v31 = vpop.f32.mrf.mxu0 }
 0x49d   :  { %v5979_v6 = vpop.f32.mrf.mxu1  ;;  %v6130_v31 = vld [vmem:[%s18821_s0 + $0xf8] sm:$0xff] }
 0x49e   :  { %6190 = vst.msk [vmem:[%s18829_s8 + $0xd8] sm:$0xff] %vm19865_vm8, %v6158_v1  ;;  %v6095_v8 = vadd.f32 %v16706_v54, %v6057_v45  ;;  %v6020_v16 = vadd.f32 %v5979_v6, %v16674_v63  ;;  %v17086_v46 = vpop.f32.mrf.mxu0 }
 0x49f   :  { %v5981_v33 = vpop.f32.mrf.mxu1 }
 0x4a0   :  { %v6159_v27 = vadd.f32 %v6127_v37, %v6095_v8  ;;  %v6058_v44 = vmul.f32 %v16695_v42, %v6020_v16  ;;  %v7775_v23 = vpop.f32.mrf.mxu0 }
 0x4a1   :  { %v5984_v47 = vpop.f32.mrf.mxu1  ;;  %v17125_v23 = vld [vmem:[%s18824_s2] ss:$0 sm:$0xff] }
 0x4a2   :  { %6191 = vst.msk [vmem:[%s18829_s8 + $0xe0] sm:$0xff] %vm19866_vm13, %v6159_v27  ;;  %v6096_v21 = vadd.f32 %v16706_v54, %v6058_v44  ;;  %v6021_v63 = vadd.f32 %v5984_v47, %v16679_v36  ;;  %v8208_v59 = vpop.f32.mrf.mxu0 }
 0x4a3   :  { %v5986_v41 = vpop.f32.mrf.mxu1 }
 0x4a4   :  { %v6160_v60 = vadd.f32 %v6128_v26, %v6096_v21  ;;  %v6059_v2 = vmul.f32 %v16695_v42, %v6021_v63  ;;  %v8210_v25 = vpop.f32.mrf.mxu0  ;;  %v17132_v21 = vld [vmem:[%s18825_s3] ss:$0 sm:$0xff] }
 0x4a5   :  { %v5987_v11 = vpop.f32.mrf.mxu1 }
 0x4a6   :  { %6192 = vst.msk [vmem:[%s18829_s8 + $0xe8] sm:$0xff] %vm19811_vm1, %v6160_v60  ;;  %v6097_v48 = vadd.f32 %v16706_v54, %v6059_v2  ;;  %v6022_v36 = vadd.f32 %v5987_v11, %v16688_v39  ;;  %v8211_v49 = vpop.f32.mrf.mxu0 }
 0x4a7   :  { %v5989_v12 = vpop.f32.mrf.mxu1 }
 0x4a8   :  { %v6161_v51 = vadd.f32 %v6129_v19, %v6097_v48  ;;  %v6060_v1 = vmul.f32 %v16695_v42, %v6022_v36  ;;  %v8213_v45 = vpop.f32.mrf.mxu0  ;;  %v19869_v19 = vld [vmem:[#allocation35_spill] sm:$0xff] }
 0x4a9   :  { %v7823_v37 = vpop.f32.mrf.mxu1 }
 0x4aa   :  { %6193 = vst.msk [vmem:[%s18829_s8 + $0xf0] sm:$0xff] %vm19867_vm12, %v6161_v51  ;;  %v6098_v6 = vadd.f32 %v16706_v54, %v6060_v1  ;;  %v7824_v39 = vadd.f32 %v7823_v37, %v16677_v0  ;;  %v8216_v8 = vpop.f32.mrf.mxu0 }
 0x4ab   :  { %v7825_v16 = vpop.f32.mrf.mxu1 }
 0x4ac   :  { %v6162_v33 = vadd.f32 %v6130_v31, %v6098_v6  ;;  %v8335_v27 = vadd.f32 %v8208_v59, %v7824_v39  ;;  %v8218_v42 = vpop.f32.mrf.mxu0 }
 0x4ad   :  { %v7826_v44 = vpop.f32.mrf.mxu1 }
 0x4ae   :  { %6194 = vst.msk [vmem:[%s18829_s8 + $0xf8] sm:$0xff] %vm19868_vm2, %v6162_v33  ;;  %v8367_v54 = vmul.f32 %v17125_v23, %v8335_v27  ;;  %v7827_v0 = vadd.f32 %v7826_v44, %v16686_v9  ;;  %v8219_v26 = vpop.f32.mrf.mxu0  ;;  %vm19875_vm2 = vcmask 519168  }
 0x4af   :  { %v7828_v47 = vpop.f32.mrf.mxu1 }
 0x4b0   :  { %v8399_v63 = vadd.f32 %v17132_v21, %v8367_v54  ;;  %v8336_v59 = vadd.f32 %v8211_v49, %v7827_v0  ;;  %v8221_v41 = vpop.f32.mrf.mxu0 }
 0x4b1   :  { %v7831_v60 = vpop.f32.mrf.mxu1 }
 0x4b2   :  { %v8368_v2 = vmul.f32 %v17125_v23, %v8336_v59  ;;  %v7832_v25 = vadd.f32 %v7831_v60, %v16698_v15  ;;  %vm8431_vm10 = vcmp.ge.f32.partialorder %v8399_v63, 0.0  ;;  %v8463_v11 = vmul.f32 %v8399_v63, %v19869_v19  ;;  %v8224_v9 = vpop.f32.mrf.mxu0 }
 0x4b3   :  { %v7833_v48 = vpop.f32.mrf.mxu1 }
 0x4b4   :  { %v8400_v36 = vadd.f32 %v17132_v21, %v8368_v2  ;;  %v8337_v12 = vadd.f32 %v8216_v8, %v7832_v25  ;;  %v8495_v51 = vsel %vm8431_vm10, %v8399_v63, %v8463_v11  ;;  %v8226_v1 = vpop.f32.mrf.mxu0 }
 0x4b5   :  { %v7834_v45 = vpop.f32.mrf.mxu1  ;;  %v12067_v31 = vpack.c.bf16 %v8495_v51, %v8495_v51 }
 0x4b6   :  { %v8369_v49 = vmul.f32 %v17125_v23, %v8337_v12  ;;  %v7835_v37 = vadd.f32 %v7834_v45, %v16716_v40  ;;  %vm8432_vm8 = vcmp.ge.f32.partialorder %v8400_v36, 0.0  ;;  %v8464_v6 = vmul.f32 %v8400_v36, %v19869_v19  ;;  %v8227_v15 = vpop.f32.mrf.mxu0 }
 0x4b7   :  { %v7836_v39 = vpop.f32.mrf.mxu1  ;;  %8623 = vrot.lane.b32.xlu0 %v12067_v31, %s12468_s13 }
 0x4b8   :  { %v8401_v16 = vadd.f32 %v17132_v21, %v8369_v49  ;;  %v8338_v33 = vadd.f32 %v8219_v26, %v7835_v37  ;;  %v8496_v27 = vsel %vm8432_vm8, %v8400_v36, %v8464_v6  ;;  %v8229_v8 = vpop.f32.mrf.mxu0 }
 0x4b9   :  { %v7839_v42 = vpop.f32.mrf.mxu1  ;;  %v12068_v44 = vpack.c.bf16 %v8496_v27, %v8496_v27  ;;  %v17144_v54 = vpack.c.bf16 %v8496_v27, %v8495_v51 }
 0x4ba   :  { %v8370_v0 = vmul.f32 %v17125_v23, %v8338_v33  ;;  %v7840_v40 = vadd.f32 %v7839_v42, %v16724_v4  ;;  %v8232_v47 = vpop.f32.mrf.mxu0  ;;  %v8465_v26 = vmul.f32 %v8401_v16, %v19869_v19  ;;  %vm8433_vm13 = vcmp.ge.f32.partialorder %v8401_v16, 0.0 }
 0x4bb   :  { %v7841_v63 = vpop.f32.mrf.mxu1  ;;  %8625 = vrot.lane.b32.xlu1 %v12068_v44, %s12468_s13  ;;  %v9204_v41 = vsel %vm12619_vm14, %v17144_v54, 0 }
 0x4bc   :  { %v8339_v60 = vadd.f32 %v8224_v9, %v7840_v40  ;;  %v8234_v2 = vpop.f32.mrf.mxu0  ;;  %v8402_v25 = vadd.f32 %v17132_v21, %v8370_v0  ;;  %v11761_v11 = vcombine.low %v9204_v41, %v9204_v41  ;;  %v11762_v48 = vcombine.high %v9204_v41, %v9204_v41  ;;  %v9652_v0 = vld [vmem:[#allocation3 + $0x14] sm:$0x8] }
 0x4bd   :  { %v7842_v36 = vpop.f32.mrf.mxu1  ;;  %v8497_v37 = vsel %vm8433_vm13, %v8401_v16, %v8465_v26  ;;  %v19871_v16 = vld [vmem:[#allocation7_spill] sm:$0xff]  ;;  %vm19878_vm13 = vcmask 523264  }
 0x4be   :  { %v8371_v4 = vmul.f32 %v17125_v23, %v8339_v60  ;;  %v17155_v12 = vpop.f32.mrf.mxu0  ;;  %v9301_v51 = vshll.u32 %v11761_v11, 16  ;;  %v9304_v31 = vshrl.u32 %v11761_v11, 16  ;;  %v9310_v49 = vshll.u32 %v11762_v48, 16 }
 0x4bf   :  { %v7844_v1 = vpop.f32.mrf.mxu1  ;;  %v8466_v9 = vmul.f32 %v8402_v25, %v19869_v19  ;;  %v9314_v33 = vshrl.u32 %v11762_v48, 16  ;;  %v7843_v27 = vadd.f32 %v7842_v36, %v16741_v10  ;;  %vm8434_vm14 = vcmp.ge.f32.partialorder %v8402_v25, 0.0 }
 0x4c0   :  { %v8403_v45 = vadd.f32 %v17132_v21, %v8371_v4  ;;  %v8237_v6 = vpop.f32.mrf.mxu0  ;;  %v9303_v39 = vrot.slane %v9301_v51, 5  ;;  %v9306_v40 = vrot.slane %v9304_v31, 4  ;;  %v9312_v63 = vrot.slane %v9310_v49, 5 }
 0x4c1   :  { %v7847_v8 = vpop.f32.mrf.mxu1  ;;  %v9316_v41 = vrot.slane %v9314_v33, 4  ;;  %vm19872_vm12 = vnez %v19871_v16  ;;  %v8340_v60 = vadd.f32 %v8227_v15, %v7843_v27  ;;  %v12069_v2 = vpack.c.bf16 %v8497_v37, %v8497_v37 }
 0x4c2   :  { %vm8435_vm1 = vcmp.ge.f32.partialorder %v8403_v45, 0.0  ;;  %v8467_v42 = vmul.f32 %v8403_v45, %v19869_v19  ;;  %v17161_v44 = vpop.f32.mrf.mxu0  ;;  %v9653_v26 = vsel %vm19872_vm12, %v9303_v39, %v9652_v0  ;;  %v9307_v48 = vor.u32 %v9306_v40, %v9303_v39 }
 0x4c3   :  { %v7849_v59 = vpop.f32.mrf.mxu1  ;;  %9654 = vst [vmem:[#allocation3 + $0x14] sm:$0x8] %v9653_v26  ;;  %v7848_v10 = vadd.f32 %v7847_v8, %v16754_v24  ;;  %v8498_v36 = vsel %vm8434_vm14, %v8402_v25, %v8466_v9  ;;  %v8372_v1 = vmul.f32 %v17125_v23, %v8340_v60  ;;  %8627 = vrot.lane.b32.xlu0 %v12069_v2, %s12468_s13  ;;  %vm19879_vm14 = vmmov %vm19875_vm2 }
 0x4c4   :  { %v8242_v11 = vpop.f32.mrf.mxu0  ;;  %v17168_v51 = vsel %vm8435_vm1, %v8403_v45, %v8467_v42  ;;  %v12070_v31 = vpack.c.bf16 %v8498_v36, %v8498_v36  ;;  %v17172_v49 = vpack.c.bf16 %v8498_v36, %v8497_v37  ;;  %v9308_v6 = vrot.slane %v9307_v48, 4  ;;  %vm19880_vm1 = vmmov %vm19875_vm2 }
 0x4c5   :  { %v7850_v4 = vpop.f32.mrf.mxu1  ;;  %v8341_v39 = vadd.f32 %v8232_v47, %v7848_v10  ;;  %v12071_v24 = vpack.c.bf16 %v17168_v51, %v17168_v51  ;;  %v9317_v37 = vor.u32 %v9316_v41, %v9312_v63  ;;  %v8404_v42 = vadd.f32 %v17132_v21, %v8372_v1 }
 0x4c6   :  { %v17174_v15 = vpop.f32.mrf.mxu0  ;;  %8629 = vrot.lane.b32.xlu1 %v12070_v31, %s12468_s13  ;;  %v9205_v45 = vsel %vm12667_vm6, %v17172_v49, 0  ;;  %v9313_v8 = vsel %vm12696_vm11, %v9308_v6, %v9312_v63  ;;  %v7851_v63 = vadd.f32 %v7850_v4, %v16771_v32  ;;  %v12343_v6 = vld [vmem:[#allocation3 + $0x8] ss:$8 sps:$4 sm:$0xff]  }
 0x4c7   :  { %v7852_v33 = vpop.f32.mrf.mxu1  ;;  %v8373_v0 = vmul.f32 %v17125_v23, %v8341_v39  ;;  %9655 = vst.msk [vmem:[#allocation3 + $0x1c] sm:$0xf] %vm19875_vm2, %v9313_v8  ;;  %v11763_v40 = vcombine.low %v9205_v45, %v9205_v45  ;;  %v11764_v59 = vcombine.high %v9205_v45, %v9205_v45  ;;  %8631 = vrot.lane.b32.xlu0 %v12071_v24, %s12468_s13  ;;  %v9318_v10 = vrot.slane %v9317_v37, 4 }
 0x4c8   :  { %v8245_v9 = vpop.f32.mrf.mxu0  ;;  %vm8436_vm6 = vcmp.ge.f32.partialorder %v8404_v42, 0.0  ;;  %v8468_v36 = vmul.f32 %v8404_v42, %v19869_v19 }
 0x4c9   :  { %v7855_v47 = vpop.f32.mrf.mxu1  ;;  %v8405_v26 = vadd.f32 %v17132_v21, %v8373_v0  ;;  %v9320_v2 = vshll.u32 %v11763_v40, 16  ;;  %v9324_v11 = vshrl.u32 %v11763_v40, 16  ;;  %v9330_v48 = vshll.u32 %v11764_v59, 16  ;;  %v19876_v9 = vld [vmem:[#allocation6_spill] sm:$0xff] }
 0x4ca   :  { %v17188_v16 = vpop.f32.mrf.mxu0  ;;  %v9334_v24 = vshrl.u32 %v11764_v59, 16  ;;  %v12345_v25 = vld [vmem:[#allocation3 + $0xc] ss:$8 sps:$4 sm:$0xff]   ;;  %vm19877_vm8 = vnez %v19876_v9  ;;  %v8342_v40 = vadd.f32 %v17155_v12, %v7851_v63  ;;  %v7856_v59 = vadd.f32 %v7855_v47, %v16784_v14 }
 0x4cb   :  { %v7857_v60 = vpop.f32.mrf.mxu1  ;;  %v8469_v1 = vmul.f32 %v8405_v26, %v19869_v19  ;;  %vm8437_vm10 = vcmp.ge.f32.partialorder %v8405_v26, 0.0  ;;  %v9322_v39 = vrot.slane %v9320_v2, 5  ;;  %v9326_v33 = vrot.slane %v9324_v11, 4  ;;  %11843 = vmatprep.mubr.msk.bf16.mxu0 %vm19878_vm13, %v12345_v25  ;;  %vm19895_vm13 = vmmov %vm19880_vm1 }
 0x4cc   :  { %v8250_v41 = vpop.f32.mrf.mxu0  ;;  %v8751_v32 = vsel %vm19877_vm8, %v17144_v54, 0  ;;  %v9332_v0 = vrot.slane %v9330_v48, 5  ;;  %v9336_v2 = vrot.slane %v9334_v24, 4  ;;  %v8500_v11 = vsel %vm8436_vm6, %v8404_v42, %v8468_v36  ;;  %10121 = vmatmul.mubr.bf16.vlgmr.msra.gmra.mxu0 %v12343_v6  ;;  %vm19886_vm6 = vmmov %vm19880_vm1 }
 0x4cd   :  { %v7858_v31 = vpop.f32.mrf.mxu1  ;;  %v9323_v8 = vsel %vm12696_vm11, %v9318_v10, %v9322_v39  ;;  %v9327_v37 = vor.u32 %v9326_v33, %v9322_v39  ;;  %v17207_v54 = vsel %vm8437_vm10, %v8405_v26, %v8469_v1  ;;  %v8374_v48 = vmul.f32 %v17125_v23, %v8342_v40  ;;  %vm19889_vm10 = vmmov %vm19880_vm1 }
 0x4ce   :  { %v17194_v45 = vpop.f32.mrf.mxu0  ;;  %9656 = vst.msk [vmem:[#allocation3 + $0x24] sm:$0xf] %vm19879_vm14, %v9323_v8  ;;  %v12072_v39 = vpack.c.bf16 %v8500_v11, %v8500_v11  ;;  %v17212_v63 = vcombine.low %v8751_v32, %v8751_v32  ;;  %v8343_v33 = vadd.f32 %v17161_v44, %v7856_v59  ;;  %v17216_v24 = vpack.c.bf16 %v8500_v11, %v17168_v51 }
 0x4cf   :  { %v7860_v4 = vpop.f32.mrf.mxu1  ;;  %v9328_v10 = vrot.slane %v9327_v37, 4  ;;  %v12073_v14 = vpack.c.bf16 %v17207_v54, %v17207_v54  ;;  %v17220_v47 = vcombine.high %v8751_v32, %v8751_v32  ;;  %v7859_v36 = vadd.f32 %v7858_v31, %v16801_v55 }
 0x4d0   :  { %v8253_v60 = vpop.f32.mrf.mxu0  ;;  %8633 = vrot.lane.b32.xlu1 %v12072_v39, %s12468_s13  ;;  %v9337_v6 = vor.u32 %v9336_v2, %v9332_v0  ;;  %v8375_v44 = vmul.f32 %v17125_v23, %v8343_v33  ;;  %v9206_v25 = vsel %vm19399_vm0, %v17216_v24, 0  ;;  %v8406_v32 = vadd.f32 %v17132_v21, %v8374_v48  ;;  %v19882_v2 = vld [vmem:[#allocation9_spill] sm:$0xff] }
 0x4d1   :  { %v7863_v41 = vpop.f32.mrf.mxu1  ;;  %v9333_v26 = vsel %vm12696_vm11, %v9328_v10, %v9332_v0  ;;  %8635 = vrot.lane.b32.xlu0 %v12073_v14, %s12468_s13  ;;  %v8848_v8 = vshrl.u32 %v17212_v63, 16  ;;  %v11765_v31 = vcombine.low %v9206_v25, %v9206_v25  ;;  %v11766_v37 = vcombine.high %v9206_v25, %v9206_v25 }
 0x4d2   :  { %v17210_v12 = vpop.f32.mrf.mxu0  ;;  %9657 = vst.msk [vmem:[#allocation3 + $0x2c] sm:$0xf] %vm19880_vm1, %v9333_v26  ;;  %v8407_v55 = vadd.f32 %v17132_v21, %v8375_v44  ;;  %v8851_v40 = vshll.u32 %v17212_v63, 16  ;;  %v8856_v60 = vshrl.u32 %v17220_v47, 16  ;;  %vm19883_vm0 = vnez %v19882_v2 }
 0x4d3   :  { %v7865_v42 = vpop.f32.mrf.mxu1  ;;  %v8752_v59 = vsel %vm19883_vm0, %v17172_v49, 0  ;;  %v8344_v11 = vadd.f32 %v17174_v15, %v7859_v36  ;;  %v9338_v48 = vrot.slane %v9337_v6, 4  ;;  %v9340_v39 = vshll.u32 %v11765_v31, 16 }
 0x4d4   :  { %v8258_v1 = vpop.f32.mrf.mxu0  ;;  %v9344_v33 = vshrl.u32 %v11765_v31, 16  ;;  %v7864_v14 = vadd.f32 %v7863_v41, %v16814_v58  ;;  %vm8438_vm12 = vcmp.ge.f32.partialorder %v8406_v32, 0.0  ;;  %v8470_v26 = vmul.f32 %v8406_v32, %v19869_v19 }
 0x4d5   :  { %v7866_v9 = vpop.f32.mrf.mxu1  ;;  %v8471_v63 = vmul.f32 %v8407_v55, %v19869_v19  ;;  %v9350_v1 = vshll.u32 %v11766_v37, 16  ;;  %vm8439_vm2 = vcmp.ge.f32.partialorder %v8407_v55, 0.0  ;;  %v9342_v51 = vrot.slane %v9340_v39, 5 }
 0x4d6   :  { %v17233_v4 = vpop.f32.mrf.mxu0  ;;  %v9346_v49 = vrot.slane %v9344_v33, 4  ;;  %v9354_v25 = vshrl.u32 %v11766_v37, 16  ;;  %v17248_v36 = vrot.slane %v8848_v8, 7  ;;  %v17250_v6 = vrot.slane %v8856_v60, 7 }
 0x4d7   :  { %v7868_v0 = vpop.f32.mrf.mxu1  ;;  %v17252_v31 = vcombine.low %v8752_v59, %v8752_v59  ;;  %v8376_v58 = vmul.f32 %v17125_v23, %v8344_v11  ;;  %v9343_v2 = vsel %vm12696_vm11, %v9338_v48, %v9342_v51  ;;  %v9352_v52 = vrot.slane %v9350_v1, 5 }
 0x4d8   :  { %v8261_v10 = vpop.f32.mrf.mxu0  ;;  %19884 = vst [vmem:[#allocation26_spill] sm:$0xff] %v17248_v36  ;;  %19885 = vst [vmem:[#allocation39_spill] sm:$0xff] %v17250_v6  ;;  %v17255_v0 = vcombine.high %v8752_v59, %v8752_v59  ;;  %v8345_v8 = vadd.f32 %v17188_v16, %v7864_v14  ;;  %v8502_v37 = vsel %vm8438_vm12, %v8406_v32, %v8470_v26  ;;  %v8859_v14 = vshll.u32 %v17220_v47, 16 }
 0x4d9   :  { %v7871_v42 = vpop.f32.mrf.mxu1  ;;  %v9347_v10 = vor.u32 %v9346_v49, %v9342_v51  ;;  %9658 = vst.msk [vmem:[#allocation3 + $0x34] sm:$0xf] %vm19886_vm6, %v9343_v2  ;;  %v7867_v60 = vadd.f32 %v7866_v9, %v16831_v61  ;;  %v17266_v11 = vsel %vm8439_vm2, %v8407_v55, %v8471_v63  ;;  %v12074_v48 = vpack.c.bf16 %v8502_v37, %v8502_v37  ;;  %vm19903_vm2 = vmmov %vm19880_vm1 }
 0x4da   :  { %v17246_v44 = vpop.f32.mrf.mxu0  ;;  %v17271_v1 = vpack.c.bf16 %v8502_v37, %v17207_v54  ;;  %v8865_v49 = vshrl.u32 %v17252_v31, 16  ;;  %v8408_v16 = vadd.f32 %v17132_v21, %v8376_v58  ;;  %v8377_v32 = vmul.f32 %v17125_v23, %v8345_v8 }
 0x4db   :  { %v7873_v15 = vpop.f32.mrf.mxu1  ;;  %v9348_v33 = vrot.slane %v9347_v10, 4  ;;  %v12075_v61 = vpack.c.bf16 %v17266_v11, %v17266_v11  ;;  %v17279_v55 = vor.u32 %v8851_v40, %v17248_v36  ;;  %8637 = vrot.lane.b32.xlu1 %v12074_v48, %s12468_s13  ;;  %v8346_v40 = vadd.f32 %v17194_v45, %v7867_v60 }
 0x4dc   :  { %v8266_v41 = vpop.f32.mrf.mxu0  ;;  %v9356_v15 = vrot.slane %v9354_v25, 4  ;;  %v9207_v63 = vsel %vm19402_vm15, %v17271_v1, 0  ;;  %v7872_v47 = vadd.f32 %v7871_v42, %v16844_v62  ;;  %v17298_v10 = vor.u32 %v8859_v14, %v17250_v6 }
 0x4dd   :  { %v17259_v39 = vpop.f32.mrf.mxu1  ;;  %19887 = vst [vmem:[#allocation37_spill] sm:$0xff] %v17279_v55  ;;  %v9353_v54 = vsel %vm12696_vm11, %v9348_v33, %v9352_v52  ;;  %v11767_v41 = vcombine.low %v9207_v63, %v9207_v63  ;;  %8639 = vrot.lane.b32.xlu0 %v12075_v61, %s12468_s13  ;;  %v11768_v33 = vcombine.high %v9207_v63, %v9207_v63  ;;  %v8868_v62 = vshll.u32 %v17252_v31, 16 }
 0x4de   :  { %v17268_v59 = vpop.f32.mrf.mxu0  ;;  %9659 = vst.msk [vmem:[#allocation3 + $0x3c] sm:$0xf] %vm19889_vm10, %v9353_v54  ;;  %19890 = vst [vmem:[#allocation44_spill] sm:$0xff] %v17298_v10  ;;  %v9357_v37 = vor.u32 %v9356_v15, %v9352_v52  ;;  %v8472_v45 = vmul.f32 %v8408_v16, %v19869_v19  ;;  %v8409_v60 = vadd.f32 %v17132_v21, %v8377_v32  ;;  %vm8440_vm15 = vcmp.ge.f32.partialorder %v8408_v16, 0.0 }
 0x4df   :  { %v7876_v51 = vpop.f32.mrf.mxu1  ;;  %v9360_v42 = vshll.u32 %v11767_v41, 16  ;;  %v9364_v14 = vshrl.u32 %v11767_v41, 16  ;;  %v9370_v26 = vshll.u32 %v11768_v33, 16  ;;  %v9374_v52 = vshrl.u32 %v11768_v33, 16  ;;  %vm19907_vm10 = vmmov %vm19880_vm1 }
 0x4e0   :  { %v8269_v9 = vpop.f32.mrf.mxu0  ;;  %v17301_v51 = vrot.slane %v8865_v49, 7  ;;  %v8378_v15 = vmul.f32 %v17125_v23, %v8346_v40  ;;  %v8347_v49 = vadd.f32 %v17210_v12, %v7872_v47  ;;  %v9358_v8 = vrot.slane %v9357_v37, 4 }
 0x4e1   :  { %v17288_v25 = vpop.f32.mrf.mxu1  ;;  %v8874_v9 = vshrl.u32 %v17255_v0, 16  ;;  %v9362_v32 = vrot.slane %v9360_v42, 5  ;;  %v8473_v6 = vmul.f32 %v8409_v60, %v19869_v19  ;;  %v8504_v33 = vsel %vm8440_vm15, %v8408_v16, %v8472_v45 }
 0x4e2   :  { %v17295_v2 = vpop.f32.mrf.mxu0  ;;  %19891 = vst [vmem:[#allocation31_spill] sm:$0xff] %v17301_v51  ;;  %v17315_v31 = vor.u32 %v8868_v62, %v17301_v51  ;;  %v8753_v47 = vsel %vm19419_vm4, %v17216_v24, 0  ;;  %vm8441_vm8 = vcmp.ge.f32.partialorder %v8409_v60, 0.0  ;;  %v9372_v62 = vrot.slane %v9370_v26, 5 }
 0x4e3   :  { %v7881_v48 = vpop.f32.mrf.mxu1  ;;  %v17317_v41 = vrot.slane %v8874_v9, 7  ;;  %v9376_v42 = vrot.slane %v9374_v52, 4  ;;  %v8410_v9 = vadd.f32 %v17132_v21, %v8378_v15  ;;  %v8379_v16 = vmul.f32 %v17125_v23, %v8347_v49 }
 0x4e4   :  { %v8274_v61 = vpop.f32.mrf.mxu0  ;;  %v8877_v48 = vshll.u32 %v17255_v0, 16  ;;  %19892 = vst [vmem:[#allocation40_spill] sm:$0xff] %v17315_v31  ;;  %v9363_v0 = vsel %vm12696_vm11, %v9358_v8, %v9362_v32  ;;  %v17334_v24 = vpack.c.bf16 %v8504_v33, %v17266_v11  ;;  %v7875_v8 = vadd.f32 %v17259_v39, %v16860_v28  ;;  %v19899_v39 = vld [vmem:[#allocation15_spill] sm:$0xff] }
 0x4e5   :  { %v17307_v54 = vpop.f32.mrf.mxu1  ;;  %v9366_v61 = vrot.slane %v9364_v14, 4  ;;  %19893 = vst [vmem:[#allocation47_spill] sm:$0xff] %v17317_v41  ;;  %9660 = vst.msk [vmem:[#allocation3 + $0x44] sm:$0xf] %vm19895_vm13, %v9363_v0  ;;  %v17339_v52 = vcombine.low %v8753_v47, %v8753_v47  ;;  %v8505_v15 = vsel %vm8441_vm8, %v8409_v60, %v8473_v6  ;;  %v19897_v0 = vld [vmem:[#allocation14_spill] sm:$0xff]  ;;  %vm19900_vm14 = vnez %v19899_v39 }
 0x4e6   :  { %v17311_v63 = vpop.f32.mrf.mxu0  ;;  %v17345_v12 = vor.u32 %v8877_v48, %v17317_v41  ;;  %vm19898_vm4 = vnez %v19897_v0  ;;  %v9377_v6 = vor.u32 %v9376_v42, %v9372_v62  ;;  %v8411_v60 = vadd.f32 %v17132_v21, %v8379_v16 }
 0x4e7   :  { %v7884_v58 = vpop.f32.mrf.mxu1  ;;  %v9367_v37 = vor.u32 %v9366_v61, %v9362_v32  ;;  %v17341_v61 = vcombine.high %v8753_v47, %v8753_v47  ;;  %v8754_v11 = vsel %vm19898_vm4, %v17271_v1, 0  ;;  %v8474_v1 = vmul.f32 %v8410_v9, %v19869_v19  ;;  %vm19912_vm4 = vmmov %vm19880_vm1 }
 0x4e8   :  { %v8277_v40 = vpop.f32.mrf.mxu0  ;;  %19896 = vst [vmem:[#allocation27_spill] sm:$0xff] %v17345_v12  ;;  %v8883_v39 = vshrl.u32 %v17339_v52, 16  ;;  %vm8442_vm0 = vcmp.ge.f32.partialorder %v8410_v9, 0.0  ;;  %v17384_v10 = vcombine.high %v8754_v11, %v8754_v11  ;;  %vm8443_vm12 = vcmp.ge.f32.partialorder %v8411_v60, 0.0 }
 0x4e9   :  { %v17326_v58 = vpop.f32.mrf.mxu1  ;;  %v9368_v14 = vrot.slane %v9367_v37, 4  ;;  %v12076_v40 = vpack.c.bf16 %v8504_v33, %v8504_v33  ;;  %v9208_v33 = vsel %vm19900_vm14, %v17334_v24, 0  ;;  %v8892_v42 = vshrl.u32 %v17341_v61, 16 }
 0x4ea   :  { %v17331_v45 = vpop.f32.mrf.mxu0  ;;  %v11769_v48 = vcombine.low %v9208_v33, %v9208_v33  ;;  %v11770_v37 = vcombine.high %v9208_v33, %v9208_v33  ;;  %v8506_v35 = vsel %vm8442_vm0, %v8410_v9, %v8474_v1  ;;  %v17380_v36 = vrot.slane %v8883_v39, 7 }
 0x4eb   :  { %v7889_v32 = vpop.f32.mrf.mxu1  ;;  %v9373_v28 = vsel %vm12696_vm11, %v9368_v14, %v9372_v62  ;;  %8641 = vrot.lane.b32.xlu1 %v12076_v40, %s12468_s13  ;;  %v8348_v14 = vadd.f32 %v17233_v4, %v7875_v8  ;;  %v12077_v40 = vpack.c.bf16 %v8505_v15, %v8505_v15  ;;  %v8886_v62 = vshll.u32 %v17339_v52, 16 }
 0x4ec   :  { %v8282_v49 = vpop.f32.mrf.mxu0  ;;  %9661 = vst.msk [vmem:[#allocation3 + $0x4c] sm:$0xf] %vm19880_vm1, %v9373_v28  ;;  %v17369_v28 = vcombine.low %v8754_v11, %v8754_v11  ;;  %v9380_v33 = vshll.u32 %v11769_v48, 16  ;;  %v9384_v26 = vshrl.u32 %v11769_v48, 16  ;;  %v9390_v51 = vshll.u32 %v11770_v37, 16  ;;  %19901 = vst [vmem:[#allocation57_spill] sm:$0xff] %v17380_v36 }
 0x4ed   :  { %v17356_v47 = vpop.f32.mrf.mxu1  ;;  %v7880_v49 = vadd.f32 %v17288_v25, %v16873_v17  ;;  %8643 = vrot.lane.b32.xlu0 %v12077_v40, %s12468_s13  ;;  %v9378_v8 = vrot.slane %v9377_v6, 4  ;;  %v8475_v17 = vmul.f32 %v8411_v60, %v19869_v19  ;;  %v9394_v25 = vshrl.u32 %v11770_v37, 16 }
 0x4ee   :  { %v17360_v32 = vpop.f32.mrf.mxu0  ;;  %v9382_v12 = vrot.slane %v9380_v33, 5  ;;  %v9386_v31 = vrot.slane %v9384_v26, 4  ;;  %v17382_v40 = vrot.slane %v8892_v42, 7  ;;  %v8901_v37 = vshrl.u32 %v17369_v28, 16 }
 0x4ef   :  { %v7892_v0 = vpop.f32.mrf.mxu1  ;;  %v9392_v26 = vrot.slane %v9390_v51, 5  ;;  %v12078_v1 = vpack.c.bf16 %v8506_v35, %v8506_v35  ;;  %v17393_v39 = vpack.c.bf16 %v8506_v35, %v8505_v15  ;;  %v17401_v51 = vsel %vm8443_vm12, %v8411_v60, %v8475_v17  ;;  %v19904_v35 = vld [vmem:[#allocation17_spill] sm:$0xff] }
 0x4f0   :  { %v8285_v16 = vpop.f32.mrf.mxu0  ;;  %v8349_v0 = vadd.f32 %v17246_v44, %v7880_v49  ;;  %19902 = vst [vmem:[#allocation58_spill] sm:$0xff] %v17382_v40  ;;  %v9383_v44 = vsel %vm12696_vm11, %v9378_v8, %v9382_v12  ;;  %v9387_v49 = vor.u32 %v9386_v31, %v9382_v12  ;;  %v7883_v8 = vadd.f32 %v17307_v54, %v16887_v13 }
 0x4f1   :  { %v17372_v4 = vpop.f32.mrf.mxu1  ;;  %v8380_v16 = vmul.f32 %v17125_v23, %v8348_v14  ;;  %v9396_v14 = vrot.slane %v9394_v25, 4  ;;  %9662 = vst.msk [vmem:[#allocation3 + $0x54] sm:$0xf] %vm19903_vm2, %v9383_v44  ;;  %v8895_v25 = vshll.u32 %v17341_v61, 16  ;;  %8645 = vrot.lane.b32.xlu1 %v12078_v1, %s12468_s13  ;;  %vm19905_vm6 = vnez %v19904_v35 }
 0x4f2   :  { %v17376_v52 = vpop.f32.mrf.mxu0  ;;  %v8381_v9 = vmul.f32 %v17125_v23, %v8349_v0  ;;  %v9388_v42 = vrot.slane %v9387_v49, 4  ;;  %v9209_v15 = vsel %vm19905_vm6, %v17393_v39, 0  ;;  %v12079_v0 = vpack.c.bf16 %v17401_v51, %v17401_v51  ;;  %vm19920_vm6 = vmmov %vm19880_vm1 }
 0x4f3   :  { %v7897_v48 = vpop.f32.mrf.mxu1  ;;  %v17412_v13 = vor.u32 %v8886_v62, %v17380_v36  ;;  %v11771_v17 = vcombine.low %v9209_v15, %v9209_v15  ;;  %v9397_v44 = vor.u32 %v9396_v14, %v9392_v26  ;;  %v11772_v49 = vcombine.high %v9209_v15, %v9209_v15 }
 0x4f4   :  { %v8290_v6 = vpop.f32.mrf.mxu0  ;;  %v8412_v48 = vadd.f32 %v17132_v21, %v8380_v16  ;;  %v9393_v54 = vsel %vm12696_vm11, %v9388_v42, %v9392_v26  ;;  %v8413_v60 = vadd.f32 %v17132_v21, %v8381_v9  ;;  %v8350_v1 = vadd.f32 %v17268_v59, %v7883_v8  ;;  %8647 = vrot.lane.b32.xlu0 %v12079_v0, %s12468_s13 }
 0x4f5   :  { %v17389_v33 = vpop.f32.mrf.mxu1  ;;  %19906 = vst [vmem:[#allocation59_spill] sm:$0xff] %v17412_v13  ;;  %9663 = vst.msk [vmem:[#allocation3 + $0x5c] sm:$0xf] %vm19907_vm10, %v9393_v54  ;;  %v17428_v42 = vrot.slane %v8901_v37, 7  ;;  %v8910_v9 = vshrl.u32 %v17384_v10, 16  ;;  %v9404_v26 = vshrl.u32 %v11771_v17, 16 }
 0x4f6   :  { %v17395_v11 = vpop.f32.mrf.mxu0  ;;  %vm8444_vm15 = vcmp.ge.f32.partialorder %v8412_v48, 0.0  ;;  %v9410_v14 = vshll.u32 %v11772_v49, 16  ;;  %v9414_v54 = vshrl.u32 %v11772_v49, 16  ;;  %v8476_v59 = vmul.f32 %v8412_v48, %v19869_v19 }
 0x4f7   :  { %v7900_v31 = vpop.f32.mrf.mxu1  ;;  %19909 = vst [vmem:[#allocation36_spill] sm:$0xff] %v17428_v42  ;;  %v8477_v8 = vmul.f32 %v8413_v60, %v19869_v19  ;;  %v8382_v0 = vmul.f32 %v17125_v23, %v8350_v1  ;;  %v9398_v6 = vrot.slane %v9397_v44, 4  ;;  %vm8445_vm8 = vcmp.ge.f32.partialorder %v8413_v60, 0.0 }
 0x4f8   :  { %v8293_v16 = vpop.f32.mrf.mxu0  ;;  %v17426_v31 = vor.u32 %v8895_v25, %v17382_v40  ;;  %v7888_v25 = vadd.f32 %v17326_v58, %v16900_v50  ;;  %v8904_v49 = vshll.u32 %v17369_v28, 16  ;;  %v9412_v44 = vrot.slane %v9410_v14, 5 }
 0x4f9   :  { %v17417_v61 = vpop.f32.mrf.mxu1  ;;  %v9400_v16 = vshll.u32 %v11771_v17, 16  ;;  %v8414_v17 = vadd.f32 %v17132_v21, %v8382_v0  ;;  %v17453_v40 = vsel %vm8445_vm8, %v8413_v60, %v8477_v8 }
 0x4fa   :  { %v17423_v62 = vpop.f32.mrf.mxu0  ;;  %19908 = vst [vmem:[#allocation60_spill] sm:$0xff] %v17426_v31  ;;  %v19910_v31 = vld [vmem:[#allocation16_spill] sm:$0xff]  ;;  %v8351_v28 = vadd.f32 %v17295_v2, %v7888_v25  ;;  %v19914_v25 = vld [vmem:[#allocation19_spill] sm:$0xff] }
 0x4fb   :  { %v7905_v35 = vpop.f32.mrf.mxu1  ;;  %v9402_v12 = vrot.slane %v9400_v16, 5  ;;  %vm19911_vm13 = vnez %v19910_v31  ;;  %v9416_v16 = vrot.slane %v9414_v54, 4  ;;  %v7891_v31 = vadd.f32 %v17356_v47, %v16912_v30 }
 0x4fc   :  { %v8298_v15 = vpop.f32.mrf.mxu0  ;;  %v9406_v35 = vrot.slane %v9404_v26, 4  ;;  %v8755_v1 = vsel %vm19911_vm13, %v17334_v24, 0  ;;  %v8383_v2 = vmul.f32 %v17125_v23, %v8351_v28  ;;  %v12081_v30 = vpack.c.bf16 %v17453_v40, %v17453_v40 }
 0x4fd   :  { %v17436_v37 = vpop.f32.mrf.mxu1  ;;  %v8913_v15 = vshll.u32 %v17384_v10, 16  ;;  %v9403_v50 = vsel %vm12696_vm11, %v9398_v6, %v9402_v12  ;;  %v8508_v10 = vsel %vm8444_vm15, %v8412_v48, %v8476_v59  ;;  %v17466_v54 = vcombine.low %v8755_v1, %v8755_v1  ;;  %vm19923_vm15 = vmmov %vm19880_vm1 }
 0x4fe   :  { %v17438_v36 = vpop.f32.mrf.mxu0  ;;  %v9407_v58 = vor.u32 %v9406_v35, %v9402_v12  ;;  %9664 = vst.msk [vmem:[#allocation3 + $0x64] sm:$0xf] %vm19912_vm4, %v9403_v50  ;;  %v17460_v12 = vrot.slane %v8910_v9, 7  ;;  %v12080_v48 = vpack.c.bf16 %v8508_v10, %v8508_v10  ;;  %v17470_v60 = vpack.c.bf16 %v8508_v10, %v17401_v51  ;;  %8651 = vrot.lane.b32.xlu0 %v12081_v30, %s12468_s13 }
 0x4ff   :  { %v7908_v41 = vpop.f32.mrf.mxu1  ;;  %v17473_v0 = vcombine.high %v8755_v1, %v8755_v1  ;;  %vm19915_vm14 = vnez %v19914_v25  ;;  %v8478_v51 = vmul.f32 %v8414_v17, %v19869_v19  ;;  %v19916_v1 = vld [vmem:[#allocation18_spill] sm:$0xff]  ;;  %vm8446_vm12 = vcmp.ge.f32.partialorder %v8414_v17, 0.0 }
 0x500   :  { %v8301_v26 = vpop.f32.mrf.mxu0  ;;  %v17458_v41 = vor.u32 %v8904_v49, %v17428_v42  ;;  %v9408_v6 = vrot.slane %v9407_v58, 4  ;;  %v8756_v35 = vsel %vm19915_vm14, %v17393_v39, 0  ;;  %v9417_v49 = vor.u32 %v9416_v16, %v9412_v44  ;;  %8649 = vrot.lane.b32.xlu1 %v12080_v48, %s12468_s13  ;;  %vm19929_vm14 = vmmov %vm19880_vm1 }
 0x501   :  { %v17455_v24 = vpop.f32.mrf.mxu1  ;;  %vm19917_vm0 = vnez %v19916_v1  ;;  %v8415_v26 = vadd.f32 %v17132_v21, %v8383_v2  ;;  %v8919_v16 = vshrl.u32 %v17466_v54, 16  ;;  %v7896_v48 = vadd.f32 %v17372_v4, %v16924_v22 }
 0x502   :  { %19913 = vst [vmem:[#allocation45_spill] sm:$0xff] %v17458_v41  ;;  %v17464_v14 = vpop.f32.mrf.mxu0  ;;  %v9413_v9 = vsel %vm12696_vm11, %v9408_v6, %v9412_v44  ;;  %v9210_v50 = vsel %vm19917_vm0, %v17470_v60, 0  ;;  %v8352_v6 = vadd.f32 %v17311_v63, %v7891_v31  ;;  %v17496_v44 = vor.u32 %v8913_v15, %v17460_v12  ;;  %vm19933_vm0 = vmmov %vm19920_vm6 }
 0x503   :  { %v7913_v59 = vpop.f32.mrf.mxu1  ;;  %9665 = vst.msk [vmem:[#allocation3 + $0x6c] sm:$0xf] %vm19880_vm1, %v9413_v9  ;;  %v11773_v28 = vcombine.low %v9210_v50, %v9210_v50  ;;  %v11774_v10 = vcombine.high %v9210_v50, %v9210_v50  ;;  %v8922_v2 = vshll.u32 %v17466_v54, 16  ;;  %v8928_v9 = vshrl.u32 %v17473_v0, 16 }
 0x504   :  { %v8306_v47 = vpop.f32.mrf.mxu0  ;;  %19918 = vst [vmem:[#allocation30_spill] sm:$0xff] %v17496_v44  ;;  %v8931_v63 = vshll.u32 %v17473_v0, 16  ;;  %v17504_v31 = vcombine.low %v8756_v35, %v8756_v35  ;;  %v9418_v8 = vrot.slane %v9417_v49, 4  ;;  %v8479_v42 = vmul.f32 %v8415_v26, %v19869_v19 }
 0x505   :  { %v17488_v58 = vpop.f32.mrf.mxu1  ;;  %v9420_v47 = vshll.u32 %v11773_v28, 16  ;;  %v9424_v25 = vshrl.u32 %v11773_v28, 16  ;;  %v9430_v15 = vshll.u32 %v11774_v10, 16  ;;  %v9434_v1 = vshrl.u32 %v11774_v10, 16 }
 0x506   :  { %v17493_v39 = vpop.f32.mrf.mxu0  ;;  %v8384_v22 = vmul.f32 %v17125_v23, %v8352_v6  ;;  %v8510_v4 = vsel %vm8446_vm12, %v8414_v17, %v8478_v51  ;;  %vm8447_vm2 = vcmp.ge.f32.partialorder %v8415_v26, 0.0  ;;  %v17514_v28 = vrot.slane %v8919_v16, 7 }
 0x507   :  { %v7916_v59 = vpop.f32.mrf.mxu1  ;;  %v9422_v0 = vrot.slane %v9420_v47, 5  ;;  %v17516_v10 = vrot.slane %v8928_v9, 7  ;;  %v17518_v41 = vcombine.high %v8756_v35, %v8756_v35  ;;  %v8937_v49 = vshrl.u32 %v17504_v31, 16 }
 0x508   :  { %v8309_v30 = vpop.f32.mrf.mxu0  ;;  %v9426_v59 = vrot.slane %v9424_v25, 4  ;;  %v9432_v6 = vrot.slane %v9430_v15, 5  ;;  %v9436_v55 = vrot.slane %v9434_v1, 4  ;;  %v7899_v35 = vadd.f32 %v17389_v33, %v16936_v34  ;;  %v19921_v33 = vld [vmem:[#allocation20_spill] sm:$0xff] }
 0x509   :  { %v17506_v50 = vpop.f32.mrf.mxu1  ;;  %v8353_v30 = vadd.f32 %v17331_v45, %v7896_v48  ;;  %19919 = vst [vmem:[#allocation24_spill] sm:$0xff] %v17516_v10  ;;  %v9423_v17 = vsel %vm12696_vm11, %v9418_v8, %v9422_v0  ;;  %v12082_v45 = vpack.c.bf16 %v8510_v4, %v8510_v4  ;;  %v17532_v16 = vsel %vm8447_vm2, %v8415_v26, %v8479_v42 }
 0x50a   :  { %v17511_v54 = vpop.f32.mrf.mxu0  ;;  %v9427_v51 = vor.u32 %v9426_v59, %v9422_v0  ;;  %9666 = vst.msk [vmem:[#allocation3 + $0x74] sm:$0xf] %vm19920_vm6, %v9423_v17  ;;  %v8416_v48 = vadd.f32 %v17132_v21, %v8384_v22  ;;  %v12083_v25 = vpack.c.bf16 %v17532_v16, %v17532_v16  ;;  %v17542_v1 = vor.u32 %v8922_v2, %v17514_v28 }
 0x50b   :  { %v7921_v44 = vpop.f32.mrf.mxu1  ;;  %v8385_v9 = vmul.f32 %v17125_v23, %v8353_v30  ;;  %8653 = vrot.lane.b32.xlu1 %v12082_v45, %s12468_s13  ;;  %vm19922_vm10 = vnez %v19921_v33  ;;  %v17550_v22 = vor.u32 %v8931_v63, %v17516_v10  ;;  %v8354_v0 = vadd.f32 %v17360_v32, %v7899_v35 }
 0x50c   :  { %v8314_v13 = vpop.f32.mrf.mxu0  ;;  %v17527_v44 = vpack.c.bf16 %v8510_v4, %v17453_v40  ;;  %v9428_v8 = vrot.slane %v9427_v51, 4  ;;  %8655 = vrot.lane.b32.xlu0 %v12083_v25, %s12468_s13  ;;  %v7904_v2 = vadd.f32 %v17417_v61, %v16948_v38  ;;  %v9437_v17 = vor.u32 %v9436_v55, %v9432_v6 }
 0x50d   :  { %v17523_v47 = vpop.f32.mrf.mxu1  ;;  %v8946_v32 = vshrl.u32 %v17518_v41, 16  ;;  %v8480_v35 = vmul.f32 %v8416_v48, %v19869_v19  ;;  %v8940_v61 = vshll.u32 %v17504_v31, 16  ;;  %vm8448_vm8 = vcmp.ge.f32.partialorder %v8416_v48, 0.0 }
 0x50e   :  { %v17534_v13 = vpop.f32.mrf.mxu0  ;;  %v9211_v42 = vsel %vm19922_vm10, %v17527_v44, 0  ;;  %v9433_v4 = vsel %vm12696_vm11, %v9428_v8, %v9432_v6  ;;  %v8417_v8 = vadd.f32 %v17132_v21, %v8385_v9  ;;  %v8949_v30 = vshll.u32 %v17518_v41, 16  ;;  %vm19936_vm10 = vmmov %vm19933_vm0 }
 0x50f   :  { %v7924_v15 = vpop.f32.mrf.mxu1  ;;  %9667 = vst.msk [vmem:[#allocation3 + $0x7c] sm:$0xf] %vm19923_vm15, %v9433_v4  ;;  %v11775_v51 = vcombine.low %v9211_v42, %v9211_v42  ;;  %v11776_v63 = vcombine.high %v9211_v42, %v9211_v42  ;;  %v8386_v42 = vmul.f32 %v17125_v23, %v8354_v0  ;;  %v9438_v34 = vrot.slane %v9437_v17, 4 }
 0x510   :  { %v8317_v26 = vpop.f32.mrf.mxu0  ;;  %v17564_v15 = vrot.slane %v8937_v49, 7  ;;  %v8355_v49 = vadd.f32 %v17376_v52, %v7904_v2  ;;  %v8512_v23 = vsel %vm8448_vm8, %v8416_v48, %v8480_v35  ;;  %v19927_v52 = vld [vmem:[#allocation21_spill] sm:$0xff]  ;;  %vm8449_vm4 = vcmp.ge.f32.partialorder %v8417_v8, 0.0  ;;  %vm19939_vm8 = vmmov %vm19933_vm0 }
 0x511   :  { %v17558_v59 = vpop.f32.mrf.mxu1  ;;  %v9440_v25 = vshll.u32 %v11775_v51, 16  ;;  %v9444_v55 = vshrl.u32 %v11775_v51, 16  ;;  %v9450_v33 = vshll.u32 %v11776_v63, 16  ;;  %v9454_v26 = vshrl.u32 %v11776_v63, 16  ;;  %v17594_v48 = vld [vmem:[%s18824_s2] ss:$0 sm:$0xff] }
 0x512   :  { %v17562_v45 = vpop.f32.mrf.mxu0  ;;  %19924 = vst [vmem:[#allocation25_spill] sm:$0xff] %v17564_v15  ;;  %v17578_v31 = vor.u32 %v8940_v61, %v17564_v15  ;;  %v17580_v51 = vrot.slane %v8946_v32, 7  ;;  %v8481_v63 = vmul.f32 %v8417_v8, %v19869_v19  ;;  %vm19928_vm13 = vnez %v19927_v52 }
 0x513   :  { %v7929_v38 = vpop.f32.mrf.mxu1  ;;  %v9442_v40 = vrot.slane %v9440_v25, 5  ;;  %v9446_v9 = vrot.slane %v9444_v55, 4  ;;  %v8757_v2 = vsel %vm19928_vm13, %v17470_v60, 0  ;;  %v9452_v55 = vrot.slane %v9450_v33, 5 }
 0x514   :  { %v8322_v6 = vpop.f32.mrf.mxu0  ;;  %19925 = vst [vmem:[#allocation35_spill] sm:$0xff] %v17578_v31  ;;  %19926 = vst [vmem:[#allocation5_spill] sm:$0xff] %v17580_v51  ;;  %v9456_v61 = vrot.slane %v9454_v26, 4  ;;  %v8418_v32 = vadd.f32 %v17132_v21, %v8386_v42  ;;  %v8387_v35 = vmul.f32 %v17594_v48, %v8355_v49  ;;  %v11741_v26 = vcombine.low %v8757_v2, %v8757_v2 }
 0x515   :  { %v17572_v4 = vpop.f32.mrf.mxu1  ;;  %v9443_v41 = vsel %vm12696_vm11, %v9438_v34, %v9442_v40  ;;  %v9447_v17 = vor.u32 %v9446_v9, %v9442_v40  ;;  %v17600_v40 = vpack.c.bf16 %v8512_v23, %v17532_v16  ;;  %v7907_v34 = vadd.f32 %v17436_v37, %v16960_v29  ;;  %v19931_v29 = vld [vmem:[#allocation23_spill] sm:$0xff] }
 0x516   :  { %v17575_v38 = vpop.f32.mrf.mxu0  ;;  %9668 = vst.msk [vmem:[#allocation3 + $0x84] sm:$0xf] %vm19929_vm14, %v9443_v41  ;;  %v17607_v42 = vcombine.high %v8757_v2, %v8757_v2  ;;  %v8513_v9 = vsel %vm8449_vm4, %v8417_v8, %v8481_v63  ;;  %v17611_v52 = vor.u32 %v8949_v30, %v17580_v51  ;;  %vm19932_vm1 = vnez %v19931_v29  ;;  %v17624_v30 = vld [vmem:[%s18825_s3] ss:$0 sm:$0xff] }
 0x517   :  { %v7932_v0 = vpop.f32.mrf.mxu1  ;;  %v9448_v6 = vrot.slane %v9447_v17, 4  ;;  %v9212_v37 = vsel %vm19932_vm1, %v17600_v40, 0  ;;  %v9457_v2 = vor.u32 %v9456_v61, %v9452_v55  ;;  %v8419_v8 = vadd.f32 %v17624_v30, %v8387_v35 }
 0x518   :  { %v8325_v25 = vpop.f32.mrf.mxu0  ;;  %v12084_v0 = vpack.c.bf16 %v8512_v23, %v8512_v23  ;;  %19930 = vst [vmem:[#allocation7_spill] sm:$0xff] %v17611_v52  ;;  %v11777_v63 = vcombine.low %v9212_v37, %v9212_v37  ;;  %v11778_v17 = vcombine.high %v9212_v37, %v9212_v37  ;;  %v8958_v29 = vshll.u32 %v11741_v26, 16  ;;  %v19934_v37 = vld [vmem:[#allocation22_spill] sm:$0xff] }
 0x519   :  { %v17597_v60 = vpop.f32.mrf.mxu1  ;;  %v9453_v16 = vsel %vm12696_vm11, %v9448_v6, %v9452_v55  ;;  %v8482_v6 = vmul.f32 %v8418_v32, %v19869_v19  ;;  %v7912_v55 = vadd.f32 %v17455_v24, %v16972_v43  ;;  %vm8450_vm12 = vcmp.ge.f32.partialorder %v8418_v32, 0.0 }
 0x51a   :  { %v17604_v33 = vpop.f32.mrf.mxu0  ;;  %8657 = vrot.lane.b32.xlu1 %v12084_v0, %s12468_s13  ;;  %9669 = vst.msk [vmem:[#allocation3 + $0x8c] sm:$0xf] %vm19933_vm0, %v9453_v16  ;;  %v8356_v0 = vadd.f32 %v17395_v11, %v7907_v34  ;;  %v8955_v16 = vshrl.u32 %v11741_v26, 16  ;;  %vm19935_vm2 = vnez %v19934_v37  ;;  %v9460_v21 = vshll.u32 %v11777_v63, 16 }
 0x51b   :  { %v7937_v49 = vpop.f32.mrf.mxu1  ;;  %v8758_v41 = vsel %vm19935_vm2, %v17527_v44, 0  ;;  %v9464_v51 = vshrl.u32 %v11777_v63, 16  ;;  %v9470_v15 = vshll.u32 %v11778_v17, 16  ;;  %v9458_v34 = vrot.slane %v9457_v2, 4  ;;  %vm19946_vm2 = vmmov %vm19939_vm8 }
 0x51c   :  { %v8330_v23 = vpop.f32.mrf.mxu0  ;;  %v12085_v49 = vpack.c.bf16 %v8513_v9, %v8513_v9  ;;  %v8483_v43 = vmul.f32 %v8419_v8, %v19869_v19  ;;  %v9474_v24 = vshrl.u32 %v11778_v17, 16  ;;  %v8357_v26 = vadd.f32 %v17423_v62, %v7912_v55 }
 0x51d   :  { %v17627_v25 = vpop.f32.mrf.mxu1  ;;  %v8964_v23 = vshrl.u32 %v17607_v42, 16  ;;  %v9462_v10 = vrot.slane %v9460_v21, 5  ;;  %v8388_v31 = vmul.f32 %v17594_v48, %v8356_v0  ;;  %v8514_v44 = vsel %vm8450_vm12, %v8418_v32, %v8482_v6 }
 0x51e   :  { %v17633_v61 = vpop.f32.mrf.mxu0  ;;  %8659 = vrot.lane.b32.xlu0 %v12085_v49, %s12468_s13  ;;  %v17646_v37 = vrot.slane %v8955_v16, 7  ;;  %v17650_v49 = vcombine.low %v8758_v41, %v8758_v41  ;;  %vm8451_vm6 = vcmp.ge.f32.partialorder %v8419_v8, 0.0  ;;  %v9472_v21 = vrot.slane %v9470_v15, 5  ;;  %v19937_v15 = vld [vmem:[#allocation29_spill] sm:$0xff] }
 0x51f   :  { %v7940_v35 = vpop.f32.mrf.mxu1  ;;  %v17648_v63 = vrot.slane %v8964_v23, 7  ;;  %v9463_v62 = vsel %vm12696_vm11, %v9458_v34, %v9462_v10  ;;  %v8389_v32 = vmul.f32 %v17594_v48, %v8357_v26  ;;  %v12086_v6 = vpack.c.bf16 %v8514_v44, %v8514_v44 }
 0x520   :  { %v8333_v11 = vpop.f32.mrf.mxu0  ;;  %v9466_v35 = vrot.slane %v9464_v51, 4  ;;  %v9476_v51 = vrot.slane %v9474_v24, 4  ;;  %9670 = vst.msk [vmem:[#allocation3 + $0x94] sm:$0xf] %vm19936_vm10, %v9463_v62  ;;  %v8536_v0 = vpack.c.bf16 %v8514_v44, %v8513_v9  ;;  %v8420_v23 = vadd.f32 %v17624_v30, %v8388_v31 }
 0x521   :  { %v17642_v52 = vpop.f32.mrf.mxu1  ;;  %v17652_v11 = vcombine.high %v8758_v41, %v8758_v41  ;;  %v7915_v41 = vadd.f32 %v17488_v58, %v16984_v7  ;;  %v17664_v34 = vor.u32 %v8958_v29, %v17646_v37  ;;  %8661 = vrot.lane.b32.xlu1 %v12086_v6, %s12468_s13  ;;  %vm19938_vm15 = vnez %v19937_v15  ;;  %v19940_v6 = vld [vmem:[#allocation28_spill] sm:$0xff] }
 0x522   :  { %v9467_v17 = vor.u32 %v9466_v35, %v9462_v10  ;;  %v8967_v10 = vshll.u32 %v17607_v42, 16  ;;  %v9213_v24 = vsel %vm19938_vm15, %v8536_v0, 0  ;;  %v8421_v7 = vadd.f32 %v17624_v30, %v8389_v32 }
 0x523   :  { %v7945_v2 = vpop.f32.mrf.mxu1  ;;  %v11779_v58 = vcombine.low %v9213_v24, %v9213_v24  ;;  %v9477_v29 = vor.u32 %v9476_v51, %v9472_v21  ;;  %v11780_v42 = vcombine.high %v9213_v24, %v9213_v24  ;;  %v8973_v62 = vshrl.u32 %v17650_v49, 16 }
 0x524   :  { %v9468_v16 = vrot.slane %v9467_v17, 4  ;;  %v8515_v2 = vsel %vm8451_vm6, %v8419_v8, %v8483_v43  ;;  %v17675_v8 = vor.u32 %v8967_v10, %v17648_v63  ;;  %v8358_v43 = vadd.f32 %v17438_v36, %v7915_v41  ;;  %vm19947_vm6 = vmmov %vm19946_vm2 }
 0x525   :  { %v17658_v55 = vpop.f32.mrf.mxu1  ;;  %v12087_v9 = vpack.c.bf16 %v8515_v2, %v8515_v2  ;;  %v8982_v17 = vshrl.u32 %v17652_v11, 16  ;;  %vm19941_vm13 = vnez %v19940_v6  ;;  %vm8452_vm4 = vcmp.ge.f32.partialorder %v8420_v23, 0.0 }
 0x526   :  { %v9473_v31 = vsel %vm12696_vm11, %v9468_v16, %v9472_v21  ;;  %v8759_v32 = vsel %vm19941_vm13, %v17600_v40, 0  ;;  %vm19942_vm14 = vcmask 1043968   ;;  %v9480_v21 = vshll.u32 %v11779_v58, 16 }
 0x527   :  { %v7948_v26 = vpop.f32.mrf.mxu1  ;;  %9671 = vst.msk [vmem:[#allocation3 + $0x9c] sm:$0xf] %vm19939_vm8, %v9473_v31  ;;  %8663 = vrot.lane.b32.xlu0 %v12087_v9, %s12468_s13  ;;  %v9484_v51 = vshrl.u32 %v11779_v58, 16  ;;  %v9490_v16 = vshll.u32 %v11780_v42, 16  ;;  %v9494_v10 = vshrl.u32 %v11780_v42, 16  ;;  %v8484_v36 = vmul.f32 %v8420_v23, %v19869_v19  ;;  %v19943_v42 = vld [vmem:[#allocation34_spill] sm:$0xff]  ;;  %vm19945_vm12 = vmmov %vm19942_vm14 }
 0x528   :  { %v8485_v41 = vmul.f32 %v8421_v7, %v19869_v19  ;;  %v8390_v15 = vmul.f32 %v17594_v48, %v8358_v43  ;;  %v7920_v24 = vadd.f32 %v17506_v50, %v16996_v53  ;;  %v9478_v9 = vrot.slane %v9477_v29, 4  ;;  %vm19950_vm8 = vmmov %vm19945_vm12 }
 0x529   :  { %v8624_v44 = vpop.permute.xlu0 %8623  ;;  %vm8453_vm1 = vcmp.ge.f32.partialorder %v8421_v7, 0.0  ;;  %v9482_v26 = vrot.slane %v9480_v21, 5  ;;  %v9486_v40 = vrot.slane %v9484_v51, 4  ;;  %v17692_v6 = vrot.slane %v8973_v62, 7 }
 0x52a   :  { %8719 = vst.msk [vmem:[#allocation3 + $0x18] sm:$0xf] %vm19942_vm14, %v8624_v44  ;;  %v17694_v58 = vcombine.low %v8759_v32, %v8759_v32  ;;  %vm19944_vm0 = vnez %v19943_v42  ;;  %v9492_v50 = vrot.slane %v9490_v16, 5  ;;  %v9496_v29 = vrot.slane %v9494_v10, 4  ;;  %vm19953_vm14 = vmmov %vm19950_vm8 }
 0x52b   :  { %v8760_v35 = vsel %vm19944_vm0, %v8536_v0, 0  ;;  %v9483_v43 = vsel %vm12696_vm11, %v9478_v9, %v9482_v26  ;;  %v9487_v53 = vor.u32 %v9486_v40, %v9482_v26  ;;  %v8422_v21 = vadd.f32 %v17624_v30, %v8390_v15  ;;  %vm19955_vm0 = vmmov %vm19950_vm8 }
 0x52c   :  { %9672 = vst.msk [vmem:[#allocation3 + $0xa4] sm:$0xf] %vm19946_vm2, %v9483_v43  ;;  %v8359_v62 = vadd.f32 %v17464_v14, %v7920_v24  ;;  %v8516_v51 = vsel %vm8452_vm4, %v8420_v23, %v8484_v36  ;;  %v8517_v44 = vsel %vm8453_vm1, %v8421_v7, %v8485_v41  ;;  %v8976_v0 = vshll.u32 %v17650_v49, 16  ;;  %vm19954_vm1 = vmmov %vm19946_vm2 }
 0x52d   :  { %v8626_v31 = vpop.permute.xlu1 %8625  ;;  %v17707_v42 = vrot.slane %v8982_v17, 7  ;;  %v7923_v9 = vadd.f32 %v17523_v47, %v17008_v20  ;;  %v17711_v16 = vcombine.high %v8759_v32, %v8759_v32  ;;  %v12088_v26 = vpack.c.bf16 %v8516_v51, %v8516_v51  ;;  %v19948_v47 = vld [vmem:[#allocation32_spill] sm:$0xff]  ;;  %vm19958_vm2 = vmmov %vm19954_vm1 }
 0x52e   :  { %8720 = vst.msk [vmem:[#allocation3 + $0x20] sm:$0xf] %vm19945_vm12, %v8626_v31  ;;  %v9488_v31 = vrot.slane %v9487_v53, 4  ;;  %v8391_v10 = vmul.f32 %v17594_v48, %v8359_v62  ;;  %v8537_v15 = vpack.c.bf16 %v8516_v51, %v8515_v2  ;;  %v8991_v14 = vshrl.u32 %v17694_v58, 16 }
 0x52f   :  { %v17715_v24 = vcombine.low %v8760_v35, %v8760_v35  ;;  %v12089_v49 = vpack.c.bf16 %v8517_v44, %v8517_v44  ;;  %v17720_v7 = vor.u32 %v8976_v0, %v17692_v6  ;;  %v9497_v17 = vor.u32 %v9496_v29, %v9492_v50  ;;  %8665 = vrot.lane.b32.xlu1 %v12088_v26, %s12468_s13 }
 0x530   :  { %v9493_v23 = vsel %vm12696_vm11, %v9488_v31, %v9492_v50  ;;  %v8486_v20 = vmul.f32 %v8422_v21, %v19869_v19  ;;  %vm19949_vm10 = vnez %v19948_v47  ;;  %v8423_v32 = vadd.f32 %v17624_v30, %v8391_v10 }
 0x531   :  { %9673 = vst.msk [vmem:[#allocation3 + $0xac] sm:$0xf] %vm19947_vm6, %v9493_v23  ;;  %v9214_v2 = vsel %vm19949_vm10, %v8537_v15, 0  ;;  %v8360_v40 = vadd.f32 %v17493_v39, %v7923_v9  ;;  %8667 = vrot.lane.b32.xlu0 %v12089_v49, %s12468_s13  ;;  %v8994_v53 = vshll.u32 %v17694_v58, 16  ;;  %vm8454_vm15 = vcmp.ge.f32.partialorder %v8422_v21, 0.0 }
 0x532   :  { %v11781_v36 = vcombine.low %v9214_v2, %v9214_v2  ;;  %v11782_v41 = vcombine.high %v9214_v2, %v9214_v2  ;;  %v7928_v50 = vadd.f32 %v17558_v59, %v17020_v57  ;;  %v17734_v29 = vrot.slane %v8991_v14, 7 }
 0x533   :  { %v9000_v62 = vshrl.u32 %v17711_v16, 16  ;;  %v17737_v51 = vcombine.high %v8760_v35, %v8760_v35  ;;  %v9009_v0 = vshrl.u32 %v17715_v24, 16  ;;  %v9498_v23 = vrot.slane %v9497_v17, 4  ;;  %v19951_v17 = vld [vmem:[#allocation41_spill] sm:$0xff] }
 0x534   :  { %v9500_v31 = vshll.u32 %v11781_v36, 16  ;;  %v9504_v39 = vshrl.u32 %v11781_v36, 16  ;;  %v9510_v9 = vshll.u32 %v11782_v41, 16  ;;  %v9514_v10 = vshrl.u32 %v11782_v41, 16 }
 0x535   :  { %v8628_v26 = vpop.permute.xlu0 %8627  ;;  %v8487_v58 = vmul.f32 %v8423_v32, %v19869_v19  ;;  %v8392_v49 = vmul.f32 %v17594_v48, %v8360_v40  ;;  %v8518_v47 = vsel %vm8454_vm15, %v8422_v21, %v8486_v20  ;;  %vm8455_vm13 = vcmp.ge.f32.partialorder %v8423_v32, 0.0 }
 0x536   :  { %8721 = vst.msk [vmem:[#allocation3 + $0x28] sm:$0xf] %vm19950_vm8, %v8628_v26  ;;  %v9502_v57 = vrot.slane %v9500_v31, 5  ;;  %v9506_v59 = vrot.slane %v9504_v39, 4  ;;  %v8361_v35 = vadd.f32 %v17511_v54, %v7928_v50  ;;  %v17744_v2 = vrot.slane %v9000_v62, 7  ;;  %vm19961_vm8 = vmmov %vm19955_vm0 }
 0x537   :  { %v17746_v36 = vrot.slane %v9009_v0, 7  ;;  %v9018_v41 = vshrl.u32 %v17737_v51, 16  ;;  %vm19952_vm4 = vnez %v19951_v17  ;;  %v9512_v40 = vrot.slane %v9510_v9, 5 }
 0x538   :  { %v8630_v14 = vpop.permute.xlu1 %8629  ;;  %v8761_v43 = vsel %vm19952_vm4, %v8537_v15, 0  ;;  %v9503_v21 = vsel %vm12696_vm11, %v9498_v23, %v9502_v57  ;;  %v9507_v20 = vor.u32 %v9506_v59, %v9502_v57  ;;  %v9516_v31 = vrot.slane %v9514_v10, 4  ;;  %vm19963_vm4 = vmmov %vm19955_vm0 }
 0x539   :  { %8722 = vst.msk [vmem:[#allocation3 + $0x30] sm:$0xf] %vm19953_vm14, %v8630_v14  ;;  %v8632_v39 = vpop.permute.xlu0 %8631  ;;  %v12090_v54 = vpack.c.bf16 %v8518_v47, %v8518_v47  ;;  %v8538_v50 = vpack.c.bf16 %v8518_v47, %v8517_v44  ;;  %v7931_v62 = vadd.f32 %v17572_v4, %v17032_v56  ;;  %v8519_v0 = vsel %vm8455_vm13, %v8423_v32, %v8487_v58  ;;  %v19956_v44 = vld [vmem:[#allocation38_spill] sm:$0xff]  ;;  %vm19962_vm13 = vmmov %vm19954_vm1 }
 0x53a   :  { %9674 = vst.msk [vmem:[#allocation3 + $0xb4] sm:$0xf] %vm19954_vm1, %v9503_v21  ;;  %v9508_v15 = vrot.slane %v9507_v20, 4  ;;  %v8424_v26 = vadd.f32 %v17624_v30, %v8392_v49  ;;  %v8393_v23 = vmul.f32 %v17594_v48, %v8361_v35  ;;  %v12091_v57 = vpack.c.bf16 %v8519_v0, %v8519_v0 }
 0x53b   :  { %8723 = vst.msk [vmem:[#allocation3 + $0x38] sm:$0xf] %vm19955_vm0, %v8632_v39  ;;  %v17762_v9 = vor.u32 %v8994_v53, %v17734_v29  ;;  %8669 = vrot.lane.b32.xlu1 %v12090_v54, %s12468_s13  ;;  %vm19957_vm12 = vnez %v19956_v44  ;;  %v8362_v4 = vadd.f32 %v17534_v13, %v7931_v62  ;;  %v9012_v32 = vshll.u32 %v17715_v24, 16  ;;  %v19959_v62 = vld [vmem:[#allocation42_spill] sm:$0xff] }
 0x53c   :  { %v9215_v56 = vsel %vm19957_vm12, %v8538_v50, 0  ;;  %v17770_v58 = vcombine.low %v8761_v43, %v8761_v43  ;;  %v9513_v49 = vsel %vm12696_vm11, %v9508_v15, %v9512_v40  ;;  %8671 = vrot.lane.b32.xlu0 %v12091_v57, %s12468_s13  ;;  %v7936_v53 = vadd.f32 %v17597_v60, %v17044_v18 }
 0x53d   :  { %v17777_v47 = vrot.slane %v9018_v41, 7  ;;  %v9517_v59 = vor.u32 %v9516_v31, %v9512_v40  ;;  %9675 = vst.msk [vmem:[#allocation3 + $0xbc] sm:$0xf] %vm19958_vm2, %v9513_v49  ;;  %v11783_v35 = vcombine.low %v9215_v56, %v9215_v56  ;;  %v11784_v14 = vcombine.high %v9215_v56, %v9215_v56 }
 0x53e   :  { %v17781_v13 = vor.u32 %v9012_v32, %v17746_v36  ;;  %v17783_v24 = vcombine.high %v8761_v43, %v8761_v43  ;;  %v8488_v17 = vmul.f32 %v8424_v26, %v19869_v19  ;;  %v8425_v21 = vadd.f32 %v17624_v30, %v8393_v23 }
 0x53f   :  { %vm8456_vm6 = vcmp.ge.f32.partialorder %v8424_v26, 0.0  ;;  %v9520_v20 = vshll.u32 %v11783_v35, 16  ;;  %v9524_v39 = vshrl.u32 %v11783_v35, 16  ;;  %v8394_v18 = vmul.f32 %v17594_v48, %v8362_v4 }
 0x540   :  { %v9027_v60 = vshrl.u32 %v17770_v58, 16  ;;  %v9530_v41 = vshll.u32 %v11784_v14, 16  ;;  %v9534_v40 = vshrl.u32 %v11784_v14, 16  ;;  %v8363_v31 = vadd.f32 %v17562_v45, %v7936_v53 }
 0x541   :  { %v9518_v54 = vrot.slane %v9517_v59, 4  ;;  %vm19960_vm10 = vnez %v19959_v62  ;;  %v9522_v15 = vrot.slane %v9520_v20, 5  ;;  %v9526_v57 = vrot.slane %v9524_v39, 4 }
 0x542   :  { %v8762_v43 = vsel %vm19960_vm10, %v8538_v50, 0  ;;  %v8489_v44 = vmul.f32 %v8425_v21, %v19869_v19  ;;  %v9532_v23 = vrot.slane %v9530_v41, 5  ;;  %v9536_v56 = vrot.slane %v9534_v40, 4  ;;  %v8634_v49 = vpop.permute.xlu1 %8633  ;;  %vm19969_vm10 = vmmov %vm19963_vm4 }
 0x543   :  { %v8520_v32 = vsel %vm8456_vm6, %v8424_v26, %v8488_v17  ;;  %vm8457_vm15 = vcmp.ge.f32.partialorder %v8425_v21, 0.0  ;;  %v9523_v4 = vsel %vm12696_vm11, %v9518_v54, %v9522_v15  ;;  %v9527_v35 = vor.u32 %v9526_v57, %v9522_v15  ;;  %8724 = vst.msk [vmem:[#allocation3 + $0x40] sm:$0xf] %vm19961_vm8, %v8634_v49  ;;  %v8636_v45 = vpop.permute.xlu0 %8635  ;;  %v19964_v57 = vld [vmem:[#allocation43_spill] sm:$0xff]  ;;  %vm19968_vm6 = vmmov %vm19954_vm1 }
 0x544   :  { %v8426_v14 = vadd.f32 %v17624_v30, %v8394_v18  ;;  %v17798_v53 = vrot.slane %v9027_v60, 7  ;;  %v9036_v59 = vshrl.u32 %v17783_v24, 16  ;;  %9676 = vst.msk [vmem:[#allocation3 + $0xc4] sm:$0xf] %vm19962_vm13, %v9523_v4  ;;  %v8395_v26 = vmul.f32 %v17594_v48, %v8363_v31  ;;  %vm19973_vm8 = vmmov %vm19954_vm1 }
 0x545   :  { %8725 = vst.msk [vmem:[#allocation3 + $0x48] sm:$0xf] %vm19963_vm4, %v8636_v45  ;;  %v9528_v17 = vrot.slane %v9527_v35, 4  ;;  %v12092_v20 = vpack.c.bf16 %v8520_v32, %v8520_v32  ;;  %v8539_v39 = vpack.c.bf16 %v8520_v32, %v8519_v0  ;;  %v7939_v18 = vadd.f32 %v17627_v25, %v17056_v3 }
 0x546   :  { %v11751_v41 = vcombine.low %v8762_v43, %v8762_v43  ;;  %v17806_v40 = vcombine.high %v8762_v43, %v8762_v43  ;;  %v9537_v54 = vor.u32 %v9536_v56, %v9532_v23  ;;  %v8521_v60 = vsel %vm8457_vm15, %v8425_v21, %v8489_v44  ;;  %vm19970_vm15 = vmmov %vm19963_vm4 }
 0x547   :  { %v9030_v62 = vshll.u32 %v17770_v58, 16  ;;  %v9533_v15 = vsel %vm12696_vm11, %v9528_v17, %v9532_v23  ;;  %v8490_v31 = vmul.f32 %v8426_v14, %v19869_v19  ;;  %8673 = vrot.lane.b32.xlu1 %v12092_v20, %s12468_s13  ;;  %vm19965_vm14 = vnez %v19964_v57  ;;  %vm19978_vm4 = vmmov %vm19954_vm1  ;;  %v19984_v57 = vld [vmem:[#allocation39_spill] sm:$0xff] }
 0x548   :  { %v9216_v0 = vsel %vm19965_vm14, %v8539_v39, 0  ;;  %9677 = vst.msk [vmem:[#allocation3 + $0xcc] sm:$0xf] %vm19954_vm1, %v9533_v15  ;;  %v8427_v3 = vadd.f32 %v17624_v30, %v8395_v26  ;;  %v8364_v21 = vadd.f32 %v17575_v38, %v7939_v18  ;;  %v17819_v44 = vrot.slane %v9036_v59, 7 }
 0x549   :  { %v11785_v25 = vcombine.low %v9216_v0, %v9216_v0  ;;  %v11786_v43 = vcombine.high %v9216_v0, %v9216_v0  ;;  %vm8458_vm0 = vcmp.ge.f32.partialorder %v8426_v14, 0.0  ;;  %v12093_v58 = vpack.c.bf16 %v8521_v60, %v8521_v60 }
 0x54a   :  { %v7944_v23 = vadd.f32 %v17642_v52, %v17074_v5  ;;  %v17824_v56 = vor.u32 %v9030_v62, %v17798_v53  ;;  %v9045_v32 = vshrl.u32 %v11751_v41, 16  ;;  %v9054_v49 = vshrl.u32 %v17806_v40, 16 }
 0x54b   :  { %v9538_v4 = vrot.slane %v9537_v54, 4  ;;  %v9540_v35 = vshll.u32 %v11785_v25, 16  ;;  %v9544_v45 = vshrl.u32 %v11785_v25, 16  ;;  %v9550_v26 = vshll.u32 %v11786_v43, 16  ;;  %8675 = vrot.lane.b32.xlu0 %v12093_v58, %s12468_s13 }
 0x54c   :  { %v9554_v17 = vshrl.u32 %v11786_v43, 16  ;;  %v8491_v38 = vmul.f32 %v8427_v3, %v19869_v19  ;;  %v8396_v59 = vmul.f32 %v17594_v48, %v8364_v21  ;;  %v8365_v20 = vadd.f32 %v17604_v33, %v7944_v23  ;;  %v19966_v43 = vld [vmem:[#allocation46_spill] sm:$0xff] }
 0x54d   :  { %v8522_v5 = vsel %vm8458_vm0, %v8426_v14, %v8490_v31  ;;  %v9542_v52 = vrot.slane %v9540_v35, 5  ;;  %v9546_v18 = vrot.slane %v9544_v45, 4  ;;  %v9552_v62 = vrot.slane %v9550_v26, 5  ;;  %v8638_v14 = vpop.permute.xlu1 %8637  ;;  %vm19986_vm0 = vmmov %vm19954_vm1 }
 0x54e   :  { %v9556_v15 = vrot.slane %v9554_v17, 4  ;;  %v17832_v54 = vrot.slane %v9045_v32, 7  ;;  %v9048_v0 = vshll.u32 %v11751_v41, 16  ;;  %vm8459_vm12 = vcmp.ge.f32.partialorder %v8427_v3, 0.0  ;;  %8726 = vst.msk [vmem:[#allocation3 + $0x50] sm:$0xf] %vm19969_vm10, %v8638_v14 }
 0x54f   :  { %v17834_v25 = vrot.slane %v9054_v49, 7  ;;  %vm19967_vm2 = vnez %v19966_v43  ;;  %v9543_v21 = vsel %vm12696_vm11, %v9538_v4, %v9542_v52  ;;  %v9547_v33 = vor.u32 %v9546_v18, %v9542_v52  ;;  %v8640_v41 = vpop.permute.xlu0 %8639  ;;  %v9167_v43 = vld [vmem:[#allocation3 + $0x18] sm:$0xf] }
 0x550   :  { %v8763_v58 = vsel %vm19967_vm2, %v8539_v39, 0  ;;  %9678 = vst.msk [vmem:[#allocation3 + $0xd4] sm:$0xf] %vm19968_vm6, %v9543_v21  ;;  %v8428_v31 = vadd.f32 %v17624_v30, %v8396_v59  ;;  %v8397_v23 = vmul.f32 %v17594_v48, %v8365_v20  ;;  %v12094_v32 = vpack.c.bf16 %v8522_v5, %v8522_v5  ;;  %vm19991_vm2 = vmmov %vm19986_vm0 }
 0x551   :  { %v8540_v35 = vpack.c.bf16 %v8522_v5, %v8521_v60  ;;  %v9548_v49 = vrot.slane %v9547_v33, 4  ;;  %v9557_v45 = vor.u32 %v9556_v15, %v9552_v62  ;;  %v7947_v39 = vadd.f32 %v17658_v55, %v17086_v46  ;;  %8727 = vst.msk [vmem:[#allocation3 + $0x58] sm:$0xf] %vm19970_vm15, %v8640_v41  ;;  %vm19998_vm6 = vmmov %vm19986_vm0 }
 0x552   :  { %v8523_v4 = vsel %vm8459_vm12, %v8427_v3, %v8491_v38  ;;  %v17849_v26 = vor.u32 %v9048_v0, %v17832_v54  ;;  %8677 = vrot.lane.b32.xlu1 %v12094_v32, %s12468_s13  ;;  %v8429_v55 = vadd.f32 %v17624_v30, %v8397_v23  ;;  %v17860_v38 = vcombine.low %v8763_v58, %v8763_v58  ;;  %vm19987_vm12 = vmmov %vm19969_vm10 }
 0x553   :  { %v8764_v60 = vsel %vm19542_vm5, %v8540_v35, 0  ;;  %v9217_v20 = vsel %vm19711_vm7, %v8540_v35, 0  ;;  %v12095_v5 = vpack.c.bf16 %v8523_v4, %v8523_v4  ;;  %v9553_v46 = vsel %vm12696_vm11, %v9548_v49, %v9552_v62  ;;  %v19974_v49 = vld [vmem:[#allocation37_spill] sm:$0xff] }
 0x554   :  { %v11787_v3 = vcombine.low %v9217_v20, %v9217_v20  ;;  %v17862_v18 = vcombine.high %v8763_v58, %v8763_v58  ;;  %9679 = vst.msk [vmem:[#allocation3 + $0xdc] sm:$0xf] %vm19973_vm8, %v9553_v46  ;;  %v11788_v15 = vcombine.high %v9217_v20, %v9217_v20  ;;  %v8366_v0 = vadd.f32 %v17633_v61, %v7947_v39  ;;  %v19975_v61 = vld [vmem:[#allocation50_spill] sm:$0xff]  ;;  %vm20003_vm8 = vmmov %vm19986_vm0 }
 0x555   :  { %8679 = vrot.lane.b32.xlu0 %v12095_v5, %s12468_s13  ;;  %v9558_v21 = vrot.slane %v9557_v45, 4  ;;  %vm8460_vm5 = vcmp.ge.f32.partialorder %v8428_v31, 0.0  ;;  %v8492_v33 = vmul.f32 %v8428_v31, %v19869_v19  ;;  %v17868_v62 = vcombine.low %v8764_v60, %v8764_v60 }
 0x556   :  { %v9560_v14 = vshll.u32 %v11787_v3, 16  ;;  %v9564_v23 = vshrl.u32 %v11787_v3, 16  ;;  %v9570_v32 = vshll.u32 %v11788_v15, 16  ;;  %v9574_v35 = vshrl.u32 %v11788_v15, 16 }
 0x557   :  { %vm8461_vm7 = vcmp.ge.f32.partialorder %v8429_v55, 0.0  ;;  %v8493_v58 = vmul.f32 %v8429_v55, %v19869_v19  ;;  %v8398_v41 = vmul.f32 %v17594_v48, %v8366_v0  ;;  %vm19976_vm13 = vnez %v19975_v61 }
 0x558   :  { %v9168_v39 = vsel %vm19976_vm13, %v19974_v49, %v9167_v43  ;;  %v9562_v17 = vrot.slane %v9560_v14, 5  ;;  %v9566_v45 = vrot.slane %v9564_v23, 4  ;;  %v9572_v59 = vrot.slane %v9570_v32, 5  ;;  %v19979_v23 = vld [vmem:[#allocation44_spill] sm:$0xff]  ;;  %v19980_v32 = vld [vmem:[#allocation26_spill] sm:$0xff]  ;;  %vm20017_vm13 = vmmov %vm19986_vm0 }
 0x559   :  { %v9576_v20 = vrot.slane %v9574_v35, 4  ;;  %9169 = vst [vmem:[#allocation3 + $0x18] sm:$0xf] %v9168_v39  ;;  %v9063_v5 = vshrl.u32 %v17860_v38, 16  ;;  %v9066_v46 = vshll.u32 %v17860_v38, 16  ;;  %v9072_v3 = vshrl.u32 %v17862_v18, 16 }
 0x55a   :  { %v17878_v15 = vcombine.high %v8764_v60, %v8764_v60  ;;  %v9081_v52 = vshrl.u32 %v17868_v62, 16  ;;  %v9563_v48 = vsel %vm12696_vm11, %v9558_v21, %v9562_v17  ;;  %v9567_v0 = vor.u32 %v9566_v45, %v9562_v17  ;;  %v19983_v39 = vld [vmem:[#allocation40_spill] sm:$0xff]  ;;  %v19988_v45 = vld [vmem:[#allocation27_spill] sm:$0xff] }
 0x55b   :  { %v8430_v43 = vadd.f32 %v17624_v30, %v8398_v41  ;;  %9680 = vst.msk [vmem:[#allocation3 + $0xe4] sm:$0xf] %vm19978_vm4, %v9563_v48  ;;  %v8524_v14 = vsel %vm8460_vm5, %v8428_v31, %v8492_v33  ;;  %v19981_v35 = vrot.slane %v19980_v32, 4  ;;  %v8525_v60 = vsel %vm8461_vm7, %v8429_v55, %v8493_v58  ;;  %vm20004_vm5 = vmmov %vm19986_vm0 }
 0x55c   :  { %19977 = vst [vmem:[#allocation8_spill] sm:$0xff] %v17878_v15  ;;  %v19985_v50 = vrot.slane %v19984_v57, 4  ;;  %v9568_v30 = vrot.slane %v9567_v0, 4  ;;  %v9577_v41 = vor.u32 %v9576_v20, %v9572_v59  ;;  %v12096_v33 = vpack.c.bf16 %v8524_v14, %v8524_v14  ;;  %v19989_v57 = vld [vmem:[#allocation31_spill] sm:$0xff]  ;;  %vm20006_vm7 = vmmov %vm19987_vm12 }
 0x55d   :  { %v8862_v61 = vsel %vm13643_vm3, %v19981_v35, %v19979_v23  ;;  %v8642_v17 = vpop.permute.xlu1 %8641  ;;  %vm8462_vm14 = vcmp.ge.f32.partialorder %v8430_v43, 0.0  ;;  %v8494_v31 = vmul.f32 %v8430_v43, %v19869_v19  ;;  %v8541_v55 = vpack.c.bf16 %v8524_v14, %v8523_v4  ;;  %v19992_v19 = vld [vmem:[#allocation59_spill] sm:$0xff]  ;;  %v19995_v4 = vld [vmem:[#allocation60_spill] sm:$0xff]  ;;  %v19996_v14 = vld [vmem:[#allocation57_spill] sm:$0xff] }
 0x55e   :  { %v8871_v21 = vsel %vm13643_vm3, %v19985_v50, %v19983_v39  ;;  %9170 = vst.msk [vmem:[#allocation3 + $0x20] sm:$0xf] %vm19954_vm1, %v8862_v61  ;;  %v12097_v58 = vpack.c.bf16 %v8525_v60, %v8525_v60  ;;  %v19990_v48 = vrot.slane %v19989_v57, 4  ;;  %v9573_v20 = vsel %vm12696_vm11, %v9568_v30, %v9572_v59  ;;  %v19993_v23 = vld [vmem:[#allocation47_spill] sm:$0xff]  ;;  %8681 = vrot.lane.b32.xlu1 %v12096_v33, %s12468_s13  ;;  %v19999_v59 = vld [vmem:[#allocation54_spill] sm:$0xff] }
 0x55f   :  { %9171 = vst.msk [vmem:[#allocation3 + $0x28] sm:$0xf] %vm19986_vm0, %v8871_v21  ;;  %v8526_v0 = vsel %vm8462_vm14, %v8430_v43, %v8494_v31  ;;  %v19994_v32 = vrot.slane %v19993_v23, 4  ;;  %v19997_v61 = vrot.slane %v19996_v14, 4  ;;  %vm20000_vm10 = vnez %v19999_v59  ;;  %v20001_v21 = vld [vmem:[#allocation52_spill] sm:$0xff] }
 0x560   :  { %8728 = vst.msk [vmem:[#allocation3 + $0x60] sm:$0xf] %vm19987_vm12, %v8642_v17  ;;  %v8880_v50 = vsel %vm13643_vm3, %v19990_v48, %v19988_v45  ;;  %v8765_v43 = vsel %vm20000_vm10, %v8541_v55, 0  ;;  %vm20002_vm15 = vnez %v20001_v21  ;;  %8683 = vrot.lane.b32.xlu0 %v12097_v58, %s12468_s13  ;;  %v12098_v30 = vpack.c.bf16 %v8526_v0, %v8526_v0  ;;  %v8644_v45 = vpop.permute.xlu0 %8643  ;;  %vm20024_vm12 = vmmov %vm19991_vm2 }
 0x561   :  { %9172 = vst.msk [vmem:[#allocation3 + $0x30] sm:$0xf] %vm19991_vm2, %v8880_v50  ;;  %v8889_v35 = vsel %vm13643_vm3, %v19994_v32, %v19992_v19  ;;  %v8898_v39 = vsel %vm13643_vm3, %v19997_v61, %v19995_v4  ;;  %v9218_v17 = vsel %vm20002_vm15, %v8541_v55, 0  ;;  %v8542_v31 = vpack.c.bf16 %v8526_v0, %v8525_v60  ;;  %v20008_v19 = vld [vmem:[#allocation45_spill] sm:$0xff]  ;;  %v20009_v60 = vld [vmem:[#allocation58_spill] sm:$0xff]  ;;  %vm20029_vm15 = vmmov %vm20004_vm5 }
 0x562   :  { %9681 = vst.msk [vmem:[#allocation3 + $0xec] sm:$0xf] %vm19998_vm6, %v9573_v20  ;;  %v17928_v57 = vrot.slane %v9063_v5, 7  ;;  %v17930_v48 = vcombine.low %v8765_v43, %v8765_v43  ;;  %v11789_v33 = vcombine.low %v9218_v17, %v9218_v17  ;;  %v11790_v50 = vcombine.high %v9218_v17, %v9218_v17  ;;  %v20011_v32 = vld [vmem:[#allocation30_spill] sm:$0xff]  ;;  %v20012_v5 = vld [vmem:[#allocation36_spill] sm:$0xff]  ;;  %8685 = vrot.lane.b32.xlu1 %v12098_v30, %s12468_s13 }
 0x563   :  { %9173 = vst.msk [vmem:[#allocation3 + $0x38] sm:$0xf] %vm20003_vm8, %v8889_v35  ;;  %v9084_v20 = vshll.u32 %v17868_v62, 16  ;;  %v8766_v58 = vsel %vm19735_vm9, %v8542_v31, 0  ;;  %v20010_v0 = vrot.slane %v20009_v60, 4  ;;  %v20013_v35 = vrot.slane %v20012_v5, 4  ;;  %vm20016_vm9 = vmmov %vm19986_vm0 }
 0x564   :  { %9174 = vst.msk [vmem:[#allocation3 + $0x40] sm:$0xf] %vm20004_vm5, %v8898_v39  ;;  %20005 = vst [vmem:[#allocation10_spill] sm:$0xff] %v17928_v57  ;;  %v17946_v14 = vrot.slane %v9081_v52, 7  ;;  %v9090_v61 = vshrl.u32 %v17878_v15, 16  ;;  %v9578_v62 = vrot.slane %v9577_v41, 4  ;;  %v17949_v39 = vcombine.high %v8765_v43, %v8765_v43 }
 0x565   :  { %8729 = vst.msk [vmem:[#allocation3 + $0x68] sm:$0xf] %vm20006_vm7, %v8644_v45  ;;  %v8907_v23 = vsel %vm13643_vm3, %v20010_v0, %v20008_v19  ;;  %v8916_v4 = vsel %vm13643_vm3, %v20013_v35, %v20011_v32  ;;  %v9580_v59 = vshll.u32 %v11789_v33, 16  ;;  %v9584_v21 = vshrl.u32 %v11789_v33, 16  ;;  %v20018_v60 = vld [vmem:[#allocation55_spill] sm:$0xff]  ;;  %vm20023_vm0 = vmmov %vm20006_vm7 }
 0x566   :  { %20014 = vst [vmem:[#allocation6_spill] sm:$0xff] %v17946_v14  ;;  %20015 = vst [vmem:[#allocation11_spill] sm:$0xff] %v17949_v39  ;;  %v9590_v17 = vshll.u32 %v11790_v50, 16  ;;  %v9594_v45 = vshrl.u32 %v11790_v50, 16  ;;  %v9099_v55 = vshrl.u32 %v17930_v48, 16  ;;  %v17955_v19 = vcombine.low %v8766_v58, %v8766_v58  ;;  %v9693_v10 = vld [vmem:[#allocation3 + $0x28] sm:$0xff] }
 0x567   :  { %9175 = vst.msk [vmem:[#allocation3 + $0x48] sm:$0xf] %vm20016_vm9, %v8907_v23  ;;  %v11760_v52 = vcombine.high %v8766_v58, %v8766_v58  ;;  %vm20019_vm4 = vnez %v20018_v60  ;;  %v12346_v43 = vld [vmem:[#allocation3 + $0x18] ss:$8 sps:$4 sm:$0xff]   ;;  %v12348_v0 = vld [vmem:[#allocation3 + $0x1c] ss:$8 sps:$4 sm:$0xff]   ;;  %v17962_v33 = vor.u32 %v9066_v46, %v17928_v57  ;;  %v17969_v50 = vor.u32 %v9084_v20, %v17946_v14  ;;  %v8648_v60 = vpop.permute.xlu0 %8647  ;;  %vm20028_vm10 = vmmov %vm20023_vm0 }
 0x568   :  { %9176 = vst.msk [vmem:[#allocation3 + $0x50] sm:$0xf] %vm20017_vm13, %v8916_v4  ;;  %v9219_v41 = vsel %vm20019_vm4, %v8542_v31, 0  ;;  %v9582_v32 = vrot.slane %v9580_v59, 5  ;;  %v9586_v23 = vrot.slane %v9584_v21, 4  ;;  %v9592_v5 = vrot.slane %v9590_v17, 5  ;;  %v8646_v4 = vpop.permute.xlu1 %8645  ;;  %vm20034_vm7 = vmmov %vm20004_vm5 }
 0x569   :  { %v9596_v35 = vrot.slane %v9594_v45, 4  ;;  %v17966_v30 = vrot.slane %v9072_v3, 7  ;;  %v17971_v58 = vrot.slane %v9090_v61, 7  ;;  %vm20020_vm14 = vcmask 523264   ;;  %v17975_v31 = vld [vmem:[#allocation3 + $0x2c] ss:$8 sps:$4 sm:$0xff]   ;;  %vm20035_vm9 = vmmov %vm20004_vm5 }
 0x56a   :  { %11825 = vmatprep.mubr.msk.bf16.mxu1 %vm20020_vm14, %v12348_v0  ;;  %vm20021_vm1 = vmmov %vm20020_vm14  ;;  %20022 = vst [vmem:[#allocation9_spill] sm:$0xff] %v17975_v31  ;;  %v9583_v38 = vsel %vm12696_vm11, %v9578_v62, %v9582_v32  ;;  %v9587_v46 = vor.u32 %v9586_v23, %v9582_v32  ;;  %v9117_v3 = vshrl.u32 %v17955_v19, 16  ;;  %v17981_v20 = vrot.slane %v9099_v55, 7  ;;  %v12452_v62 = vld [vmem:[%s18823_s5 + $0xf8] sm:$0xff]   ;;  %v9694_v45 = vld [vmem:[#allocation3 + $0x30] sm:$0xff] }
 0x56b   :  { %11844 = vmatprep.mubr.msk.bf16.mxu0 %vm20021_vm1, %v12348_v0  ;;  %v9597_v59 = vor.u32 %v9596_v35, %v9592_v5  ;;  %9948 = vmatmul.mubr.bf16.vlgmr.msra.gmra.mxu1 %v12346_v43  ;;  %8730 = vst.msk [vmem:[#allocation3 + $0x70] sm:$0xf] %vm20023_vm0, %v8646_v4  ;;  %v9108_v61 = vshrl.u32 %v17949_v39, 16  ;;  %v9126_v21 = vshrl.u32 %v11760_v52, 16  ;;  %v11791_v17 = vcombine.low %v9219_v41, %v9219_v41  ;;  %vm20025_vm2 = vmmov %vm20021_vm1  ;;  %v17999_v57 = vld [vmem:[#allocation3 + $0x3c] ss:$8 sps:$4 sm:$0xff]  }
 0x56c   :  { %10129 = vmatmul.mubr.bf16.gmra.mxu0 %v12346_v43  ;;  %9682 = vst.msk [vmem:[#allocation3 + $0xf4] sm:$0xf] %vm20024_vm12, %v9583_v38  ;;  %10474 = vmatpush1.bf16.msra.mxu1 %v12452_v62  ;;  %v9588_v43 = vrot.slane %v9587_v46, 4  ;;  %v9119_v0 = vrot.slane %v9117_v3, 7  ;;  %v9129_v55 = vshll.u32 %v11760_v52, 16  ;;  %v11792_v32 = vcombine.high %v9219_v41, %v9219_v41  ;;  %vm20026_vm6 = vmmov %vm20021_vm1 }
 0x56d   :  { %11826 = vmatprep.mubr.msk.bf16.mxu1 %vm20025_vm2, %v17975_v31  ;;  %11845 = vmatprep.mubr.msk.bf16.mxu0 %vm20026_vm6, %v17975_v31  ;;  %v20027_v23 = vmov 0   ;;  %8731 = vst.msk [vmem:[#allocation3 + $0x78] sm:$0xf] %vm20028_vm10, %v8648_v60  ;;  %v9598_v35 = vrot.slane %v9597_v59, 4  ;;  %v9128_v4 = vrot.slane %v9126_v21, 7  ;;  %v9600_v38 = vshll.u32 %v11791_v17, 16  ;;  %vm20042_vm13 = vmmov %vm20021_vm1 }
 0x56e   :  { %10475 = vmatprep.subr.bf16.mxu1 %v20027_v23  ;;  %v9604_v62 = vshrl.u32 %v11791_v17, 16  ;;  %v9593_v39 = vsel %vm12696_vm11, %v9588_v43, %v9592_v5  ;;  %v9124_v14 = vrot.slane %v9119_v0, 4  ;;  %v9610_v46 = vshll.u32 %v11792_v32, 16  ;;  %v12453_v59 = vld [vmem:[%s18823_s5 + $0xf0] sm:$0xff]   ;;  %v9201_v21 = vld [vmem:[#allocation3 + $0x118] sm:$0x1]  ;;  %vm20043_vm4 = vmmov %vm20021_vm1 }
 0x56f   :  { %v17996_v3 = vcombine.low %v9693_v10, %v9694_v45  ;;  %9683 = vst.msk [vmem:[#allocation3 + $0xfc] sm:$0xf] %vm20029_vm15, %v9593_v39  ;;  %v9131_v52 = vor.u32 %v9129_v55, %v9128_v4  ;;  %v9133_v41 = vrot.slane %v9128_v4, 4  ;;  %v9602_v31 = vrot.slane %v9600_v38, 5  ;;  %v20032_v55 = vld [vmem:[#allocation56_spill] sm:$0xff]  ;;  %vm20044_vm14 = vmmov %vm20004_vm5 }
 0x570   :  { %v9606_v15 = vrot.slane %v9604_v62, 4  ;;  %10476 = vmatpush1.bf16.msra.mxu1 %v12453_v59  ;;  %v9612_v17 = vrot.slane %v9610_v46, 5  ;;  %v9614_v5 = vshrl.u32 %v11792_v32, 16  ;;  %v20030_v10 = vrot.slane %v17460_v12, 4  ;;  %vm20045_vm1 = vmmov %vm20004_vm5  ;;  %v20046_v59 = vld [vmem:[#allocation5_spill] sm:$0xff] }
 0x571   :  { %v20031_v45 = vrot.slane %v17514_v28, 4  ;;  %10477 = vmatprep.subr.bf16.mxu1 %v20027_v23  ;;  %v18017_v43 = vsel %vm13643_vm3, %v9124_v14, %v9131_v52  ;;  %vm20033_vm8 = vnez %v20032_v55  ;;  %v9603_v12 = vsel %vm12696_vm11, %v9598_v35, %v9602_v31  ;;  %v20037_v14 = vld [vmem:[#allocation24_spill] sm:$0xff]  ;;  %v20040_v35 = vld [vmem:[#allocation25_spill] sm:$0xff]  ;;  %vm20048_vm0 = vmmov %vm20045_vm1 }
 0x572   :  { %v8925_v39 = vsel %vm13643_vm3, %v20030_v10, %v17542_v1  ;;  %v9202_v32 = vsel %vm20033_vm8, %v9133_v41, %v9201_v21  ;;  %v9607_v4 = vor.u32 %v9606_v15, %v9602_v31  ;;  %v9102_v28 = vshll.u32 %v17930_v48, 16  ;;  %9684 = vst.msk [vmem:[#allocation3 + $0x104] sm:$0xf] %vm20035_vm9, %v9603_v12  ;;  %v20039_v31 = vld [vmem:[#allocation7_spill] sm:$0xff]  ;;  %v12454_v10 = vld [vmem:[%s18823_s5 + $0xe8] sm:$0xff]   ;;  %vm20052_vm12 = vmmov %vm20048_vm0 }
 0x573   :  { %v8934_v60 = vsel %vm13643_vm3, %v20031_v45, %v17550_v22  ;;  %9177 = vst.msk [vmem:[#allocation3 + $0x58] sm:$0xf] %vm20004_vm5, %v8925_v39  ;;  %9203 = vst [vmem:[#allocation3 + $0x118] sm:$0x1] %v9202_v32  ;;  %v9616_v1 = vrot.slane %v9614_v5, 4  ;;  %9956 = vmatmul.mubr.bf16.gmra.mxu1 %v17996_v3  ;;  %v20036_v22 = vld [vmem:[#allocation35_spill] sm:$0xff] }
 0x574   :  { %9178 = vst.msk [vmem:[#allocation3 + $0x60] sm:$0xf] %vm20034_vm7, %v8934_v60  ;;  %10137 = vmatmul.mubr.bf16.gmra.mxu0 %v17996_v3  ;;  %v20038_v38 = vrot.slane %v20037_v14, 4  ;;  %v20041_v62 = vrot.slane %v20040_v35, 4  ;;  %v18039_v46 = vrot.slane %v9108_v61, 7  ;;  %v9120_v52 = vshll.u32 %v17955_v19, 16  ;;  %11827 = vmatprep.mubr.msk.bf16.mxu1 %vm20042_vm13, %v17999_v57  ;;  %v8652_v35 = vpop.permute.xlu0 %8651  ;;  %vm20060_vm6 = vmmov %vm20048_vm0 }
 0x575   :  { %v9608_v41 = vrot.slane %v9607_v4, 4  ;;  %11846 = vmatprep.mubr.msk.bf16.mxu0 %vm20043_vm4, %v17999_v57  ;;  %v20047_v21 = vrot.slane %v20046_v59, 4  ;;  %v9104_v5 = vor.u32 %v9102_v28, %v17981_v20  ;;  %v9617_v19 = vor.u32 %v9616_v1, %v9612_v17  ;;  %10478 = vmatpush1.bf16.msra.mxu1 %v12454_v10  ;;  %v9696_v4 = vld [vmem:[#allocation3 + $0x40] sm:$0xff]  ;;  %v9686_v14 = vld [vmem:[#allocation3 + $0x114] sm:$0xf]  ;;  %vm20061_vm15 = vmmov %vm20048_vm0 }
 0x576   :  { %v8943_v15 = vsel %vm13643_vm3, %v20038_v38, %v20036_v22  ;;  %v8952_v48 = vsel %vm13643_vm3, %v20041_v62, %v20039_v31  ;;  %v20049_v39 = vrot.slane %v17648_v63, 4  ;;  %v20050_v60 = vrot.slane %v17707_v42, 4  ;;  %10479 = vmatprep.subr.bf16.mxu1 %v20027_v23  ;;  %v9695_v38 = vld [vmem:[#allocation3 + $0x38] sm:$0xff]  ;;  %8733 = vst.msk [vmem:[#allocation3 + $0x88] sm:$0xf] %vm20028_vm10, %v8652_v35  ;;  %vm20062_vm8 = vmmov %vm20043_vm4  ;;  %v9697_v10 = vld [vmem:[#allocation3 + $0x48] sm:$0xff] }
 0x577   :  { %9179 = vst.msk [vmem:[#allocation3 + $0x68] sm:$0xf] %vm20044_vm14, %v8943_v15  ;;  %v8961_v61 = vsel %vm13643_vm3, %v20047_v21, %v17664_v34  ;;  %v9079_v55 = vrot.slane %v17966_v30, 4  ;;  %v9122_v32 = vor.u32 %v9120_v52, %v9119_v0  ;;  %v9613_v12 = vsel %vm12696_vm11, %v9608_v41, %v9612_v17  ;;  %v18096_v15 = vld [vmem:[#allocation3 + $0x4c] ss:$8 sps:$4 sm:$0xff]   ;;  %vm20055_vm11 = vmmov %vm20028_vm10 }
 0x578   :  { %9180 = vst.msk [vmem:[#allocation3 + $0x70] sm:$0xf] %vm20045_vm1, %v8952_v48  ;;  %v8979_v45 = vsel %vm13643_vm3, %v20049_v39, %v17720_v7  ;;  %v8997_v34 = vsel %vm13643_vm3, %v20050_v60, %v17762_v9  ;;  %v20051_v63 = vrot.slane %v17744_v2, 4  ;;  %v9097_v28 = vrot.slane %v17971_v58, 4  ;;  %v8650_v9 = vpop.permute.xlu1 %8649  ;;  %v20058_v52 = vld [vmem:[#allocation33_spill] sm:$0xff]  ;;  %vm20063_vm5 = vmmov %vm20043_vm4  ;;  %v12456_v21 = vld [vmem:[%s18823_s5 + $0xd8] sm:$0xff]  }
 0x579   :  { %9181 = vst.msk [vmem:[#allocation3 + $0x78] sm:$0xf] %vm20048_vm0, %v8961_v61  ;;  %v9618_v1 = vrot.slane %v9617_v19, 4  ;;  %v20053_v27 = vrot.slane %v17777_v47, 4  ;;  %v20054_v17 = vrot.slane %v17819_v44, 4  ;;  %v9115_v22 = vrot.slane %v18039_v46, 4  ;;  %vm20064_vm7 = vmmov %vm20028_vm10 }
 0x57a   :  { %v18077_v7 = vsel %vm13643_vm3, %v20051_v63, %v17781_v13  ;;  %9685 = vst.msk [vmem:[#allocation3 + $0x10c] sm:$0xf] %vm20052_vm12, %v9613_v12  ;;  %v20056_v31 = vrot.slane %v17646_v37, 4  ;;  %v20057_v62 = vrot.slane %v17834_v25, 4  ;;  %v18114_v48 = vsel %vm13643_vm3, %v9079_v55, %v17969_v50  ;;  %v9698_v61 = vld [vmem:[#allocation3 + $0x50] sm:$0xff]  ;;  %vm20065_vm9 = vmmov %vm20043_vm4  ;;  %v12458_v55 = vld [vmem:[%s18823_s5 + $0xc8] sm:$0xff]  }
 0x57b   :  { %v18086_v0 = vsel %vm13643_vm3, %v20053_v27, %v17824_v56  ;;  %v18093_v13 = vsel %vm13643_vm3, %v20054_v17, %v17849_v26  ;;  %8732 = vst.msk [vmem:[#allocation3 + $0x80] sm:$0xf] %vm20055_vm11, %v8650_v9  ;;  %vm20059_vm2 = vnez %v20058_v52  ;;  %v18118_v37 = vcombine.low %v9695_v38, %v9696_v4  ;;  %v18148_v39 = vld [vmem:[#allocation3 + $0x5c] ss:$8 sps:$4 sm:$0xff]   ;;  %vm20066_vm13 = vmmov %vm20043_vm4  ;;  %v18172_v4 = vld [vmem:[#allocation3 + $0x6c] ss:$8 sps:$4 sm:$0xff]  }
 0x57c   :  { %v8970_v56 = vsel %vm13643_vm3, %v20056_v31, %v17675_v8  ;;  %v18109_v26 = vsel %vm13643_vm3, %v20057_v62, %v17962_v33  ;;  %v9687_v41 = vsel %vm20059_vm2, %v9618_v1, %v9686_v14  ;;  %v12455_v8 = vld [vmem:[%s18823_s5 + $0xe0] sm:$0xff]   ;;  %v18127_v33 = vsel %vm13643_vm3, %v9097_v28, %v9104_v5  ;;  %9183 = vst.msk [vmem:[#allocation3 + $0x88] sm:$0xf] %vm20061_vm15, %v8979_v45  ;;  %vm20067_vm4 = vmmov %vm20048_vm0  ;;  %v9699_v12 = vld [vmem:[#allocation3 + $0x58] sm:$0xff] }
 0x57d   :  { %9182 = vst.msk [vmem:[#allocation3 + $0x80] sm:$0xf] %vm20060_vm6, %v8970_v56  ;;  %10480 = vmatpush1.bf16.msra.mxu1 %v12455_v8  ;;  %9688 = vst [vmem:[#allocation3 + $0x114] sm:$0xf] %v9687_v41  ;;  %v18133_v50 = vsel %vm13643_vm3, %v9115_v22, %v9122_v32  ;;  %10145 = vmatmul.mubr.bf16.gmra.mxu0 %v18118_v37  ;;  %v8985_v59 = vshll.u32 %v17652_v11, 16  ;;  %v8980_v5 = vrot.slane %v17692_v6, 4  ;;  %v8654_v60 = vpop.permute.xlu1 %8653 }
 0x57e   :  { %10481 = vmatprep.subr.bf16.mxu1 %v20027_v23  ;;  %9964 = vmatmul.mubr.bf16.gmra.mxu1 %v18118_v37  ;;  %v18150_v45 = vcombine.low %v9697_v10, %v9698_v61  ;;  %v12457_v11 = vld [vmem:[%s18823_s5 + $0xd0] sm:$0xff]   ;;  %8734 = vst.msk [vmem:[#allocation3 + $0x90] sm:$0xf] %vm20064_vm7, %v8654_v60  ;;  %vm20068_vm14 = vmmov %vm20064_vm7  ;;  %v9003_v63 = vshll.u32 %v17711_v16, 16  ;;  %v12459_v1 = vld [vmem:[%s18823_s5 + $0xc0] sm:$0xff]   ;;  %v9021_v62 = vshll.u32 %v17737_v51, 16 }
 0x57f   :  { %11828 = vmatprep.mubr.msk.bf16.mxu1 %vm20062_vm8, %v18096_v15  ;;  %11847 = vmatprep.mubr.msk.bf16.mxu0 %vm20063_vm5, %v18096_v15  ;;  %v8987_v19 = vor.u32 %v8985_v59, %v17707_v42  ;;  %v8656_v42 = vpop.permute.xlu0 %8655  ;;  %vm20069_vm1 = vmmov %vm20048_vm0  ;;  %v9700_v32 = vld [vmem:[#allocation3 + $0x60] sm:$0xff]  ;;  %v12460_v16 = vld [vmem:[%s18823_s5 + $0x118] sm:$0xff]   ;;  %v9016_v8 = vrot.slane %v17746_v36, 4 }
 0x580   :  { %8735 = vst.msk [vmem:[#allocation3 + $0x98] sm:$0xf] %vm20068_vm14, %v8656_v42  ;;  %v18175_v28 = vcombine.low %v9699_v12, %v9700_v32  ;;  %v9005_v9 = vor.u32 %v9003_v63, %v17744_v2  ;;  %vm20070_vm0 = vmmov %vm20063_vm5  ;;  %v9702_v27 = vld [vmem:[#allocation3 + $0x70] sm:$0xff]  ;;  %v9701_v2 = vld [vmem:[#allocation3 + $0x68] sm:$0xff]  ;;  %v9023_v51 = vor.u32 %v9021_v62, %v17777_v47 }
 0x581   :  { %10482 = vmatpush1.bf16.msra.mxu1 %v12456_v21  ;;  %v8988_v6 = vsel %vm13643_vm3, %v8980_v5, %v8987_v19  ;;  %9185 = vst.msk [vmem:[#allocation3 + $0x98] sm:$0xf] %vm20069_vm1, %v8997_v34  ;;  %v8998_v34 = vrot.slane %v17734_v29, 4  ;;  %vm20071_vm12 = vmmov %vm20070_vm0  ;;  %v18196_v22 = vld [vmem:[#allocation3 + $0x7c] ss:$8 sps:$4 sm:$0xff]   ;;  %v18199_v14 = vcombine.low %v9701_v2, %v9702_v27  ;;  %v12463_v10 = vld [vmem:[%s18823_s5 + $0x100] sm:$0xff]  }
 0x582   :  { %10483 = vmatprep.subr.bf16.mxu1 %v20027_v23  ;;  %9184 = vst.msk [vmem:[#allocation3 + $0x90] sm:$0xf] %vm20067_vm4, %v8988_v6  ;;  %vm20072_vm11 = vmmov %vm20064_vm7  ;;  %v12461_v31 = vld [vmem:[%s18823_s5 + $0x110] sm:$0xff]   ;;  %v12462_v41 = vld [vmem:[%s18823_s5 + $0x108] sm:$0xff]   ;;  %v9024_v36 = vsel %vm13643_vm3, %v9016_v8, %v9023_v51  ;;  %v9039_v6 = vshll.u32 %v17783_v24, 16 }
 0x583   :  { %v9006_v29 = vsel %vm13643_vm3, %v8998_v34, %v9005_v9  ;;  %vm20073_vm2 = vmmov %vm20069_vm1  ;;  %v9703_v61 = vld [vmem:[#allocation3 + $0x78] sm:$0xff]  ;;  %v18225_v5 = vld [vmem:[#allocation3 + $0x8c] ss:$8 sps:$4 sm:$0xff]   ;;  %v9057_v34 = vshll.u32 %v17806_v40, 16  ;;  %v9052_v9 = vrot.slane %v17832_v54, 4 }
 0x584   :  { %vm20074_vm6 = vmmov %vm20064_vm7  ;;  %v9704_v59 = vld [vmem:[#allocation3 + $0x80] sm:$0xff]  ;;  %v9041_v32 = vor.u32 %v9039_v6, %v17819_v44  ;;  %v18262_v44 = vld [vmem:[#allocation3 + $0xac] ss:$8 sps:$4 sm:$0xff]  }
 0x585   :  { %10484 = vmatpush1.bf16.msra.mxu1 %v12457_v11  ;;  %10153 = vmatmul.mubr.bf16.gmra.mxu0 %v18150_v45  ;;  %vm20075_vm10 = vmmov %vm20070_vm0  ;;  %v18227_v19 = vcombine.low %v9703_v61, %v9704_v59  ;;  %v9705_v11 = vld [vmem:[#allocation3 + $0x88] sm:$0xff]  ;;  %v18245_v60 = vld [vmem:[#allocation3 + $0x9c] ss:$8 sps:$4 sm:$0xff]  }
 0x586   :  { %10485 = vmatprep.subr.bf16.mxu1 %v20027_v23  ;;  %9972 = vmatmul.mubr.bf16.gmra.mxu1 %v18150_v45  ;;  %vm20076_vm15 = vmmov %vm20070_vm0  ;;  %v20097_v62 = vld [vmem:[#allocation10_spill] sm:$0xff]  ;;  %v18300_v51 = vld [vmem:[#allocation3 + $0xcc] ss:$8 sps:$4 sm:$0xff]  }
 0x587   :  { %11829 = vmatprep.mubr.msk.bf16.mxu1 %vm20065_vm9, %v18148_v39  ;;  %11848 = vmatprep.mubr.msk.bf16.mxu0 %vm20066_vm13, %v18148_v39  ;;  %vm20077_vm8 = vmmov %vm20069_vm1  ;;  %v18322_v6 = vld [vmem:[#allocation3 + $0xdc] ss:$8 sps:$4 sm:$0xff]   ;;  %v18372_v49 = vld [vmem:[#allocation3 + $0x10c] ss:$8 sps:$4 sm:$0xff]  }
 0x588   :  { %vm20078_vm5 = vmmov %vm20074_vm6  ;;  %v9707_v63 = vld [vmem:[#allocation3 + $0x98] sm:$0xff] }
 0x589   :  { %10486 = vmatpush1.bf16.msra.mxu1 %v12458_v55  ;;  %vm20079_vm7 = vmmov %vm20069_vm1  ;;  %v9034_v55 = vrot.slane %v17798_v53, 4 }
 0x58a   :  { %10487 = vmatprep.subr.bf16.mxu1 %v20027_v23  ;;  %vm20080_vm9 = vmmov %vm20070_vm0 }
 0x58b   :  { %vm20081_vm13 = vmmov %vm20070_vm0  ;;  %v9042_v24 = vsel %vm13643_vm3, %v9034_v55, %v9041_v32 }
 0x58c   :  { %v8658_v17 = vpop.permute.xlu1 %8657  ;;  %v18201_v38 = vpop.f32.mrf.mxu0  ;;  %vm20082_vm4 = vmmov %vm20078_vm5 }
 0x58d   :  { %10488 = vmatpush1.bf16.msra.mxu1 %v12459_v1  ;;  %10161 = vmatmul.mubr.bf16.gmra.mxu0 %v18175_v28  ;;  %8736 = vst.msk [vmem:[#allocation3 + $0xa0] sm:$0xf] %vm20072_vm11, %v8658_v17  ;;  %vm20083_vm14 = vmmov %vm20069_vm1 }
 0x58e   :  { %10497 = vmatprep.subr.bf16.mxu1 %v20027_v23  ;;  %9980 = vmatmul.mubr.bf16.gmra.mxu1 %v18175_v28  ;;  %9186 = vst.msk [vmem:[#allocation3 + $0xa0] sm:$0xf] %vm20073_vm2, %v9006_v29  ;;  %v10124_v35 = vpop.f32.mrf.mxu0  ;;  %vm20084_vm1 = vmmov %vm20070_vm0  ;;  %v18278_v29 = vld [vmem:[#allocation3 + $0xbc] ss:$8 sps:$4 sm:$0xff]  }
 0x58f   :  { %11830 = vmatprep.mubr.msk.bf16.mxu1 %vm20070_vm0, %v18172_v4  ;;  %11849 = vmatprep.mubr.msk.bf16.mxu0 %vm20071_vm12, %v18172_v4  ;;  %vm20085_vm12 = vmmov %vm20082_vm4 }
 0x590   :  { %v8660_v56 = vpop.permute.xlu0 %8659  ;;  %v18217_v52 = vpop.f32.mrf.mxu0  ;;  %vm20086_vm11 = vmmov %vm20073_vm2 }
 0x591   :  { %10498 = vmatpush2.bf16.msra.mxu1 %v12460_v16  ;;  %8737 = vst.msk [vmem:[#allocation3 + $0xa8] sm:$0xf] %vm20074_vm6, %v8660_v56  ;;  %vm20087_vm2 = vmmov %vm20082_vm4  ;;  %v9059_v16 = vor.u32 %v9057_v34, %v17834_v25  ;;  %v9075_v25 = vshll.u32 %v17862_v18, 16  ;;  %v18340_v34 = vld [vmem:[#allocation3 + $0xec] ss:$8 sps:$4 sm:$0xff]  }
 0x592   :  { %10499 = vmatprep.subr.bf16.mxu1 %v20027_v23  ;;  %9187 = vst.msk [vmem:[#allocation3 + $0xa8] sm:$0xf] %vm20077_vm8, %v18077_v7  ;;  %v10127_v21 = vpop.f32.mrf.mxu0  ;;  %vm20088_vm6 = vmmov %vm20079_vm7 }
 0x593   :  { %v8662_v7 = vpop.permute.xlu1 %8661  ;;  %vm20091_vm8 = vmmov %vm20087_vm2  ;;  %v9060_v40 = vsel %vm13643_vm3, %v9052_v9, %v9059_v16  ;;  %v9077_v8 = vor.u32 %v9075_v25, %v17966_v30  ;;  %v9106_v9 = vrot.slane %v17981_v20, 4 }
 0x594   :  { %8738 = vst.msk [vmem:[#allocation3 + $0xb0] sm:$0xf] %vm20078_vm5, %v8662_v7  ;;  %vm20092_vm5 = vmmov %vm20088_vm6  ;;  %v20103_v7 = vld [vmem:[#allocation8_spill] sm:$0xff] }
 0x595   :  { %10500 = vmatpush2.bf16.msra.mxu1 %v12461_v31  ;;  %10169 = vmatmul.mubr.bf16.gmra.mxu0 %v18199_v14  ;;  %9188 = vst.msk [vmem:[#allocation3 + $0xb0] sm:$0xf] %vm20079_vm7, %v9024_v36  ;;  %vm20093_vm7 = vmmov %vm20087_vm2  ;;  %v20105_v36 = vld [vmem:[#allocation6_spill] sm:$0xff] }
 0x596   :  { %10501 = vmatprep.subr.bf16.mxu1 %v20027_v23  ;;  %9988 = vmatmul.mubr.bf16.gmra.mxu1 %v18199_v14 }
 0x597   :  { %11831 = vmatprep.mubr.msk.bf16.mxu1 %vm20075_vm10, %v18196_v22  ;;  %11850 = vmatprep.mubr.msk.bf16.mxu0 %vm20076_vm15, %v18196_v22  ;;  %vm20089_vm10 = vmmov %vm20070_vm0 }
 0x598   :  { %vm20090_vm15 = vmmov %vm20070_vm0 }
 0x599   :  { %10502 = vmatpush2.bf16.msra.mxu1 %v12462_v41  ;;  %v8664_v47 = vpop.permute.xlu0 %8663  ;;  %v9709_v17 = vld [vmem:[#allocation3 + $0xa8] sm:$0xff]  ;;  %v9070_v41 = vrot.slane %v20097_v62, 4 }
 0x59a   :  { %10503 = vmatprep.subr.bf16.mxu1 %v20027_v23  ;;  %8739 = vst.msk [vmem:[#allocation3 + $0xb8] sm:$0xf] %vm20082_vm4, %v8664_v47  ;;  %v9706_v23 = vld [vmem:[#allocation3 + $0x90] sm:$0xff]  ;;  %vm20096_vm4 = vmmov %vm20092_vm5  ;;  %v9088_v47 = vrot.slane %v20105_v36, 4 }
 0x59b   :  { %9189 = vst.msk [vmem:[#allocation3 + $0xb8] sm:$0xf] %vm20083_vm14, %v18086_v0  ;;  %v18248_v42 = vcombine.low %v9705_v11, %v9706_v23  ;;  %v9708_v0 = vld [vmem:[#allocation3 + $0xa0] sm:$0xff]  ;;  %vm20098_vm14 = vmmov %vm20070_vm0 }
 0x59c   :  { %v18265_v1 = vcombine.low %v9707_v63, %v9708_v0  ;;  %v9710_v27 = vld [vmem:[#allocation3 + $0xb0] sm:$0xff] }
 0x59d   :  { %10504 = vmatpush2.bf16.msra.mxu1 %v12463_v10  ;;  %10177 = vmatmul.mubr.bf16.gmra.mxu0 %v18227_v19  ;;  %v18280_v2 = vcombine.low %v9709_v17, %v9710_v27  ;;  %v9093_v10 = vshll.u32 %v20103_v7, 16 }
 0x59e   :  { %9996 = vmatmul.mubr.bf16.gmra.mxu1 %v18227_v19  ;;  %11851 = vmatprep.mubr.msk.bf16.mxu0 %vm20081_vm13, %v18225_v5  ;;  %vm20095_vm13 = vmmov %vm20070_vm0 }
 0x59f   :  { %11832 = vmatprep.mubr.msk.bf16.mxu1 %vm20080_vm9, %v18225_v5  ;;  %vm20094_vm9 = vmmov %vm20070_vm0  ;;  %v9095_v23 = vor.u32 %v9093_v10, %v17971_v58 }
 0x5a1   :  { %v8666_v12 = vpop.permute.xlu1 %8665 }
 0x5a2   :  { %8740 = vst.msk [vmem:[#allocation3 + $0xc0] sm:$0xf] %vm20085_vm12, %v8666_v12  ;;  %v9711_v56 = vld [vmem:[#allocation3 + $0xb8] sm:$0xff]  ;;  %vm20101_vm12 = vmmov %vm20096_vm4  ;;  %v20112_v12 = vld [vmem:[#allocation11_spill] sm:$0xff] }
 0x5a3   :  { %v8668_v53 = vpop.permute.xlu0 %8667  ;;  %9190 = vst.msk [vmem:[#allocation3 + $0xc0] sm:$0xf] %vm20086_vm11, %v9042_v24  ;;  %v9111_v24 = vshll.u32 %v20112_v12, 16 }
 0x5a4   :  { %8741 = vst.msk [vmem:[#allocation3 + $0xc8] sm:$0xf] %vm20087_vm2, %v8668_v53 }
 0x5a5   :  { %10185 = vmatmul.mubr.bf16.gmra.mxu0 %v18248_v42  ;;  %9191 = vst.msk [vmem:[#allocation3 + $0xc8] sm:$0xf] %vm20088_vm6, %v18093_v13  ;;  %v9113_v16 = vor.u32 %v9111_v24, %v18039_v46 }
 0x5a6   :  { %10004 = vmatmul.mubr.bf16.gmra.mxu1 %v18248_v42  ;;  %11852 = vmatprep.mubr.msk.bf16.mxu0 %vm20070_vm0, %v18245_v60 }
 0x5a7   :  { %11833 = vmatprep.mubr.msk.bf16.mxu1 %vm20084_vm1, %v18245_v60  ;;  %vm20099_vm1 = vmmov %vm20070_vm0  ;;  %v9114_v20 = vsel %vm13643_vm3, %v9106_v9, %v9113_v16 }
 0x5a8   :  { %vm20100_vm0 = vmmov %vm20087_vm2 }
 0x5a9   :  { %vm20102_vm11 = vmmov %vm20100_vm0 }
 0x5aa   :  { %v9712_v54 = vld [vmem:[#allocation3 + $0xc0] sm:$0xff]  ;;  %vm20104_vm2 = vmmov %vm20096_vm4 }
 0x5ab   :  { %v18296_v35 = vcombine.low %v9711_v56, %v9712_v54  ;;  %vm20106_vm6 = vmmov %vm20099_vm1 }
 0x5ac   :  { %v9713_v30 = vld [vmem:[#allocation3 + $0xc8] sm:$0xff] }
 0x5ad   :  { %10193 = vmatmul.mubr.bf16.gmra.mxu0 %v18265_v1  ;;  %v8670_v13 = vpop.permute.xlu1 %8669 }
 0x5ae   :  { %10012 = vmatmul.mubr.bf16.gmra.mxu1 %v18265_v1  ;;  %11853 = vmatprep.mubr.msk.bf16.mxu0 %vm20090_vm15, %v18262_v44  ;;  %8742 = vst.msk [vmem:[#allocation3 + $0xd0] sm:$0xf] %vm20091_vm8, %v8670_v13  ;;  %v8672_v31 = vpop.permute.xlu0 %8671  ;;  %vm20108_vm15 = vmmov %vm20100_vm0  ;;  %v18362_v13 = vld [vmem:[#allocation3 + $0xfc] ss:$8 sps:$4 sm:$0xff]  }
 0x5af   :  { %11834 = vmatprep.mubr.msk.bf16.mxu1 %vm20089_vm10, %v18262_v44  ;;  %9192 = vst.msk [vmem:[#allocation3 + $0xd0] sm:$0xf] %vm20092_vm5, %v9060_v40  ;;  %vm20107_vm10 = vmmov %vm20099_vm1 }
 0x5b0   :  { %8743 = vst.msk [vmem:[#allocation3 + $0xd8] sm:$0xf] %vm20093_vm7, %v8672_v31  ;;  %vm20109_vm8 = vmmov %vm20104_vm2 }
 0x5b1   :  { %9193 = vst.msk [vmem:[#allocation3 + $0xd8] sm:$0xf] %vm20096_vm4, %v18109_v26  ;;  %v9078_v26 = vsel %vm13643_vm3, %v9070_v41, %v9077_v8  ;;  %vm20110_vm5 = vmmov %vm20100_vm0 }
 0x5b2   :  { %vm20111_vm7 = vmmov %vm20104_vm2 }
 0x5b3   :  { %vm20115_vm4 = vmmov %vm20100_vm0 }
 0x5b5   :  { %10201 = vmatmul.mubr.bf16.gmra.mxu0 %v18280_v2 }
 0x5b6   :  { %10020 = vmatmul.mubr.bf16.gmra.mxu1 %v18280_v2  ;;  %11854 = vmatprep.mubr.msk.bf16.mxu0 %vm20095_vm13, %v18278_v29  ;;  %v9714_v59 = vld [vmem:[#allocation3 + $0xd0] sm:$0xff]  ;;  %vm20114_vm13 = vmmov %vm20099_vm1 }
 0x5b7   :  { %11835 = vmatprep.mubr.msk.bf16.mxu1 %vm20094_vm9, %v18278_v29  ;;  %v18312_v61 = vcombine.low %v9713_v30, %v9714_v59  ;;  %vm20113_vm9 = vmmov %vm20099_vm1 }
 0x5b8   :  { %v9715_v32 = vld [vmem:[#allocation3 + $0xd8] sm:$0xff] }
 0x5b9   :  { %v8674_v18 = vpop.permute.xlu1 %8673 }
 0x5ba   :  { %8744 = vst.msk [vmem:[#allocation3 + $0xe0] sm:$0xf] %vm20100_vm0, %v8674_v18 }
 0x5bb   :  { %9194 = vst.msk [vmem:[#allocation3 + $0xe0] sm:$0xf] %vm20101_vm12, %v9078_v26  ;;  %vm20119_vm12 = vmmov %vm20115_vm4 }
 0x5bd   :  { %10209 = vmatmul.mubr.bf16.gmra.mxu0 %v18296_v35  ;;  %v8676_v21 = vpop.permute.xlu0 %8675 }
 0x5be   :  { %10028 = vmatmul.mubr.bf16.gmra.mxu1 %v18296_v35  ;;  %11855 = vmatprep.mubr.msk.bf16.mxu0 %vm20099_vm1, %v18300_v51  ;;  %8745 = vst.msk [vmem:[#allocation3 + $0xe8] sm:$0xf] %vm20102_vm11, %v8676_v21  ;;  %vm20117_vm1 = vmmov %vm20104_vm2 }
 0x5bf   :  { %11836 = vmatprep.mubr.msk.bf16.mxu1 %vm20098_vm14, %v18300_v51  ;;  %9195 = vst.msk [vmem:[#allocation3 + $0xe8] sm:$0xf] %vm20104_vm2, %v18114_v48  ;;  %v9096_v48 = vsel %vm13643_vm3, %v9088_v47, %v9095_v23  ;;  %vm20116_vm14 = vmmov %vm20100_vm0 }
 0x5c0   :  { %vm20118_vm0 = vmmov %vm20117_vm1 }
 0x5c1   :  { %vm20120_vm11 = vmmov %vm20118_vm0 }
 0x5c2   :  { %v9716_v11 = vld [vmem:[#allocation3 + $0xe0] sm:$0xff]  ;;  %vm20121_vm2 = vmmov %vm20106_vm6 }
 0x5c3   :  { %v18331_v0 = vcombine.low %v9715_v32, %v9716_v11  ;;  %vm20122_vm3 = vmmov %vm20121_vm2 }
 0x5c4   :  { %v8678_v55 = vpop.permute.xlu1 %8677 }
 0x5c5   :  { %10217 = vmatmul.mubr.bf16.gmra.mxu0 %v18312_v61  ;;  %8746 = vst.msk [vmem:[#allocation3 + $0xf0] sm:$0xf] %vm20108_vm15, %v8678_v55  ;;  %vm20126_vm15 = vmmov %vm20121_vm2 }
 0x5c6   :  { %10036 = vmatmul.mubr.bf16.gmra.mxu1 %v18312_v61  ;;  %11856 = vmatprep.mubr.msk.bf16.mxu0 %vm20107_vm10, %v18322_v6  ;;  %9196 = vst.msk [vmem:[#allocation3 + $0xf0] sm:$0xf] %vm20109_vm8, %v9096_v48  ;;  %v9717_v53 = vld [vmem:[#allocation3 + $0xe8] sm:$0xff]  ;;  %vm20125_vm10 = vmmov %vm20121_vm2 }
 0x5c7   :  { %11837 = vmatprep.mubr.msk.bf16.mxu1 %vm20106_vm6, %v18322_v6  ;;  %v8680_v58 = vpop.permute.xlu0 %8679  ;;  %vm20123_vm6 = vmmov %vm20121_vm2 }
 0x5c8   :  { %8747 = vst.msk [vmem:[#allocation3 + $0xf8] sm:$0xf] %vm20110_vm5, %v8680_v58  ;;  %vm20127_vm8 = vmmov %vm20121_vm2 }
 0x5c9   :  { %9197 = vst.msk [vmem:[#allocation3 + $0xf8] sm:$0xf] %vm20111_vm7, %v18127_v33  ;;  %vm20128_vm5 = vmmov %vm20121_vm2 }
 0x5ca   :  { %vm20129_vm7 = vmmov %vm20121_vm2 }
 0x5cd   :  { %10225 = vmatmul.mubr.bf16.gmra.mxu0 %v18331_v0  ;;  %v9718_v63 = vld [vmem:[#allocation3 + $0xf0] sm:$0xff] }
 0x5ce   :  { %10044 = vmatmul.mubr.bf16.gmra.mxu1 %v18331_v0  ;;  %v18344_v27 = vcombine.low %v9717_v53, %v9718_v63  ;;  %11857 = vmatprep.mubr.msk.bf16.mxu0 %vm20114_vm13, %v18340_v34  ;;  %vm20131_vm13 = vmmov %vm20121_vm2 }
 0x5cf   :  { %11838 = vmatprep.mubr.msk.bf16.mxu1 %vm20113_vm9, %v18340_v34  ;;  %vm20130_vm9 = vmmov %vm20121_vm2 }
 0x5d0   :  { %v8682_v33 = vpop.permute.xlu1 %8681 }
 0x5d1   :  { %8748 = vst.msk [vmem:[#allocation3 + $0x100] sm:$0xf] %vm20115_vm4, %v8682_v33  ;;  %vm20132_vm4 = vmmov %vm20121_vm2 }
 0x5d2   :  { %v8684_v17 = vpop.permute.xlu0 %8683  ;;  %9198 = vst.msk [vmem:[#allocation3 + $0x100] sm:$0xf] %vm20117_vm1, %v9114_v20  ;;  %vm20134_vm1 = vmmov %vm20121_vm2 }
 0x5d3   :  { %8749 = vst.msk [vmem:[#allocation3 + $0x108] sm:$0xf] %vm20116_vm14, %v8684_v17  ;;  %vm20133_vm14 = vmmov %vm20121_vm2 }
 0x5d4   :  { %9199 = vst.msk [vmem:[#allocation3 + $0x108] sm:$0xf] %vm20118_vm0, %v18133_v50  ;;  %v8686_v46 = vpop.permute.xlu1 %8685  ;;  %v20124_v50 = vld [vmem:[#allocation9_spill] sm:$0xff]  ;;  %vm20135_vm0 = vmmov %vm20134_vm1 }
 0x5d5   :  { %10233 = vmatmul.mubr.bf16.gmra.mxu0 %v18344_v27  ;;  %8750 = vst.msk [vmem:[#allocation3 + $0x110] sm:$0xf] %vm20119_vm12, %v8686_v46  ;;  %vm20136_vm12 = vmmov %vm20135_vm0 }
 0x5d6   :  { %10052 = vmatmul.mubr.bf16.gmra.mxu1 %v18344_v27  ;;  %9200 = vst.msk [vmem:[#allocation3 + $0x110] sm:$0xf] %vm20120_vm11, %v18017_v43  ;;  %11858 = vmatprep.mubr.msk.bf16.mxu0 %vm20122_vm3, %v18362_v13  ;;  %vm20137_vm11 = vmmov %vm20135_vm0 }
 0x5d7   :  { %11839 = vmatprep.mubr.msk.bf16.mxu1 %vm20121_vm2, %v18362_v13  ;;  %vm20138_vm2 = vmmov %vm20135_vm0 }
 0x5d8   :  { %vm20139_vm3 = vmmov %vm20135_vm0 }
 0x5d9   :  { %v18364_v40 = vld [vmem:[#allocation3 + $0xf8] ss:$8 sps:$4 sm:$0xff]  }
 0x5dd   :  { %10241 = vmatmul.mubr.bf16.gmra.mxu0 %v18364_v40  ;;  %v18376_v43 = vld [vmem:[#allocation3 + $0x108] ss:$8 sps:$4 sm:$0xff]  }
 0x5de   :  { %10060 = vmatmul.mubr.bf16.gmra.mxu1 %v18364_v40 }
 0x5df   :  { %11840 = vmatprep.mubr.msk.bf16.mxu1 %vm20123_vm6, %v18372_v49  ;;  %vm20140_vm6 = vmmov %vm20135_vm0 }
 0x5e6   :  { %10068 = vmatmul.mubr.bf16.gmra.mxu1 %v18376_v43 }
 0x5e7   :  { %11891 = vmatprep.mubr.msk.bf16.mxu1 %vm20125_vm10, %v20124_v50  ;;  %vm20141_vm10 = vmmov %vm20135_vm0 }
 0x5ee   :  { %10506 = vmatmul.mubr.bf16.vlgmr.msra.gmra.mxu1 %v17996_v3 }
 0x5ef   :  { %11892 = vmatprep.mubr.msk.bf16.mxu1 %vm20126_vm15, %v17999_v57  ;;  %vm20142_vm15 = vmmov %vm20135_vm0 }
 0x5f6   :  { %10514 = vmatmul.mubr.bf16.gmra.mxu1 %v18118_v37 }
 0x5f7   :  { %11893 = vmatprep.mubr.msk.bf16.mxu1 %vm20127_vm8, %v18096_v15  ;;  %vm20143_vm8 = vmmov %vm20135_vm0 }
 0x5fe   :  { %10522 = vmatmul.mubr.bf16.gmra.mxu1 %v18150_v45 }
 0x5ff   :  { %11894 = vmatprep.mubr.msk.bf16.mxu1 %vm20128_vm5, %v18148_v39  ;;  %vm20144_vm5 = vmmov %vm20135_vm0 }
 0x606   :  { %10530 = vmatmul.mubr.bf16.gmra.mxu1 %v18175_v28 }
 0x607   :  { %11895 = vmatprep.mubr.msk.bf16.mxu1 %vm20129_vm7, %v18172_v4  ;;  %vm20145_vm7 = vmmov %vm20135_vm0 }
 0x60e   :  { %10538 = vmatmul.mubr.bf16.gmra.mxu1 %v18199_v14 }
 0x60f   :  { %11896 = vmatprep.mubr.msk.bf16.mxu1 %vm20130_vm9, %v18196_v22  ;;  %vm20146_vm9 = vmmov %vm20135_vm0 }
 0x616   :  { %10546 = vmatmul.mubr.bf16.gmra.mxu1 %v18227_v19 }
 0x617   :  { %11897 = vmatprep.mubr.msk.bf16.mxu1 %vm20131_vm13, %v18225_v5  ;;  %vm20147_vm13 = vmmov %vm20135_vm0 }
 0x61e   :  { %10554 = vmatmul.mubr.bf16.gmra.mxu1 %v18248_v42 }
 0x61f   :  { %11898 = vmatprep.mubr.msk.bf16.mxu1 %vm20132_vm4, %v18245_v60  ;;  %vm20148_vm4 = vmmov %vm20135_vm0 }
 0x626   :  { %10562 = vmatmul.mubr.bf16.gmra.mxu1 %v18265_v1 }
 0x627   :  { %11899 = vmatprep.mubr.msk.bf16.mxu1 %vm20133_vm14, %v18262_v44  ;;  %vm20149_vm14 = vmmov %vm20135_vm0 }
 0x62b   :  { %v18405_v57 = vpop.f32.mrf.mxu1 }
 0x62c   :  { %v10130_v3 = vpop.f32.mrf.mxu0 }
 0x62d   :  { %v9951_v15 = vpop.f32.mrf.mxu1 }
 0x62e   :  { %v10132_v37 = vpop.f32.mrf.mxu0  ;;  %10570 = vmatmul.mubr.bf16.gmra.mxu1 %v18280_v2 }
 0x62f   :  { %v18407_v39 = vpop.f32.mrf.mxu1  ;;  %11900 = vmatprep.mubr.msk.bf16.mxu1 %vm20134_vm1, %v18278_v29  ;;  %vm20150_vm1 = vmmov %vm20135_vm0 }
 0x630   :  { %v10133_v45 = vpop.f32.mrf.mxu0 }
 0x631   :  { %v9954_v4 = vpop.f32.mrf.mxu1 }
 0x632   :  { %v10135_v28 = vpop.f32.mrf.mxu0 }
 0x633   :  { %v9957_v22 = vpop.f32.mrf.mxu1 }
 0x634   :  { %v10138_v14 = vpop.f32.mrf.mxu0  ;;  %v18412_v5 = vadd.f32 %v10130_v3, %v9957_v22  ;;  %v12381_v22 = vld [vmem:[#allocation3 + $0x11c] ss:$8 sps:$4 sm:$0xff]  }
 0x635   :  { %v9959_v19 = vpop.f32.mrf.mxu1 }
 0x636   :  { %v10140_v60 = vpop.f32.mrf.mxu0  ;;  %10578 = vmatmul.mubr.bf16.gmra.mxu1 %v18296_v35 }
 0x637   :  { %v9960_v42 = vpop.f32.mrf.mxu1  ;;  %11901 = vmatprep.mubr.msk.bf16.mxu1 %vm20135_vm0, %v18300_v51 }
 0x638   :  { %v10141_v44 = vpop.f32.mrf.mxu0  ;;  %v18414_v1 = vadd.f32 %v10133_v45, %v9960_v42 }
 0x639   :  { %v9962_v31 = vpop.f32.mrf.mxu1 }
 0x63a   :  { %v10143_v54 = vpop.f32.mrf.mxu0 }
 0x63b   :  { %v12383_v54 = vld [vmem:[#allocation3 + $0x118] ss:$8 sps:$4 sm:$0xff]  }
 0x63d   :  { %v10146_v25 = vpop.f32.mrf.mxu0 }
 0x63e   :  { %v9965_v2 = vpop.f32.mrf.mxu1  ;;  %10586 = vmatmul.mubr.bf16.gmra.mxu1 %v18312_v61 }
 0x63f   :  { %v18419_v29 = vadd.f32 %v10138_v14, %v9965_v2  ;;  %v10148_v62 = vpop.f32.mrf.mxu0  ;;  %11902 = vmatprep.mubr.msk.bf16.mxu1 %vm20136_vm12, %v18322_v6  ;;  %vm20151_vm12 = vmmov %vm20135_vm0 }
 0x640   :  { %v9967_v56 = vpop.f32.mrf.mxu1 }
 0x641   :  { %v10149_v8 = vpop.f32.mrf.mxu0 }
 0x642   :  { %v9968_v41 = vpop.f32.mrf.mxu1 }
 0x643   :  { %v18421_v18 = vadd.f32 %v10141_v44, %v9968_v41  ;;  %v10151_v59 = vpop.f32.mrf.mxu0 }
 0x644   :  { %v9970_v26 = vpop.f32.mrf.mxu1 }
 0x645   :  { %v10154_v30 = vpop.f32.mrf.mxu0 }
 0x646   :  { %v9973_v35 = vpop.f32.mrf.mxu1  ;;  %10594 = vmatmul.mubr.bf16.gmra.mxu1 %v18331_v0 }
 0x647   :  { %v18426_v51 = vadd.f32 %v10146_v25, %v9973_v35  ;;  %v10156_v7 = vpop.f32.mrf.mxu0  ;;  %11903 = vmatprep.mubr.msk.bf16.mxu1 %vm20137_vm11, %v18340_v34  ;;  %vm20152_vm11 = vmmov %vm20135_vm0 }
 0x648   :  { %v9975_v21 = vpop.f32.mrf.mxu1 }
 0x649   :  { %v10157_v36 = vpop.f32.mrf.mxu0 }
 0x64a   :  { %v9976_v10 = vpop.f32.mrf.mxu1 }
 0x64b   :  { %v18428_v47 = vadd.f32 %v10149_v8, %v9976_v10  ;;  %v10159_v11 = vpop.f32.mrf.mxu0 }
 0x64c   :  { %v9978_v23 = vpop.f32.mrf.mxu1 }
 0x64d   :  { %v10162_v55 = vpop.f32.mrf.mxu0 }
 0x64e   :  { %v9981_v61 = vpop.f32.mrf.mxu1  ;;  %10602 = vmatmul.mubr.bf16.gmra.mxu1 %v18344_v27 }
 0x64f   :  { %v18433_v6 = vadd.f32 %v10154_v30, %v9981_v61  ;;  %v10164_v48 = vpop.f32.mrf.mxu0  ;;  %11904 = vmatprep.mubr.msk.bf16.mxu1 %vm20138_vm2, %v18362_v13  ;;  %vm20153_vm2 = vmmov %vm20135_vm0 }
 0x650   :  { %v9983_v32 = vpop.f32.mrf.mxu1 }
 0x651   :  { %v10165_v12 = vpop.f32.mrf.mxu0 }
 0x652   :  { %v9984_v58 = vpop.f32.mrf.mxu1 }
 0x653   :  { %v18435_v24 = vadd.f32 %v10157_v36, %v9984_v58  ;;  %v10167_v63 = vpop.f32.mrf.mxu0 }
 0x654   :  { %v9986_v53 = vpop.f32.mrf.mxu1 }
 0x655   :  { %v10170_v9 = vpop.f32.mrf.mxu0 }
 0x656   :  { %v9989_v0 = vpop.f32.mrf.mxu1  ;;  %10610 = vmatmul.mubr.bf16.gmra.mxu1 %v18364_v40 }
 0x657   :  { %v18440_v34 = vadd.f32 %v10162_v55, %v9989_v0  ;;  %v10172_v33 = vpop.f32.mrf.mxu0  ;;  %11905 = vmatprep.mubr.msk.bf16.mxu1 %vm20139_vm3, %v18372_v49  ;;  %vm20154_vm3 = vmmov %vm20135_vm0 }
 0x658   :  { %v9991_v16 = vpop.f32.mrf.mxu1 }
 0x659   :  { %v10173_v20 = vpop.f32.mrf.mxu0 }
 0x65a   :  { %v9992_v17 = vpop.f32.mrf.mxu1 }
 0x65b   :  { %v18442_v46 = vadd.f32 %v10165_v12, %v9992_v17  ;;  %v10175_v3 = vpop.f32.mrf.mxu0 }
 0x65c   :  { %v9994_v50 = vpop.f32.mrf.mxu1 }
 0x65d   :  { %v10178_v15 = vpop.f32.mrf.mxu0 }
 0x65e   :  { %v9997_v27 = vpop.f32.mrf.mxu1  ;;  %10618 = vmatmul.mubr.bf16.gmra.mxu1 %v18376_v43 }
 0x65f   :  { %v18447_v13 = vadd.f32 %v10170_v9, %v9997_v27  ;;  %v10180_v45 = vpop.f32.mrf.mxu0  ;;  %11906 = vmatprep.mubr.msk.bf16.mxu1 %vm20140_vm6, %v12381_v22  ;;  %vm20155_vm6 = vmmov %vm20135_vm0 }
 0x660   :  { %v9999_v37 = vpop.f32.mrf.mxu1 }
 0x661   :  { %v10181_v28 = vpop.f32.mrf.mxu0 }
 0x662   :  { %v10000_v4 = vpop.f32.mrf.mxu1 }
 0x663   :  { %v18449_v14 = vadd.f32 %v10173_v20, %v10000_v4  ;;  %v10183_v40 = vpop.f32.mrf.mxu0 }
 0x664   :  { %v10002_v19 = vpop.f32.mrf.mxu1 }
 0x665   :  { %v10186_v42 = vpop.f32.mrf.mxu0 }
 0x666   :  { %v10005_v60 = vpop.f32.mrf.mxu1  ;;  %10626 = vmatmul.mubr.bf16.gmra.mxu1 %v12383_v54 }
 0x667   :  { %v18453_v49 = vadd.f32 %v10178_v15, %v10005_v60  ;;  %v10188_v31 = vpop.f32.mrf.mxu0 }
 0x668   :  { %v10007_v44 = vpop.f32.mrf.mxu1 }
 0x669   :  { %v10189_v25 = vpop.f32.mrf.mxu0 }
 0x66a   :  { %v10008_v2 = vpop.f32.mrf.mxu1 }
 0x66b   :  { %v18455_v56 = vadd.f32 %v10181_v28, %v10008_v2  ;;  %v10191_v41 = vpop.f32.mrf.mxu0 }
 0x66c   :  { %v10010_v62 = vpop.f32.mrf.mxu1 }
 0x66d   :  { %v10194_v43 = vpop.f32.mrf.mxu0 }
 0x66e   :  { %v10013_v8 = vpop.f32.mrf.mxu1 }
 0x66f   :  { %v18457_v26 = vadd.f32 %v10186_v42, %v10013_v8  ;;  %v10196_v35 = vpop.f32.mrf.mxu0 }
 0x670   :  { %v10015_v59 = vpop.f32.mrf.mxu1 }
 0x671   :  { %v10197_v21 = vpop.f32.mrf.mxu0 }
 0x672   :  { %v10016_v30 = vpop.f32.mrf.mxu1 }
 0x673   :  { %v18459_v7 = vadd.f32 %v10189_v25, %v10016_v30  ;;  %v10199_v36 = vpop.f32.mrf.mxu0 }
 0x674   :  { %v10018_v10 = vpop.f32.mrf.mxu1 }
 0x675   :  { %v10202_v11 = vpop.f32.mrf.mxu0 }
 0x676   :  { %v10021_v23 = vpop.f32.mrf.mxu1 }
 0x677   :  { %v18461_v61 = vadd.f32 %v10194_v43, %v10021_v23  ;;  %v10204_v32 = vpop.f32.mrf.mxu0 }
 0x678   :  { %v10023_v55 = vpop.f32.mrf.mxu1 }
 0x679   :  { %v10205_v58 = vpop.f32.mrf.mxu0 }
 0x67a   :  { %v10024_v48 = vpop.f32.mrf.mxu1 }
 0x67b   :  { %v18463_v12 = vadd.f32 %v10197_v21, %v10024_v48  ;;  %v10207_v63 = vpop.f32.mrf.mxu0 }
 0x67c   :  { %v10026_v53 = vpop.f32.mrf.mxu1 }
 0x67d   :  { %v10210_v9 = vpop.f32.mrf.mxu0 }
 0x67e   :  { %v10029_v0 = vpop.f32.mrf.mxu1 }
 0x67f   :  { %v18465_v16 = vadd.f32 %v10202_v11, %v10029_v0  ;;  %v10212_v17 = vpop.f32.mrf.mxu0 }
 0x680   :  { %v10031_v33 = vpop.f32.mrf.mxu1 }
 0x681   :  { %v10213_v50 = vpop.f32.mrf.mxu0 }
 0x682   :  { %v10032_v20 = vpop.f32.mrf.mxu1 }
 0x683   :  { %v18467_v3 = vadd.f32 %v10205_v58, %v10032_v20  ;;  %v10215_v15 = vpop.f32.mrf.mxu0 }
 0x684   :  { %v10034_v27 = vpop.f32.mrf.mxu1 }
 0x685   :  { %v10218_v45 = vpop.f32.mrf.mxu0 }
 0x686   :  { %v10037_v37 = vpop.f32.mrf.mxu1 }
 0x687   :  { %v18469_v4 = vadd.f32 %v10210_v9, %v10037_v37  ;;  %v10220_v22 = vpop.f32.mrf.mxu0 }
 0x688   :  { %v10039_v28 = vpop.f32.mrf.mxu1 }
 0x689   :  { %v10221_v40 = vpop.f32.mrf.mxu0 }
 0x68a   :  { %v10040_v19 = vpop.f32.mrf.mxu1 }
 0x68b   :  { %v18471_v60 = vadd.f32 %v10213_v50, %v10040_v19  ;;  %v10223_v44 = vpop.f32.mrf.mxu0 }
 0x68c   :  { %v10042_v42 = vpop.f32.mrf.mxu1 }
 0x68d   :  { %v10226_v54 = vpop.f32.mrf.mxu0  ;;  %v10123_v42 = vadd.f32 %v18201_v38, %v18405_v57  ;;  %v18505_v38 = vld [vmem:[%s18828_s7] ss:$0 sm:$0xff] }
 0x68e   :  { %v10045_v31 = vpop.f32.mrf.mxu1 }
 0x68f   :  { %v18473_v2 = vadd.f32 %v10218_v45, %v10045_v31  ;;  %v10228_v62 = vpop.f32.mrf.mxu0 }
 0x690   :  { %v10047_v25 = vpop.f32.mrf.mxu1  ;;  %v18496_v62 = vld [vmem:[%s18827_s6] ss:$0 sm:$0xff] }
 0x691   :  { %v10229_v8 = vpop.f32.mrf.mxu0  ;;  %v10126_v25 = vadd.f32 %v18217_v52, %v18407_v39 }
 0x692   :  { %v10048_v41 = vpop.f32.mrf.mxu1 }
 0x693   :  { %v18475_v43 = vadd.f32 %v10221_v40, %v10048_v41  ;;  %v10231_v35 = vpop.f32.mrf.mxu0 }
 0x694   :  { %v10050_v59 = vpop.f32.mrf.mxu1 }
 0x695   :  { %v10234_v21 = vpop.f32.mrf.mxu0 }
 0x696   :  { %v10053_v30 = vpop.f32.mrf.mxu1 }
 0x697   :  { %v18477_v10 = vadd.f32 %v10226_v54, %v10053_v30  ;;  %v10236_v23 = vpop.f32.mrf.mxu0 }
 0x698   :  { %v10055_v36 = vpop.f32.mrf.mxu1 }
 0x699   :  { %v10237_v55 = vpop.f32.mrf.mxu0 }
 0x69a   :  { %v10056_v11 = vpop.f32.mrf.mxu1 }
 0x69b   :  { %v18479_v32 = vadd.f32 %v10229_v8, %v10056_v11  ;;  %v10239_v58 = vpop.f32.mrf.mxu0  ;;  %v11907_v8 = vld [vmem:[%s18821_s0 + $0x100] sm:$0xff] }
 0x69c   :  { %v10058_v48 = vpop.f32.mrf.mxu1 }
 0x69d   :  { %v10242_v63 = vpop.f32.mrf.mxu0 }
 0x69e   :  { %v10061_v53 = vpop.f32.mrf.mxu1 }
 0x69f   :  { %v18481_v0 = vadd.f32 %v10234_v21, %v10061_v53  ;;  %v10244_v33 = vpop.f32.mrf.mxu0  ;;  %v11908_v21 = vld [vmem:[%s18821_s0 + $0x108] sm:$0xff]  ;;  %v11909_v53 = vld [vmem:[%s18821_s0 + $0x110] sm:$0xff] }
 0x6a0   :  { %v10063_v9 = vpop.f32.mrf.mxu1 }
 0x6a1   :  { %v10245_v20 = vpop.f32.mrf.mxu0 }
 0x6a2   :  { %v10064_v17 = vpop.f32.mrf.mxu1 }
 0x6a3   :  { %v18483_v50 = vadd.f32 %v10237_v55, %v10064_v17  ;;  %v10247_v15 = vpop.f32.mrf.mxu0 }
 0x6a4   :  { %v10066_v27 = vpop.f32.mrf.mxu1 }
 0x6a5   :  { %v11910_v27 = vld [vmem:[%s18821_s0 + $0x118] sm:$0xff] }
 0x6a6   :  { %v10069_v37 = vpop.f32.mrf.mxu1 }
 0x6a7   :  { %v18485_v45 = vadd.f32 %v10242_v63, %v10069_v37 }
 0x6a8   :  { %v10071_v28 = vpop.f32.mrf.mxu1 }
 0x6aa   :  { %v10072_v22 = vpop.f32.mrf.mxu1 }
 0x6ab   :  { %v18487_v19 = vadd.f32 %v10245_v20, %v10072_v22 }
 0x6ac   :  { %v10074_v40 = vpop.f32.mrf.mxu1 }
 0x6ae   :  { %v10507_v44 = vpop.f32.mrf.mxu1 }
 0x6af   :  { %v10634_v31 = vadd.f32 %v10507_v44, %v10123_v42  ;;  %v11911_v42 = vld [vmem:[%s18821_s0 + $0x120] sm:$0xff] }
 0x6b0   :  { %v10509_v54 = vpop.f32.mrf.mxu1 }
 0x6b1   :  { %v10666_v41 = vmul.f32 %v18496_v62, %v10634_v31 }
 0x6b2   :  { %v10510_v59 = vpop.f32.mrf.mxu1 }
 0x6b3   :  { %v10698_v57 = vadd.f32 %v18505_v38, %v10666_v41  ;;  %v10635_v52 = vadd.f32 %v10510_v59, %v10126_v25 }
 0x6b4   :  { %v10512_v39 = vpop.f32.mrf.mxu1 }
 0x6b5   :  { %v10762_v35 = vadd.f32 %v11907_v8, %v10698_v57  ;;  %v10667_v30 = vmul.f32 %v18496_v62, %v10635_v52  ;;  %v11912_v8 = vld [vmem:[%s18821_s0 + $0x128] sm:$0xff] }
 0x6b6   :  { %v10515_v36 = vpop.f32.mrf.mxu1 }
 0x6b7   :  { %11939 = vst.msk [vmem:[%s18829_s8 + $0x100] sm:$0xff] %vm20141_vm10, %v10762_v35  ;;  %v10699_v23 = vadd.f32 %v18505_v38, %v10667_v30  ;;  %v10636_v11 = vadd.f32 %v10515_v36, %v18412_v5  ;;  %v11913_v30 = vld [vmem:[%s18821_s0 + $0x130] sm:$0xff]  ;;  %vm20156_vm10 = vmmov %vm20135_vm0 }
 0x6b8   :  { %v10517_v55 = vpop.f32.mrf.mxu1 }
 0x6b9   :  { %v10763_v48 = vadd.f32 %v11908_v21, %v10699_v23  ;;  %v10668_v58 = vmul.f32 %v18496_v62, %v10636_v11 }
 0x6ba   :  { %v10518_v63 = vpop.f32.mrf.mxu1 }
 0x6bb   :  { %11940 = vst.msk [vmem:[%s18829_s8 + $0x108] sm:$0xff] %vm20142_vm15, %v10763_v48  ;;  %v10700_v9 = vadd.f32 %v18505_v38, %v10668_v58  ;;  %v10637_v33 = vadd.f32 %v10518_v63, %v18414_v1  ;;  %v11914_v48 = vld [vmem:[%s18821_s0 + $0x138] sm:$0xff]  ;;  %vm20157_vm15 = vmmov %vm20135_vm0 }
 0x6bc   :  { %v10520_v17 = vpop.f32.mrf.mxu1 }
 0x6bd   :  { %v10764_v5 = vadd.f32 %v11909_v53, %v10700_v9  ;;  %v10669_v20 = vmul.f32 %v18496_v62, %v10637_v33  ;;  %v11915_v17 = vld [vmem:[%s18821_s0 + $0x140] sm:$0xff] }
 0x6be   :  { %v10523_v15 = vpop.f32.mrf.mxu1 }
 0x6bf   :  { %11941 = vst.msk [vmem:[%s18829_s8 + $0x110] sm:$0xff] %vm20143_vm8, %v10764_v5  ;;  %v10701_v37 = vadd.f32 %v18505_v38, %v10669_v20  ;;  %v10638_v28 = vadd.f32 %v10523_v15, %v18419_v29  ;;  %vm20158_vm8 = vmmov %vm20135_vm0 }
 0x6c0   :  { %v10525_v22 = vpop.f32.mrf.mxu1 }
 0x6c1   :  { %v10765_v1 = vadd.f32 %v11910_v27, %v10701_v37  ;;  %v10670_v40 = vmul.f32 %v18496_v62, %v10638_v28  ;;  %v11916_v28 = vld [vmem:[%s18821_s0 + $0x148] sm:$0xff] }
 0x6c2   :  { %v10526_v44 = vpop.f32.mrf.mxu1 }
 0x6c3   :  { %11942 = vst.msk [vmem:[%s18829_s8 + $0x118] sm:$0xff] %vm20144_vm5, %v10765_v1  ;;  %v10702_v31 = vadd.f32 %v18505_v38, %v10670_v40  ;;  %v10639_v54 = vadd.f32 %v10526_v44, %v18421_v18  ;;  %vm20159_vm5 = vmmov %vm20135_vm0 }
 0x6c4   :  { %v10528_v25 = vpop.f32.mrf.mxu1 }
 0x6c5   :  { %v10766_v29 = vadd.f32 %v11911_v42, %v10702_v31  ;;  %v10671_v41 = vmul.f32 %v18496_v62, %v10639_v54  ;;  %v11917_v31 = vld [vmem:[%s18821_s0 + $0x150] sm:$0xff] }
 0x6c6   :  { %v10531_v59 = vpop.f32.mrf.mxu1 }
 0x6c7   :  { %11943 = vst.msk [vmem:[%s18829_s8 + $0x120] sm:$0xff] %vm20145_vm7, %v10766_v29  ;;  %v10703_v57 = vadd.f32 %v18505_v38, %v10671_v41  ;;  %v10640_v52 = vadd.f32 %v10531_v59, %v18426_v51  ;;  %v11918_v59 = vld [vmem:[%s18821_s0 + $0x158] sm:$0xff]  ;;  %vm20160_vm7 = vmmov %vm20135_vm0 }
 0x6c8   :  { %v10533_v39 = vpop.f32.mrf.mxu1 }
 0x6c9   :  { %v10767_v18 = vadd.f32 %v11912_v8, %v10703_v57  ;;  %v10672_v35 = vmul.f32 %v18496_v62, %v10640_v52 }
 0x6ca   :  { %v10534_v21 = vpop.f32.mrf.mxu1 }
 0x6cb   :  { %11944 = vst.msk [vmem:[%s18829_s8 + $0x128] sm:$0xff] %vm20146_vm9, %v10767_v18  ;;  %v10704_v36 = vadd.f32 %v18505_v38, %v10672_v35  ;;  %v10641_v23 = vadd.f32 %v10534_v21, %v18428_v47  ;;  %vm20161_vm9 = vmmov %vm20135_vm0 }
 0x6cc   :  { %v10536_v11 = vpop.f32.mrf.mxu1 }
 0x6cd   :  { %v10768_v51 = vadd.f32 %v11913_v30, %v10704_v36  ;;  %v10673_v55 = vmul.f32 %v18496_v62, %v10641_v23  ;;  %v11919_v30 = vld [vmem:[%s18821_s0 + $0x160] sm:$0xff] }
 0x6ce   :  { %v10539_v58 = vpop.f32.mrf.mxu1 }
 0x6cf   :  { %11945 = vst.msk [vmem:[%s18829_s8 + $0x130] sm:$0xff] %vm20147_vm13, %v10768_v51  ;;  %v10705_v53 = vadd.f32 %v18505_v38, %v10673_v55  ;;  %v10642_v63 = vadd.f32 %v10539_v58, %v18433_v6  ;;  %v11920_v55 = vld [vmem:[%s18821_s0 + $0x168] sm:$0xff]  ;;  %vm20162_vm13 = vmmov %vm20135_vm0 }
 0x6d0   :  { %v10541_v9 = vpop.f32.mrf.mxu1 }
 0x6d1   :  { %v10769_v47 = vadd.f32 %v11914_v48, %v10705_v53  ;;  %v10674_v33 = vmul.f32 %v18496_v62, %v10642_v63 }
 0x6d2   :  { %v10542_v5 = vpop.f32.mrf.mxu1 }
 0x6d3   :  { %11946 = vst.msk [vmem:[%s18829_s8 + $0x138] sm:$0xff] %vm20148_vm4, %v10769_v47  ;;  %v10706_v20 = vadd.f32 %v18505_v38, %v10674_v33  ;;  %v10643_v27 = vadd.f32 %v10542_v5, %v18435_v24  ;;  %v11921_v47 = vld [vmem:[%s18821_s0 + $0x170] sm:$0xff]  ;;  %vm20163_vm4 = vmmov %vm20135_vm0 }
 0x6d4   :  { %v10544_v15 = vpop.f32.mrf.mxu1 }
 0x6d5   :  { %v10770_v6 = vadd.f32 %v11915_v17, %v10706_v20  ;;  %v10675_v37 = vmul.f32 %v18496_v62, %v10643_v27  ;;  %v11922_v15 = vld [vmem:[%s18821_s0 + $0x178] sm:$0xff] }
 0x6d6   :  { %v10547_v22 = vpop.f32.mrf.mxu1 }
 0x6d7   :  { %11947 = vst.msk [vmem:[%s18829_s8 + $0x140] sm:$0xff] %vm20149_vm14, %v10770_v6  ;;  %v10707_v1 = vadd.f32 %v18505_v38, %v10675_v37  ;;  %v10644_v40 = vadd.f32 %v10547_v22, %v18440_v34  ;;  %vm20164_vm14 = vmmov %vm20135_vm0 }
 0x6d8   :  { %v10549_v42 = vpop.f32.mrf.mxu1 }
 0x6d9   :  { %v10771_v24 = vadd.f32 %v11916_v28, %v10707_v1  ;;  %v10676_v44 = vmul.f32 %v18496_v62, %v10644_v40  ;;  %v11923_v40 = vld [vmem:[%s18821_s0 + $0x180] sm:$0xff] }
 0x6da   :  { %v10550_v54 = vpop.f32.mrf.mxu1 }
 0x6db   :  { %11948 = vst.msk [vmem:[%s18829_s8 + $0x148] sm:$0xff] %vm20150_vm1, %v10771_v24  ;;  %v10708_v25 = vadd.f32 %v18505_v38, %v10676_v44  ;;  %v10645_v29 = vadd.f32 %v10550_v54, %v18442_v46  ;;  %vm20165_vm1 = vmmov %vm20135_vm0 }
 0x6dc   :  { %v10552_v41 = vpop.f32.mrf.mxu1 }
 0x6dd   :  { %v10772_v34 = vadd.f32 %v11917_v31, %v10708_v25  ;;  %v10677_v8 = vmul.f32 %v18496_v62, %v10645_v29  ;;  %v11924_v25 = vld [vmem:[%s18821_s0 + $0x188] sm:$0xff] }
 0x6de   :  { %v10555_v57 = vpop.f32.mrf.mxu1 }
 0x6df   :  { %11949 = vst.msk [vmem:[%s18829_s8 + $0x150] sm:$0xff] %vm20135_vm0, %v10772_v34  ;;  %v10709_v52 = vadd.f32 %v18505_v38, %v10677_v8  ;;  %v10646_v39 = vadd.f32 %v10555_v57, %v18447_v13  ;;  %v11925_v57 = vld [vmem:[%s18821_s0 + $0x190] sm:$0xff] }
 0x6e0   :  { %v10557_v18 = vpop.f32.mrf.mxu1 }
 0x6e1   :  { %v10773_v46 = vadd.f32 %v11918_v59, %v10709_v52  ;;  %v10678_v35 = vmul.f32 %v18496_v62, %v10646_v39 }
 0x6e2   :  { %v10558_v21 = vpop.f32.mrf.mxu1 }
 0x6e3   :  { %11950 = vst.msk [vmem:[%s18829_s8 + $0x158] sm:$0xff] %vm20151_vm12, %v10773_v46  ;;  %v10710_v36 = vadd.f32 %v18505_v38, %v10678_v35  ;;  %v10647_v23 = vadd.f32 %v10558_v21, %v18449_v14  ;;  %vm20166_vm12 = vmmov %vm20135_vm0 }
 0x6e4   :  { %v10560_v11 = vpop.f32.mrf.mxu1 }
 0x6e5   :  { %v10774_v13 = vadd.f32 %v11919_v30, %v10710_v36  ;;  %v10679_v51 = vmul.f32 %v18496_v62, %v10647_v23  ;;  %v11926_v30 = vld [vmem:[%s18821_s0 + $0x198] sm:$0xff] }
 0x6e6   :  { %v10563_v48 = vpop.f32.mrf.mxu1 }
 0x6e7   :  { %11951 = vst.msk [vmem:[%s18829_s8 + $0x160] sm:$0xff] %vm20152_vm11, %v10774_v13  ;;  %v10711_v58 = vadd.f32 %v18505_v38, %v10679_v51  ;;  %v10648_v53 = vadd.f32 %v10563_v48, %v18453_v49  ;;  %v11927_v51 = vld [vmem:[%s18821_s0 + $0x1a0] sm:$0xff]  ;;  %vm20167_vm11 = vmmov %vm20135_vm0 }
 0x6e8   :  { %v10565_v63 = vpop.f32.mrf.mxu1 }
 0x6e9   :  { %v10775_v14 = vadd.f32 %v11920_v55, %v10711_v58  ;;  %v10680_v9 = vmul.f32 %v18496_v62, %v10648_v53 }
 0x6ea   :  { %v10566_v33 = vpop.f32.mrf.mxu1 }
 0x6eb   :  { %11952 = vst.msk [vmem:[%s18829_s8 + $0x168] sm:$0xff] %vm20153_vm2, %v10775_v14  ;;  %v10712_v17 = vadd.f32 %v18505_v38, %v10680_v9  ;;  %v10649_v5 = vadd.f32 %v10566_v33, %v18455_v56  ;;  %v11928_v14 = vld [vmem:[%s18821_s0 + $0x1a8] sm:$0xff]  ;;  %vm20168_vm2 = vmmov %vm20135_vm0 }
 0x6ec   :  { %v10568_v20 = vpop.f32.mrf.mxu1 }
 0x6ed   :  { %v10776_v49 = vadd.f32 %v11921_v47, %v10712_v17  ;;  %v10681_v27 = vmul.f32 %v18496_v62, %v10649_v5  ;;  %v11929_v20 = vld [vmem:[%s18821_s0 + $0x1b0] sm:$0xff] }
 0x6ee   :  { %v10571_v6 = vpop.f32.mrf.mxu1 }
 0x6ef   :  { %11953 = vst.msk [vmem:[%s18829_s8 + $0x170] sm:$0xff] %vm20154_vm3, %v10776_v49  ;;  %v10713_v37 = vadd.f32 %v18505_v38, %v10681_v27  ;;  %v10650_v28 = vadd.f32 %v10571_v6, %v18457_v26  ;;  %vm20169_vm3 = vmmov %vm20135_vm0 }
 0x6f0   :  { %v10573_v22 = vpop.f32.mrf.mxu1 }
 0x6f1   :  { %v10777_v56 = vadd.f32 %v11922_v15, %v10713_v37  ;;  %v10682_v1 = vmul.f32 %v18496_v62, %v10650_v28  ;;  %v11930_v28 = vld [vmem:[%s18821_s0 + $0x1b8] sm:$0xff] }
 0x6f2   :  { %v10574_v42 = vpop.f32.mrf.mxu1 }
 0x6f3   :  { %11954 = vst.msk [vmem:[%s18829_s8 + $0x178] sm:$0xff] %vm20155_vm6, %v10777_v56  ;;  %v10714_v24 = vadd.f32 %v18505_v38, %v10682_v1  ;;  %v10651_v44 = vadd.f32 %v10574_v42, %v18459_v7  ;;  %vm20170_vm6 = vmmov %vm20135_vm0 }
 0x6f4   :  { %v10576_v31 = vpop.f32.mrf.mxu1 }
 0x6f5   :  { %v10778_v26 = vadd.f32 %v11923_v40, %v10714_v24  ;;  %v10683_v54 = vmul.f32 %v18496_v62, %v10651_v44  ;;  %v11931_v24 = vld [vmem:[%s18821_s0 + $0x1c0] sm:$0xff] }
 0x6f6   :  { %v10579_v29 = vpop.f32.mrf.mxu1 }
 0x6f7   :  { %11955 = vst.msk [vmem:[%s18829_s8 + $0x180] sm:$0xff] %vm20156_vm10, %v10778_v26  ;;  %v10715_v41 = vadd.f32 %v18505_v38, %v10683_v54  ;;  %v10652_v34 = vadd.f32 %v10579_v29, %v18461_v61  ;;  %v11932_v29 = vld [vmem:[%s18821_s0 + $0x1c8] sm:$0xff] }
 0x6f8   :  { %v10581_v8 = vpop.f32.mrf.mxu1 }
 0x6f9   :  { %v10779_v7 = vadd.f32 %v11924_v25, %v10715_v41  ;;  %v10684_v59 = vmul.f32 %v18496_v62, %v10652_v34 }
 0x6fa   :  { %v10582_v52 = vpop.f32.mrf.mxu1 }
 0x6fb   :  { %11956 = vst.msk [vmem:[%s18829_s8 + $0x188] sm:$0xff] %vm20157_vm15, %v10779_v7  ;;  %v10716_v39 = vadd.f32 %v18505_v38, %v10684_v59  ;;  %v10653_v18 = vadd.f32 %v10582_v52, %v18463_v12 }
 0x6fc   :  { %v10584_v46 = vpop.f32.mrf.mxu1 }
 0x6fd   :  { %v10780_v61 = vadd.f32 %v11925_v57, %v10716_v39  ;;  %v10685_v35 = vmul.f32 %v18496_v62, %v10653_v18  ;;  %v11933_v57 = vld [vmem:[%s18821_s0 + $0x1d0] sm:$0xff] }
 0x6fe   :  { %v10587_v21 = vpop.f32.mrf.mxu1 }
 0x6ff   :  { %11957 = vst.msk [vmem:[%s18829_s8 + $0x190] sm:$0xff] %vm20158_vm8, %v10780_v61  ;;  %v10717_v36 = vadd.f32 %v18505_v38, %v10685_v35  ;;  %v10654_v23 = vadd.f32 %v10587_v21, %v18465_v16  ;;  %v11934_v35 = vld [vmem:[%s18821_s0 + $0x1d8] sm:$0xff] }
 0x700   :  { %v10589_v11 = vpop.f32.mrf.mxu1 }
 0x701   :  { %v10781_v12 = vadd.f32 %v11926_v30, %v10717_v36  ;;  %v10686_v13 = vmul.f32 %v18496_v62, %v10654_v23 }
 0x702   :  { %v10590_v55 = vpop.f32.mrf.mxu1 }
 0x703   :  { %11958 = vst.msk [vmem:[%s18829_s8 + $0x198] sm:$0xff] %vm20159_vm5, %v10781_v12  ;;  %v10718_v48 = vadd.f32 %v18505_v38, %v10686_v13  ;;  %v10655_v58 = vadd.f32 %v10590_v55, %v18467_v3  ;;  %v11935_v12 = vld [vmem:[%s18821_s0 + $0x1e0] sm:$0xff] }
 0x704   :  { %v10592_v53 = vpop.f32.mrf.mxu1 }
 0x705   :  { %v10782_v16 = vadd.f32 %v11927_v51, %v10718_v48  ;;  %v10687_v63 = vmul.f32 %v18496_v62, %v10655_v58  ;;  %v11936_v53 = vld [vmem:[%s18821_s0 + $0x1e8] sm:$0xff] }
 0x706   :  { %v10595_v9 = vpop.f32.mrf.mxu1 }
 0x707   :  { %11959 = vst.msk [vmem:[%s18829_s8 + $0x1a0] sm:$0xff] %vm20160_vm7, %v10782_v16  ;;  %v10719_v47 = vadd.f32 %v18505_v38, %v10687_v63  ;;  %v10656_v33 = vadd.f32 %v10595_v9, %v18469_v4 }
 0x708   :  { %v10597_v17 = vpop.f32.mrf.mxu1 }
 0x709   :  { %v10783_v3 = vadd.f32 %v11928_v14, %v10719_v47  ;;  %v10688_v5 = vmul.f32 %v18496_v62, %v10656_v33  ;;  %v11937_v33 = vld [vmem:[%s18821_s0 + $0x1f0] sm:$0xff] }
 0x70a   :  { %v10598_v49 = vpop.f32.mrf.mxu1 }
 0x70b   :  { %11960 = vst.msk [vmem:[%s18829_s8 + $0x1a8] sm:$0xff] %vm20161_vm9, %v10783_v3  ;;  %v10720_v27 = vadd.f32 %v18505_v38, %v10688_v5  ;;  %v10657_v15 = vadd.f32 %v10598_v49, %v18471_v60 }
 0x70c   :  { %v10600_v6 = vpop.f32.mrf.mxu1 }
 0x70d   :  { %v10784_v4 = vadd.f32 %v11929_v20, %v10720_v27  ;;  %v10689_v37 = vmul.f32 %v18496_v62, %v10657_v15  ;;  %v11938_v27 = vld [vmem:[%s18821_s0 + $0x1f8] sm:$0xff] }
 0x70e   :  { %v10603_v22 = vpop.f32.mrf.mxu1 }
 0x70f   :  { %11961 = vst.msk [vmem:[%s18829_s8 + $0x1b0] sm:$0xff] %vm20162_vm13, %v10784_v4  ;;  %v10721_v56 = vadd.f32 %v18505_v38, %v10689_v37  ;;  %v10658_v1 = vadd.f32 %v10603_v22, %v18473_v2 }
 0x710   :  { %v10605_v40 = vpop.f32.mrf.mxu1 }
 0x711   :  { %v10785_v60 = vadd.f32 %v11930_v28, %v10721_v56  ;;  %v10690_v42 = vmul.f32 %v18496_v62, %v10658_v1 }
 0x712   :  { %v10606_v44 = vpop.f32.mrf.mxu1 }
 0x713   :  { %11962 = vst.msk [vmem:[%s18829_s8 + $0x1b8] sm:$0xff] %vm20163_vm4, %v10785_v60  ;;  %v10722_v31 = vadd.f32 %v18505_v38, %v10690_v42  ;;  %v10659_v26 = vadd.f32 %v10606_v44, %v18475_v43 }
 0x714   :  { %v10608_v54 = vpop.f32.mrf.mxu1 }
 0x715   :  { %v10786_v2 = vadd.f32 %v11931_v24, %v10722_v31  ;;  %v10691_v25 = vmul.f32 %v18496_v62, %v10659_v26 }
 0x716   :  { %v10611_v41 = vpop.f32.mrf.mxu1 }
 0x717   :  { %11963 = vst.msk [vmem:[%s18829_s8 + $0x1c0] sm:$0xff] %vm20164_vm14, %v10786_v2  ;;  %v10723_v34 = vadd.f32 %v18505_v38, %v10691_v25  ;;  %v10660_v8 = vadd.f32 %v10611_v41, %v18477_v10 }
 0x718   :  { %v10613_v7 = vpop.f32.mrf.mxu1 }
 0x719   :  { %v10787_v43 = vadd.f32 %v11932_v29, %v10723_v34  ;;  %v10692_v59 = vmul.f32 %v18496_v62, %v10660_v8 }
 0x71a   :  { %v10614_v52 = vpop.f32.mrf.mxu1 }
 0x71b   :  { %11964 = vst.msk [vmem:[%s18829_s8 + $0x1c8] sm:$0xff] %vm20165_vm1, %v10787_v43  ;;  %v10724_v39 = vadd.f32 %v18505_v38, %v10692_v59  ;;  %v10661_v18 = vadd.f32 %v10614_v52, %v18479_v32 }
 0x71c   :  { %v10616_v46 = vpop.f32.mrf.mxu1 }
 0x71d   :  { %v10788_v10 = vadd.f32 %v11933_v57, %v10724_v39  ;;  %v10693_v61 = vmul.f32 %v18496_v62, %v10661_v18 }
 0x71e   :  { %v10619_v30 = vpop.f32.mrf.mxu1 }
 0x71f   :  { %11965 = vst.msk [vmem:[%s18829_s8 + $0x1d0] sm:$0xff] %vm20135_vm0, %v10788_v10  ;;  %v10725_v21 = vadd.f32 %v18505_v38, %v10693_v61  ;;  %v10662_v36 = vadd.f32 %v10619_v30, %v18481_v0 }
 0x720   :  { %v10621_v23 = vpop.f32.mrf.mxu1 }
 0x721   :  { %v10789_v32 = vadd.f32 %v11934_v35, %v10725_v21  ;;  %v10694_v11 = vmul.f32 %v18496_v62, %v10662_v36 }
 0x722   :  { %v10622_v13 = vpop.f32.mrf.mxu1 }
 0x723   :  { %11966 = vst.msk [vmem:[%s18829_s8 + $0x1d8] sm:$0xff] %vm20166_vm12, %v10789_v32  ;;  %v10726_v51 = vadd.f32 %v18505_v38, %v10694_v11  ;;  %v10663_v55 = vadd.f32 %v10622_v13, %v18483_v50 }
 0x724   :  { %v10624_v48 = vpop.f32.mrf.mxu1 }
 0x725   :  { %v10790_v0 = vadd.f32 %v11935_v12, %v10726_v51  ;;  %v10695_v58 = vmul.f32 %v18496_v62, %v10663_v55 }
 0x726   :  { %v10627_v16 = vpop.f32.mrf.mxu1 }
 0x727   :  { %11967 = vst.msk [vmem:[%s18829_s8 + $0x1e0] sm:$0xff] %vm20167_vm11, %v10790_v0  ;;  %v10727_v63 = vadd.f32 %v18505_v38, %v10695_v58  ;;  %v10664_v14 = vadd.f32 %v10627_v16, %v18485_v45 }
 0x728   :  { %v10629_v9 = vpop.f32.mrf.mxu1 }
 0x729   :  { %v10791_v50 = vadd.f32 %v11936_v53, %v10727_v63  ;;  %v10696_v47 = vmul.f32 %v18496_v62, %v10664_v14 }
 0x72a   :  { %v10630_v17 = vpop.f32.mrf.mxu1 }
 0x72b   :  { %11968 = vst.msk [vmem:[%s18829_s8 + $0x1e8] sm:$0xff] %vm20168_vm2, %v10791_v50  ;;  %v10728_v3 = vadd.f32 %v18505_v38, %v10696_v47  ;;  %v10665_v5 = vadd.f32 %v10630_v17, %v18487_v19 }
 0x72c   :  { %v10632_v20 = vpop.f32.mrf.mxu1 }
 0x72d   :  { %v10792_v45 = vadd.f32 %v11937_v33, %v10728_v3  ;;  %v10697_v49 = vmul.f32 %v18496_v62, %v10665_v5 }
 0x72f   :  { %11969 = vst.msk [vmem:[%s18829_s8 + $0x1f0] sm:$0xff] %vm20169_vm3, %v10792_v45  ;;  %v10729_v15 = vadd.f32 %v18505_v38, %v10697_v49 }
 0x731   :  { %v10793_v6 = vadd.f32 %v11938_v27, %v10729_v15 }
 0x733   :  { %11970 = vst.msk [vmem:[%s18829_s8 + $0x1f8] sm:$0xff] %vm20170_vm6, %v10793_v6 }

</bundles_post_ra>
